<compile_context>
chip_gen: v7x
topology: tpu7x:2x2x1
jax: 0.10.0
libtpu: 0.0.40
codegen_flags: <defaults>
</compile_context>

<pallas_src>
import math

import jax
import jax.numpy as jnp
from jax.experimental import pallas as pl
from jax.experimental.pallas import tpu as pltpu


# ------------------------------ fused kernel ------------------------------- #

def _fused_forward_kernel(patches_ref, avg_ref,                 # (B_pad*S,32) bf16, (B_pad,B_pad*S) bf16
                          stem_w_ref, stem_b_ref,               # (32,128) bf16, (1,128) f32
                          wp_ref, bp_ref,                       # (128,1280) bf16, (1,1280) f32
                          wc_ref, bc_ref,                       # (1280,1024) bf16, (1,1024) f32
                          w1_ref, b1_ref,                       # (1024,512) bf16, (1,512) f32   [per-head block]
                          w2_ref, b2_ref,                       # (512,256) bf16,  (1,256) f32   [per-head block]
                          w3_ref, b3_ref,                       # (256,128) bf16,  (1,128) f32   [per-head block]
                          w4_ref, b4_ref,                       # (128,128) bf16,  (1,128) f32   [per-head block]
                          w5_ref, b5_ref,                       # (128,128) bf16,  (1,128) f32   [per-head block]
                          o_ref):                               # (1, B_pad, 128) f32            [per-head block]
    bf16 = jnp.bfloat16

    # ---- surrogate backbone (recomputed every head step: ~20 MFLOP on 8 rows,
    #      negligible vs per-head weight DMA; keeps grid steps independent so the
    #      head axis can be megacore-parallel on v7x) ----
    y = jnp.dot(patches_ref[...], stem_w_ref[...],
                preferred_element_type=jnp.float32) + stem_b_ref[...]       # (B_pad*S, 128)
    f = y * jax.nn.sigmoid(y)                                               # SiLU
    # global average pool = one block-averaging matmul (no per-batch loop / concat)
    pooled = jnp.dot(avg_ref[...], f.astype(bf16),
                     preferred_element_type=jnp.float32)                    # (B_pad, 128)

    h = jnp.dot(pooled.astype(bf16), wp_ref[...],
                preferred_element_type=jnp.float32) + bp_ref[...]           # (B_pad, 1280)
    h = h * jax.nn.sigmoid(h)
    logits = jnp.dot(h.astype(bf16), wc_ref[...],
                     preferred_element_type=jnp.float32) + bc_ref[...]      # (B_pad, 1024)
    logits_b = logits.astype(bf16)

    # ---- one level head per grid step (weights arrive as lane-dense blocks) ----
    h1 = jnp.maximum(jnp.dot(logits_b, w1_ref[...],
                             preferred_element_type=jnp.float32) + b1_ref[...], 0.0)
    h2 = jnp.maximum(jnp.dot(h1.astype(bf16), w2_ref[...],
                             preferred_element_type=jnp.float32) + b2_ref[...], 0.0)
    h3 = jnp.maximum(jnp.dot(h2.astype(bf16), w3_ref[...],
                             preferred_element_type=jnp.float32) + b3_ref[...], 0.0)
    h4 = jnp.maximum(jnp.dot(h3.astype(bf16), w4_ref[...],
                             preferred_element_type=jnp.float32) + b4_ref[...], 0.0)
    out = jnp.dot(h4.astype(bf16), w5_ref[...],
                  preferred_element_type=jnp.float32) + b5_ref[...]         # (B_pad, 128)
    o_ref[0, :, :] = out


def fused_forward(patches, avg, pp):
    B_pad = avg.shape[0]
    full = lambda i: (0, 0)     # resident operand: same block every grid step (fetched once)
    head = lambda i: (0, i)     # per-head column block (pipelined across the head grid)

    in_specs = [
        pl.BlockSpec(patches.shape, full),
        pl.BlockSpec(avg.shape, full),
        pl.BlockSpec(pp["stem_w"].shape, full),
        pl.BlockSpec(pp["stem_b"].shape, full),
        pl.BlockSpec(pp["wp"].shape, full),
        pl.BlockSpec(pp["bp"].shape, full),
        pl.BlockSpec(pp["wc"].shape, full),
        pl.BlockSpec(pp["bc"].shape, full),
        pl.BlockSpec((1024, 512), head), pl.BlockSpec((1, 512), head),
        pl.BlockSpec((512, 256), head), pl.BlockSpec((1, 256), head),
        pl.BlockSpec((256, 128), head), pl.BlockSpec((1, 128), head),
        pl.BlockSpec((128, 128), head), pl.BlockSpec((1, 128), head),
        pl.BlockSpec((128, 128), head), pl.BlockSpec((1, 128), head),
    ]
    return pl.pallas_call(
        _fused_forward_kernel,
        out_shape=jax.ShapeDtypeStruct((6, B_pad, 128), jnp.float32),
        grid=(6,),
        in_specs=in_specs,
        out_specs=pl.BlockSpec((1, B_pad, 128), lambda i: (i, 0, 0)),
        compiler_params=pltpu.CompilerParams(
            dimension_semantics=("parallel",),        # heads are independent; v7x shards 3/core
            vmem_limit_bytes=24 * 1024 * 1024),       # ~9 MB used incl. double-buffered blocks
    )(patches, avg,
      pp["stem_w"], pp["stem_b"], pp["wp"], pp["bp"], pp["wc"], pp["bc"],
      pp["w1"], pp["b1"], pp["w2"], pp["b2"], pp["w3"], pp["b3"],
      pp["w4"], pp["b4"], pp["w5"], pp["b5"])


# ----------------------------- parameter setup ----------------------------- #

def _linear_init(key, fan_in, fan_out):
    # PyTorch-style uniform(-1/sqrt(fan_in), 1/sqrt(fan_in)) init (deterministic).
    kw, kb = jax.random.split(key)
    bound = 1.0 / math.sqrt(fan_in)
    w = jax.random.uniform(kw, (fan_in, fan_out), jnp.float32, -bound, bound)
    b = jax.random.uniform(kb, (1, fan_out), jnp.float32, -bound, bound)
    return w, b


def init_params(key):
    keys = jax.random.split(key, 16)
    params = {}
    # surrogate backbone
    cin, cstem = 3, 24
    bound = 1.0 / math.sqrt(cin * 9)
    params["stem_w"] = jax.random.uniform(keys[0], (cin * 9, cstem), jnp.float32,
                                          -bound, bound)
    params["stem_b"] = jax.random.uniform(keys[1], (1, cstem), jnp.float32,
                                          -bound, bound)
    params["proj"] = _linear_init(keys[2], cstem, 1280)
    params["cls"] = _linear_init(keys[3], 1280, 1000)
    # six level heads
    heads = []
    hkeys = jax.random.split(keys[4], 6)
    for level in range(1, 7):
        dims = [1000, 512, 256, 128, 64, level]
        lkeys = jax.random.split(hkeys[level - 1], 5)
        layers = [_linear_init(lkeys[j], dims[j], dims[j + 1]) for j in range(5)]
        heads.append(layers)
    params["heads"] = heads
    return params


def pack_params(p):
    """One-time host-side padding / concatenation / bf16 cast for the fused kernel."""
    f32, bf16 = jnp.float32, jnp.bfloat16

    stem_w = jnp.zeros((32, 128), f32).at[:27, :24].set(p["stem_w"]).astype(bf16)
    stem_b = jnp.zeros((1, 128), f32).at[:, :24].set(p["stem_b"])

    wp, bp = p["proj"]                                      # (24,1280), (1,1280)
    wp_p = jnp.zeros((128, 1280), f32).at[:24, :].set(wp).astype(bf16)

    wc, bc = p["cls"]                                       # (1280,1000), (1,1000)
    wc_p = jnp.zeros((1280, 1024), f32).at[:, :1000].set(wc).astype(bf16)
    bc_p = jnp.zeros((1, 1024), f32).at[:, :1000].set(bc)

    w1s, b1s, w2s, b2s, w3s, b3s, w4s, b4s, w5s, b5s = ([] for _ in range(10))
    for layers in p["heads"]:
        (w1, b1), (w2, b2), (w3, b3), (w4, b4), (w5, b5) = layers
        w1s.append(jnp.zeros((1024, 512), f32).at[:1000, :].set(w1)); b1s.append(b1)
        w2s.append(w2); b2s.append(b2)
        w3s.append(w3); b3s.append(b3)
        # layer-4 output and layer-5 input/output padded 64 -> 128 (lane-dense vregs;
        # zero pads keep the math exact, extra output cols sliced off outside)
        w4s.append(jnp.zeros((128, 128), f32).at[:, :64].set(w4))
        b4s.append(jnp.zeros((1, 128), f32).at[:, :64].set(b4))
        lvl = w5.shape[1]
        w5s.append(jnp.zeros((128, 128), f32).at[:64, :lvl].set(w5))
        b5s.append(jnp.zeros((1, 128), f32).at[:, :lvl].set(b5))

    cat = lambda xs: jnp.concatenate(xs, axis=1)
    return dict(
        stem_w=stem_w, stem_b=stem_b, wp=wp_p, bp=bp, wc=wc_p, bc=bc_p,
        w1=cat(w1s).astype(bf16), b1=cat(b1s),              # (1024,3072), (1,3072)
        w2=cat(w2s).astype(bf16), b2=cat(b2s),              # (512,1536),  (1,1536)
        w3=cat(w3s).astype(bf16), b3=cat(b3s),              # (256,768),   (1,768)
        w4=cat(w4s).astype(bf16), b4=cat(b4s),              # (128,768),   (1,768)
        w5=cat(w5s).astype(bf16), b5=cat(b5s),              # (128,768),   (1,768)
    )


# ------------------------------ forward pass ------------------------------- #

def _im2col_3x3_s2_p1(x_nchw):
    # plain-JAX glue: extract 3x3/stride-2/pad-1 patches (matches PyTorch conv geom).
    B, C, H, W = x_nchw.shape
    Ho = (H + 2 - 3) // 2 + 1
    Wo = (W + 2 - 3) // 2 + 1
    xp = jnp.pad(x_nchw, ((0, 0), (0, 0), (1, 1), (1, 1)))
    cols = []
    for dh in range(3):
        for dw in range(3):
            cols.append(xp[:, :, dh:dh + 2 * Ho:2, dw:dw + 2 * Wo:2])  # (B,C,Ho,Wo)
    patches = jnp.stack(cols, axis=2)                # (B, C, 9, Ho, Wo)
    patches = patches.transpose(0, 3, 4, 1, 2)       # (B, Ho, Wo, C, 9)
    return patches.reshape(B * Ho * Wo, C * 9), Ho, Wo


def model_forward(packed, x_nchw):
    B = x_nchw.shape[0]
    B_pad = ((B + 7) // 8) * 8                       # pad batch to full sublanes
    x_pad = jnp.pad(x_nchw, ((0, B_pad - B), (0, 0), (0, 0), (0, 0)))

    patches, Ho, Wo = _im2col_3x3_s2_p1(x_pad)       # (B_pad*S, 27)
    S = Ho * Wo
    patches = jnp.pad(patches, ((0, 0), (0, 32 - patches.shape[1])))      # K 27 -> 32
    patches = patches.astype(jnp.bfloat16)

    # block-averaging matrix for global-avg-pool: (B_pad, B_pad*S), 1/S per row block
    avg = (jnp.kron(jnp.eye(B_pad, dtype=jnp.float32),
                    jnp.ones((1, S), jnp.float32)) / float(S)).astype(jnp.bfloat16)

    out = fused_forward(patches, avg, packed)        # (6, B_pad, 128)

    predictions = {}
    for i in range(6):
        predictions[f"level_{i + 1}"] = out[i, :B, :i + 1]
    return predictions


# ---------------------------------- main ----------------------------------- #

if __name__ == "__main__":
    key = jax.random.PRNGKey(0)
    pkey, xkey = jax.random.split(key)
    params = init_params(pkey)
    packed = pack_params(params)

    # small input consistent with the module's NCHW image input
    x = jax.random.normal(xkey, (2, 3, 16, 16), dtype=jnp.float32)

    preds = jax.jit(model_forward)(packed, x)
    preds = jax.tree_util.tree_map(jax.block_until_ready, preds)

    # sanity-check shapes: level_i -> (B, i)
    for i in range(1, 7):
        out = preds[f"level_{i}"]
        assert out.shape == (2, i), (i, out.shape)
        assert out.dtype == jnp.float32

    print("KERNEL_OK")
</pallas_src>

<mosaic_0001>
module attributes {stable_mosaic.version = 11 : i64} {
  func.func @_fused_forward_kernel(%arg0: i32, %arg1: memref<512x32xbf16, #tpu.memory_space<vmem>>, %arg2: memref<8x512xbf16, #tpu.memory_space<vmem>>, %arg3: memref<32x128xbf16, #tpu.memory_space<vmem>>, %arg4: memref<1x128xf32, #tpu.memory_space<vmem>>, %arg5: memref<128x1280xbf16, #tpu.memory_space<vmem>>, %arg6: memref<1x1280xf32, #tpu.memory_space<vmem>>, %arg7: memref<1280x1024xbf16, #tpu.memory_space<vmem>>, %arg8: memref<1x1024xf32, #tpu.memory_space<vmem>>, %arg9: memref<1024x512xbf16, #tpu.memory_space<vmem>>, %arg10: memref<1x512xf32, #tpu.memory_space<vmem>>, %arg11: memref<512x256xbf16, #tpu.memory_space<vmem>>, %arg12: memref<1x256xf32, #tpu.memory_space<vmem>>, %arg13: memref<256x128xbf16, #tpu.memory_space<vmem>>, %arg14: memref<1x128xf32, #tpu.memory_space<vmem>>, %arg15: memref<128x128xbf16, #tpu.memory_space<vmem>>, %arg16: memref<1x128xf32, #tpu.memory_space<vmem>>, %arg17: memref<128x128xbf16, #tpu.memory_space<vmem>>, %arg18: memref<1x128xf32, #tpu.memory_space<vmem>>, %arg19: memref<1x8x128xf32, #tpu.memory_space<vmem>>) attributes {dimension_semantics = [#tpu.dimension_semantics<parallel>], iteration_bounds = array<i64: 6>, scalar_prefetch = 0 : i64, scratch_operands = 0 : i64, tpu.core_type = #tpu.core_type<tc>, window_params = [{pipeline_mode = #tpu.pipeline_mode<synchronous>, transform_indices = @transform_0, window_bounds = array<i64: 512, 32>}, {pipeline_mode = #tpu.pipeline_mode<synchronous>, transform_indices = @transform_1, window_bounds = array<i64: 8, 512>}, {pipeline_mode = #tpu.pipeline_mode<synchronous>, transform_indices = @transform_2, window_bounds = array<i64: 32, 128>}, {pipeline_mode = #tpu.pipeline_mode<synchronous>, transform_indices = @transform_3, window_bounds = array<i64: 1, 128>}, {pipeline_mode = #tpu.pipeline_mode<synchronous>, transform_indices = @transform_4, window_bounds = array<i64: 128, 1280>}, {pipeline_mode = #tpu.pipeline_mode<synchronous>, transform_indices = @transform_5, window_bounds = array<i64: 1, 1280>}, {pipeline_mode = #tpu.pipeline_mode<synchronous>, transform_indices = @transform_6, window_bounds = array<i64: 1280, 1024>}, {pipeline_mode = #tpu.pipeline_mode<synchronous>, transform_indices = @transform_7, window_bounds = array<i64: 1, 1024>}, {transform_indices = @transform_8, window_bounds = array<i64: 1024, 512>}, {transform_indices = @transform_9, window_bounds = array<i64: 1, 512>}, {transform_indices = @transform_10, window_bounds = array<i64: 512, 256>}, {transform_indices = @transform_11, window_bounds = array<i64: 1, 256>}, {transform_indices = @transform_12, window_bounds = array<i64: 256, 128>}, {transform_indices = @transform_13, window_bounds = array<i64: 1, 128>}, {transform_indices = @transform_14, window_bounds = array<i64: 128, 128>}, {transform_indices = @transform_15, window_bounds = array<i64: 1, 128>}, {transform_indices = @transform_16, window_bounds = array<i64: 128, 128>}, {transform_indices = @transform_17, window_bounds = array<i64: 1, 128>}, {transform_indices = @transform_18, window_bounds = array<i64: 1, 8, 128>}]} {
    %c0 = arith.constant 0 : index
    %c0_0 = arith.constant 0 : index
    %0 = vector.load %arg1[%c0, %c0_0] : memref<512x32xbf16, #tpu.memory_space<vmem>>, vector<512x32xbf16>
    %c0_1 = arith.constant 0 : index
    %c0_2 = arith.constant 0 : index
    %1 = vector.load %arg3[%c0_1, %c0_2] : memref<32x128xbf16, #tpu.memory_space<vmem>>, vector<32x128xbf16>
    %cst = arith.constant dense<0.000000e+00> : vector<512x128xf32>
    %2 = tpu.matmul %0, %1, %cst {dimension_numbers = #tpu.dot_dimension_numbers<[1], [0], [0], [1], [0, 0, 1, 1], [], []>} : vector<512x32xbf16>, vector<32x128xbf16>, vector<512x128xf32> -> vector<512x128xf32>
    %c0_3 = arith.constant 0 : index
    %c0_4 = arith.constant 0 : index
    %3 = vector.load %arg4[%c0_3, %c0_4] : memref<1x128xf32, #tpu.memory_space<vmem>>, vector<1x128xf32>
    %4 = vector.broadcast %3 : vector<1x128xf32> to vector<512x128xf32>
    %5 = arith.addf %2, %4 : vector<512x128xf32>
    %6 = arith.negf %5 : vector<512x128xf32>
    %7 = math.exp %6 : vector<512x128xf32>
    %cst_5 = arith.constant 1.000000e+00 : f32
    %8 = vector.broadcast %cst_5 : f32 to vector<512x128xf32>
    %9 = arith.addf %8, %7 : vector<512x128xf32>
    %10 = arith.divf %8, %9 : vector<512x128xf32>
    %11 = arith.mulf %5, %10 : vector<512x128xf32>
    %c0_6 = arith.constant 0 : index
    %c0_7 = arith.constant 0 : index
    %12 = vector.load %arg2[%c0_6, %c0_7] : memref<8x512xbf16, #tpu.memory_space<vmem>>, vector<8x512xbf16>
    %13 = arith.truncf %11 : vector<512x128xf32> to vector<512x128xbf16>
    %cst_8 = arith.constant dense<0.000000e+00> : vector<8x128xf32>
    %14 = tpu.matmul %12, %13, %cst_8 {dimension_numbers = #tpu.dot_dimension_numbers<[1], [0], [0], [1], [0, 0, 1, 1], [], []>} : vector<8x512xbf16>, vector<512x128xbf16>, vector<8x128xf32> -> vector<8x128xf32>
    %15 = arith.truncf %14 : vector<8x128xf32> to vector<8x128xbf16>
    %c0_9 = arith.constant 0 : index
    %c0_10 = arith.constant 0 : index
    %16 = vector.load %arg5[%c0_9, %c0_10] : memref<128x1280xbf16, #tpu.memory_space<vmem>>, vector<128x1280xbf16>
    %cst_11 = arith.constant dense<0.000000e+00> : vector<8x1280xf32>
    %17 = tpu.matmul %15, %16, %cst_11 {dimension_numbers = #tpu.dot_dimension_numbers<[1], [0], [0], [1], [0, 0, 1, 1], [], []>} : vector<8x128xbf16>, vector<128x1280xbf16>, vector<8x1280xf32> -> vector<8x1280xf32>
    %c0_12 = arith.constant 0 : index
    %c0_13 = arith.constant 0 : index
    %18 = vector.load %arg6[%c0_12, %c0_13] : memref<1x1280xf32, #tpu.memory_space<vmem>>, vector<1x1280xf32>
    %19 = vector.broadcast %18 : vector<1x1280xf32> to vector<8x1280xf32>
    %20 = arith.addf %17, %19 : vector<8x1280xf32>
    %21 = arith.negf %20 : vector<8x1280xf32>
    %22 = math.exp %21 : vector<8x1280xf32>
    %cst_14 = arith.constant 1.000000e+00 : f32
    %23 = vector.broadcast %cst_14 : f32 to vector<8x1280xf32>
    %24 = arith.addf %23, %22 : vector<8x1280xf32>
    %25 = arith.divf %23, %24 : vector<8x1280xf32>
    %26 = arith.mulf %20, %25 : vector<8x1280xf32>
    %27 = arith.truncf %26 : vector<8x1280xf32> to vector<8x1280xbf16>
    %c0_15 = arith.constant 0 : index
    %c0_16 = arith.constant 0 : index
    %28 = vector.load %arg7[%c0_15, %c0_16] : memref<1280x1024xbf16, #tpu.memory_space<vmem>>, vector<1280x1024xbf16>
    %cst_17 = arith.constant dense<0.000000e+00> : vector<8x1024xf32>
    %29 = tpu.matmul %27, %28, %cst_17 {dimension_numbers = #tpu.dot_dimension_numbers<[1], [0], [0], [1], [0, 0, 1, 1], [], []>} : vector<8x1280xbf16>, vector<1280x1024xbf16>, vector<8x1024xf32> -> vector<8x1024xf32>
    %c0_18 = arith.constant 0 : index
    %c0_19 = arith.constant 0 : index
    %30 = vector.load %arg8[%c0_18, %c0_19] : memref<1x1024xf32, #tpu.memory_space<vmem>>, vector<1x1024xf32>
    %31 = vector.broadcast %30 : vector<1x1024xf32> to vector<8x1024xf32>
    %32 = arith.addf %29, %31 : vector<8x1024xf32>
    %33 = arith.truncf %32 : vector<8x1024xf32> to vector<8x1024xbf16>
    %c0_20 = arith.constant 0 : index
    %c0_21 = arith.constant 0 : index
    %34 = vector.load %arg9[%c0_20, %c0_21] : memref<1024x512xbf16, #tpu.memory_space<vmem>>, vector<1024x512xbf16>
    %cst_22 = arith.constant dense<0.000000e+00> : vector<8x512xf32>
    %35 = tpu.matmul %33, %34, %cst_22 {dimension_numbers = #tpu.dot_dimension_numbers<[1], [0], [0], [1], [0, 0, 1, 1], [], []>} : vector<8x1024xbf16>, vector<1024x512xbf16>, vector<8x512xf32> -> vector<8x512xf32>
    %c0_23 = arith.constant 0 : index
    %c0_24 = arith.constant 0 : index
    %36 = vector.load %arg10[%c0_23, %c0_24] : memref<1x512xf32, #tpu.memory_space<vmem>>, vector<1x512xf32>
    %37 = vector.broadcast %36 : vector<1x512xf32> to vector<8x512xf32>
    %38 = arith.addf %35, %37 : vector<8x512xf32>
    %cst_25 = arith.constant 0.000000e+00 : f32
    %39 = vector.broadcast %cst_25 : f32 to vector<8x512xf32>
    %40 = arith.maximumf %38, %39 : vector<8x512xf32>
    %41 = arith.truncf %40 : vector<8x512xf32> to vector<8x512xbf16>
    %c0_26 = arith.constant 0 : index
    %c0_27 = arith.constant 0 : index
    %42 = vector.load %arg11[%c0_26, %c0_27] : memref<512x256xbf16, #tpu.memory_space<vmem>>, vector<512x256xbf16>
    %cst_28 = arith.constant dense<0.000000e+00> : vector<8x256xf32>
    %43 = tpu.matmul %41, %42, %cst_28 {dimension_numbers = #tpu.dot_dimension_numbers<[1], [0], [0], [1], [0, 0, 1, 1], [], []>} : vector<8x512xbf16>, vector<512x256xbf16>, vector<8x256xf32> -> vector<8x256xf32>
    %c0_29 = arith.constant 0 : index
    %c0_30 = arith.constant 0 : index
    %44 = vector.load %arg12[%c0_29, %c0_30] : memref<1x256xf32, #tpu.memory_space<vmem>>, vector<1x256xf32>
    %45 = vector.broadcast %44 : vector<1x256xf32> to vector<8x256xf32>
    %46 = arith.addf %43, %45 : vector<8x256xf32>
    %cst_31 = arith.constant 0.000000e+00 : f32
    %47 = vector.broadcast %cst_31 : f32 to vector<8x256xf32>
    %48 = arith.maximumf %46, %47 : vector<8x256xf32>
    %49 = arith.truncf %48 : vector<8x256xf32> to vector<8x256xbf16>
    %c0_32 = arith.constant 0 : index
    %c0_33 = arith.constant 0 : index
    %50 = vector.load %arg13[%c0_32, %c0_33] : memref<256x128xbf16, #tpu.memory_space<vmem>>, vector<256x128xbf16>
    %cst_34 = arith.constant dense<0.000000e+00> : vector<8x128xf32>
    %51 = tpu.matmul %49, %50, %cst_34 {dimension_numbers = #tpu.dot_dimension_numbers<[1], [0], [0], [1], [0, 0, 1, 1], [], []>} : vector<8x256xbf16>, vector<256x128xbf16>, vector<8x128xf32> -> vector<8x128xf32>
    %c0_35 = arith.constant 0 : index
    %c0_36 = arith.constant 0 : index
    %52 = vector.load %arg14[%c0_35, %c0_36] : memref<1x128xf32, #tpu.memory_space<vmem>>, vector<1x128xf32>
    %53 = vector.broadcast %52 : vector<1x128xf32> to vector<8x128xf32>
    %54 = arith.addf %51, %53 : vector<8x128xf32>
    %cst_37 = arith.constant 0.000000e+00 : f32
    %55 = vector.broadcast %cst_37 : f32 to vector<8x128xf32>
    %56 = arith.maximumf %54, %55 : vector<8x128xf32>
    %57 = arith.truncf %56 : vector<8x128xf32> to vector<8x128xbf16>
    %c0_38 = arith.constant 0 : index
    %c0_39 = arith.constant 0 : index
    %58 = vector.load %arg15[%c0_38, %c0_39] : memref<128x128xbf16, #tpu.memory_space<vmem>>, vector<128x128xbf16>
    %cst_40 = arith.constant dense<0.000000e+00> : vector<8x128xf32>
    %59 = tpu.matmul %57, %58, %cst_40 {dimension_numbers = #tpu.dot_dimension_numbers<[1], [0], [0], [1], [0, 0, 1, 1], [], []>} : vector<8x128xbf16>, vector<128x128xbf16>, vector<8x128xf32> -> vector<8x128xf32>
    %c0_41 = arith.constant 0 : index
    %c0_42 = arith.constant 0 : index
    %60 = vector.load %arg16[%c0_41, %c0_42] : memref<1x128xf32, #tpu.memory_space<vmem>>, vector<1x128xf32>
    %61 = vector.broadcast %60 : vector<1x128xf32> to vector<8x128xf32>
    %62 = arith.addf %59, %61 : vector<8x128xf32>
    %cst_43 = arith.constant 0.000000e+00 : f32
    %63 = vector.broadcast %cst_43 : f32 to vector<8x128xf32>
    %64 = arith.maximumf %62, %63 : vector<8x128xf32>
    %65 = arith.truncf %64 : vector<8x128xf32> to vector<8x128xbf16>
    %c0_44 = arith.constant 0 : index
    %c0_45 = arith.constant 0 : index
    %66 = vector.load %arg17[%c0_44, %c0_45] : memref<128x128xbf16, #tpu.memory_space<vmem>>, vector<128x128xbf16>
    %cst_46 = arith.constant dense<0.000000e+00> : vector<8x128xf32>
    %67 = tpu.matmul %65, %66, %cst_46 {dimension_numbers = #tpu.dot_dimension_numbers<[1], [0], [0], [1], [0, 0, 1, 1], [], []>} : vector<8x128xbf16>, vector<128x128xbf16>, vector<8x128xf32> -> vector<8x128xf32>
    %c0_47 = arith.constant 0 : index
    %c0_48 = arith.constant 0 : index
    %68 = vector.load %arg18[%c0_47, %c0_48] : memref<1x128xf32, #tpu.memory_space<vmem>>, vector<1x128xf32>
    %69 = vector.broadcast %68 : vector<1x128xf32> to vector<8x128xf32>
    %70 = arith.addf %67, %69 : vector<8x128xf32>
    %c0_49 = arith.constant 0 : index
    %c0_50 = arith.constant 0 : index
    %c0_51 = arith.constant 0 : index
    %71 = vector.load %arg19[%c0_49, %c0_50, %c0_51] : memref<1x8x128xf32, #tpu.memory_space<vmem>>, vector<1x8x128xf32>
    %72 = vector.shape_cast %71 : vector<1x8x128xf32> to vector<8x128xf32>
    %73 = vector.shape_cast %70 : vector<8x128xf32> to vector<1x8x128xf32>
    tpu.vector_store %arg19[%c0_49, %c0_50, %c0_51], %73 {strides = array<i32>} : memref<1x8x128xf32, #tpu.memory_space<vmem>>, vector<1x8x128xf32>,
    return
  }
  func.func @transform_0(%arg0: i32) -> (i32, i32) {
    %c0_i32 = arith.constant 0 : i32
    %c0_i32_0 = arith.constant 0 : i32
    %c0_i32_1 = arith.constant 0 : i32
    return %c0_i32, %c0_i32_0 : i32, i32
  }
  func.func @transform_1(%arg0: i32) -> (i32, i32) {
    %c0_i32 = arith.constant 0 : i32
    %c0_i32_0 = arith.constant 0 : i32
    %c0_i32_1 = arith.constant 0 : i32
    return %c0_i32, %c0_i32_0 : i32, i32
  }
  func.func @transform_2(%arg0: i32) -> (i32, i32) {
    %c0_i32 = arith.constant 0 : i32
    %c0_i32_0 = arith.constant 0 : i32
    %c0_i32_1 = arith.constant 0 : i32
    return %c0_i32, %c0_i32_0 : i32, i32
  }
  func.func @transform_3(%arg0: i32) -> (i32, i32) {
    %c0_i32 = arith.constant 0 : i32
    %c0_i32_0 = arith.constant 0 : i32
    %c0_i32_1 = arith.constant 0 : i32
    return %c0_i32, %c0_i32_0 : i32, i32
  }
  func.func @transform_4(%arg0: i32) -> (i32, i32) {
    %c0_i32 = arith.constant 0 : i32
    %c0_i32_0 = arith.constant 0 : i32
    %c0_i32_1 = arith.constant 0 : i32
    return %c0_i32, %c0_i32_0 : i32, i32
  }
  func.func @transform_5(%arg0: i32) -> (i32, i32) {
    %c0_i32 = arith.constant 0 : i32
    %c0_i32_0 = arith.constant 0 : i32
    %c0_i32_1 = arith.constant 0 : i32
    return %c0_i32, %c0_i32_0 : i32, i32
  }
  func.func @transform_6(%arg0: i32) -> (i32, i32) {
    %c0_i32 = arith.constant 0 : i32
    %c0_i32_0 = arith.constant 0 : i32
    %c0_i32_1 = arith.constant 0 : i32
    return %c0_i32, %c0_i32_0 : i32, i32
  }
  func.func @transform_7(%arg0: i32) -> (i32, i32) {
    %c0_i32 = arith.constant 0 : i32
    %c0_i32_0 = arith.constant 0 : i32
    %c0_i32_1 = arith.constant 0 : i32
    return %c0_i32, %c0_i32_0 : i32, i32
  }
  func.func @transform_8(%arg0: i32) -> (i32, i32) {
    %c0_i32 = arith.constant 0 : i32
    %c0_i32_0 = arith.constant 0 : i32
    return %c0_i32, %arg0 : i32, i32
  }
  func.func @transform_9(%arg0: i32) -> (i32, i32) {
    %c0_i32 = arith.constant 0 : i32
    %c0_i32_0 = arith.constant 0 : i32
    return %c0_i32, %arg0 : i32, i32
  }
  func.func @transform_10(%arg0: i32) -> (i32, i32) {
    %c0_i32 = arith.constant 0 : i32
    %c0_i32_0 = arith.constant 0 : i32
    return %c0_i32, %arg0 : i32, i32
  }
  func.func @transform_11(%arg0: i32) -> (i32, i32) {
    %c0_i32 = arith.constant 0 : i32
    %c0_i32_0 = arith.constant 0 : i32
    return %c0_i32, %arg0 : i32, i32
  }
  func.func @transform_12(%arg0: i32) -> (i32, i32) {
    %c0_i32 = arith.constant 0 : i32
    %c0_i32_0 = arith.constant 0 : i32
    return %c0_i32, %arg0 : i32, i32
  }
  func.func @transform_13(%arg0: i32) -> (i32, i32) {
    %c0_i32 = arith.constant 0 : i32
    %c0_i32_0 = arith.constant 0 : i32
    return %c0_i32, %arg0 : i32, i32
  }
  func.func @transform_14(%arg0: i32) -> (i32, i32) {
    %c0_i32 = arith.constant 0 : i32
    %c0_i32_0 = arith.constant 0 : i32
    return %c0_i32, %arg0 : i32, i32
  }
  func.func @transform_15(%arg0: i32) -> (i32, i32) {
    %c0_i32 = arith.constant 0 : i32
    %c0_i32_0 = arith.constant 0 : i32
    return %c0_i32, %arg0 : i32, i32
  }
  func.func @transform_16(%arg0: i32) -> (i32, i32) {
    %c0_i32 = arith.constant 0 : i32
    %c0_i32_0 = arith.constant 0 : i32
    return %c0_i32, %arg0 : i32, i32
  }
  func.func @transform_17(%arg0: i32) -> (i32, i32) {
    %c0_i32 = arith.constant 0 : i32
    %c0_i32_0 = arith.constant 0 : i32
    return %c0_i32, %arg0 : i32, i32
  }
  func.func @transform_18(%arg0: i32) -> (i32, i32, i32) {
    %c0_i32 = arith.constant 0 : i32
    %c0_i32_0 = arith.constant 0 : i32
    %c0_i32_1 = arith.constant 0 : i32
    return %arg0, %c0_i32, %c0_i32_0 : i32, i32, i32
  }
}

</mosaic_0001>

<bundles_post_ra>
// kernel: model_forward.1
= control target key start
LH: loop header
LB: loop body
LE: loop exit
PB: predicated region body
PF: predicated region fallthrough
CT: control target
= control target key end

     0   :  { %s17364_s0 = inlined_call_operand.vmem [shape: bf16[512,32], index: 0, kind: input, shape index: {}]   ;;  %s17365_s1 = inlined_call_operand.vmem [shape: bf16[8,512], index: 1, kind: input, shape index: {}]   ;;  %s17366_s2 = inlined_call_operand.vmem [shape: bf16[32,128], index: 2, kind: input, shape index: {}]   ;;  %s17367_s3 = inlined_call_operand.vmem [shape: f32[1,128], index: 3, kind: input, shape index: {}]   ;;  %s17368_s4 = inlined_call_operand.vmem [shape: bf16[128,1280], index: 4, kind: input, shape index: {}]   ;;  %s17369_s5 = inlined_call_operand.vmem [shape: f32[1,1280], index: 5, kind: input, shape index: {}]   ;;  %s17370_s6 = inlined_call_operand.vmem [shape: bf16[1280,1024], index: 6, kind: input, shape index: {}]   ;;  %s17371_s7 = inlined_call_operand.vmem [shape: f32[1,1024], index: 7, kind: input, shape index: {}]   ;;  %s17372_s8 = inlined_call_operand.hbm [shape: bf16[1024,3072], index: 8, kind: input, shape index: {}]   ;;  %s17373_s9 = inlined_call_operand.vmem [shape: f32[1,3072], index: 9, kind: input, shape index: {}]   ;;  %s17374_s10 = inlined_call_operand.hbm [shape: bf16[512,1536], index: 10, kind: input, shape index: {}]   ;;  %s17375_s11 = inlined_call_operand.vmem [shape: f32[1,1536], index: 11, kind: input, shape index: {}]   ;;  %s17376_s12 = inlined_call_operand.vmem [shape: bf16[256,768], index: 12, kind: input, shape index: {}]   ;;  %s17377_s13 = inlined_call_operand.vmem [shape: f32[1,768], index: 13, kind: input, shape index: {}]   ;;  %s17378_s14 = inlined_call_operand.vmem [shape: bf16[128,768], index: 14, kind: input, shape index: {}]   ;;  %s17379_s15 = inlined_call_operand.vmem [shape: f32[1,768], index: 15, kind: input, shape index: {}]   ;;  %s17380_s16 = inlined_call_operand.vmem [shape: bf16[128,768], index: 16, kind: input, shape index: {}]   ;;  %s17381_s17 = inlined_call_operand.vmem [shape: f32[1,768], index: 17, kind: input, shape index: {}]   ;;  %s17382_s18 = inlined_call_operand.vmem [shape: f32[6,8,128], index: 18, kind: output, shape index: {}]  }
   0x1   :  { %17389 = sst [smem:[#allocation14_spill]] %s17364_s0 }
   0x2   :  { %17390 = sst [smem:[#allocation15_spill]] %s17365_s1 }
   0x3   :  { %17391 = sst [smem:[#allocation16_spill]] %s17366_s2 }
   0x4   :  { %17392 = sst [smem:[#allocation17_spill]] %s17372_s8 }
   0x5   :  { %17393 = sst [smem:[#allocation18_spill]] %s17375_s11 }
   0x6   :  { %17394 = sst [smem:[#allocation19_spill]] %s17377_s13 }
   0x7   :  { %17395 = sst [smem:[#allocation20_spill]] %s17379_s15 }
   0x8   :  { %17396 = sst [smem:[#allocation21_spill]] %s17381_s17 }
   0x9   :  { %17397 = sst [smem:[#allocation22_spill]] %s17382_s18 }
   0xa   :  { %23 = vsyncpa [#allocation3], 0 }
   0xb   :  { %25 = vsyncpa [#allocation3 + $0x1], 0 }
   0xc   :  { %26 = vsyncpa [#allocation5], 0 }
   0xd   :  { %28 = vsyncpa [#allocation5 + $0x1], 0  ;;  %s13644_s27 = smov 0   ;;  %s13646_s28 = smov 0  }
   0xe   :  { %s13648_s29 = smov 0   ;;  %s13650_s30 = smov 0  }
   0xf LB: > { %17398 = sst [smem:[#allocation11_spill]] %s13532_s29  ;;  %s13663_s0 = sadd.s32 4294967295, %s13536_s30   ;;  %s13536_s30 = sphi %s13650_s30, %s17413_s30   ;;  %s13532_s29 = sphi %s13648_s29, %s17415_s29   ;;  %s13528_s28 = sphi %s13646_s28, %s17417_s28   ;;  %s13524_s27 = sphi %s13644_s27, %s17416_s27  }
  0x10   : > { %s13666_s19 = sadd.s32 1, %s13536_s30   ;;  %s209_s20 = sadd.s32 1, %s13532_s29 }
  0x11   : > { %17399 = sst [smem:[#allocation12_spill]] %s13666_s19  ;;  %s206_s1 = ssub.s32 %s13536_s30, %s13666_s19 }
  0x12   : > { %p207_p0 = scmp.eq.s32.totalorder %s206_s1, 0  ;;  %p216_p1 = scmp.ne.s32.totalorder %s13532_s29, %s13528_s28 }
  0x13   : > { %p217_p2 = scmp.eq.s32.totalorder %s13536_s30, 0  ;;  %p222_p3 = scmp.ne.s32.totalorder %s13528_s28, %s13524_s27 }
  0x14   : > { %s13676_s21 = scalar_select %p207_p0, %s13532_s29, %s209_s20  }
  0x15   : > { %p13678_p4 = por %p217_p2, %p216_p1  ;;  %p223_p5 = scmp.eq.s32.totalorder %s13663_s0, 0 }
  0x16   : > { %17400 = sst [smem:[#allocation13_spill]] %s13676_s21  ;;  %p10850_p7 = scmp.ge.s32.totalorder %s13536_s30, 6 }
  0x17   : > { %p13683_p6 = por %p223_p5, %p222_p3  ;;  %s13689_s23 = sand.u32 (!%p10850_p7), 1, %s13532_s29  }
  0x18   : > { %526 = sbr.rel (%p10850_p7) target bundleno = 133 (0x85), region = 48  ;;  %s12094_s24 = sshll.u32 (!%p10850_p7), %s13536_s30, 8 }
  0x19   : > { %s10851_s25 = sshll.u32 (!%p10850_p7), %s13689_s23, 11  ;;  %s17403_s8 = sld [smem:[#allocation17_spill]] (!%p10850_p7) }
  0x1a   : > { %s534_s20 = scalar_lea.vmem (!%p10850_p7), [#allocation2], %s10851_s25  ;;  %s531_s19 = scalar_lea.sflag (!%p10850_p7), [#allocation3], %s13689_s23 }
  0x1b   : > { %s541_s21 = sshll.u32 (!%p10850_p7), %s534_s20, 4  ;;  %s13698_s21 = int_to_ptr.vmem [resolvable:$true] %s541_s21 }
  0x1f   : > { %s13696_s1 = scalar_lea.hbm %s17403_s8, %s12094_s24  ;;  %s13446_s26 = scalar_lea.hbm %s17403_s8, 196608 }
  0x20   : > { %s13442_s29 = scalar_lea.hbm %s13696_s1, 32768  ;;  %p13447_p11 = scmp.lt.u32.totalorder %s13696_s1, %s17403_s8 }
  0x21   : > { %p13443_p8 = scmp.ne.s32.totalorder %s13696_s1, %s13442_s29  ;;  %p13448_p12 = scmp.lt.u32.totalorder %s13446_s26, %s13442_s29 }
  0x22   : > { %p13450_p0 = scmp.lt.u32.totalorder %s13442_s29, %s13696_s1 }
  0x23   : > { %p13444_p9 = pnand %p13443_p8, %p13678_p4  ;;  %p13449_p13 = por %p13448_p12, %p13447_p11 }
  0x25   : > { %p13445_p10 = pneg %p13444_p9  ;;  %p13451_p1 = por %p13450_p0, %p13449_p13 }
  0x27   : > { %p13452_p2 = pnand %p13451_p1, %p13445_p10 }
  0x29   : > { %13455 = shalt.err (!%p13452_p2)
}
  0x2a   : > { %s13456_s25 = scalar_lea.vmem %s13698_s21, 32768  ;;  %s13538_s17 = smov [#allocation2]  }
  0x2b   : > { %p13457_p3 = scmp.ne.s32.totalorder %s13698_s21, %s13456_s25  ;;  %s13460_s18 = sshll.u32 %s13538_s17, 4  ;;  %s13461_s18 = int_to_ptr.vmem [resolvable:$false] %s13460_s18 }
  0x2c   : > { %s13462_s20 = scalar_lea.vmem %s13461_s18, 65536  ;;  %p13463_p8 = scmp.lt.s32.totalorder %s13698_s21, %s13461_s18 }
  0x2d   : > { %p13458_p5 = pnand %p13457_p3, %p13678_p4  ;;  %p13464_p9 = scmp.lt.s32.totalorder %s13462_s20, %s13456_s25 }
  0x2f   : > { %p13459_p7 = pneg %p13458_p5  ;;  %p13465_p11 = por %p13464_p9, %p13463_p8 }
  0x31   : > { %p13466_p12 = pnand %p13465_p11, %p13459_p7 }
  0x33   : > { %13469 = shalt.err (!%p13466_p12)
}
  0x34   : > { %s13539_s29 = smov 1536   ;;  %s13540_s26 = smov 256  }
  0x35   : > { %s13541_s24 = smov 16   ;;  %s10854_s27 = sshll.u32 %s13689_s23, 9 }
  0x36   : > { %12428 = dma.hbm_to_vmem [thread:$0]  (%p13678_p4), %s13696_s1, 32768, %s13698_s21, %s531_s19, %s13539_s29, %s13540_s26, %s13541_s24  }
  0x37   : > { %s12095_s17 = sshll.u32 %s13536_s30, 7  ;;  %s563_s8 = scalar_lea.vmem [#allocation4], %s10854_s27 }
  0x38   : > { %s13729_s20 = scalar_lea.hbm %s17374_s10, %s12095_s17  ;;  %s570_s15 = sshll.u32 %s563_s8, 4  ;;  %s13731_s15 = int_to_ptr.vmem [resolvable:$true] %s570_s15 }
  0x39   : > { %s560_s13 = scalar_lea.sflag [#allocation5], %s13689_s23  ;;  %s13470_s11 = scalar_lea.hbm %s13729_s20, 8192 }
  0x3a   : > { %p13471_p10 = scmp.ne.s32.totalorder %s13729_s20, %s13470_s11  ;;  %s13474_s1 = scalar_lea.hbm %s17374_s10, 49152 }
  0x3b   : > { %p13475_p1 = scmp.lt.u32.totalorder %s13729_s20, %s17374_s10  ;;  %p13476_p2 = scmp.lt.u32.totalorder %s13474_s1, %s13470_s11 }
  0x3c   : > { %p13472_p13 = pnand %p13471_p10, %p13678_p4  ;;  %p13478_p5 = scmp.lt.u32.totalorder %s13470_s11, %s13729_s20 }
  0x3d   : > { %p13477_p3 = por %p13476_p2, %p13475_p1 }
  0x3e   : > { %p13473_p0 = pneg %p13472_p13 }
  0x3f   : > { %p13479_p7 = por %p13478_p5, %p13477_p3 }
  0x41   : > { %p13480_p8 = pnand %p13479_p7, %p13473_p0 }
  0x43   : > { %13483 = shalt.err (!%p13480_p8)
}
  0x44   : > { %s13484_s8 = scalar_lea.vmem %s13731_s15, 8192  ;;  %s13542_s24 = smov [#allocation4]  }
  0x45   : > { %p13485_p9 = scmp.ne.s32.totalorder %s13731_s15, %s13484_s8  ;;  %s13488_s27 = sshll.u32 %s13542_s24, 4  ;;  %s13489_s27 = int_to_ptr.vmem [resolvable:$false] %s13488_s27 }
  0x46   : > { %s13490_s17 = scalar_lea.vmem %s13489_s27, 16384  ;;  %p13491_p10 = scmp.lt.s32.totalorder %s13731_s15, %s13489_s27 }
  0x47   : > { %p13486_p11 = pnand %p13485_p9, %p13678_p4  ;;  %p13492_p13 = scmp.lt.s32.totalorder %s13490_s17, %s13484_s8 }
  0x49   : > { %p13487_p12 = pneg %p13486_p11  ;;  %p13493_p1 = por %p13492_p13, %p13491_p10 }
  0x4b   : > { %p13494_p2 = pnand %p13493_p1, %p13487_p12 }
  0x4d   : > { %13497 = shalt.err (!%p13494_p2)
}
  0x4e   : > { %s13543_s11 = smov 768   ;;  %s13544_s25 = smov 128  }
  0x4f   : > { %s13545_s18 = smov 8   ;;  %587 = sbr.rel (!%p13678_p4) target bundleno = 105 (0x69), region = 68 }
  0x50   : > { %12429 = dma.hbm_to_vmem [thread:$0]  (%p13678_p4), %s13729_s20, 8192, %s13731_s15, %s560_s13, %s13543_s11, %s13544_s25, %s13545_s18  }
  0x51   : > { %s10857_s19 = sshll.u32 (%p13678_p4), %s13689_s23, 7  ;;  %s10858_s21 = sshll.u32 (%p13678_p4), %s13536_s30, 2 }
  0x52   : > { %s13764_s26 = scalar_lea.vmem (%p13678_p4), %s17376_s12, %s10858_s21  ;;  %s13769_s13 = scalar_lea.vmem (%p13678_p4), [#allocation6], %s10857_s19 }
  0x53   : > { %v609_v0 = vld [vmem:[%s13764_s26] sm:$0xf] (%p13678_p4)  ;;  %v611_v1 = vld [vmem:[%s13764_s26 + $0x18] sm:$0xf] (%p13678_p4)  ;;  %v613_v2 = vld [vmem:[%s13764_s26 + $0x30] sm:$0xf] (%p13678_p4) }
  0x54   : > { %610 = vst [vmem:[%s13769_s13] sm:$0xf] (%p13678_p4), %v609_v0  ;;  %612 = vst [vmem:[%s13769_s13 + $0x4] sm:$0xf] (%p13678_p4), %v611_v1  ;;  %v615_v3 = vld [vmem:[%s13764_s26 + $0x48] sm:$0xf] (%p13678_p4) }
  0x55   : > { %614 = vst [vmem:[%s13769_s13 + $0x8] sm:$0xf] (%p13678_p4), %v613_v2  ;;  %v617_v4 = vld [vmem:[%s13764_s26 + $0x60] sm:$0xf] (%p13678_p4)  ;;  %v619_v5 = vld [vmem:[%s13764_s26 + $0x78] sm:$0xf] (%p13678_p4) }
  0x56   : > { %616 = vst [vmem:[%s13769_s13 + $0xc] sm:$0xf] %v615_v3  ;;  %618 = vst [vmem:[%s13769_s13 + $0x10] sm:$0xf] %v617_v4  ;;  %v621_v6 = vld [vmem:[%s13764_s26 + $0x90] sm:$0xf] }
  0x57   : > { %620 = vst [vmem:[%s13769_s13 + $0x14] sm:$0xf] %v619_v5  ;;  %v623_v7 = vld [vmem:[%s13764_s26 + $0xa8] sm:$0xf]  ;;  %v625_v8 = vld [vmem:[%s13764_s26 + $0xc0] sm:$0xf] }
  0x58   : > { %622 = vst [vmem:[%s13769_s13 + $0x18] sm:$0xf] %v621_v6  ;;  %624 = vst [vmem:[%s13769_s13 + $0x1c] sm:$0xf] %v623_v7  ;;  %v627_v9 = vld [vmem:[%s13764_s26 + $0xd8] sm:$0xf] }
  0x59   : > { %626 = vst [vmem:[%s13769_s13 + $0x20] sm:$0xf] %v625_v8  ;;  %v629_v10 = vld [vmem:[%s13764_s26 + $0xf0] sm:$0xf]  ;;  %v631_v11 = vld [vmem:[%s13764_s26 + $0x108] sm:$0xf] }
  0x5a   : > { %628 = vst [vmem:[%s13769_s13 + $0x24] sm:$0xf] %v627_v9  ;;  %630 = vst [vmem:[%s13769_s13 + $0x28] sm:$0xf] %v629_v10  ;;  %v633_v12 = vld [vmem:[%s13764_s26 + $0x120] sm:$0xf] }
  0x5b   : > { %632 = vst [vmem:[%s13769_s13 + $0x2c] sm:$0xf] %v631_v11  ;;  %v635_v13 = vld [vmem:[%s13764_s26 + $0x138] sm:$0xf]  ;;  %v637_v14 = vld [vmem:[%s13764_s26 + $0x150] sm:$0xf] }
  0x5c   : > { %634 = vst [vmem:[%s13769_s13 + $0x30] sm:$0xf] %v633_v12  ;;  %636 = vst [vmem:[%s13769_s13 + $0x34] sm:$0xf] %v635_v13  ;;  %v639_v15 = vld [vmem:[%s13764_s26 + $0x168] sm:$0xf] }
  0x5d   : > { %638 = vst [vmem:[%s13769_s13 + $0x38] sm:$0xf] %v637_v14  ;;  %v641_v16 = vld [vmem:[%s13764_s26 + $0x180] sm:$0xf]  ;;  %v643_v17 = vld [vmem:[%s13764_s26 + $0x198] sm:$0xf] }
  0x5e   : > { %640 = vst [vmem:[%s13769_s13 + $0x3c] sm:$0xf] %v639_v15  ;;  %642 = vst [vmem:[%s13769_s13 + $0x40] sm:$0xf] %v641_v16  ;;  %v645_v18 = vld [vmem:[%s13764_s26 + $0x1b0] sm:$0xf] }
  0x5f   : > { %644 = vst [vmem:[%s13769_s13 + $0x44] sm:$0xf] %v643_v17  ;;  %v647_v19 = vld [vmem:[%s13764_s26 + $0x1c8] sm:$0xf]  ;;  %v649_v20 = vld [vmem:[%s13764_s26 + $0x1e0] sm:$0xf] }
  0x60   : > { %646 = vst [vmem:[%s13769_s13 + $0x48] sm:$0xf] %v645_v18  ;;  %648 = vst [vmem:[%s13769_s13 + $0x4c] sm:$0xf] %v647_v19  ;;  %v651_v21 = vld [vmem:[%s13764_s26 + $0x1f8] sm:$0xf] }
  0x61   : > { %650 = vst [vmem:[%s13769_s13 + $0x50] sm:$0xf] %v649_v20  ;;  %v653_v22 = vld [vmem:[%s13764_s26 + $0x210] sm:$0xf]  ;;  %v655_v23 = vld [vmem:[%s13764_s26 + $0x228] sm:$0xf] }
  0x62   : > { %652 = vst [vmem:[%s13769_s13 + $0x54] sm:$0xf] %v651_v21  ;;  %654 = vst [vmem:[%s13769_s13 + $0x58] sm:$0xf] %v653_v22  ;;  %v657_v24 = vld [vmem:[%s13764_s26 + $0x240] sm:$0xf] }
  0x63   : > { %656 = vst [vmem:[%s13769_s13 + $0x5c] sm:$0xf] %v655_v23  ;;  %v659_v25 = vld [vmem:[%s13764_s26 + $0x258] sm:$0xf]  ;;  %v661_v26 = vld [vmem:[%s13764_s26 + $0x270] sm:$0xf] }
  0x64   : > { %658 = vst [vmem:[%s13769_s13 + $0x60] sm:$0xf] %v657_v24  ;;  %660 = vst [vmem:[%s13769_s13 + $0x64] sm:$0xf] %v659_v25  ;;  %v663_v27 = vld [vmem:[%s13764_s26 + $0x288] sm:$0xf] }
  0x65   : > { %662 = vst [vmem:[%s13769_s13 + $0x68] sm:$0xf] %v661_v26  ;;  %v665_v28 = vld [vmem:[%s13764_s26 + $0x2a0] sm:$0xf]  ;;  %v667_v29 = vld [vmem:[%s13764_s26 + $0x2b8] sm:$0xf] }
  0x66   : > { %664 = vst [vmem:[%s13769_s13 + $0x6c] sm:$0xf] %v663_v27  ;;  %666 = vst [vmem:[%s13769_s13 + $0x70] sm:$0xf] %v665_v28  ;;  %v669_v30 = vld [vmem:[%s13764_s26 + $0x2d0] sm:$0xf] }
  0x67   : > { %668 = vst [vmem:[%s13769_s13 + $0x74] sm:$0xf] %v667_v29  ;;  %v671_v31 = vld [vmem:[%s13764_s26 + $0x2e8] sm:$0xf]  ;;  %670 = vst [vmem:[%s13769_s13 + $0x78] sm:$0xf] %v669_v30 }
  0x68   : > { %672 = vst [vmem:[%s13769_s13 + $0x7c] sm:$0xf] %v671_v31 }
  0x69 PF: > { %765 = sbr.rel (!%p13678_p4) target bundleno = 119 (0x77), region = 113  ;;  %s10859_s15 = sshll.u32 (%p13678_p4), %s13689_s23, 6 }
  0x6a   : > { %s10860_s20 = sshll.u32 (%p13678_p4), %s13536_s30, 2  ;;  %s769_s17 = scalar_lea.vmem (%p13678_p4), [#allocation7], %s10859_s15 }
  0x6b   : > { %s13839_s27 = scalar_lea.vmem (%p13678_p4), %s17378_s14, %s10860_s20 }
  0x6c   : > { %v787_v32 = vld [vmem:[%s13839_s27] sm:$0xf] (%p13678_p4)  ;;  %v789_v33 = vld [vmem:[%s13839_s27 + $0x18] sm:$0xf] (%p13678_p4)  ;;  %v791_v34 = vld [vmem:[%s13839_s27 + $0x30] sm:$0xf] (%p13678_p4) }
  0x6d   : > { %788 = vst [vmem:[%s769_s17] sm:$0xf] (%p13678_p4), %v787_v32  ;;  %790 = vst [vmem:[%s769_s17 + $0x4] sm:$0xf] (%p13678_p4), %v789_v33  ;;  %v793_v35 = vld [vmem:[%s13839_s27 + $0x48] sm:$0xf] (%p13678_p4) }
  0x6e   : > { %792 = vst [vmem:[%s769_s17 + $0x8] sm:$0xf] (%p13678_p4), %v791_v34  ;;  %v795_v36 = vld [vmem:[%s13839_s27 + $0x60] sm:$0xf] (%p13678_p4)  ;;  %v797_v37 = vld [vmem:[%s13839_s27 + $0x78] sm:$0xf] (%p13678_p4) }
  0x6f   : > { %794 = vst [vmem:[%s769_s17 + $0xc] sm:$0xf] (%p13678_p4), %v793_v35  ;;  %796 = vst [vmem:[%s769_s17 + $0x10] sm:$0xf] (%p13678_p4), %v795_v36  ;;  %v799_v38 = vld [vmem:[%s13839_s27 + $0x90] sm:$0xf] (%p13678_p4) }
  0x70   : > { %798 = vst [vmem:[%s769_s17 + $0x14] sm:$0xf] %v797_v37  ;;  %v801_v39 = vld [vmem:[%s13839_s27 + $0xa8] sm:$0xf]  ;;  %v803_v40 = vld [vmem:[%s13839_s27 + $0xc0] sm:$0xf] }
  0x71   : > { %800 = vst [vmem:[%s769_s17 + $0x18] sm:$0xf] %v799_v38  ;;  %802 = vst [vmem:[%s769_s17 + $0x1c] sm:$0xf] %v801_v39  ;;  %v805_v41 = vld [vmem:[%s13839_s27 + $0xd8] sm:$0xf] }
  0x72   : > { %804 = vst [vmem:[%s769_s17 + $0x20] sm:$0xf] %v803_v40  ;;  %v807_v42 = vld [vmem:[%s13839_s27 + $0xf0] sm:$0xf]  ;;  %v809_v43 = vld [vmem:[%s13839_s27 + $0x108] sm:$0xf] }
  0x73   : > { %806 = vst [vmem:[%s769_s17 + $0x24] sm:$0xf] %v805_v41  ;;  %808 = vst [vmem:[%s769_s17 + $0x28] sm:$0xf] %v807_v42  ;;  %v811_v44 = vld [vmem:[%s13839_s27 + $0x120] sm:$0xf] }
  0x74   : > { %810 = vst [vmem:[%s769_s17 + $0x2c] sm:$0xf] %v809_v43  ;;  %v813_v45 = vld [vmem:[%s13839_s27 + $0x138] sm:$0xf]  ;;  %v815_v46 = vld [vmem:[%s13839_s27 + $0x150] sm:$0xf] }
  0x75   : > { %812 = vst [vmem:[%s769_s17 + $0x30] sm:$0xf] %v811_v44  ;;  %814 = vst [vmem:[%s769_s17 + $0x34] sm:$0xf] %v813_v45  ;;  %v817_v47 = vld [vmem:[%s13839_s27 + $0x168] sm:$0xf] }
  0x76   : > { %816 = vst [vmem:[%s769_s17 + $0x38] sm:$0xf] %v815_v46  ;;  %818 = vst [vmem:[%s769_s17 + $0x3c] sm:$0xf] %v817_v47 }
  0x77 PF: > { %879 = sbr.rel (!%p13678_p4) target bundleno = 133 (0x85), region = 158  ;;  %s10861_s11 = sshll.u32 (%p13678_p4), %s13689_s23, 6 }
  0x78   : > { %s10862_s25 = sshll.u32 (%p13678_p4), %s13536_s30, 2  ;;  %s883_s22 = scalar_lea.vmem (%p13678_p4), [#allocation8], %s10861_s11 }
  0x79   : > { %s13864_s21 = scalar_lea.vmem (%p13678_p4), %s17380_s16, %s10862_s25 }
  0x7a   : > { %v901_v48 = vld [vmem:[%s13864_s21] sm:$0xf] (%p13678_p4)  ;;  %v903_v49 = vld [vmem:[%s13864_s21 + $0x18] sm:$0xf] (%p13678_p4)  ;;  %v905_v50 = vld [vmem:[%s13864_s21 + $0x30] sm:$0xf] (%p13678_p4) }
  0x7b   : > { %902 = vst [vmem:[%s883_s22] sm:$0xf] (%p13678_p4), %v901_v48  ;;  %904 = vst [vmem:[%s883_s22 + $0x4] sm:$0xf] (%p13678_p4), %v903_v49  ;;  %v907_v51 = vld [vmem:[%s13864_s21 + $0x48] sm:$0xf] (%p13678_p4) }
  0x7c   : > { %906 = vst [vmem:[%s883_s22 + $0x8] sm:$0xf] (%p13678_p4), %v905_v50  ;;  %v909_v52 = vld [vmem:[%s13864_s21 + $0x60] sm:$0xf] (%p13678_p4)  ;;  %v911_v53 = vld [vmem:[%s13864_s21 + $0x78] sm:$0xf] (%p13678_p4) }
  0x7d   : > { %908 = vst [vmem:[%s883_s22 + $0xc] sm:$0xf] (%p13678_p4), %v907_v51  ;;  %910 = vst [vmem:[%s883_s22 + $0x10] sm:$0xf] (%p13678_p4), %v909_v52  ;;  %v913_v54 = vld [vmem:[%s13864_s21 + $0x90] sm:$0xf] (%p13678_p4) }
  0x7e   : > { %912 = vst [vmem:[%s883_s22 + $0x14] sm:$0xf] %v911_v53  ;;  %v915_v55 = vld [vmem:[%s13864_s21 + $0xa8] sm:$0xf]  ;;  %v917_v56 = vld [vmem:[%s13864_s21 + $0xc0] sm:$0xf] }
  0x7f   : > { %914 = vst [vmem:[%s883_s22 + $0x18] sm:$0xf] %v913_v54  ;;  %916 = vst [vmem:[%s883_s22 + $0x1c] sm:$0xf] %v915_v55  ;;  %v919_v57 = vld [vmem:[%s13864_s21 + $0xd8] sm:$0xf] }
  0x80   : > { %918 = vst [vmem:[%s883_s22 + $0x20] sm:$0xf] %v917_v56  ;;  %v921_v58 = vld [vmem:[%s13864_s21 + $0xf0] sm:$0xf]  ;;  %v923_v59 = vld [vmem:[%s13864_s21 + $0x108] sm:$0xf] }
  0x81   : > { %920 = vst [vmem:[%s883_s22 + $0x24] sm:$0xf] %v919_v57  ;;  %922 = vst [vmem:[%s883_s22 + $0x28] sm:$0xf] %v921_v58  ;;  %v925_v60 = vld [vmem:[%s13864_s21 + $0x120] sm:$0xf] }
  0x82   : > { %924 = vst [vmem:[%s883_s22 + $0x2c] sm:$0xf] %v923_v59  ;;  %v927_v61 = vld [vmem:[%s13864_s21 + $0x138] sm:$0xf]  ;;  %v929_v62 = vld [vmem:[%s13864_s21 + $0x150] sm:$0xf] }
  0x83   : > { %926 = vst [vmem:[%s883_s22 + $0x30] sm:$0xf] %v925_v60  ;;  %928 = vst [vmem:[%s883_s22 + $0x34] sm:$0xf] %v927_v61  ;;  %v931_v63 = vld [vmem:[%s13864_s21 + $0x168] sm:$0xf] }
  0x84   : > { %930 = vst [vmem:[%s883_s22 + $0x38] sm:$0xf] %v929_v62  ;;  %932 = vst [vmem:[%s883_s22 + $0x3c] sm:$0xf] %v931_v63 }
  0x85 PF: > { %p10863_p4 = scmp.ge.s32.totalorder %s13536_s30, 1  ;;  %p992_p0 = scmp.lt.s32.totalorder %s13536_s30, 7 }
  0x87   : > { %p993_p3 = pnand %p10863_p4, %p992_p0 }
  0x88   : > { %s13885_s23 = sand.u32 (!%p993_p3), 1, %s13528_s28  }
  0x89   : > { %996 = sbr.rel (%p993_p3) target bundleno = 3025 (0xbd1), region = 203  ;;  %s10864_s1 = sshll.u32 (!%p993_p3), %s13885_s23, 11 }
  0x8a   : > { %s999_s29 = scalar_lea.sflag (!%p993_p3), [#allocation3], %s13885_s23  ;;  %s13889_s26 = scalar_lea.vmem (!%p993_p3), [#allocation2], %s10864_s1 }
  0x90   : > { %13515 = dma.done.wait (%p13683_p6), %s999_s29, 32768  }
  0x91   : > { %13517 = vsyncadd (%p13683_p6), %s999_s29, 4294934528  ;;  %s10865_s30 = sshll.u32 %s13885_s23, 9  ;;  %s1008_s13 = scalar_lea.sflag [#allocation5], %s13885_s23 }
  0x92   : > { %s13897_s15 = scalar_lea.vmem [#allocation4], %s10865_s30 }
  0x93   : > { %13519 = dma.done.wait (%p13683_p6), %s1008_s13, 8192  }
  0x94   : > { %13521 = vsyncadd (%p13683_p6), %s1008_s13, 4294959104  ;;  %s17404_s24 = sld [smem:[#allocation16_spill]]  ;;  %vm1391_vm0 = vcmask 261120   ;;  %s17405_s18 = sld [smem:[#allocation14_spill]]  ;;  %v14040_v34 = vld [vmem:[%s17367_s3] ss:$0 sm:$0xff] }
  0x95   : > { %s17406_s27 = sld [smem:[#allocation15_spill]]  ;;  %s10867_s19 = sshll.u32 %s13885_s23, 6  ;;  %vm13548_vm1 = vmmov 0  }
  0x96   : > { %s10870_s21 = sshll.u32 %s13663_s0, 1  ;;  %s17408_s29 = sld [smem:[#allocation18_spill]] }
  0x97   : > { %p1126_p5 = scmp.lt.s32.totalorder %s10870_s21, 11  ;;  %s17312_s13 = scalar_lea.vmem [#allocation8], %s10867_s19 }
  0x98   : > { %p1130_p7 = scmp.lt.s32.totalorder %s13663_s0, 5  ;;  %s17410_s25 = sld [smem:[#allocation20_spill]] }
  0x99   : > { %s17421_s21 = smov (!%p1126_p5, %s10870_s21), 11 }
  0x9a   : > { %v12473_v0 = vld [vmem:[%s17404_s24] sm:$0xff]   ;;  %v12474_v1 = vld [vmem:[%s17404_s24 + $0x8] sm:$0xff]   ;;  %v12477_v4 = vld [vmem:[%s17405_s18 + $0x10] sm:$0xff]  }
  0x9b   : > { %12214 = vmatprep.subr.bf16.mxu0 %v12473_v0  ;;  %v12475_v2 = vld [vmem:[%s17405_s18] sm:$0xff]   ;;  %v12476_v3 = vld [vmem:[%s17405_s18 + $0x8] sm:$0xff]   ;;  %v12478_v5 = vld [vmem:[%s17405_s18 + $0x18] sm:$0xff]   ;;  %s17407_s17 = smov %s17406_s27 }
  0x9c   : > { %12215 = vmatpush3.bf16.msra.mxu0 %v12473_v0  ;;  %12218 = vmatprep.mubr.msk.bf16.mxu0 %vm1391_vm0, %v12475_v2  ;;  %v12479_v6 = vld [vmem:[%s17405_s18 + $0x20] sm:$0xff]   ;;  %v12480_v7 = vld [vmem:[%s17405_s18 + $0x28] sm:$0xff]   ;;  %v12481_v8 = vld [vmem:[%s17405_s18 + $0x30] sm:$0xff]   ;;  %s1128_s30 = scalar_lea.vmem %s17408_s29, %s17421_s21  ;;  %s17411_s21 = sld [smem:[#allocation21_spill]] }
  0x9d   : > { %12216 = vmatprep.subr.bf16.mxu0 %v12474_v1  ;;  %v12482_v9 = vld [vmem:[%s17405_s18 + $0x38] sm:$0xff]   ;;  %v12483_v10 = vld [vmem:[%s17405_s18 + $0x40] sm:$0xff]   ;;  %v12484_v11 = vld [vmem:[%s17405_s18 + $0x48] sm:$0xff]  }
  0x9e   : > { %v12485_v12 = vld [vmem:[%s17405_s18 + $0x50] sm:$0xff]   ;;  %v12486_v13 = vld [vmem:[%s17405_s18 + $0x58] sm:$0xff]   ;;  %v12487_v14 = vld [vmem:[%s17405_s18 + $0x60] sm:$0xff]  }
  0x9f   : > { %v12488_v15 = vld [vmem:[%s17405_s18 + $0x68] sm:$0xff]   ;;  %v12489_v16 = vld [vmem:[%s17405_s18 + $0x70] sm:$0xff]   ;;  %v12490_v17 = vld [vmem:[%s17405_s18 + $0x78] sm:$0xff]  }
  0xa0   : > { %12217 = vmatpush3.bf16.msra.mxu0 %v12474_v1  ;;  %v12491_v18 = vld [vmem:[%s17405_s18 + $0x80] sm:$0xff]   ;;  %v12492_v19 = vld [vmem:[%s17405_s18 + $0x88] sm:$0xff]   ;;  %v12493_v20 = vld [vmem:[%s17405_s18 + $0x90] sm:$0xff]  }
  0xa1   : > { %v12494_v21 = vld [vmem:[%s17405_s18 + $0x98] sm:$0xff]   ;;  %v12495_v22 = vld [vmem:[%s17405_s18 + $0xa0] sm:$0xff]   ;;  %v12496_v23 = vld [vmem:[%s17405_s18 + $0xa8] sm:$0xff]  }
  0xa2   : > { %v12497_v24 = vld [vmem:[%s17405_s18 + $0xb0] sm:$0xff]   ;;  %v12498_v25 = vld [vmem:[%s17405_s18 + $0xb8] sm:$0xff]   ;;  %v12499_v26 = vld [vmem:[%s17405_s18 + $0xc0] sm:$0xff]  }
  0xa3   : > { %12219 = vmatmul.mubr.msk.bf16.vlgmr.msra.gmra.mrb[0].mxu0 %vm1391_vm0, %v12476_v3  ;;  %v12500_v27 = vld [vmem:[%s17405_s18 + $0xc8] sm:$0xff]   ;;  %v12501_v28 = vld [vmem:[%s17405_s18 + $0xd0] sm:$0xff]   ;;  %v12502_v29 = vld [vmem:[%s17405_s18 + $0xd8] sm:$0xff]  }
  0xa4   : > { %12222 = vmatprep.mubr.msk.bf16.mxu0 %vm1391_vm0, %v12477_v4  ;;  %v12503_v30 = vld [vmem:[%s17405_s18 + $0xe0] sm:$0xff]   ;;  %v12504_v31 = vld [vmem:[%s17405_s18 + $0xe8] sm:$0xff]   ;;  %v12505_v32 = vld [vmem:[%s17405_s18 + $0xf0] sm:$0xff]  }
  0xa5   : > { %v12506_v33 = vld [vmem:[%s17405_s18 + $0xf8] sm:$0xff]   ;;  %v14059_v45 = vld [vmem:[%s17406_s27] sm:$0xff]  ;;  %s10869_s27 = sshll.u32 %s13663_s0, 2  ;;  %s17423_s0 = smov (!%p1130_p7, %s13663_s0), 5 }
  0xa6   : > { %v11004_v47 = vcombine.high %v14059_v45, %v14059_v45  ;;  %p1120_p6 = scmp.lt.s32.totalorder %s10869_s27, 23  ;;  %s1138_s22 = scalar_lea.vmem %s17411_s21, %s17423_s0 }
  0xa7   : > { %s10871_s1 = sshll.u32 %s17423_s0, 3 }
  0xa8   : > { %2305 = vmatprep.mubr.bf16.mxu1 %v11004_v47  ;;  %s17419_s27 = smov (!%p1120_p6, %s10869_s27), 23 }
  0xa9   : > { %s1122_s2 = scalar_lea.vmem %s17373_s9, %s17419_s27 }
  0xab   : > { %12223 = vmatmul.mubr.msk.bf16.gmra.mrb[4].mxu0 %vm1391_vm0, %v12478_v5 }
  0xac   : > { %12226 = vmatprep.mubr.msk.bf16.mxu0 %vm1391_vm0, %v12479_v6 }
  0xb3   : > { %12227 = vmatmul.mubr.msk.bf16.gmra.mrb[8].mxu0 %vm1391_vm0, %v12480_v7 }
  0xb4   : > { %12230 = vmatprep.mubr.msk.bf16.mxu0 %vm1391_vm0, %v12481_v8 }
  0xbb   : > { %12231 = vmatmul.mubr.msk.bf16.gmra.mrb[12].mxu0 %vm1391_vm0, %v12482_v9 }
  0xbc   : > { %12234 = vmatprep.mubr.msk.bf16.mxu0 %vm1391_vm0, %v12483_v10 }
  0xc3   : > { %12235 = vmatmul.mubr.msk.bf16.gmra.mrb[16].mxu0 %vm1391_vm0, %v12484_v11 }
  0xc4   : > { %12238 = vmatprep.mubr.msk.bf16.mxu0 %vm1391_vm0, %v12485_v12 }
  0xcb   : > { %12239 = vmatmul.mubr.msk.bf16.gmra.mrb[20].mxu0 %vm1391_vm0, %v12486_v13 }
  0xcc   : > { %12242 = vmatprep.mubr.msk.bf16.mxu0 %vm1391_vm0, %v12487_v14 }
  0xd3   : > { %12243 = vmatmul.mubr.msk.bf16.gmra.mrb[24].mxu0 %vm1391_vm0, %v12488_v15 }
  0xd4   : > { %12246 = vmatprep.mubr.msk.bf16.mxu0 %vm1391_vm0, %v12489_v16 }
  0xdb   : > { %12247 = vmatmul.mubr.msk.bf16.gmra.mrb[28].mxu0 %vm1391_vm0, %v12490_v17 }
  0xdc   : > { %12250 = vmatprep.mubr.msk.bf16.mxu0 %vm1391_vm0, %v12491_v18 }
  0xe3   : > { %12251 = vmatmul.mubr.msk.bf16.gmra.mrb[32].mxu0 %vm1391_vm0, %v12492_v19 }
  0xe4   : > { %12254 = vmatprep.mubr.msk.bf16.mxu0 %vm1391_vm0, %v12493_v20 }
  0xeb   : > { %12255 = vmatmul.mubr.msk.bf16.gmra.mrb[36].mxu0 %vm1391_vm0, %v12494_v21 }
  0xec   : > { %12258 = vmatprep.mubr.msk.bf16.mxu0 %vm1391_vm0, %v12495_v22 }
  0xf3   : > { %12259 = vmatmul.mubr.msk.bf16.gmra.mrb[40].mxu0 %vm1391_vm0, %v12496_v23 }
  0xf4   : > { %12262 = vmatprep.mubr.msk.bf16.mxu0 %vm1391_vm0, %v12497_v24 }
  0xfb   : > { %12263 = vmatmul.mubr.msk.bf16.gmra.mrb[44].mxu0 %vm1391_vm0, %v12498_v25 }
  0xfc   : > { %12266 = vmatprep.mubr.msk.bf16.mxu0 %vm1391_vm0, %v12499_v26 }
 0x103   : > { %12267 = vmatmul.mubr.msk.bf16.gmra.mrb[48].mxu0 %vm1391_vm0, %v12500_v27 }
 0x104   : > { %12270 = vmatprep.mubr.msk.bf16.mxu0 %vm1391_vm0, %v12501_v28 }
 0x10b   : > { %12271 = vmatmul.mubr.msk.bf16.gmra.mrb[52].mxu0 %vm1391_vm0, %v12502_v29 }
 0x10c   : > { %12274 = vmatprep.mubr.msk.bf16.mxu0 %vm1391_vm0, %v12503_v30 }
 0x113   : > { %12275 = vmatmul.mubr.msk.bf16.gmra.mrb[56].mxu0 %vm1391_vm0, %v12504_v31 }
 0x114   : > { %12278 = vmatprep.mubr.msk.bf16.mxu0 %vm1391_vm0, %v12505_v32 }
 0x11b   : > { %12279 = vmatmul.mubr.msk.bf16.gmra.mrb[60].mxu0 %vm1391_vm0, %v12506_v33 }
 0x176   : > { %v12220_v35 = vpop.f32.mrb[0].mxu0 }
 0x177   : > { %v14043_v36 = vadd.f32 %v12220_v35, %v14040_v34  ;;  %v1522_v37 = vpop.f32.mrb[1].mxu0 }
 0x178   : > { %v14046_v38 = vadd.f32 %v14040_v34, %v1522_v37  ;;  %v12221_v39 = vpop.f32.mrb[2].mxu0 }
 0x179   : > { %v10941_v40 = vmul.f32 -1.442695, %v14043_v36  ;;  %v14050_v41 = vadd.f32 %v12221_v39, %v14040_v34  ;;  %v1525_v42 = vpop.f32.mrb[3].mxu0 }
 0x17a   : > { %v10939_v43 = vmul.f32 -1.442695, %v14046_v38  ;;  %v14054_v44 = vadd.f32 %v14040_v34, %v1525_v42 }
 0x17b   : > { %13143 = vpow2.f32 %v10941_v40  ;;  %v10942_v46 = vmul.f32 -1.442695, %v14050_v41 }
 0x17c   : > { %13145 = vpow2.f32 %v10939_v43  ;;  %v10940_v48 = vmul.f32 -1.442695, %v14054_v44 }
 0x17d   : > { %13147 = vpow2.f32 %v10942_v46 }
 0x17e   : > { %13149 = vpow2.f32 %v10940_v48  ;;  %v12224_v49 = vpop.f32.mrb[4].mxu0 }
 0x17f   : > { %v14066_v50 = vadd.f32 %v12224_v49, %v14040_v34  ;;  %v1538_v51 = vpop.f32.mrb[5].mxu0 }
 0x180   : > { %v14069_v52 = vadd.f32 %v14040_v34, %v1538_v51  ;;  %v12225_v53 = vpop.f32.mrb[6].mxu0 }
 0x181   : > { %v10945_v54 = vmul.f32 -1.442695, %v14066_v50  ;;  %v14073_v55 = vadd.f32 %v12225_v53, %v14040_v34  ;;  %v1541_v56 = vpop.f32.mrb[7].mxu0 }
 0x182   : > { %v10943_v57 = vmul.f32 -1.442695, %v14069_v52  ;;  %v14077_v58 = vadd.f32 %v14040_v34, %v1541_v56 }
 0x183   : > { %13151 = vpow2.f32 %v10945_v54  ;;  %v10946_v59 = vmul.f32 -1.442695, %v14073_v55 }
 0x184   : > { %13153 = vpow2.f32 %v10943_v57  ;;  %v10944_v60 = vmul.f32 -1.442695, %v14077_v58 }
 0x185   : > { %v13144_v61 = vpop.eup %13143  ;;  %13155 = vpow2.f32 %v10946_v59 }
 0x186   : > { %v13146_v62 = vpop.eup %13145  ;;  %v1971_v63 = vadd.f32 1.0, %v13144_v61  ;;  %13157 = vpow2.f32 %v10944_v60  ;;  %v12228_v0 = vpop.f32.mrb[8].mxu0 }
 0x187   : > { %v13148_v1 = vpop.eup %13147  ;;  %v1969_v2 = vadd.f32 1.0, %v13146_v62  ;;  %v14082_v3 = vadd.f32 %v12228_v0, %v14040_v34  ;;  %v1554_v4 = vpop.f32.mrb[9].mxu0 }
 0x188   : > { %v13150_v5 = vpop.eup %13149  ;;  %13159 = vrcp.f32 %v1971_v63  ;;  %v1972_v6 = vadd.f32 1.0, %v13148_v1  ;;  %v14085_v7 = vadd.f32 %v14040_v34, %v1554_v4  ;;  %v12229_v8 = vpop.f32.mrb[10].mxu0 }
 0x189   : > { %13161 = vrcp.f32 %v1969_v2  ;;  %v1970_v9 = vadd.f32 1.0, %v13150_v5  ;;  %v10949_v10 = vmul.f32 -1.442695, %v14082_v3  ;;  %v14089_v11 = vadd.f32 %v12229_v8, %v14040_v34  ;;  %v1557_v12 = vpop.f32.mrb[11].mxu0 }
 0x18a   : > { %13163 = vrcp.f32 %v1972_v6  ;;  %v10947_v13 = vmul.f32 -1.442695, %v14085_v7  ;;  %v14093_v14 = vadd.f32 %v14040_v34, %v1557_v12 }
 0x18b   : > { %13165 = vrcp.f32 %v1970_v9  ;;  %v10950_v15 = vmul.f32 -1.442695, %v14089_v11 }
 0x18c   : > { %13167 = vpow2.f32 %v10949_v10  ;;  %v10948_v16 = vmul.f32 -1.442695, %v14093_v14 }
 0x18d   : > { %v13152_v17 = vpop.eup %13151  ;;  %13169 = vpow2.f32 %v10947_v13 }
 0x18e   : > { %v13154_v18 = vpop.eup %13153  ;;  %v1975_v19 = vadd.f32 1.0, %v13152_v17  ;;  %13171 = vpow2.f32 %v10950_v15  ;;  %v12232_v20 = vpop.f32.mrb[12].mxu0 }
 0x18f   : > { %v13156_v21 = vpop.eup %13155  ;;  %v1973_v22 = vadd.f32 1.0, %v13154_v18  ;;  %13173 = vpow2.f32 %v10948_v16  ;;  %v14098_v23 = vadd.f32 %v12232_v20, %v14040_v34  ;;  %v1570_v24 = vpop.f32.mrb[13].mxu0 }
 0x190   : > { %v13158_v25 = vpop.eup %13157  ;;  %13175 = vrcp.f32 %v1975_v19  ;;  %v1976_v26 = vadd.f32 1.0, %v13156_v21  ;;  %v14101_v27 = vadd.f32 %v14040_v34, %v1570_v24  ;;  %v12233_v28 = vpop.f32.mrb[14].mxu0 }
 0x191   : > { %13177 = vrcp.f32 %v1973_v22  ;;  %v1974_v29 = vadd.f32 1.0, %v13158_v25  ;;  %v10953_v30 = vmul.f32 -1.442695, %v14098_v23  ;;  %v14105_v31 = vadd.f32 %v12233_v28, %v14040_v34  ;;  %v1573_v32 = vpop.f32.mrb[15].mxu0 }
 0x192   : > { %v13160_v33 = vpop.eup %13159  ;;  %13179 = vrcp.f32 %v1976_v26  ;;  %v10951_v35 = vmul.f32 -1.442695, %v14101_v27  ;;  %v14109_v37 = vadd.f32 %v14040_v34, %v1573_v32 }
 0x193   : > { %v13162_v39 = vpop.eup %13161  ;;  %13181 = vrcp.f32 %v1974_v29  ;;  %v10954_v40 = vmul.f32 -1.442695, %v14105_v31  ;;  %v14114_v47 = vmul.f32 %v13160_v33, %v14043_v36 }
 0x194   : > { %v13164_v42 = vpop.eup %13163  ;;  %13183 = vpow2.f32 %v10953_v30  ;;  %v10952_v43 = vmul.f32 -1.442695, %v14109_v37  ;;  %v14120_v51 = vmul.f32 %v13162_v39, %v14046_v38 }
 0x195   : > { %v13166_v46 = vpop.eup %13165  ;;  %v14117_v48 = vmul.f32 %v13164_v42, %v14050_v41  ;;  %13185 = vpow2.f32 %v10951_v35 }
 0x196   : > { %v13168_v49 = vpop.eup %13167  ;;  %v14123_v53 = vmul.f32 %v13166_v46, %v14054_v44  ;;  %13187 = vpow2.f32 %v10954_v40  ;;  %v12236_v54 = vpop.f32.mrb[16].mxu0 }
 0x197   : > { %v13170_v56 = vpop.eup %13169  ;;  %v1979_v57 = vadd.f32 1.0, %v13168_v49  ;;  %13189 = vpow2.f32 %v10952_v43  ;;  %v14126_v59 = vadd.f32 %v12236_v54, %v14040_v34  ;;  %v1586_v36 = vpop.f32.mrb[17].mxu0  ;;  %v2228_v41 = vpack.c.bf16 %v14117_v48, %v14114_v47 }
 0x198   : > { %v13172_v60 = vpop.eup %13171  ;;  %v1977_v61 = vadd.f32 1.0, %v13170_v56  ;;  %v14131_v38 = vadd.f32 %v14040_v34, %v1586_v36  ;;  %v12237_v62 = vpop.f32.mrb[18].mxu0  ;;  %v2227_v44 = vpack.c.bf16 %v14123_v53, %v14120_v51 }
 0x199   : > { %v13174_v63 = vpop.eup %13173  ;;  %13191 = vrcp.f32 %v1979_v57  ;;  %v1980_v0 = vadd.f32 1.0, %v13172_v60  ;;  %v10957_v1 = vmul.f32 -1.442695, %v14126_v59  ;;  %v14137_v2 = vadd.f32 %v12237_v62, %v14040_v34  ;;  %v1589_v4 = vpop.f32.mrb[19].mxu0 }
 0x19a   : > { %v13176_v5 = vpop.eup %13175  ;;  %13193 = vrcp.f32 %v1977_v61  ;;  %v1978_v6 = vadd.f32 1.0, %v13174_v63  ;;  %v10955_v8 = vmul.f32 -1.442695, %v14131_v38  ;;  %v14141_v9 = vadd.f32 %v14040_v34, %v1589_v4 }
 0x19b   : > { %v13178_v10 = vpop.eup %13177  ;;  %13195 = vrcp.f32 %v1980_v0  ;;  %v10958_v12 = vmul.f32 -1.442695, %v14137_v2  ;;  %v14146_v17 = vmul.f32 %v13176_v5, %v14066_v50 }
 0x19c   : > { %v13180_v13 = vpop.eup %13179  ;;  %13197 = vrcp.f32 %v1978_v6  ;;  %v10956_v15 = vmul.f32 -1.442695, %v14141_v9  ;;  %v14152_v20 = vmul.f32 %v13178_v10, %v14069_v52 }
 0x19d   : > { %v13182_v16 = vpop.eup %13181  ;;  %v14149_v18 = vmul.f32 %v13180_v13, %v14073_v55  ;;  %13199 = vpow2.f32 %v10957_v1 }
 0x19e   : > { %v13184_v19 = vpop.eup %13183  ;;  %v14155_v21 = vmul.f32 %v13182_v16, %v14077_v58  ;;  %13201 = vpow2.f32 %v10955_v8  ;;  %v12240_v22 = vpop.f32.mrb[20].mxu0 }
 0x19f   : > { %v13186_v24 = vpop.eup %13185  ;;  %v1983_v25 = vadd.f32 1.0, %v13184_v19  ;;  %13203 = vpow2.f32 %v10958_v12  ;;  %v14158_v26 = vadd.f32 %v12240_v22, %v14040_v34  ;;  %v1602_v50 = vpop.f32.mrb[21].mxu0  ;;  %v2230_v55 = vpack.c.bf16 %v14149_v18, %v14146_v17 }
 0x1a0   : > { %v13188_v28 = vpop.eup %13187  ;;  %v1981_v29 = vadd.f32 1.0, %v13186_v24  ;;  %13205 = vpow2.f32 %v10956_v15  ;;  %v14163_v52 = vadd.f32 %v14040_v34, %v1602_v50  ;;  %v12241_v58 = vpop.f32.mrb[22].mxu0  ;;  %v2229_v30 = vpack.c.bf16 %v14155_v21, %v14152_v20 }
 0x1a1   : > { %v13190_v32 = vpop.eup %13189  ;;  %13207 = vrcp.f32 %v1983_v25  ;;  %v1984_v33 = vadd.f32 1.0, %v13188_v28  ;;  %v10961_v35 = vmul.f32 -1.442695, %v14158_v26  ;;  %v14169_v39 = vadd.f32 %v12241_v58, %v14040_v34  ;;  %v1605_v40 = vpop.f32.mrb[23].mxu0 }
 0x1a2   : > { %13209 = vrcp.f32 %v1981_v29  ;;  %v1982_v42 = vadd.f32 1.0, %v13190_v32  ;;  %v10959_v43 = vmul.f32 -1.442695, %v14163_v52  ;;  %v14173_v46 = vadd.f32 %v14040_v34, %v1605_v40 }
 0x1a3   : > { %v13192_v49 = vpop.eup %13191  ;;  %13211 = vrcp.f32 %v1984_v33  ;;  %v10962_v54 = vmul.f32 -1.442695, %v14169_v39 }
 0x1a4   : > { %v13194_v56 = vpop.eup %13193  ;;  %13213 = vrcp.f32 %v1982_v42  ;;  %v10960_v57 = vmul.f32 -1.442695, %v14173_v46  ;;  %v14178_v61 = vmul.f32 %v13192_v49, %v14082_v3 }
 0x1a5   : > { %v13196_v36 = vpop.eup %13195  ;;  %13215 = vpow2.f32 %v10961_v35  ;;  %v14184_v1 = vmul.f32 %v13194_v56, %v14085_v7 }
 0x1a6   : > { %v13198_v60 = vpop.eup %13197  ;;  %v14181_v62 = vmul.f32 %v13196_v36, %v14089_v11  ;;  %13217 = vpow2.f32 %v10959_v43  ;;  %v12244_v63 = vpop.f32.mrb[24].mxu0 }
 0x1a7   : > { %v13200_v0 = vpop.eup %13199  ;;  %v14187_v4 = vmul.f32 %v13198_v60, %v14093_v14  ;;  %13219 = vpow2.f32 %v10962_v54  ;;  %v14190_v5 = vadd.f32 %v12244_v63, %v14040_v34  ;;  %v1618_v6 = vpop.f32.mrb[25].mxu0 }
 0x1a8   : > { %v13202_v8 = vpop.eup %13201  ;;  %v1987_v3 = vadd.f32 1.0, %v13200_v0  ;;  %13221 = vpow2.f32 %v10960_v57  ;;  %v14193_v11 = vadd.f32 %v14040_v34, %v1618_v6  ;;  %v12245_v10 = vpop.f32.mrb[26].mxu0  ;;  %v2232_v12 = vpack.c.bf16 %v14181_v62, %v14178_v61  ;;  %v14340_v62 = vld [vmem:[%s17407_s17 + $0x8] sm:$0xff] }
 0x1a9   : > { %v13204_v7 = vpop.eup %13203  ;;  %v1985_v13 = vadd.f32 1.0, %v13202_v8  ;;  %v14198_v14 = vadd.f32 %v12245_v10, %v14040_v34  ;;  %v1621_v15 = vpop.f32.mrb[27].mxu0  ;;  %v2231_v16 = vpack.c.bf16 %v14187_v4, %v14184_v1  ;;  %v10965_v24 = vmul.f32 -1.442695, %v14190_v5 }
 0x1aa   : > { %v13206_v19 = vpop.eup %13205  ;;  %13223 = vrcp.f32 %v1987_v3  ;;  %v1988_v22 = vadd.f32 1.0, %v13204_v7  ;;  %v14204_v25 = vadd.f32 %v14040_v34, %v1621_v15  ;;  %v10963_v29 = vmul.f32 -1.442695, %v14193_v11 }
 0x1ab   : > { %v13208_v50 = vpop.eup %13207  ;;  %13225 = vrcp.f32 %v1985_v13  ;;  %v1986_v28 = vadd.f32 1.0, %v13206_v19  ;;  %v10966_v32 = vmul.f32 -1.442695, %v14198_v14 }
 0x1ac   : > { %v13210_v58 = vpop.eup %13209  ;;  %13227 = vrcp.f32 %v1988_v22  ;;  %v10964_v35 = vmul.f32 -1.442695, %v14204_v25  ;;  %v14210_v42 = vmul.f32 %v13208_v50, %v14098_v23 }
 0x1ad   : > { %v13212_v33 = vpop.eup %13211  ;;  %13229 = vrcp.f32 %v1986_v28  ;;  %v14227_v8 = vmul.f32 %v13210_v58, %v14101_v27 }
 0x1ae   : > { %v13214_v40 = vpop.eup %13213  ;;  %v14213_v43 = vmul.f32 %v13212_v33, %v14105_v31  ;;  %13231 = vpow2.f32 %v10965_v24  ;;  %v12248_v49 = vpop.f32.mrb[28].mxu0 }
 0x1af   : > { %v13216_v54 = vpop.eup %13215  ;;  %v14216_v56 = vmul.f32 %v13214_v40, %v14109_v37  ;;  %13233 = vpow2.f32 %v10963_v29  ;;  %v14219_v57 = vadd.f32 %v12248_v49, %v14040_v34  ;;  %v1634_v36 = vpop.f32.mrb[29].mxu0 }
 0x1b0   : > { %v13218_v60 = vpop.eup %13217  ;;  %v1991_v63 = vadd.f32 1.0, %v13216_v54  ;;  %13235 = vpow2.f32 %v10966_v32  ;;  %v14222_v23 = vadd.f32 %v14040_v34, %v1634_v36  ;;  %v12249_v0 = vpop.f32.mrb[30].mxu0  ;;  %v2234_v31 = vpack.c.bf16 %v14213_v43, %v14210_v42 }
 0x1b1   : > { %v13220_v6 = vpop.eup %13219  ;;  %v1989_v37 = vadd.f32 1.0, %v13218_v60  ;;  %13237 = vpow2.f32 %v10964_v35  ;;  %v14230_v3 = vadd.f32 %v12249_v0, %v14040_v34  ;;  %v1637_v10 = vpop.f32.mrb[31].mxu0  ;;  %v10969_v15 = vmul.f32 -1.442695, %v14219_v57 }
 0x1b2   : > { %v13222_v7 = vpop.eup %13221  ;;  %13239 = vrcp.f32 %v1991_v63  ;;  %v1992_v13 = vadd.f32 1.0, %v13220_v6  ;;  %v14234_v19 = vadd.f32 %v14040_v34, %v1637_v10  ;;  %v10967_v24 = vmul.f32 -1.442695, %v14222_v23 }
 0x1b3   : > { %13241 = vrcp.f32 %v1989_v37  ;;  %v1990_v22 = vadd.f32 1.0, %v13222_v7  ;;  %v2233_v27 = vpack.c.bf16 %v14216_v56, %v14227_v8  ;;  %v10970_v28 = vmul.f32 -1.442695, %v14230_v3 }
 0x1b4   : > { %v13224_v50 = vpop.eup %13223  ;;  %13243 = vrcp.f32 %v1992_v13  ;;  %v10968_v58 = vmul.f32 -1.442695, %v14234_v19  ;;  %v11003_v56 = vcombine.low %v14059_v45, %v14059_v45  ;;  %v11006_v8 = vcombine.high %v14340_v62, %v14340_v62 }
 0x1b5   : > { %v13226_v29 = vpop.eup %13225  ;;  %13245 = vrcp.f32 %v1990_v22  ;;  %v2179_v10 = vmul.f32 %v13224_v50, %v14126_v59 }
 0x1b6   : > { %v13228_v32 = vpop.eup %13227  ;;  %13247 = vpow2.f32 %v10969_v15  ;;  %v12252_v33 = vpop.f32.mrb[32].mxu0  ;;  %v2177_v0 = vmul.f32 %v13226_v29, %v14131_v38 }
 0x1b7   : > { %v13230_v35 = vpop.eup %13229  ;;  %v2180_v40 = vmul.f32 %v13228_v32, %v14137_v2  ;;  %13249 = vpow2.f32 %v10967_v24  ;;  %v14243_v49 = vadd.f32 %v12252_v33, %v14040_v34  ;;  %v1650_v54 = vpop.f32.mrb[33].mxu0 }
 0x1b8   : > { %v13232_v36 = vpop.eup %13231  ;;  %13251 = vpow2.f32 %v10970_v28  ;;  %v14246_v60 = vadd.f32 %v14040_v34, %v1650_v54  ;;  %v12253_v63 = vpop.f32.mrb[34].mxu0  ;;  %v2178_v6 = vmul.f32 %v13230_v35, %v14141_v9 }
 0x1b9   : > { %v13234_v37 = vpop.eup %13233  ;;  %v1995_v7 = vadd.f32 1.0, %v13232_v36  ;;  %13253 = vpow2.f32 %v10968_v58  ;;  %v14252_v2 = vadd.f32 %v12253_v63, %v14040_v34  ;;  %v1653_v13 = vpop.f32.mrb[35].mxu0  ;;  %v10973_v9 = vmul.f32 -1.442695, %v14243_v49 }
 0x1ba   : > { %v13236_v15 = vpop.eup %13235  ;;  %v1993_v22 = vadd.f32 1.0, %v13234_v37  ;;  %v14255_v24 = vadd.f32 %v14040_v34, %v1653_v13  ;;  %v2235_v28 = vpack.c.bf16 %v2178_v6, %v2177_v0  ;;  %v2236_v29 = vpack.c.bf16 %v2180_v40, %v2179_v10 }
 0x1bb   : > { %v13238_v32 = vpop.eup %13237  ;;  %13255 = vrcp.f32 %v1995_v7  ;;  %v1996_v38 = vadd.f32 1.0, %v13236_v15  ;;  %v10971_v50 = vmul.f32 -1.442695, %v14246_v60  ;;  %v10974_v35 = vmul.f32 -1.442695, %v14252_v2 }
 0x1bc   : > { %v13240_v33 = vpop.eup %13239  ;;  %13257 = vrcp.f32 %v1993_v22  ;;  %v1994_v59 = vadd.f32 1.0, %v13238_v32  ;;  %12130 = vmatprep.subr.bf16.mxu1 %v2235_v28  ;;  %v10972_v36 = vmul.f32 -1.442695, %v14255_v24 }
 0x1bd   : > { %v13242_v58 = vpop.eup %13241  ;;  %13259 = vrcp.f32 %v1996_v38  ;;  %12131 = vmatpush3.bf16.msra.mxu1 %v2227_v44 }
 0x1be   : > { %v13244_v54 = vpop.eup %13243  ;;  %13261 = vrcp.f32 %v1994_v59  ;;  %12132 = vmatprep.subr.bf16.mxu1 %v2236_v29  ;;  %v12256_v40 = vpop.f32.mrb[36].mxu0  ;;  %v2181_v13 = vmul.f32 %v13242_v58, %v14163_v52 }
 0x1bf   : > { %v13246_v63 = vpop.eup %13245  ;;  %13263 = vpow2.f32 %v10973_v9  ;;  %v14265_v0 = vadd.f32 %v12256_v40, %v14040_v34  ;;  %v1666_v6 = vpop.f32.mrb[37].mxu0  ;;  %v2184_v10 = vmul.f32 %v13244_v54, %v14169_v39 }
 0x1c0   : > { %v13248_v37 = vpop.eup %13247  ;;  %v2182_v7 = vmul.f32 %v13246_v63, %v14173_v46  ;;  %13265 = vpow2.f32 %v10971_v50  ;;  %v14270_v51 = vadd.f32 %v14040_v34, %v1666_v6  ;;  %v12257_v53 = vpop.f32.mrb[38].mxu0  ;;  %v2183_v46 = vmul.f32 %v13240_v33, %v14158_v26 }
 0x1c1   : > { %v13250_v44 = vpop.eup %13249  ;;  %v1999_v15 = vadd.f32 1.0, %v13248_v37  ;;  %13267 = vpow2.f32 %v10974_v35  ;;  %12133 = vmatpush3.bf16.msra.mxu1 %v2228_v41  ;;  %v14277_v22 = vadd.f32 %v12257_v53, %v14040_v34  ;;  %v1669_v39 = vpop.f32.mrb[39].mxu0  ;;  %v10977_v29 = vmul.f32 -1.442695, %v14265_v0 }
 0x1c2   : > { %v13252_v28 = vpop.eup %13251  ;;  %v1997_v32 = vadd.f32 1.0, %v13250_v44  ;;  %13269 = vpow2.f32 %v10972_v36  ;;  %v14281_v38 = vadd.f32 %v14040_v34, %v1669_v39  ;;  %v2237_v59 = vpack.c.bf16 %v2182_v7, %v2181_v13 }
 0x1c3   : > { %v13254_v9 = vpop.eup %13253  ;;  %13271 = vrcp.f32 %v1999_v15  ;;  %v2000_v52 = vadd.f32 1.0, %v13252_v28  ;;  %v10975_v48 = vmul.f32 -1.442695, %v14270_v51  ;;  %v2238_v41 = vpack.c.bf16 %v2184_v10, %v2183_v46 }
 0x1c4   : > { %13273 = vrcp.f32 %v1997_v32  ;;  %v1998_v47 = vadd.f32 1.0, %v13254_v9  ;;  %v10978_v26 = vmul.f32 -1.442695, %v14277_v22  ;;  %12134 = vmatprep.subr.bf16.mxu1 %v2237_v59  ;;  %v10976_v58 = vmul.f32 -1.442695, %v14281_v38 }
 0x1c5   : > { %v13256_v50 = vpop.eup %13255  ;;  %13275 = vrcp.f32 %v2000_v52  ;;  %12135 = vmatpush3.bf16.msra.mxu1 %v2229_v30 }
 0x1c6   : > { %v13258_v33 = vpop.eup %13257  ;;  %13277 = vrcp.f32 %v1998_v47  ;;  %v12260_v35 = vpop.f32.mrb[40].mxu0  ;;  %12136 = vmatprep.subr.bf16.mxu1 %v2238_v41 }
 0x1c7   : > { %v13260_v54 = vpop.eup %13259  ;;  %13279 = vpow2.f32 %v10977_v29  ;;  %v14291_v36 = vadd.f32 %v12260_v35, %v14040_v34  ;;  %v1682_v40 = vpop.f32.mrb[41].mxu0  ;;  %v2185_v6 = vmul.f32 %v13258_v33, %v14193_v11  ;;  %v2187_v11 = vmul.f32 %v13256_v50, %v14190_v5 }
 0x1c8   : > { %v13262_v63 = vpop.eup %13261  ;;  %v2188_v37 = vmul.f32 %v13260_v54, %v14198_v14  ;;  %13281 = vpow2.f32 %v10975_v48  ;;  %v14296_v10 = vadd.f32 %v14040_v34, %v1682_v40  ;;  %v12261_v7 = vpop.f32.mrb[42].mxu0 }
 0x1c9   : > { %v13264_v20 = vpop.eup %13263  ;;  %v2186_v21 = vmul.f32 %v13262_v63, %v14204_v25  ;;  %13283 = vpow2.f32 %v10978_v26  ;;  %v10981_v30 = vmul.f32 -1.442695, %v14291_v36  ;;  %v14301_v53 = vadd.f32 %v12261_v7, %v14040_v34  ;;  %v1685_v44 = vpop.f32.mrb[43].mxu0  ;;  %12137 = vmatpush3.bf16.msra.mxu1 %v2230_v55 }
 0x1ca   : > { %v13266_v13 = vpop.eup %13265  ;;  %v2003_v15 = vadd.f32 1.0, %v13264_v20  ;;  %13285 = vpow2.f32 %v10976_v58  ;;  %v14308_v14 = vadd.f32 %v14040_v34, %v1685_v44  ;;  %v10979_v9 = vmul.f32 -1.442695, %v14296_v10 }
 0x1cb   : > { %v13268_v25 = vpop.eup %13267  ;;  %v2001_v39 = vadd.f32 1.0, %v13266_v13  ;;  %13287 = vpow2.f32 %v10981_v30  ;;  %v2239_v28 = vpack.c.bf16 %v2186_v21, %v2185_v6  ;;  %v2240_v52 = vpack.c.bf16 %v2188_v37, %v2187_v11 }
 0x1cc   : > { %v13270_v46 = vpop.eup %13269  ;;  %13289 = vrcp.f32 %v2003_v15  ;;  %v2004_v32 = vadd.f32 1.0, %v13268_v25  ;;  %v10982_v59 = vmul.f32 -1.442695, %v14301_v53  ;;  %v10980_v18 = vmul.f32 -1.442695, %v14308_v14 }
 0x1cd   : > { %v13272_v5 = vpop.eup %13271  ;;  %13291 = vrcp.f32 %v2001_v39  ;;  %v2002_v29 = vadd.f32 1.0, %v13270_v46  ;;  %12138 = vmatprep.subr.bf16.mxu1 %v2239_v28 }
 0x1ce   : > { %v13274_v17 = vpop.eup %13273  ;;  %13293 = vrcp.f32 %v2004_v32  ;;  %12139 = vmatpush3.bf16.msra.mxu1 %v2231_v16  ;;  %v12264_v55 = vpop.f32.mrb[44].mxu0  ;;  %v2191_v63 = vmul.f32 %v13272_v5, %v14219_v57 }
 0x1cf   : > { %v13276_v47 = vpop.eup %13275  ;;  %13295 = vrcp.f32 %v2002_v29  ;;  %12140 = vmatprep.subr.bf16.mxu1 %v2240_v52  ;;  %v14317_v48 = vadd.f32 %v12264_v55, %v14040_v34  ;;  %v1698_v41 = vpop.f32.mrb[45].mxu0  ;;  %v2189_v26 = vmul.f32 %v13274_v17, %v14222_v23 }
 0x1d0   : > { %v13278_v50 = vpop.eup %13277  ;;  %v2192_v33 = vmul.f32 %v13276_v47, %v14230_v3  ;;  %13297 = vpow2.f32 %v10979_v9  ;;  %v12265_v58 = vpop.f32.mrb[46].mxu0  ;;  %v14324_v4 = vadd.f32 %v14040_v34, %v1698_v41 }
 0x1d1   : > { %v13280_v35 = vpop.eup %13279  ;;  %v2190_v54 = vmul.f32 %v13278_v50, %v14234_v19  ;;  %13299 = vpow2.f32 %v10982_v59  ;;  %v10985_v1 = vmul.f32 -1.442695, %v14317_v48  ;;  %v1701_v16 = vpop.f32.mrb[47].mxu0  ;;  %v14331_v23 = vadd.f32 %v12265_v58, %v14040_v34 }
 0x1d2   : > { %v13282_v40 = vpop.eup %13281  ;;  %v2007_v6 = vadd.f32 1.0, %v13280_v35  ;;  %13301 = vpow2.f32 %v10980_v18  ;;  %12141 = vmatpush3.bf16.msra.mxu1 %v2232_v12  ;;  %v14334_v37 = vadd.f32 %v14040_v34, %v1701_v16  ;;  %v2242_v57 = vpack.c.bf16 %v2192_v33, %v2191_v63 }
 0x1d3   : > { %v13284_v3 = vpop.eup %13283  ;;  %v2005_v19 = vadd.f32 1.0, %v13282_v40  ;;  %13303 = vpow2.f32 %v10985_v1  ;;  %v2241_v7 = vpack.c.bf16 %v2190_v54, %v2189_v26  ;;  %v10983_v61 = vmul.f32 -1.442695, %v14324_v4 }
 0x1d4   : > { %v13286_v20 = vpop.eup %13285  ;;  %13305 = vrcp.f32 %v2007_v6  ;;  %v2008_v21 = vadd.f32 1.0, %v13284_v3  ;;  %v10986_v11 = vmul.f32 -1.442695, %v14331_v23  ;;  %v10984_v39 = vmul.f32 -1.442695, %v14334_v37 }
 0x1d5   : > { %v13288_v30 = vpop.eup %13287  ;;  %13307 = vrcp.f32 %v2005_v19  ;;  %v2006_v44 = vadd.f32 1.0, %v13286_v20  ;;  %12142 = vmatprep.subr.bf16.mxu1 %v2241_v7 }
 0x1d6   : > { %v13290_v12 = vpop.eup %13289  ;;  %13309 = vrcp.f32 %v2008_v21  ;;  %v2011_v13 = vadd.f32 1.0, %v13288_v30  ;;  %12143 = vmatpush3.bf16.msra.mxu1 %v2233_v27  ;;  %v12268_v15 = vpop.f32.mrb[48].mxu0 }
 0x1d7   : > { %v13292_v25 = vpop.eup %13291  ;;  %13311 = vrcp.f32 %v2006_v44  ;;  %12144 = vmatprep.subr.bf16.mxu1 %v2242_v57  ;;  %v14348_v28 = vadd.f32 %v12268_v15, %v14040_v34  ;;  %v1714_v46 = vpop.f32.mrb[49].mxu0  ;;  %v14351_v9 = vmul.f32 %v13290_v12, %v14243_v49 }
 0x1d8   : > { %v13294_v32 = vpop.eup %13293  ;;  %13313 = vrcp.f32 %v2011_v13  ;;  %v12269_v52 = vpop.f32.mrb[50].mxu0  ;;  %v14362_v59 = vadd.f32 %v14040_v34, %v1714_v46  ;;  %v14365_v18 = vmul.f32 %v13292_v25, %v14246_v60 }
 0x1d9   : > { %v13296_v27 = vpop.eup %13295  ;;  %v14358_v5 = vmul.f32 %v13294_v32, %v14252_v2  ;;  %13315 = vpow2.f32 %v10983_v61  ;;  %v10989_v29 = vmul.f32 -1.442695, %v14348_v28  ;;  %v1717_v49 = vpop.f32.mrb[51].mxu0  ;;  %v14374_v2 = vadd.f32 %v12269_v52, %v14040_v34 }
 0x1da   : > { %v13298_v17 = vpop.eup %13297  ;;  %v14368_v45 = vmul.f32 %v13296_v27, %v14255_v24  ;;  %13317 = vpow2.f32 %v10986_v11  ;;  %12145 = vmatpush3.bf16.msra.mxu1 %v2234_v31  ;;  %v14379_v60 = vadd.f32 %v14040_v34, %v1717_v49  ;;  %v10987_v31 = vmul.f32 -1.442695, %v14362_v59 }
 0x1db   : > { %v13300_v55 = vpop.eup %13299  ;;  %v2244_v47 = vpack.c.bf16 %v14358_v5, %v14351_v9  ;;  %v2009_v41 = vadd.f32 1.0, %v13298_v17  ;;  %13319 = vpow2.f32 %v10984_v39  ;;  %v10990_v35 = vmul.f32 -1.442695, %v14374_v2 }
 0x1dc   : > { %v13302_v50 = vpop.eup %13301  ;;  %v2243_v24 = vpack.c.bf16 %v14368_v45, %v14365_v18  ;;  %v2012_v26 = vadd.f32 1.0, %v13300_v55  ;;  %13321 = vpow2.f32 %v10989_v29  ;;  %v10988_v16 = vmul.f32 -1.442695, %v14379_v60 }
 0x1dd   : > { %v13304_v42 = vpop.eup %13303  ;;  %13323 = vrcp.f32 %v2009_v41  ;;  %v2010_v43 = vadd.f32 1.0, %v13302_v50  ;;  %2306 = vmatmul.mubr.bf16.vlgmr.msra.gmra.mrb[0].mxu1 %v11003_v56 }
 0x1de   : > { %v13306_v33 = vpop.eup %13305  ;;  %13325 = vrcp.f32 %v2012_v26  ;;  %v2015_v58 = vadd.f32 1.0, %v13304_v42  ;;  %v12272_v54 = vpop.f32.mrb[52].mxu0  ;;  %2345 = vmatprep.mubr.bf16.mxu1 %v11006_v8 }
 0x1df   : > { %v13308_v1 = vpop.eup %13307  ;;  %13327 = vrcp.f32 %v2010_v43  ;;  %v14387_v40 = vadd.f32 %v12272_v54, %v14040_v34  ;;  %v1730_v63 = vpop.f32.mrb[53].mxu0  ;;  %v14390_v3 = vmul.f32 %v13306_v33, %v14265_v0 }
 0x1e0   : > { %v13310_v6 = vpop.eup %13309  ;;  %13329 = vrcp.f32 %v2015_v58  ;;  %v14393_v19 = vadd.f32 %v14040_v34, %v1730_v63  ;;  %v12273_v7 = vpop.f32.mrb[54].mxu0  ;;  %v14396_v21 = vmul.f32 %v13308_v1, %v14270_v51 }
 0x1e1   : > { %v13312_v20 = vpop.eup %13311  ;;  %v14399_v57 = vmul.f32 %v13310_v6, %v14277_v22  ;;  %13331 = vpow2.f32 %v10987_v31  ;;  %v10993_v30 = vmul.f32 -1.442695, %v14387_v40  ;;  %v1733_v44 = vpop.f32.mrb[55].mxu0  ;;  %v14407_v13 = vadd.f32 %v12273_v7, %v14040_v34 }
 0x1e2   : > { %v13314_v61 = vpop.eup %13313  ;;  %v14403_v0 = vmul.f32 %v13312_v20, %v14281_v38  ;;  %13333 = vpow2.f32 %v10990_v35  ;;  %v10991_v12 = vmul.f32 -1.442695, %v14393_v19  ;;  %v14412_v22 = vadd.f32 %v14040_v34, %v1733_v44 }
 0x1e3   : > { %v13316_v11 = vpop.eup %13315  ;;  %v2246_v51 = vpack.c.bf16 %v14399_v57, %v14390_v3  ;;  %13335 = vpow2.f32 %v10988_v16  ;;  %v10994_v56 = vmul.f32 -1.442695, %v14407_v13  ;;  %v14425_v43 = vmul.f32 %v13314_v61, %v14291_v36 }
 0x1e4   : > { %v13318_v15 = vpop.eup %13317  ;;  %v2245_v25 = vpack.c.bf16 %v14403_v0, %v14396_v21  ;;  %v2013_v38 = vadd.f32 1.0, %v13316_v11  ;;  %13337 = vpow2.f32 %v10993_v30  ;;  %v10992_v49 = vmul.f32 -1.442695, %v14412_v22 }
 0x1e5   : > { %v13320_v39 = vpop.eup %13319  ;;  %v2016_v46 = vadd.f32 1.0, %v13318_v15  ;;  %13339 = vpow2.f32 %v10991_v12 }
 0x1e6   : > { %v13322_v32 = vpop.eup %13321  ;;  %13341 = vrcp.f32 %v2013_v38  ;;  %v2014_v52 = vadd.f32 1.0, %v13320_v39  ;;  %v12276_v8 = vpop.f32.mrb[56].mxu0 }
 0x1e7   : > { %v13324_v27 = vpop.eup %13323  ;;  %13343 = vrcp.f32 %v2016_v46  ;;  %v2019_v29 = vadd.f32 1.0, %v13322_v32  ;;  %v14419_v17 = vadd.f32 %v12276_v8, %v14040_v34  ;;  %v1746_v55 = vpop.f32.mrb[57].mxu0 }
 0x1e8   : > { %v13326_v41 = vpop.eup %13325  ;;  %13345 = vrcp.f32 %v2014_v52  ;;  %v14422_v50 = vadd.f32 %v14040_v34, %v1746_v55  ;;  %v12277_v26 = vpop.f32.mrb[58].mxu0  ;;  %v14432_v54 = vmul.f32 %v13324_v27, %v14296_v10 }
 0x1e9   : > { %v13328_v42 = vpop.eup %13327  ;;  %v14428_v31 = vmul.f32 %v13326_v41, %v14301_v53  ;;  %13347 = vrcp.f32 %v2019_v29  ;;  %v10997_v33 = vmul.f32 -1.442695, %v14419_v17  ;;  %v1749_v58 = vpop.f32.mrb[59].mxu0  ;;  %v13439_v53 = vld [vmem:[%s17367_s3] ss:$0 sm:$0xff] }
 0x1ea   : > { %v13330_v35 = vpop.eup %13329  ;;  %v14435_v1 = vmul.f32 %v13328_v42, %v14308_v14  ;;  %13349 = vpow2.f32 %v10994_v56  ;;  %v10995_v34 = vmul.f32 -1.442695, %v14422_v50  ;;  %v14443_v63 = vadd.f32 %v13439_v53, %v12277_v26 }
 0x1eb   : > { %v13332_v16 = vpop.eup %13331  ;;  %v2248_v36 = vpack.c.bf16 %v14428_v31, %v14425_v43  ;;  %13351 = vpow2.f32 %v10992_v49  ;;  %v14447_v7 = vadd.f32 %v13439_v53, %v1749_v58  ;;  %v14457_v26 = vmul.f32 %v13330_v35, %v14317_v48  ;;  %v12511_v43 = vld [vmem:[%s17368_s4] ss:$40 sps:$4 sm:$0xff]   ;;  %v12513_v31 = vld [vmem:[%s17368_s4 + $0x4] ss:$40 sps:$4 sm:$0xff]  }
 0x1ec   : > { %v13334_v6 = vpop.eup %13333  ;;  %v2247_v10 = vpack.c.bf16 %v14435_v1, %v14432_v54  ;;  %v2017_v14 = vadd.f32 1.0, %v13332_v16  ;;  %13353 = vpow2.f32 %v10997_v33  ;;  %v10998_v38 = vmul.f32 -1.442695, %v14443_v63  ;;  %v12514_v1 = vld [vmem:[%s17368_s4 + $0x10] ss:$40 sps:$4 sm:$0xff]  }
 0x1ed   : > { %v13336_v20 = vpop.eup %13335  ;;  %v2020_v30 = vadd.f32 1.0, %v13334_v6  ;;  %13355 = vpow2.f32 %v10995_v34  ;;  %v10996_v56 = vmul.f32 -1.442695, %v14447_v7  ;;  %v11005_v54 = vcombine.low %v14340_v62, %v14340_v62  ;;  %v12516_v62 = vld [vmem:[%s17368_s4 + $0x14] ss:$40 sps:$4 sm:$0xff]  }
 0x1ee   : > { %v13338_v44 = vpop.eup %13337  ;;  %13357 = vrcp.f32 %v2017_v14  ;;  %v2018_v61 = vadd.f32 1.0, %v13336_v20  ;;  %v12280_v12 = vpop.f32.mrb[60].mxu0  ;;  %2970 = vmatprep.subr.bf16.mxu0 %v12516_v62  ;;  %v12589_v62 = vld [vmem:[%s17368_s4 + $0x198] ss:$40 sps:$4 sm:$0xff]  }
 0x1ef   : > { %v13340_v11 = vpop.eup %13339  ;;  %13359 = vrcp.f32 %v2020_v30  ;;  %v2023_v15 = vadd.f32 1.0, %v13338_v44  ;;  %v14450_v39 = vadd.f32 %v13439_v53, %v12280_v12  ;;  %v1762_v46 = vpop.f32.mrb[61].mxu0  ;;  %2971 = vmatpush1.bf16.msra.mxu0 %v12514_v1  ;;  %v12594_v1 = vld [vmem:[%s17368_s4 + $0x1b4] ss:$40 sps:$4 sm:$0xff]  }
 0x1f0   : > { %v13342_v32 = vpop.eup %13341  ;;  %13361 = vrcp.f32 %v2018_v61  ;;  %v2021_v52 = vadd.f32 1.0, %v13340_v11  ;;  %v14453_v8 = vadd.f32 %v13439_v53, %v1762_v46  ;;  %v12281_v27 = vpop.f32.mrb[62].mxu0 }
 0x1f1   : > { %v13344_v29 = vpop.eup %13343  ;;  %13363 = vrcp.f32 %v2023_v15  ;;  %v11001_v49 = vmul.f32 -1.442695, %v14450_v39  ;;  %v1765_v55 = vpop.f32.mrb[63].mxu0  ;;  %v14464_v34 = vmul.f32 %v13342_v32, %v14324_v4  ;;  %v14469_v6 = vadd.f32 %v13439_v53, %v12281_v27 }
 0x1f2   : > { %v13346_v41 = vpop.eup %13345  ;;  %v14460_v42 = vmul.f32 %v13344_v29, %v14331_v23  ;;  %13365 = vrcp.f32 %v2021_v52  ;;  %v10999_v33 = vmul.f32 -1.442695, %v14453_v8  ;;  %v14473_v23 = vadd.f32 %v13439_v53, %v1765_v55 }
 0x1f3   : > { %v13348_v58 = vpop.eup %13347  ;;  %v14467_v16 = vmul.f32 %v13346_v41, %v14334_v37  ;;  %13367 = vpow2.f32 %v10998_v38  ;;  %v11002_v61 = vmul.f32 -1.442695, %v14469_v6 }
 0x1f4   : > { %v13350_v14 = vpop.eup %13349  ;;  %v2250_v48 = vpack.c.bf16 %v14460_v42, %v14457_v26  ;;  %13369 = vpow2.f32 %v10996_v56  ;;  %v11000_v11 = vmul.f32 -1.442695, %v14473_v23  ;;  %v2211_v38 = vmul.f32 %v13348_v58, %v14348_v28  ;;  %v12525_v26 = vld [vmem:[%s17368_s4 + $0xa4] ss:$40 sps:$4 sm:$0xff]   ;;  %v12528_v42 = vld [vmem:[%s17368_s4 + $0xb4] ss:$40 sps:$4 sm:$0xff]  }
 0x1f5   : > { %v13352_v35 = vpop.eup %13351  ;;  %v2249_v20 = vpack.c.bf16 %v14467_v16, %v14464_v34  ;;  %v2024_v30 = vadd.f32 1.0, %v13350_v14  ;;  %13371 = vpow2.f32 %v11001_v49  ;;  %v12523_v34 = vld [vmem:[%s17368_s4 + $0xa0] ss:$40 sps:$4 sm:$0xff]   ;;  %v12526_v16 = vld [vmem:[%s17368_s4 + $0xb0] ss:$40 sps:$4 sm:$0xff]  }
 0x1f6   : > { %v13354_v4 = vpop.eup %13353  ;;  %v2022_v44 = vadd.f32 1.0, %v13352_v35  ;;  %13373 = vpow2.f32 %v10999_v33 }
 0x1f7   : > { %v13356_v37 = vpop.eup %13355  ;;  %13375 = vrcp.f32 %v2024_v30  ;;  %v2027_v32 = vadd.f32 1.0, %v13354_v4 }
 0x1f8   : > { %v13358_v12 = vpop.eup %13357  ;;  %13377 = vrcp.f32 %v2022_v44  ;;  %v2025_v29 = vadd.f32 1.0, %v13356_v37 }
 0x1f9   : > { %v13360_v15 = vpop.eup %13359  ;;  %v2209_v56 = vmul.f32 %v13358_v12, %v14362_v59  ;;  %13379 = vpow2.f32 %v11002_v61 }
 0x1fa   : > { %v13362_v53 = vpop.eup %13361  ;;  %v2212_v46 = vmul.f32 %v13360_v15, %v14374_v2  ;;  %13381 = vpow2.f32 %v11000_v11 }
 0x1fb   : > { %v13364_v52 = vpop.eup %13363  ;;  %v2210_v27 = vmul.f32 %v13362_v53, %v14379_v60  ;;  %13383 = vrcp.f32 %v2027_v32 }
 0x1fc   : > { %v13366_v49 = vpop.eup %13365  ;;  %v2252_v55 = vpack.c.bf16 %v2212_v46, %v2211_v38  ;;  %13385 = vrcp.f32 %v2025_v29  ;;  %v2215_v58 = vmul.f32 %v13364_v52, %v14387_v40  ;;  %v12537_v52 = vld [vmem:[%s17368_s4 + $0x144] ss:$40 sps:$4 sm:$0xff]   ;;  %v12538_v29 = vld [vmem:[%s17368_s4 + $0x150] ss:$40 sps:$4 sm:$0xff]  }
 0x1fd   : > { %v13368_v41 = vpop.eup %13367  ;;  %v2251_v33 = vpack.c.bf16 %v2210_v27, %v2209_v56  ;;  %v2213_v37 = vmul.f32 %v13366_v49, %v14393_v19  ;;  %v12540_v56 = vld [vmem:[%s17368_s4 + $0x154] ss:$40 sps:$4 sm:$0xff]   ;;  %v12535_v27 = vld [vmem:[%s17368_s4 + $0x140] ss:$40 sps:$4 sm:$0xff]  }
 0x1fe   : > { %v13370_v14 = vpop.eup %13369  ;;  %v2028_v35 = vadd.f32 1.0, %v13368_v41  ;;  %v12543_v49 = vld [vmem:[%s17368_s4 + $0x194] ss:$40 sps:$4 sm:$0xff]   ;;  %v12541_v41 = vld [vmem:[%s17368_s4 + $0x190] ss:$40 sps:$4 sm:$0xff]  }
 0x1ff   : > { %v13372_v30 = vpop.eup %13371  ;;  %v2026_v28 = vadd.f32 1.0, %v13370_v14  ;;  %12152 = vmatprep.subr.bf16.mxu1 %v2251_v33  ;;  %v12544_v33 = vld [vmem:[%s17368_s4 + $0x1a0] ss:$40 sps:$4 sm:$0xff]   ;;  %v12549_v14 = vld [vmem:[%s17368_s4 + $0x1e4] ss:$40 sps:$4 sm:$0xff]  }
 0x200   : > { %v13374_v2 = vpop.eup %13373  ;;  %13387 = vrcp.f32 %v2028_v35  ;;  %12153 = vmatpush3.bf16.msra.mxu1 %v2243_v24  ;;  %v2031_v44 = vadd.f32 1.0, %v13372_v30  ;;  %v12552_v35 = vld [vmem:[%s17368_s4 + $0x1f4] ss:$40 sps:$4 sm:$0xff]   ;;  %v12547_v30 = vld [vmem:[%s17368_s4 + $0x1e0] ss:$40 sps:$4 sm:$0xff]  }
 0x201   : > { %v13376_v59 = vpop.eup %13375  ;;  %13389 = vrcp.f32 %v2026_v28  ;;  %12154 = vmatprep.subr.bf16.mxu1 %v2252_v55  ;;  %v2029_v12 = vadd.f32 1.0, %v13374_v2  ;;  %v12546_v55 = vld [vmem:[%s17368_s4 + $0x1a4] ss:$40 sps:$4 sm:$0xff]   ;;  %v12550_v28 = vld [vmem:[%s17368_s4 + $0x1f0] ss:$40 sps:$4 sm:$0xff]  }
 0x202   : > { %v13378_v60 = vpop.eup %13377  ;;  %v2216_v4 = vmul.f32 %v13376_v59, %v14407_v13  ;;  %13391 = vrcp.f32 %v2031_v44  ;;  %v12555_v2 = vld [vmem:[%s17368_s4 + $0x234] ss:$40 sps:$4 sm:$0xff]   ;;  %v12558_v59 = vld [vmem:[%s17368_s4 + $0x244] ss:$40 sps:$4 sm:$0xff]  }
 0x203   : > { %v2214_v61 = vmul.f32 %v13378_v60, %v14412_v22  ;;  %v13380_v45 = vpop.eup %13379  ;;  %13393 = vrcp.f32 %v2029_v12  ;;  %v12553_v60 = vld [vmem:[%s17368_s4 + $0x230] ss:$40 sps:$4 sm:$0xff]   ;;  %v12564_v44 = vld [vmem:[%s17368_s4 + $0x24] ss:$40 sps:$4 sm:$0xff]  }
 0x204   : > { %12155 = vmatpush3.bf16.msra.mxu1 %v2244_v47  ;;  %v2254_v18 = vpack.c.bf16 %v2216_v4, %v2215_v58  ;;  %v13382_v11 = vpop.eup %13381  ;;  %v2032_v15 = vadd.f32 1.0, %v13380_v45  ;;  %v12556_v58 = vld [vmem:[%s17368_s4 + $0x240] ss:$40 sps:$4 sm:$0xff]   ;;  %v12561_v4 = vld [vmem:[%s17368_s4 + $0xc] ss:$40 sps:$4 sm:$0xff]  }
 0x205   : > { %v2253_v24 = vpack.c.bf16 %v2214_v61, %v2213_v37  ;;  %v2030_v40 = vadd.f32 1.0, %v13382_v11  ;;  %v13384_v13 = vpop.eup %13383  ;;  %v13546_v37 = vmov 0  }
 0x206   : > { %13395 = vrcp.f32 %v2032_v15  ;;  %v13386_v19 = vpop.eup %13385  ;;  %v2219_v47 = vmul.f32 %v13384_v13, %v14419_v17  ;;  %3002 = vmatprep.mubr.bf16.mxu0 %v13546_v37 }
 0x207   : > { %12156 = vmatprep.subr.bf16.mxu1 %v2253_v24  ;;  %13397 = vrcp.f32 %v2030_v40  ;;  %v2217_v53 = vmul.f32 %v13386_v19, %v14422_v50 }
 0x208   : > { %12157 = vmatpush3.bf16.msra.mxu1 %v2245_v25 }
 0x209   : > { %12158 = vmatprep.subr.bf16.mxu1 %v2254_v18 }
 0x20a   : > { %v13388_v9 = vpop.eup %13387 }
 0x20b   : > { %v13390_v5 = vpop.eup %13389  ;;  %v2220_v22 = vmul.f32 %v13388_v9, %v14443_v63 }
 0x20c   : > { %v2218_v38 = vmul.f32 %v13390_v5, %v14447_v7  ;;  %12159 = vmatpush3.bf16.msra.mxu1 %v2246_v51  ;;  %v13392_v0 = vpop.eup %13391  ;;  %v12559_v5 = vld [vmem:[%s17368_s4 + $0x8] ss:$40 sps:$4 sm:$0xff]  }
 0x20d   : > { %v2256_v46 = vpack.c.bf16 %v2220_v22, %v2219_v47  ;;  %v13394_v25 = vpop.eup %13393  ;;  %v2223_v50 = vmul.f32 %v13392_v0, %v14450_v39  ;;  %v12517_v39 = vld [vmem:[%s17368_s4 + $0x50] ss:$40 sps:$4 sm:$0xff]   ;;  %v12562_v47 = vld [vmem:[%s17368_s4 + $0x20] ss:$40 sps:$4 sm:$0xff]   ;;  %v12573_v0 = vld [vmem:[%s17368_s4 + $0xac] ss:$40 sps:$4 sm:$0xff]  }
 0x20e   : > { %v2255_v21 = vpack.c.bf16 %v2218_v38, %v2217_v53  ;;  %v2221_v32 = vmul.f32 %v13394_v25, %v14453_v8  ;;  %v12520_v8 = vld [vmem:[%s17368_s4 + $0x60] ss:$40 sps:$4 sm:$0xff]   ;;  %v12567_v53 = vld [vmem:[%s17368_s4 + $0x5c] ss:$40 sps:$4 sm:$0xff]  }
 0x20f   : > { %v12570_v38 = vld [vmem:[%s17368_s4 + $0x74] ss:$40 sps:$4 sm:$0xff]   ;;  %v12576_v25 = vld [vmem:[%s17368_s4 + $0xc4] ss:$40 sps:$4 sm:$0xff]  }
 0x210   : > { %12160 = vmatprep.subr.bf16.mxu1 %v2255_v21  ;;  %v13396_v17 = vpop.eup %13395  ;;  %v12568_v21 = vld [vmem:[%s17368_s4 + $0x70] ss:$40 sps:$4 sm:$0xff]  }
 0x211   : > { %12161 = vmatpush3.bf16.msra.mxu1 %v2247_v10  ;;  %v13398_v63 = vpop.eup %13397  ;;  %v2224_v7 = vmul.f32 %v13396_v17, %v14469_v6  ;;  %v12522_v10 = vld [vmem:[%s17368_s4 + $0x64] ss:$40 sps:$4 sm:$0xff]   ;;  %v12531_v6 = vld [vmem:[%s17368_s4 + $0xf4] ss:$40 sps:$4 sm:$0xff]   ;;  %v12571_v17 = vld [vmem:[%s17368_s4 + $0xa8] ss:$40 sps:$4 sm:$0xff]  }
 0x212   : > { %12162 = vmatprep.subr.bf16.mxu1 %v2256_v46  ;;  %v2222_v3 = vmul.f32 %v13398_v63, %v14473_v23  ;;  %2972 = vmatprep.subr.bf16.mxu0 %v12522_v10  ;;  %v12529_v23 = vld [vmem:[%s17368_s4 + $0xf0] ss:$40 sps:$4 sm:$0xff]   ;;  %v12574_v63 = vld [vmem:[%s17368_s4 + $0xc0] ss:$40 sps:$4 sm:$0xff]   ;;  %v12597_v10 = vld [vmem:[%s17368_s4 + $0x1ec] ss:$40 sps:$4 sm:$0xff]  }
 0x213   : > { %v2258_v57 = vpack.c.bf16 %v2224_v7, %v2223_v50  ;;  %2973 = vmatpush1.bf16.msra.mxu0 %v12520_v8  ;;  %v12565_v46 = vld [vmem:[%s17368_s4 + $0x58] ss:$40 sps:$4 sm:$0xff]   ;;  %v12579_v50 = vld [vmem:[%s17368_s4 + $0xfc] ss:$40 sps:$4 sm:$0xff]   ;;  %v12595_v8 = vld [vmem:[%s17368_s4 + $0x1e8] ss:$40 sps:$4 sm:$0xff]  }
 0x214   : > { %v2257_v51 = vpack.c.bf16 %v2222_v3, %v2221_v32  ;;  %2974 = vmatprep.subr.bf16.mxu0 %v12528_v42  ;;  %v12582_v7 = vld [vmem:[%s17368_s4 + $0x114] ss:$40 sps:$4 sm:$0xff]   ;;  %v12577_v32 = vld [vmem:[%s17368_s4 + $0xf8] ss:$40 sps:$4 sm:$0xff]  }
 0x215   : > { %12163 = vmatpush3.bf16.msra.mxu1 %v2248_v36  ;;  %v12519_v36 = vld [vmem:[%s17368_s4 + $0x54] ss:$40 sps:$4 sm:$0xff]   ;;  %v12580_v3 = vld [vmem:[%s17368_s4 + $0x110] ss:$40 sps:$4 sm:$0xff]  }
 0x216   : > { %12164 = vmatprep.subr.bf16.mxu1 %v2257_v51  ;;  %v12588_v51 = vld [vmem:[%s17368_s4 + $0x164] ss:$40 sps:$4 sm:$0xff]  }
 0x217   : > { %2975 = vmatpush1.bf16.msra.mxu0 %v12526_v16  ;;  %v12603_v42 = vld [vmem:[%s17368_s4 + $0x23c] ss:$40 sps:$4 sm:$0xff]   ;;  %v3174_v16 = vld [vmem:[%s17370_s6 + $0x8] sm:$0xff] }
 0x219   : > { %12165 = vmatpush3.bf16.msra.mxu1 %v2249_v20  ;;  %v12532_v20 = vld [vmem:[%s17368_s4 + $0x100] ss:$40 sps:$4 sm:$0xff]  }
 0x21a   : > { %12166 = vmatprep.subr.bf16.mxu1 %v2258_v57  ;;  %v12585_v57 = vld [vmem:[%s17368_s4 + $0x14c] ss:$40 sps:$4 sm:$0xff]  }
 0x21d   : > { %12167 = vmatpush3.bf16.msra.mxu1 %v2250_v48  ;;  %v12534_v48 = vld [vmem:[%s17368_s4 + $0x104] ss:$40 sps:$4 sm:$0xff]  }
 0x21e   : > { %2888 = vmatprep.subr.bf16.mxu1 %v12513_v31  ;;  %2976 = vmatprep.subr.bf16.mxu0 %v12534_v48  ;;  %v12591_v31 = vld [vmem:[%s17368_s4 + $0x19c] ss:$40 sps:$4 sm:$0xff]   ;;  %v12601_v48 = vld [vmem:[%s17368_s4 + $0x238] ss:$40 sps:$4 sm:$0xff]  }
 0x21f   : > { %2977 = vmatpush1.bf16.msra.mxu0 %v12532_v20  ;;  %v12609_v20 = vld [vmem:[%s17368_s4 + $0x1c] ss:$40 sps:$4 sm:$0xff]  }
 0x220   : > { %2346 = vmatmul.mubr.bf16.vlgmr.msra.gmra.mrb[4].mxu1 %v11005_v54  ;;  %2978 = vmatprep.subr.bf16.mxu0 %v12540_v56  ;;  %v12583_v54 = vld [vmem:[%s17368_s4 + $0x148] ss:$40 sps:$4 sm:$0xff]  }
 0x221   : > { %2889 = vmatpush1.bf16.msra.mxu1 %v12511_v43  ;;  %2920 = vmatprep.mubr.bf16.mxu1 %v13546_v37  ;;  %v12586_v43 = vld [vmem:[%s17368_s4 + $0x160] ss:$40 sps:$4 sm:$0xff]  }
 0x222   : > { %2890 = vmatprep.subr.bf16.mxu1 %v12519_v36  ;;  %v12592_v36 = vld [vmem:[%s17368_s4 + $0x1b0] ss:$40 sps:$4 sm:$0xff]   ;;  %v3182_v56 = vld [vmem:[%s17370_s6 + $0x48] sm:$0xff] }
 0x223   : > { %2979 = vmatpush1.bf16.msra.mxu0 %v12538_v29  ;;  %v12607_v29 = vld [vmem:[%s17368_s4 + $0x18] ss:$40 sps:$4 sm:$0xff]  }
 0x224   : > { %2980 = vmatprep.subr.bf16.mxu0 %v12546_v55 }
 0x225   : > { %2891 = vmatpush1.bf16.msra.mxu1 %v12517_v39  ;;  %v12600_v39 = vld [vmem:[%s17368_s4 + $0x204] ss:$40 sps:$4 sm:$0xff]  }
 0x226   : > { %2892 = vmatprep.subr.bf16.mxu1 %v12525_v26  ;;  %v12598_v26 = vld [vmem:[%s17368_s4 + $0x200] ss:$40 sps:$4 sm:$0xff]  }
 0x227   : > { %2981 = vmatpush1.bf16.msra.mxu0 %v12544_v33  ;;  %v3190_v33 = vld [vmem:[%s17370_s6 + $0x88] sm:$0xff] }
 0x228   : > { %2982 = vmatprep.subr.bf16.mxu0 %v12552_v35  ;;  %v12610_v35 = vld [vmem:[%s17368_s4 + $0x68] ss:$40 sps:$4 sm:$0xff]  }
 0x229   : > { %2893 = vmatpush1.bf16.msra.mxu1 %v12523_v34  ;;  %v12606_v34 = vld [vmem:[%s17368_s4 + $0x254] ss:$40 sps:$4 sm:$0xff]  }
 0x22a   : > { %2894 = vmatprep.subr.bf16.mxu1 %v12531_v6  ;;  %v3178_v6 = vld [vmem:[%s17370_s6 + $0x28] sm:$0xff] }
 0x22b   : > { %2983 = vmatpush1.bf16.msra.mxu0 %v12550_v28  ;;  %v11099_v55 = vcombine.low %v3174_v16, %v3178_v6 }
 0x22c   : > { %2984 = vmatprep.subr.bf16.mxu0 %v12558_v59  ;;  %v3198_v59 = vld [vmem:[%s17370_s6 + $0xc8] sm:$0xff] }
 0x22d   : > { %2895 = vmatpush1.bf16.msra.mxu1 %v12529_v23  ;;  %v12604_v23 = vld [vmem:[%s17368_s4 + $0x250] ss:$40 sps:$4 sm:$0xff]  }
 0x22e   : > { %2896 = vmatprep.subr.bf16.mxu1 %v12537_v52  ;;  %v11100_v52 = vcombine.high %v3174_v16, %v3178_v6 }
 0x22f   : > { %2985 = vmatpush1.bf16.msra.mxu0 %v12556_v58  ;;  %v12613_v58 = vld [vmem:[%s17368_s4 + $0xb8] ss:$40 sps:$4 sm:$0xff]  }
 0x230   : > { %3052 = vmatprep.subr.bf16.mxu0 %v12564_v44 }
 0x231   : > { %2897 = vmatpush1.bf16.msra.mxu1 %v12535_v27  ;;  %v3186_v27 = vld [vmem:[%s17370_s6 + $0x68] sm:$0xff] }
 0x232   : > { %2898 = vmatprep.subr.bf16.mxu1 %v12543_v49  ;;  %v12612_v49 = vld [vmem:[%s17368_s4 + $0x6c] ss:$40 sps:$4 sm:$0xff]   ;;  %v11107_v28 = vcombine.low %v3182_v56, %v3186_v27 }
 0x235   : > { %2899 = vmatpush1.bf16.msra.mxu1 %v12541_v41  ;;  %v11108_v41 = vcombine.high %v3182_v56, %v3186_v27  ;;  %v3217_v56 = vld [vmem:[%s17370_s6 + $0x160] sm:$0xff] }
 0x236   : > { %2900 = vmatprep.subr.bf16.mxu1 %v12549_v14  ;;  %v3194_v14 = vld [vmem:[%s17370_s6 + $0xa8] sm:$0xff] }
 0x237   : > { %v11115_v44 = vcombine.low %v3190_v33, %v3194_v14 }
 0x239   : > { %2901 = vmatpush1.bf16.msra.mxu1 %v12547_v30  ;;  %v12615_v30 = vld [vmem:[%s17368_s4 + $0xbc] ss:$40 sps:$4 sm:$0xff]  }
 0x23a   : > { %2902 = vmatprep.subr.bf16.mxu1 %v12555_v2  ;;  %v11116_v2 = vcombine.high %v3190_v33, %v3194_v14  ;;  %v3229_v14 = vld [vmem:[%s17370_s6 + $0x1c0] sm:$0xff] }
 0x23d   : > { %2903 = vmatpush1.bf16.msra.mxu1 %v12553_v60  ;;  %v3202_v60 = vld [vmem:[%s17370_s6 + $0xe8] sm:$0xff] }
 0x23e   : > { %2929 = vmatprep.subr.bf16.mxu1 %v12561_v4  ;;  %v12618_v4 = vld [vmem:[%s17368_s4 + $0x10c] ss:$40 sps:$4 sm:$0xff]  }
 0x2b0   : > { %v12146_v61 = vpop.f32.mrb[0].mxu1 }
 0x2b1   : > { %v12147_v12 = vpop.f32.mrb[1].mxu1 }
 0x2b2   : > { %v12148_v18 = vadd.f32 %v12147_v12, %v12146_v61  ;;  %v12149_v45 = vpop.f32.mrb[2].mxu1  ;;  %v3206_v61 = vld [vmem:[%s17370_s6 + $0x108] sm:$0xff] }
 0x2b3   : > { %v12150_v24 = vpop.f32.mrb[3].mxu1  ;;  %v3210_v12 = vld [vmem:[%s17370_s6 + $0x128] sm:$0xff]  ;;  %v12621_v45 = vld [vmem:[%s17368_s4 + $0x15c] ss:$40 sps:$4 sm:$0xff]  }
 0x2b4   : > { %v11123_v24 = vcombine.low %v3198_v59, %v3202_v60 }
 0x2f3   : > { %v12168_v11 = vpop.f32.mrb[4].mxu1 }
 0x2f4   : > { %v12169_v15 = vpop.f32.mrb[5].mxu1 }
 0x2f5   : > { %v12170_v40 = vadd.f32 %v12169_v15, %v12168_v11  ;;  %v12171_v13 = vpop.f32.mrb[6].mxu1  ;;  %v11132_v11 = vcombine.high %v3206_v61, %v3210_v12  ;;  %v3214_v15 = vld [vmem:[%s17370_s6 + $0x148] sm:$0xff] }
 0x2f6   : > { %v12172_v19 = vpop.f32.mrb[7].mxu1  ;;  %v12619_v13 = vld [vmem:[%s17368_s4 + $0x158] ss:$40 sps:$4 sm:$0xff]  }
 0x2f7   : > { %v2348_v9 = vadd.f32 %v12170_v40, %v12148_v18  ;;  %v12616_v18 = vld [vmem:[%s17368_s4 + $0x108] ss:$40 sps:$4 sm:$0xff]   ;;  %v12624_v19 = vld [vmem:[%s17368_s4 + $0x1ac] ss:$40 sps:$4 sm:$0xff]  }
 0x2f8   : > { %v3218_v40 = vld [vmem:[%s17370_s6 + $0x168] sm:$0xff] }
 0x2f9   : > { %v14631_v22 = vpack.c.bf16 %v2348_v9, %v2348_v9  ;;  %v11131_v9 = vcombine.low %v3206_v61, %v3210_v12  ;;  %v3250_v12 = vld [vmem:[%s17370_s6 + $0x268] sm:$0xff] }
 0x2fb   : > { %2921 = vmatmul.mubr.bf16.vlgmr.msra.gmra.mrb[8].mxu1 %v14631_v22  ;;  %3003 = vmatmul.mubr.bf16.vlgmr.msra.gmra.mrb[64].mxu0 %v14631_v22 }
 0x2fc   : > { %2930 = vmatpush1.bf16.msra.mxu1 %v12559_v5  ;;  %3053 = vmatpush1.bf16.msra.mxu0 %v12562_v47  ;;  %v11140_v5 = vcombine.high %v3214_v15, %v3218_v40  ;;  %v3222_v47 = vld [vmem:[%s17370_s6 + $0x188] sm:$0xff] }
 0x2fd   : > { %2931 = vmatprep.subr.bf16.mxu1 %v12567_v53  ;;  %3054 = vmatprep.subr.bf16.mxu0 %v12570_v38  ;;  %v3226_v53 = vld [vmem:[%s17370_s6 + $0x1a8] sm:$0xff] }
 0x2fe   : > { %2961 = vmatprep.mubr.bf16.mxu1 %v13546_v37  ;;  %3084 = vmatprep.mubr.bf16.mxu0 %v13546_v37  ;;  %v12622_v38 = vld [vmem:[%s17368_s4 + $0x1a8] ss:$40 sps:$4 sm:$0xff]  }
 0x300   : > { %2932 = vmatpush1.bf16.msra.mxu1 %v12565_v46  ;;  %3055 = vmatpush1.bf16.msra.mxu0 %v12568_v21  ;;  %v12627_v46 = vld [vmem:[%s17368_s4 + $0x1fc] ss:$40 sps:$4 sm:$0xff]   ;;  %v11139_v21 = vcombine.low %v3214_v15, %v3218_v40  ;;  %v3254_v40 = vld [vmem:[%s17370_s6 + $0x288] sm:$0xff] }
 0x301   : > { %2933 = vmatprep.subr.bf16.mxu1 %v12573_v0  ;;  %3056 = vmatprep.subr.bf16.mxu0 %v12576_v25  ;;  %v11148_v0 = vcombine.high %v3222_v47, %v3226_v53  ;;  %v3230_v25 = vld [vmem:[%s17370_s6 + $0x1c8] sm:$0xff]  ;;  %v3249_v15 = vld [vmem:[%s17370_s6 + $0x260] sm:$0xff] }
 0x304   : > { %2934 = vmatpush1.bf16.msra.mxu1 %v12571_v17  ;;  %3057 = vmatpush1.bf16.msra.mxu0 %v12574_v63  ;;  %v3234_v17 = vld [vmem:[%s17370_s6 + $0x1e8] sm:$0xff]  ;;  %v12625_v63 = vld [vmem:[%s17368_s4 + $0x1f8] ss:$40 sps:$4 sm:$0xff]  }
 0x305   : > { %2935 = vmatprep.subr.bf16.mxu1 %v12579_v50  ;;  %3058 = vmatprep.subr.bf16.mxu0 %v12582_v7  ;;  %v12630_v50 = vld [vmem:[%s17368_s4 + $0x24c] ss:$40 sps:$4 sm:$0xff]   ;;  %v11147_v7 = vcombine.low %v3222_v47, %v3226_v53  ;;  %v3253_v53 = vld [vmem:[%s17370_s6 + $0x280] sm:$0xff] }
 0x308   : > { %2936 = vmatpush1.bf16.msra.mxu1 %v12577_v32  ;;  %3059 = vmatpush1.bf16.msra.mxu0 %v12580_v3  ;;  %v3173_v32 = vld [vmem:[%s17370_s6] sm:$0xff] }
 0x309   : > { %2937 = vmatprep.subr.bf16.mxu1 %v12585_v57  ;;  %3060 = vmatprep.subr.bf16.mxu0 %v12588_v51  ;;  %v3177_v3 = vld [vmem:[%s17370_s6 + $0x20] sm:$0xff]  ;;  %v11156_v57 = vcombine.high %v3230_v25, %v3234_v17  ;;  %v12628_v51 = vld [vmem:[%s17368_s4 + $0x248] ss:$40 sps:$4 sm:$0xff]  }
 0x30c   : > { %2938 = vmatpush1.bf16.msra.mxu1 %v12583_v54  ;;  %3061 = vmatpush1.bf16.msra.mxu0 %v12586_v43  ;;  %v11098_v54 = vcombine.high %v3173_v32, %v3177_v3  ;;  %v11155_v43 = vcombine.low %v3230_v25, %v3234_v17 }
 0x30d   : > { %2939 = vmatprep.subr.bf16.mxu1 %v12591_v31  ;;  %3062 = vmatprep.subr.bf16.mxu0 %v12594_v1  ;;  %v3181_v31 = vld [vmem:[%s17370_s6 + $0x40] sm:$0xff] }
 0x30e   : > { %v3185_v1 = vld [vmem:[%s17370_s6 + $0x60] sm:$0xff] }
 0x310   : > { %2940 = vmatpush1.bf16.msra.mxu1 %v12589_v62  ;;  %3063 = vmatpush1.bf16.msra.mxu0 %v12592_v36  ;;  %v11097_v62 = vcombine.low %v3173_v32, %v3177_v3  ;;  %v11106_v36 = vcombine.high %v3181_v31, %v3185_v1  ;;  %v3270_v32 = vld [vmem:[%s17370_s6 + $0x308] sm:$0xff] }
 0x311   : > { %2941 = vmatprep.subr.bf16.mxu1 %v12597_v10  ;;  %3064 = vmatprep.subr.bf16.mxu0 %v12600_v39  ;;  %v3189_v10 = vld [vmem:[%s17370_s6 + $0x80] sm:$0xff] }
 0x312   : > { %v3193_v39 = vld [vmem:[%s17370_s6 + $0xa0] sm:$0xff] }
 0x313   : > { %v11113_v16 = vcombine.low %v3189_v10, %v3193_v39 }
 0x314   : > { %2942 = vmatpush1.bf16.msra.mxu1 %v12595_v8  ;;  %3065 = vmatpush1.bf16.msra.mxu0 %v12598_v26  ;;  %v11105_v8 = vcombine.low %v3181_v31, %v3185_v1  ;;  %v11114_v26 = vcombine.high %v3189_v10, %v3193_v39  ;;  %v3269_v31 = vld [vmem:[%s17370_s6 + $0x300] sm:$0xff]  ;;  %v3282_v10 = vld [vmem:[%s17370_s6 + $0x368] sm:$0xff] }
 0x315   : > { %2943 = vmatprep.subr.bf16.mxu1 %v12603_v42  ;;  %3066 = vmatprep.subr.bf16.mxu0 %v12606_v34  ;;  %v3197_v42 = vld [vmem:[%s17370_s6 + $0xc0] sm:$0xff] }
 0x316   : > { %v3201_v34 = vld [vmem:[%s17370_s6 + $0xe0] sm:$0xff] }
 0x317   : > { %v11122_v6 = vcombine.high %v3197_v42, %v3201_v34  ;;  %v3273_v1 = vld [vmem:[%s17370_s6 + $0x320] sm:$0xff] }
 0x318   : > { %2944 = vmatpush1.bf16.msra.mxu1 %v12601_v48  ;;  %3067 = vmatpush1.bf16.msra.mxu0 %v12604_v23  ;;  %v3209_v48 = vld [vmem:[%s17370_s6 + $0x120] sm:$0xff]  ;;  %v11121_v23 = vcombine.low %v3197_v42, %v3201_v34  ;;  %v11194_v39 = vcombine.high %v3269_v31, %v3273_v1 }
 0x319   : > { %3011 = vmatprep.subr.bf16.mxu1 %v12609_v20  ;;  %7260 = vmatprep.subr.bf16.mxu0 %v11100_v52  ;;  %v3213_v52 = vld [vmem:[%s17370_s6 + $0x140] sm:$0xff] }
 0x31a   : > { %v3277_v42 = vld [vmem:[%s17370_s6 + $0x340] sm:$0xff] }
 0x31b   : > { %2962 = vmatmul.mubr.bf16.vlgmr.msra.gmra.mrb[12].mxu1 %v14631_v22  ;;  %3085 = vmatmul.mubr.bf16.vlgmr.msra.gmra.mrb[68].mxu0 %v14631_v22  ;;  %v3281_v34 = vld [vmem:[%s17370_s6 + $0x360] sm:$0xff] }
 0x31c   : > { %3012 = vmatpush1.bf16.msra.mxu1 %v12607_v29  ;;  %3043 = vmatprep.mubr.bf16.mxu1 %v13546_v37  ;;  %v11124_v37 = vcombine.high %v3198_v59, %v3202_v60  ;;  %v11138_v29 = vcombine.high %v3213_v52, %v3217_v56 }
 0x31d   : > { %3013 = vmatprep.subr.bf16.mxu1 %v12612_v49  ;;  %7261 = vmatpush1.bf16.msra.mxu0 %v11099_v55  ;;  %v3221_v49 = vld [vmem:[%s17370_s6 + $0x180] sm:$0xff] }
 0x31e   : > { %7262 = vmatprep.subr.bf16.mxu0 %v11108_v41  ;;  %v3225_v55 = vld [vmem:[%s17370_s6 + $0x1a0] sm:$0xff]  ;;  %v11137_v41 = vcombine.low %v3213_v52, %v3217_v56 }
 0x31f   : > { %v11146_v33 = vcombine.high %v3221_v49, %v3225_v55  ;;  %v3285_v52 = vld [vmem:[%s17370_s6 + $0x380] sm:$0xff] }
 0x320   : > { %3014 = vmatpush1.bf16.msra.mxu1 %v12610_v35  ;;  %v3233_v35 = vld [vmem:[%s17370_s6 + $0x1e0] sm:$0xff] }
 0x321   : > { %3015 = vmatprep.subr.bf16.mxu1 %v12615_v30  ;;  %7263 = vmatpush1.bf16.msra.mxu0 %v11107_v28  ;;  %v3238_v30 = vld [vmem:[%s17370_s6 + $0x208] sm:$0xff]  ;;  %v11145_v28 = vcombine.low %v3221_v49, %v3225_v55  ;;  %v11154_v59 = vcombine.high %v3229_v14, %v3233_v35  ;;  %v11153_v61 = vcombine.low %v3229_v14, %v3233_v35  ;;  %v3289_v56 = vld [vmem:[%s17370_s6 + $0x3a0] sm:$0xff] }
 0x322   : > { %7264 = vmatprep.subr.bf16.mxu0 %v11116_v2  ;;  %v3242_v2 = vld [vmem:[%s17370_s6 + $0x228] sm:$0xff]  ;;  %v11210_v55 = vcombine.high %v3285_v52, %v3289_v56  ;;  %v3293_v14 = vld [vmem:[%s17370_s6 + $0x3c0] sm:$0xff] }
 0x323   : > { %v11163_v60 = vcombine.low %v3238_v30, %v3242_v2  ;;  %v3298_v49 = vld [vmem:[%s17370_s6 + $0x3e8] sm:$0xff]  ;;  %v3297_v35 = vld [vmem:[%s17370_s6 + $0x3e0] sm:$0xff] }
 0x324   : > { %3016 = vmatpush1.bf16.msra.mxu1 %v12613_v58  ;;  %v11164_v58 = vcombine.high %v3238_v30, %v3242_v2  ;;  %v11209_v30 = vcombine.low %v3285_v52, %v3289_v56  ;;  %v14973_v2 = vld [vmem:[%s17370_s6 + $0x420] sm:$0xff] }
 0x325   : > { %3017 = vmatprep.subr.bf16.mxu1 %v12618_v4  ;;  %7265 = vmatpush1.bf16.msra.mxu0 %v11115_v44  ;;  %v3237_v4 = vld [vmem:[%s17370_s6 + $0x200] sm:$0xff] }
 0x326   : > { %7266 = vmatprep.subr.bf16.mxu0 %v11124_v37  ;;  %v3241_v44 = vld [vmem:[%s17370_s6 + $0x220] sm:$0xff]  ;;  %v3246_v37 = vld [vmem:[%s17370_s6 + $0x248] sm:$0xff] }
 0x327   : > { %v3317_v56 = vld [vmem:[%s17370_s6 + $0x480] sm:$0xff] }
 0x328   : > { %3018 = vmatpush1.bf16.msra.mxu1 %v12616_v18  ;;  %v11162_v18 = vcombine.high %v3237_v4, %v3241_v44 }
 0x329   : > { %3019 = vmatprep.subr.bf16.mxu1 %v12621_v45  ;;  %7267 = vmatpush1.bf16.msra.mxu0 %v11123_v24  ;;  %v11171_v45 = vcombine.low %v3246_v37, %v3250_v12  ;;  %v11172_v24 = vcombine.high %v3246_v37, %v3250_v12 }
 0x32a   : > { %7268 = vmatprep.subr.bf16.mxu0 %v11132_v11  ;;  %v3245_v11 = vld [vmem:[%s17370_s6 + $0x240] sm:$0xff] }
 0x32c   : > { %3020 = vmatpush1.bf16.msra.mxu1 %v12619_v13  ;;  %v11161_v13 = vcombine.low %v3237_v4, %v3241_v44 }
 0x32d   : > { %3021 = vmatprep.subr.bf16.mxu1 %v12624_v19  ;;  %7269 = vmatpush1.bf16.msra.mxu0 %v11131_v9  ;;  %v3258_v19 = vld [vmem:[%s17370_s6 + $0x2a8] sm:$0xff]  ;;  %v11170_v9 = vcombine.high %v3245_v11, %v3249_v15 }
 0x32e   : > { %7270 = vmatprep.subr.bf16.mxu0 %v11140_v5  ;;  %v11179_v5 = vcombine.low %v3254_v40, %v3258_v19  ;;  %v11180_v47 = vcombine.high %v3254_v40, %v3258_v19 }
 0x330   : > { %3022 = vmatpush1.bf16.msra.mxu1 %v12622_v38  ;;  %v3257_v38 = vld [vmem:[%s17370_s6 + $0x2a0] sm:$0xff] }
 0x331   : > { %3023 = vmatprep.subr.bf16.mxu1 %v12627_v46  ;;  %7271 = vmatpush1.bf16.msra.mxu0 %v11139_v21  ;;  %v3262_v46 = vld [vmem:[%s17370_s6 + $0x2c8] sm:$0xff]  ;;  %v11169_v21 = vcombine.low %v3245_v11, %v3249_v15  ;;  %v11178_v25 = vcombine.high %v3253_v53, %v3257_v38  ;;  %v11177_v3 = vcombine.low %v3253_v53, %v3257_v38  ;;  %v15001_v11 = vld [vmem:[%s17369_s5] sm:$0xff] }
 0x332   : > { %7272 = vmatprep.subr.bf16.mxu0 %v11148_v0  ;;  %v3266_v0 = vld [vmem:[%s17370_s6 + $0x2e8] sm:$0xff] }
 0x333   : > { %v11187_v17 = vcombine.low %v3262_v46, %v3266_v0 }
 0x334   : > { %3024 = vmatpush1.bf16.msra.mxu1 %v12625_v63  ;;  %v11188_v63 = vcombine.high %v3262_v46, %v3266_v0 }
 0x335   : > { %3025 = vmatprep.subr.bf16.mxu1 %v12630_v50  ;;  %7273 = vmatpush1.bf16.msra.mxu0 %v11147_v7  ;;  %v3261_v50 = vld [vmem:[%s17370_s6 + $0x2c0] sm:$0xff] }
 0x336   : > { %7274 = vmatprep.subr.bf16.mxu0 %v11156_v57  ;;  %v3265_v7 = vld [vmem:[%s17370_s6 + $0x2e0] sm:$0xff]  ;;  %v3274_v57 = vld [vmem:[%s17370_s6 + $0x328] sm:$0xff] }
 0x338   : > { %3026 = vmatpush1.bf16.msra.mxu1 %v12628_v51  ;;  %v11186_v51 = vcombine.high %v3261_v50, %v3265_v7 }
 0x339   : > { %7055 = vmatprep.subr.bf16.mxu1 %v11098_v54  ;;  %7275 = vmatpush1.bf16.msra.mxu0 %v11155_v43  ;;  %v11195_v54 = vcombine.low %v3270_v32, %v3274_v57  ;;  %v11196_v43 = vcombine.high %v3270_v32, %v3274_v57 }
 0x33a   : > { %7276 = vmatprep.subr.bf16.mxu0 %v11164_v58  ;;  %v14983_v58 = vld [vmem:[%s17370_s6 + $0x428] sm:$0xff] }
 0x33b   : > { %3044 = vmatmul.mubr.bf16.vlgmr.msra.gmra.mrb[16].mxu1 %v14631_v22  ;;  %v3205_v22 = vld [vmem:[%s17370_s6 + $0x100] sm:$0xff] }
 0x33c   : > { %7056 = vmatpush1.bf16.msra.mxu1 %v11097_v62  ;;  %v11130_v20 = vcombine.high %v3205_v22, %v3209_v48  ;;  %v11129_v27 = vcombine.low %v3205_v22, %v3209_v48  ;;  %v3278_v62 = vld [vmem:[%s17370_s6 + $0x348] sm:$0xff]  ;;  %v11202_v48 = vcombine.high %v3277_v42, %v3281_v34 }
 0x33d   : > { %7057 = vmatprep.subr.bf16.mxu1 %v11106_v36  ;;  %7277 = vmatpush1.bf16.msra.mxu0 %v11163_v60  ;;  %v11185_v36 = vcombine.low %v3261_v50, %v3265_v7  ;;  %v3290_v22 = vld [vmem:[%s17370_s6 + $0x3a8] sm:$0xff]  ;;  %v11218_v60 = vcombine.high %v3293_v14, %v3297_v35 }
 0x33e   : > { %7278 = vmatprep.subr.bf16.mxu0 %v11172_v24 }
 0x340   : > { %7058 = vmatpush1.bf16.msra.mxu1 %v11105_v8  ;;  %v11203_v8 = vcombine.low %v3278_v62, %v3282_v10 }
 0x341   : > { %7059 = vmatprep.subr.bf16.mxu1 %v11114_v26  ;;  %7279 = vmatpush1.bf16.msra.mxu0 %v11171_v45  ;;  %v11204_v26 = vcombine.high %v3278_v62, %v3282_v10  ;;  %v3310_v10 = vld [vmem:[%s17370_s6 + $0x448] sm:$0xff] }
 0x342   : > { %7280 = vmatprep.subr.bf16.mxu0 %v11180_v47 }
 0x344   : > { %7060 = vmatpush1.bf16.msra.mxu1 %v11113_v16  ;;  %v3286_v16 = vld [vmem:[%s17370_s6 + $0x388] sm:$0xff] }
 0x345   : > { %7061 = vmatprep.subr.bf16.mxu1 %v11122_v6  ;;  %7281 = vmatpush1.bf16.msra.mxu0 %v11179_v5  ;;  %v11193_v6 = vcombine.low %v3269_v31, %v3273_v1  ;;  %v3309_v1 = vld [vmem:[%s17370_s6 + $0x440] sm:$0xff] }
 0x346   : > { %7282 = vmatprep.subr.bf16.mxu0 %v11188_v63 }
 0x348   : > { %7062 = vmatpush1.bf16.msra.mxu1 %v11121_v23  ;;  %v11211_v23 = vcombine.low %v3286_v16, %v3290_v22 }
 0x349   : > { %7063 = vmatprep.subr.bf16.mxu1 %v11130_v20  ;;  %7283 = vmatpush1.bf16.msra.mxu0 %v11187_v17  ;;  %v11212_v20 = vcombine.high %v3286_v16, %v3290_v22 }
 0x34a   : > { %7284 = vmatprep.subr.bf16.mxu0 %v11196_v43 }
 0x34c   : > { %7064 = vmatpush1.bf16.msra.mxu1 %v11129_v27  ;;  %v3294_v27 = vld [vmem:[%s17370_s6 + $0x3c8] sm:$0xff] }
 0x34d   : > { %7065 = vmatprep.subr.bf16.mxu1 %v11138_v29  ;;  %7285 = vmatpush1.bf16.msra.mxu0 %v11195_v54  ;;  %v11201_v29 = vcombine.low %v3277_v42, %v3281_v34 }
 0x34e   : > { %7286 = vmatprep.subr.bf16.mxu0 %v11204_v26 }
 0x350   : > { %7066 = vmatpush1.bf16.msra.mxu1 %v11137_v41  ;;  %v11219_v41 = vcombine.low %v3294_v27, %v3298_v49 }
 0x351   : > { %7067 = vmatprep.subr.bf16.mxu1 %v11146_v33  ;;  %7287 = vmatpush1.bf16.msra.mxu0 %v11203_v8  ;;  %v11220_v33 = vcombine.high %v3294_v27, %v3298_v49  ;;  %v3321_v49 = vld [vmem:[%s17370_s6 + $0x4a0] sm:$0xff] }
 0x352   : > { %7288 = vmatprep.subr.bf16.mxu0 %v11212_v20 }
 0x354   : > { %7068 = vmatpush1.bf16.msra.mxu1 %v11145_v28  ;;  %v14968_v28 = vld [vmem:[%s17370_s6 + $0x400] sm:$0xff] }
 0x355   : > { %7069 = vmatprep.subr.bf16.mxu1 %v11154_v59  ;;  %7289 = vmatpush1.bf16.msra.mxu0 %v11211_v23  ;;  %v14978_v59 = vld [vmem:[%s17370_s6 + $0x408] sm:$0xff]  ;;  %v11225_v4 = vcombine.low %v14968_v28, %v14973_v2  ;;  %v11226_v12 = vcombine.high %v14968_v28, %v14973_v2  ;;  %v3329_v28 = vld [vmem:[%s17370_s6 + $0x4e0] sm:$0xff] }
 0x356   : > { %7290 = vmatprep.subr.bf16.mxu0 %v11220_v33  ;;  %v11227_v44 = vcombine.low %v14978_v59, %v14983_v58  ;;  %v11228_v37 = vcombine.high %v14978_v59, %v14983_v58  ;;  %v3326_v2 = vld [vmem:[%s17370_s6 + $0x4c8] sm:$0xff]  ;;  %v11241_v58 = vcombine.low %v3317_v56, %v3321_v49 }
 0x357   : > { %v3330_v59 = vld [vmem:[%s17370_s6 + $0x4e8] sm:$0xff] }
 0x358   : > { %7070 = vmatpush1.bf16.msra.mxu1 %v11153_v61  ;;  %v11217_v61 = vcombine.low %v3293_v14, %v3297_v35 }
 0x359   : > { %7071 = vmatprep.subr.bf16.mxu1 %v11162_v18  ;;  %7291 = vmatpush1.bf16.msra.mxu0 %v11219_v41  ;;  %v2438_v18 = vlaneseq  ;;  %v3322_v41 = vld [vmem:[%s17370_s6 + $0x4a8] sm:$0xff] }
 0x35a   : > { %7301 = vmatprep.subr.bf16.mxu0 %v11228_v37  ;;  %v3325_v37 = vld [vmem:[%s17370_s6 + $0x4c0] sm:$0xff] }
 0x35b   : > { %v14993_v45 = vshrl.u32 %v2438_v18, 7  ;;  %v3337_v18 = vld [vmem:[%s17370_s6 + $0x520] sm:$0xff] }
 0x35c   : > { %7072 = vmatpush1.bf16.msra.mxu1 %v11161_v13 }
 0x35d   : > { %7073 = vmatprep.subr.bf16.mxu1 %v11170_v9  ;;  %v14996_v24 = vsub.s32 0, %v14993_v45  ;;  %v15004_v15 = vsub.s32 1, %v14993_v45  ;;  %v15015_v57 = vsub.s32 3, %v14993_v45 }
 0x35f   : > { %v2441_v40 = vrot.slane %v15001_v11, %v14996_v24  ;;  %v2445_v13 = vrot.slane %v15001_v11, %v15004_v15  ;;  %v2453_v31 = vrot.slane %v15001_v11, %v15015_v57 }
 0x360   : > { %7074 = vmatpush1.bf16.msra.mxu1 %v11169_v21 }
 0x361   : > { %7075 = vmatprep.subr.bf16.mxu1 %v11178_v25 }
 0x364   : > { %7076 = vmatpush1.bf16.msra.mxu1 %v11177_v3 }
 0x365   : > { %7077 = vmatprep.subr.bf16.mxu1 %v11186_v51 }
 0x368   : > { %7078 = vmatpush1.bf16.msra.mxu1 %v11185_v36  ;;  %v3313_v36 = vld [vmem:[%s17370_s6 + $0x460] sm:$0xff] }
 0x369   : > { %7079 = vmatprep.subr.bf16.mxu1 %v11194_v39  ;;  %v3314_v39 = vld [vmem:[%s17370_s6 + $0x468] sm:$0xff]  ;;  %v11234_v20 = vcombine.high %v3309_v1, %v3313_v36  ;;  %v11233_v14 = vcombine.low %v3309_v1, %v3313_v36 }
 0x36a   : > { %v11236_v52 = vcombine.high %v3310_v10, %v3314_v39  ;;  %v11235_v35 = vcombine.low %v3310_v10, %v3314_v39  ;;  %v3350_v1 = vld [vmem:[%s17370_s6 + $0x588] sm:$0xff] }
 0x36c   : > { %7080 = vmatpush1.bf16.msra.mxu1 %v11193_v6 }
 0x36d   : > { %7081 = vmatprep.subr.bf16.mxu1 %v11202_v48 }
 0x370   : > { %7082 = vmatpush1.bf16.msra.mxu1 %v11201_v29 }
 0x371   : > { %7083 = vmatprep.subr.bf16.mxu1 %v11210_v55  ;;  %v3318_v55 = vld [vmem:[%s17370_s6 + $0x488] sm:$0xff] }
 0x374   : > { %7084 = vmatpush1.bf16.msra.mxu1 %v11209_v30  ;;  %v11242_v30 = vcombine.high %v3317_v56, %v3321_v49  ;;  %v3358_v56 = vld [vmem:[%s17370_s6 + $0x5c8] sm:$0xff] }
 0x375   : > { %7085 = vmatprep.subr.bf16.mxu1 %v11218_v60  ;;  %v11244_v60 = vcombine.high %v3318_v55, %v3322_v41 }
 0x378   : > { %7086 = vmatpush1.bf16.msra.mxu1 %v11217_v61  ;;  %v11252_v61 = vcombine.high %v3326_v2, %v3330_v59 }
 0x379   : > { %7096 = vmatprep.subr.bf16.mxu1 %v11226_v12  ;;  %v3333_v12 = vld [vmem:[%s17370_s6 + $0x500] sm:$0xff] }
 0x3ce   : > { %v2922_v19 = vpop.f32.mrb[8].mxu1  ;;  %v15010_v9 = vpop.f32.mrb[64].mxu0 }
 0x3cf   : > { %v2923_v5 = vadd.f32 %v2922_v19, %v2441_v40  ;;  %v2924_v47 = vpop.f32.mrb[9].mxu1  ;;  %v15012_v53 = vpop.f32.mrb[65].mxu0  ;;  %v3334_v40 = vld [vmem:[%s17370_s6 + $0x508] sm:$0xff]  ;;  %v11249_v19 = vcombine.low %v3325_v37, %v3329_v28 }
 0x3d0   : > { %v2925_v38 = vadd.f32 %v2924_v47, %v2445_v13  ;;  %v2926_v46 = vpop.f32.mrb[10].mxu1  ;;  %v3008_v21 = vpop.f32.mrb[66].mxu0  ;;  %v3338_v13 = vld [vmem:[%s17370_s6 + $0x528] sm:$0xff]  ;;  %v11258_v47 = vcombine.high %v3333_v12, %v3337_v18 }
 0x3d1   : > { %v11087_v0 = vmul.f32 -1.442695, %v2923_v5  ;;  %v2927_v25 = vpop.f32.mrb[11].mxu1  ;;  %v3009_v17 = vpop.f32.mrb[67].mxu0  ;;  %v3341_v46 = vld [vmem:[%s17370_s6 + $0x540] sm:$0xff] }
 0x3d2   : > { %v11088_v63 = vmul.f32 -1.442695, %v2925_v38  ;;  %v3345_v21 = vld [vmem:[%s17370_s6 + $0x560] sm:$0xff]  ;;  %v3346_v25 = vld [vmem:[%s17370_s6 + $0x568] sm:$0xff]  ;;  %v15103_v17 = vsub.s32 2, %v14993_v45 }
 0x3d3   : > { %13399 = vpow2.f32 %v11087_v0  ;;  %v3342_v0 = vld [vmem:[%s17370_s6 + $0x548] sm:$0xff]  ;;  %v11265_v39 = vcombine.low %v3341_v46, %v3345_v21 }
 0x3d4   : > { %13401 = vpow2.f32 %v11088_v63  ;;  %v2449_v36 = vrot.slane %v15001_v11, %v15103_v17 }
 0x3dd   : > { %v13400_v50 = vpop.eup %13399 }
 0x3de   : > { %v3123_v7 = vadd.f32 1.0, %v13400_v50  ;;  %v13402_v32 = vpop.eup %13401  ;;  %v2460_v50 = vsub.s32 5, %v14993_v45 }
 0x3df   : > { %v3124_v3 = vadd.f32 1.0, %v13402_v32  ;;  %v11259_v32 = vcombine.low %v3334_v40, %v3338_v13 }
 0x3e0   : > { %13403 = vrcp.f32 %v3123_v7  ;;  %v11257_v7 = vcombine.low %v3333_v12, %v3337_v18  ;;  %v2461_v10 = vrot.slane %v15001_v11, %v2460_v50  ;;  %v3377_v12 = vld [vmem:[%s17370_s6 + $0x660] sm:$0xff]  ;;  %v3374_v18 = vld [vmem:[%s17370_s6 + $0x648] sm:$0xff] }
 0x3e1   : > { %13405 = vrcp.f32 %v3124_v3 }
 0x3e2   : > { %v15139_v49 = vadd.f32 %v15012_v53, %v2461_v10  ;;  %v3366_v53 = vld [vmem:[%s17370_s6 + $0x608] sm:$0xff] }
 0x3ea   : > { %v13404_v51 = vpop.eup %13403 }
 0x3eb   : > { %v13406_v54 = vpop.eup %13405  ;;  %v3153_v43 = vmul.f32 %v13404_v51, %v2923_v5  ;;  %v11251_v5 = vcombine.low %v3326_v2, %v3330_v59  ;;  %v11266_v51 = vcombine.high %v3341_v46, %v3345_v21 }
 0x3ec   : > { %v3154_v62 = vmul.f32 %v13406_v54, %v2925_v38  ;;  %v11260_v38 = vcombine.high %v3334_v40, %v3338_v13  ;;  %v11268_v54 = vcombine.high %v3342_v0, %v3346_v25  ;;  %v3378_v40 = vld [vmem:[%s17370_s6 + $0x668] sm:$0xff] }
 0x3ed   : > { %v15039_v6 = vpack.c.bf16 %v3153_v43, %v3153_v43  ;;  %v3349_v43 = vld [vmem:[%s17370_s6 + $0x580] sm:$0xff]  ;;  %v11300_v21 = vcombine.high %v3374_v18, %v3378_v40 }
 0x3ee   : > { %v15031_v8 = vpop.f32.mrb[12].mxu1  ;;  %v15033_v26 = vpop.f32.mrb[68].mxu0  ;;  %v15035_v42 = vpack.c.bf16 %v3154_v62, %v3154_v62  ;;  %v3354_v62 = vld [vmem:[%s17370_s6 + $0x5a8] sm:$0xff] }
 0x3ef   : > { %v2965_v34 = vpop.f32.mrb[13].mxu1  ;;  %v15037_v16 = vpop.f32.mrb[69].mxu0 }
 0x3f0   : > { %v15041_v22 = vadd.f32 %v2965_v34, %v2453_v31  ;;  %v2967_v48 = vpop.f32.mrb[14].mxu1  ;;  %v3090_v23 = vpop.f32.mrb[70].mxu0  ;;  %7087 = vmatprep.mubr.bf16.mxu1 %v15035_v42  ;;  %7292 = vmatprep.mubr.bf16.mxu0 %v15035_v42  ;;  %v3353_v31 = vld [vmem:[%s17370_s6 + $0x5a0] sm:$0xff]  ;;  %v11267_v34 = vcombine.low %v3342_v0, %v3346_v25 }
 0x3f1   : > { %v2968_v27 = vpop.f32.mrb[15].mxu1  ;;  %v3091_v29 = vpop.f32.mrb[71].mxu0  ;;  %7088 = vmatmul.mubr.bf16.vlgmr.msra.gmra.mrb[20].mxu1 %v15039_v6  ;;  %7293 = vmatmul.mubr.bf16.vlgmr.msra.gmra.mrb[72].mxu0 %v15039_v6  ;;  %v11274_v48 = vcombine.high %v3349_v43, %v3353_v31  ;;  %v11276_v23 = vcombine.high %v3350_v1, %v3354_v62  ;;  %v3381_v0 = vld [vmem:[%s17370_s6 + $0x680] sm:$0xff] }
 0x3f2   : > { %v11090_v33 = vmul.f32 -1.442695, %v15041_v22  ;;  %7097 = vmatpush1.bf16.msra.mxu1 %v11225_v4  ;;  %7302 = vmatpush1.bf16.msra.mxu0 %v11227_v44  ;;  %v11243_v4 = vcombine.low %v3318_v55, %v3322_v41  ;;  %v11250_v44 = vcombine.high %v3325_v37, %v3329_v28  ;;  %v3362_v27 = vld [vmem:[%s17370_s6 + $0x5e8] sm:$0xff]  ;;  %v15136_v29 = vadd.f32 %v15031_v8, %v2449_v36  ;;  %v3369_v8 = vld [vmem:[%s17370_s6 + $0x620] sm:$0xff] }
 0x3f3   : > { %7098 = vmatprep.subr.bf16.mxu1 %v11234_v20  ;;  %7303 = vmatprep.subr.bf16.mxu0 %v11236_v52  ;;  %v3357_v20 = vld [vmem:[%s17370_s6 + $0x5c0] sm:$0xff]  ;;  %v11273_v55 = vcombine.low %v3349_v43, %v3353_v31  ;;  %v11275_v41 = vcombine.low %v3350_v1, %v3354_v62  ;;  %v11092_v37 = vmul.f32 -1.442695, %v15139_v49  ;;  %v11283_v2 = vcombine.low %v3358_v56, %v3362_v27  ;;  %v3390_v62 = vld [vmem:[%s17370_s6 + $0x6c8] sm:$0xff] }
 0x3f4   : > { %13407 = vpow2.f32 %v11090_v33  ;;  %v3361_v52 = vld [vmem:[%s17370_s6 + $0x5e0] sm:$0xff]  ;;  %v3394_v36 = vld [vmem:[%s17370_s6 + $0x6e8] sm:$0xff] }
 0x3f5   : > { %v11282_v33 = vcombine.high %v3357_v20, %v3361_v52  ;;  %v11281_v28 = vcombine.low %v3357_v20, %v3361_v52  ;;  %v3389_v31 = vld [vmem:[%s17370_s6 + $0x6c0] sm:$0xff] }
 0x3f6   : > { %7099 = vmatpush1.bf16.msra.mxu1 %v11233_v14  ;;  %7304 = vmatpush1.bf16.msra.mxu0 %v11235_v35  ;;  %v11284_v14 = vcombine.high %v3358_v56, %v3362_v27  ;;  %v3365_v35 = vld [vmem:[%s17370_s6 + $0x600] sm:$0xff]  ;;  %v3398_v27 = vld [vmem:[%s17370_s6 + $0x708] sm:$0xff] }
 0x3f7   : > { %7100 = vmatprep.subr.bf16.mxu1 %v11242_v30  ;;  %7305 = vmatprep.subr.bf16.mxu0 %v11244_v60  ;;  %v3370_v30 = vld [vmem:[%s17370_s6 + $0x628] sm:$0xff]  ;;  %v11089_v60 = vmul.f32 -1.442695, %v15136_v29  ;;  %v3393_v1 = vld [vmem:[%s17370_s6 + $0x6e0] sm:$0xff] }
 0x3f8   : > { %v3397_v20 = vld [vmem:[%s17370_s6 + $0x700] sm:$0xff] }
 0x3f9   : > { %v3401_v56 = vld [vmem:[%s17370_s6 + $0x720] sm:$0xff] }
 0x3fa   : > { %7101 = vmatpush1.bf16.msra.mxu1 %v11241_v58  ;;  %7306 = vmatpush1.bf16.msra.mxu0 %v11243_v4  ;;  %v11290_v58 = vcombine.high %v3365_v35, %v3369_v8  ;;  %v11292_v4 = vcombine.high %v3366_v53, %v3370_v30 }
 0x3fb   : > { %7102 = vmatprep.subr.bf16.mxu1 %v11250_v44  ;;  %7307 = vmatprep.subr.bf16.mxu0 %v11252_v61  ;;  %v3373_v44 = vld [vmem:[%s17370_s6 + $0x640] sm:$0xff] }
 0x3fc   : > { %v11298_v46 = vcombine.high %v3373_v44, %v3377_v12 }
 0x3fe   : > { %v13408_v63 = vpop.eup %13407  ;;  %7103 = vmatpush1.bf16.msra.mxu1 %v11249_v19  ;;  %7308 = vmatpush1.bf16.msra.mxu0 %v11251_v5  ;;  %v11289_v5 = vcombine.low %v3365_v35, %v3369_v8  ;;  %v11322_v8 = vcombine.high %v3397_v20, %v3401_v56 }
 0x3ff   : > { %v3126_v3 = vadd.f32 1.0, %v13408_v63  ;;  %7104 = vmatprep.subr.bf16.mxu1 %v11258_v47  ;;  %7309 = vmatprep.subr.bf16.mxu0 %v11260_v38  ;;  %v11291_v47 = vcombine.low %v3366_v53, %v3370_v30  ;;  %v3385_v63 = vld [vmem:[%s17370_s6 + $0x6a0] sm:$0xff] }
 0x400   : > { %v11305_v10 = vcombine.low %v3381_v0, %v3385_v63  ;;  %v3405_v30 = vld [vmem:[%s17370_s6 + $0x740] sm:$0xff] }
 0x401   : > { %13409 = vrcp.f32 %v3126_v3  ;;  %v11297_v3 = vcombine.low %v3373_v44, %v3377_v12  ;;  %v3413_v44 = vld [vmem:[%s17370_s6 + $0x780] sm:$0xff]  ;;  %v3414_v12 = vld [vmem:[%s17370_s6 + $0x788] sm:$0xff] }
 0x402   : > { %7105 = vmatpush1.bf16.msra.mxu1 %v11257_v7  ;;  %7310 = vmatpush1.bf16.msra.mxu0 %v11259_v32  ;;  %13411 = vpow2.f32 %v11089_v60  ;;  %v3382_v7 = vld [vmem:[%s17370_s6 + $0x688] sm:$0xff]  ;;  %v3409_v60 = vld [vmem:[%s17370_s6 + $0x760] sm:$0xff] }
 0x403   : > { %7106 = vmatprep.subr.bf16.mxu1 %v11266_v51  ;;  %7311 = vmatprep.subr.bf16.mxu0 %v11268_v54  ;;  %13413 = vpow2.f32 %v11092_v37  ;;  %v3386_v32 = vld [vmem:[%s17370_s6 + $0x6a8] sm:$0xff]  ;;  %v11299_v51 = vcombine.low %v3374_v18, %v3378_v40  ;;  %v11306_v54 = vcombine.high %v3381_v0, %v3385_v63  ;;  %v11329_v40 = vcombine.low %v3405_v30, %v3409_v60 }
 0x404   : > { %v11308_v43 = vcombine.high %v3382_v7, %v3386_v32  ;;  %v3406_v37 = vld [vmem:[%s17370_s6 + $0x748] sm:$0xff] }
 0x405   : > { %v3418_v18 = vld [vmem:[%s17370_s6 + $0x7a8] sm:$0xff] }
 0x406   : > { %7107 = vmatpush1.bf16.msra.mxu1 %v11265_v39  ;;  %7312 = vmatpush1.bf16.msra.mxu0 %v11267_v34  ;;  %v11307_v39 = vcombine.low %v3382_v7, %v3386_v32  ;;  %v3422_v0 = vld [vmem:[%s17370_s6 + $0x7c8] sm:$0xff]  ;;  %v11339_v7 = vcombine.low %v3414_v12, %v3418_v18 }
 0x407   : > { %7108 = vmatprep.subr.bf16.mxu1 %v11274_v48  ;;  %7313 = vmatprep.subr.bf16.mxu0 %v11276_v23  ;;  %v11314_v48 = vcombine.high %v3389_v31, %v3393_v1  ;;  %v11316_v23 = vcombine.high %v3390_v62, %v3394_v36 }
 0x40a   : > { %7109 = vmatpush1.bf16.msra.mxu1 %v11273_v55  ;;  %7314 = vmatpush1.bf16.msra.mxu0 %v11275_v41  ;;  %v3402_v55 = vld [vmem:[%s17370_s6 + $0x728] sm:$0xff] }
 0x40b   : > { %v13410_v59 = vpop.eup %13409  ;;  %7110 = vmatprep.subr.bf16.mxu1 %v11282_v33  ;;  %7315 = vmatprep.subr.bf16.mxu0 %v11284_v14  ;;  %v11313_v33 = vcombine.low %v3389_v31, %v3393_v1  ;;  %v11315_v14 = vcombine.low %v3390_v62, %v3394_v36  ;;  %v11324_v53 = vcombine.high %v3398_v27, %v3402_v55  ;;  %v3430_v31 = vld [vmem:[%s17370_s6 + $0x808] sm:$0xff] }
 0x40c   : > { %v3156_v61 = vmul.f32 %v13410_v59, %v15041_v22  ;;  %v13412_v34 = vpop.eup %13411  ;;  %v11323_v59 = vcombine.low %v3398_v27, %v3402_v55  ;;  %v3434_v1 = vld [vmem:[%s17370_s6 + $0x828] sm:$0xff] }
 0x40d   : > { %v13414_v52 = vpop.eup %13413  ;;  %v3125_v41 = vadd.f32 1.0, %v13412_v34  ;;  %v11355_v55 = vcombine.low %v3430_v31, %v3434_v1 }
 0x40e   : > { %v15168_v13 = vpop.f32.mrb[16].mxu1  ;;  %v15170_v19 = vpack.c.bf16 %v3156_v61, %v3156_v61  ;;  %7111 = vmatpush1.bf16.msra.mxu1 %v11281_v28  ;;  %7316 = vmatpush1.bf16.msra.mxu0 %v11283_v2  ;;  %v3128_v35 = vadd.f32 1.0, %v13414_v52  ;;  %v3410_v28 = vld [vmem:[%s17370_s6 + $0x768] sm:$0xff]  ;;  %v11321_v2 = vcombine.low %v3397_v20, %v3401_v56  ;;  %v3417_v61 = vld [vmem:[%s17370_s6 + $0x7a0] sm:$0xff] }
 0x40f   : > { %v15172_v22 = vpop.f32.mrb[17].mxu1  ;;  %7112 = vmatprep.subr.bf16.mxu1 %v11290_v58  ;;  %7317 = vmatprep.subr.bf16.mxu0 %v11292_v4  ;;  %13415 = vrcp.f32 %v3125_v41  ;;  %v11330_v58 = vcombine.high %v3405_v30, %v3409_v60  ;;  %v11332_v4 = vcombine.high %v3406_v37, %v3410_v28  ;;  %v11337_v63 = vcombine.low %v3413_v44, %v3417_v61  ;;  %v3437_v20 = vld [vmem:[%s17370_s6 + $0x840] sm:$0xff]  ;;  %v3438_v56 = vld [vmem:[%s17370_s6 + $0x848] sm:$0xff] }
 0x410   : > { %v3049_v38 = vpop.f32.mrb[18].mxu1  ;;  %7128 = vmatprep.mubr.bf16.mxu1 %v15170_v19  ;;  %7333 = vmatprep.mubr.bf16.mxu0 %v15170_v19  ;;  %13417 = vrcp.f32 %v3128_v35  ;;  %v3441_v52 = vld [vmem:[%s17370_s6 + $0x860] sm:$0xff]  ;;  %v3450_v30 = vld [vmem:[%s17370_s6 + $0x8a8] sm:$0xff] }
 0x411   : > { %v3050_v25 = vpop.f32.mrb[19].mxu1  ;;  %v11340_v38 = vcombine.high %v3414_v12, %v3418_v18  ;;  %v3445_v35 = vld [vmem:[%s17370_s6 + $0x880] sm:$0xff]  ;;  %v11361_v60 = vcombine.low %v3437_v20, %v3441_v52 }
 0x412   : > { %7113 = vmatpush1.bf16.msra.mxu1 %v11289_v5  ;;  %7318 = vmatpush1.bf16.msra.mxu0 %v11291_v47  ;;  %v11331_v5 = vcombine.low %v3406_v37, %v3410_v28  ;;  %v11338_v47 = vcombine.high %v3413_v44, %v3417_v61  ;;  %v3426_v25 = vld [vmem:[%s17370_s6 + $0x7e8] sm:$0xff] }
 0x413   : > { %7114 = vmatprep.subr.bf16.mxu1 %v11298_v46  ;;  %7319 = vmatprep.subr.bf16.mxu0 %v11300_v21  ;;  %v3421_v46 = vld [vmem:[%s17370_s6 + $0x7c0] sm:$0xff]  ;;  %v3458_v44 = vld [vmem:[%s17370_s6 + $0x8e8] sm:$0xff] }
 0x414   : > { %v3425_v21 = vld [vmem:[%s17370_s6 + $0x7e0] sm:$0xff] }
 0x415   : > { %v11346_v32 = vcombine.high %v3421_v46, %v3425_v21  ;;  %v11345_v36 = vcombine.low %v3421_v46, %v3425_v21  ;;  %v3466_v46 = vld [vmem:[%s17370_s6 + $0x928] sm:$0xff] }
 0x416   : > { %7115 = vmatpush1.bf16.msra.mxu1 %v11297_v3  ;;  %7320 = vmatpush1.bf16.msra.mxu0 %v11299_v51  ;;  %v11348_v3 = vcombine.high %v3422_v0, %v3426_v25  ;;  %v3429_v51 = vld [vmem:[%s17370_s6 + $0x800] sm:$0xff] }
 0x417   : > { %7116 = vmatprep.subr.bf16.mxu1 %v11306_v54  ;;  %7321 = vmatprep.subr.bf16.mxu0 %v11308_v43  ;;  %v3433_v43 = vld [vmem:[%s17370_s6 + $0x820] sm:$0xff] }
 0x418   : > { %v11354_v34 = vcombine.high %v3429_v51, %v3433_v43  ;;  %v11353_v27 = vcombine.low %v3429_v51, %v3433_v43  ;;  %v3470_v51 = vld [vmem:[%s17370_s6 + $0x948] sm:$0xff] }
 0x419   : > { %v13416_v54 = vpop.eup %13415 }
 0x41a   : > { %7117 = vmatpush1.bf16.msra.mxu1 %v11305_v10  ;;  %7322 = vmatpush1.bf16.msra.mxu0 %v11307_v39  ;;  %v13418_v62 = vpop.eup %13417  ;;  %v11347_v10 = vcombine.low %v3422_v0, %v3426_v25  ;;  %v3155_v39 = vmul.f32 %v13416_v54, %v15136_v29  ;;  %v3442_v29 = vld [vmem:[%s17370_s6 + $0x868] sm:$0xff] }
 0x41b   : > { %7118 = vmatprep.subr.bf16.mxu1 %v11314_v48  ;;  %7323 = vmatprep.subr.bf16.mxu0 %v11316_v23  ;;  %v11356_v48 = vcombine.high %v3430_v31, %v3434_v1  ;;  %v3158_v23 = vmul.f32 %v13418_v62, %v15139_v49  ;;  %v11363_v37 = vcombine.low %v3438_v56, %v3442_v29  ;;  %v3474_v54 = vld [vmem:[%s17370_s6 + $0x968] sm:$0xff]  ;;  %v2468_v31 = vsub.s32 7, %v14993_v45 }
 0x41c   : > { %v15274_v49 = vpack.c.bf16 %v3155_v39, %v3155_v39  ;;  %v3481_v39 = vld [vmem:[%s17370_s6 + $0x9a0] sm:$0xff] }
 0x41d   : > { %v15276_v41 = vpack.c.bf16 %v3158_v23, %v3158_v23  ;;  %v3482_v23 = vld [vmem:[%s17370_s6 + $0x9a8] sm:$0xff] }
 0x41e   : > { %7119 = vmatpush1.bf16.msra.mxu1 %v11313_v33  ;;  %7324 = vmatpush1.bf16.msra.mxu0 %v11315_v14  ;;  %v11362_v33 = vcombine.high %v3437_v20, %v3441_v52  ;;  %v11364_v14 = vcombine.high %v3438_v56, %v3442_v29  ;;  %v2469_v52 = vrot.slane %v15001_v11, %v2468_v31 }
 0x41f   : > { %7120 = vmatprep.subr.bf16.mxu1 %v11322_v8  ;;  %7325 = vmatprep.subr.bf16.mxu0 %v11324_v53  ;;  %v3449_v8 = vld [vmem:[%s17370_s6 + $0x8a0] sm:$0xff]  ;;  %v3446_v53 = vld [vmem:[%s17370_s6 + $0x888] sm:$0xff]  ;;  %v11395_v56 = vcombine.low %v3470_v51, %v3474_v54 }
 0x420   : > { %v11370_v28 = vcombine.high %v3445_v35, %v3449_v8  ;;  %v11369_v61 = vcombine.low %v3445_v35, %v3449_v8  ;;  %v11371_v12 = vcombine.low %v3446_v53, %v3450_v30  ;;  %v3490_v35 = vld [vmem:[%s17370_s6 + $0x9e8] sm:$0xff] }
 0x422   : > { %7121 = vmatpush1.bf16.msra.mxu1 %v11321_v2  ;;  %7326 = vmatpush1.bf16.msra.mxu0 %v11323_v59  ;;  %v11372_v2 = vcombine.high %v3446_v53, %v3450_v30  ;;  %v3453_v59 = vld [vmem:[%s17370_s6 + $0x8c0] sm:$0xff]  ;;  %v15366_v53 = vadd.f32 %v15172_v22, %v2469_v52  ;;  %v3494_v22 = vld [vmem:[%s17370_s6 + $0xa08] sm:$0xff] }
 0x423   : > { %7122 = vmatprep.subr.bf16.mxu1 %v11330_v58  ;;  %7327 = vmatprep.subr.bf16.mxu0 %v11332_v4  ;;  %v3457_v58 = vld [vmem:[%s17370_s6 + $0x8e0] sm:$0xff]  ;;  %v3454_v4 = vld [vmem:[%s17370_s6 + $0x8c8] sm:$0xff] }
 0x424   : > { %v11378_v18 = vcombine.high %v3453_v59, %v3457_v58  ;;  %v11377_v21 = vcombine.low %v3453_v59, %v3457_v58  ;;  %v11379_v0 = vcombine.low %v3454_v4, %v3458_v44  ;;  %v3498_v59 = vld [vmem:[%s17370_s6 + $0xa28] sm:$0xff] }
 0x426   : > { %7123 = vmatpush1.bf16.msra.mxu1 %v11329_v40  ;;  %7328 = vmatpush1.bf16.msra.mxu0 %v11331_v5  ;;  %v11380_v40 = vcombine.high %v3454_v4, %v3458_v44  ;;  %v3461_v5 = vld [vmem:[%s17370_s6 + $0x900] sm:$0xff]  ;;  %v11094_v4 = vmul.f32 -1.442695, %v15366_v53 }
 0x427   : > { %7124 = vmatprep.subr.bf16.mxu1 %v11338_v47  ;;  %7329 = vmatprep.subr.bf16.mxu0 %v11340_v38  ;;  %v3465_v47 = vld [vmem:[%s17370_s6 + $0x920] sm:$0xff]  ;;  %v3462_v38 = vld [vmem:[%s17370_s6 + $0x908] sm:$0xff] }
 0x428   : > { %v11386_v25 = vcombine.high %v3461_v5, %v3465_v47  ;;  %v11385_v43 = vcombine.low %v3461_v5, %v3465_v47  ;;  %v11387_v1 = vcombine.low %v3462_v38, %v3466_v46  ;;  %v3502_v5 = vld [vmem:[%s17370_s6 + $0xa48] sm:$0xff] }
 0x429   : > { %v3506_v47 = vld [vmem:[%s17370_s6 + $0xa68] sm:$0xff] }
 0x42a   : > { %7125 = vmatpush1.bf16.msra.mxu1 %v11337_v63  ;;  %7330 = vmatpush1.bf16.msra.mxu0 %v11339_v7  ;;  %v11388_v63 = vcombine.high %v3462_v38, %v3466_v46  ;;  %v3469_v7 = vld [vmem:[%s17370_s6 + $0x940] sm:$0xff]  ;;  %v11419_v46 = vcombine.low %v3494_v22, %v3498_v59 }
 0x42b   : > { %7126 = vmatprep.subr.bf16.mxu1 %v11346_v32  ;;  %7331 = vmatprep.subr.bf16.mxu0 %v11348_v3  ;;  %v3473_v32 = vld [vmem:[%s17370_s6 + $0x960] sm:$0xff]  ;;  %v2456_v3 = vsub.s32 4, %v14993_v45 }
 0x42c   : > { %v11394_v62 = vcombine.high %v3469_v7, %v3473_v32  ;;  %v11393_v20 = vcombine.low %v3469_v7, %v3473_v32  ;;  %v3510_v7 = vld [vmem:[%s17370_s6 + $0xa88] sm:$0xff] }
 0x42d   : > { %v3514_v32 = vld [vmem:[%s17370_s6 + $0xaa8] sm:$0xff] }
 0x42e   : > { %7127 = vmatpush1.bf16.msra.mxu1 %v11345_v36  ;;  %7332 = vmatpush1.bf16.msra.mxu0 %v11347_v10  ;;  %v11396_v36 = vcombine.high %v3470_v51, %v3474_v54  ;;  %v3477_v10 = vld [vmem:[%s17370_s6 + $0x980] sm:$0xff]  ;;  %v11427_v54 = vcombine.low %v3502_v5, %v3506_v47 }
 0x42f   : > { %7137 = vmatprep.subr.bf16.mxu1 %v11354_v34  ;;  %7342 = vmatprep.subr.bf16.mxu0 %v11356_v48  ;;  %v2457_v34 = vrot.slane %v15001_v11, %v2456_v3  ;;  %v3478_v48 = vld [vmem:[%s17370_s6 + $0x988] sm:$0xff]  ;;  %v11402_v29 = vcombine.high %v3477_v10, %v3481_v39  ;;  %v11401_v8 = vcombine.low %v3477_v10, %v3481_v39 }
 0x430   : > { %v3486_v11 = vld [vmem:[%s17370_s6 + $0x9c8] sm:$0xff]  ;;  %v11403_v30 = vcombine.low %v3478_v48, %v3482_v23 }
 0x431   : > { %7129 = vmatmul.mubr.bf16.vlgmr.msra.gmra.mrb[20].mxu1 %v15274_v49  ;;  %7334 = vmatmul.mubr.bf16.vlgmr.msra.gmra.mrb[72].mxu0 %v15274_v49  ;;  %v11411_v44 = vcombine.low %v3486_v11, %v3490_v35  ;;  %v3518_v10 = vld [vmem:[%s17370_s6 + $0xac8] sm:$0xff] }
 0x432   : > { %7138 = vmatpush1.bf16.msra.mxu1 %v11353_v27  ;;  %7169 = vmatprep.mubr.bf16.mxu1 %v15276_v41  ;;  %v11404_v27 = vcombine.high %v3478_v48, %v3482_v23  ;;  %v3522_v39 = vld [vmem:[%s17370_s6 + $0xae8] sm:$0xff]  ;;  %v11435_v23 = vcombine.low %v3510_v7, %v3514_v32 }
 0x433   : > { %7343 = vmatpush1.bf16.msra.mxu0 %v11355_v55  ;;  %7374 = vmatprep.mubr.bf16.mxu0 %v15276_v41  ;;  %v3485_v55 = vld [vmem:[%s17370_s6 + $0x9c0] sm:$0xff]  ;;  %v11444_v52 = vcombine.high %v3518_v10, %v3522_v39 }
 0x434   : > { %7139 = vmatprep.subr.bf16.mxu1 %v11362_v33  ;;  %7344 = vmatprep.subr.bf16.mxu0 %v11364_v14  ;;  %v3489_v33 = vld [vmem:[%s17370_s6 + $0x9e0] sm:$0xff]  ;;  %v15357_v14 = vadd.f32 %v15010_v9, %v2457_v34  ;;  %v11412_v9 = vcombine.high %v3486_v11, %v3490_v35 }
 0x435   : > { %v11409_v58 = vcombine.low %v3485_v55, %v3489_v33 }
 0x436   : > { %7140 = vmatpush1.bf16.msra.mxu1 %v11361_v60  ;;  %v11410_v60 = vcombine.high %v3485_v55, %v3489_v33  ;;  %v3526_v55 = vld [vmem:[%s17370_s6 + $0xb08] sm:$0xff] }
 0x437   : > { %7345 = vmatpush1.bf16.msra.mxu0 %v11363_v37  ;;  %7141 = vmatprep.subr.bf16.mxu1 %v11370_v28  ;;  %v3493_v37 = vld [vmem:[%s17370_s6 + $0xa00] sm:$0xff]  ;;  %v3530_v33 = vld [vmem:[%s17370_s6 + $0xb28] sm:$0xff] }
 0x438   : > { %7346 = vmatprep.subr.bf16.mxu0 %v11372_v2  ;;  %v3497_v28 = vld [vmem:[%s17370_s6 + $0xa20] sm:$0xff]  ;;  %v11091_v2 = vmul.f32 -1.442695, %v15357_v14 }
 0x439   : > { %v11417_v38 = vcombine.low %v3493_v37, %v3497_v28 }
 0x43a   : > { %7142 = vmatpush1.bf16.msra.mxu1 %v11369_v61  ;;  %v11418_v61 = vcombine.high %v3493_v37, %v3497_v28  ;;  %13419 = vpow2.f32 %v11091_v2  ;;  %v3533_v37 = vld [vmem:[%s17370_s6 + $0xb40] sm:$0xff]  ;;  %v3534_v2 = vld [vmem:[%s17370_s6 + $0xb48] sm:$0xff] }
 0x43b   : > { %7347 = vmatpush1.bf16.msra.mxu0 %v11371_v12  ;;  %7143 = vmatprep.subr.bf16.mxu1 %v11378_v18  ;;  %v11420_v12 = vcombine.high %v3494_v22, %v3498_v59  ;;  %v3501_v18 = vld [vmem:[%s17370_s6 + $0xa40] sm:$0xff]  ;;  %13421 = vpow2.f32 %v11094_v4  ;;  %v3538_v22 = vld [vmem:[%s17370_s6 + $0xb68] sm:$0xff] }
 0x43c   : > { %7348 = vmatprep.subr.bf16.mxu0 %v11380_v40  ;;  %v3505_v40 = vld [vmem:[%s17370_s6 + $0xa60] sm:$0xff] }
 0x43d   : > { %v11425_v51 = vcombine.low %v3501_v18, %v3505_v40  ;;  %v3537_v28 = vld [vmem:[%s17370_s6 + $0xb60] sm:$0xff] }
 0x43e   : > { %7144 = vmatpush1.bf16.msra.mxu1 %v11377_v21  ;;  %v11426_v21 = vcombine.high %v3501_v18, %v3505_v40  ;;  %v11458_v4 = vcombine.high %v3533_v37, %v3537_v28  ;;  %v3542_v18 = vld [vmem:[%s17370_s6 + $0xb88] sm:$0xff] }
 0x43f   : > { %7349 = vmatpush1.bf16.msra.mxu0 %v11379_v0  ;;  %7145 = vmatprep.subr.bf16.mxu1 %v11386_v25  ;;  %v11428_v0 = vcombine.high %v3502_v5, %v3506_v47  ;;  %v3509_v25 = vld [vmem:[%s17370_s6 + $0xa80] sm:$0xff]  ;;  %v3546_v40 = vld [vmem:[%s17370_s6 + $0xba8] sm:$0xff]  ;;  %v11457_v5 = vcombine.low %v3533_v37, %v3537_v28  ;;  %v11459_v47 = vcombine.low %v3534_v2, %v3538_v22 }
 0x440   : > { %7350 = vmatprep.subr.bf16.mxu0 %v11388_v63  ;;  %v3513_v63 = vld [vmem:[%s17370_s6 + $0xaa0] sm:$0xff]  ;;  %v3574_v37 = vld [vmem:[%s17370_s6 + $0xc88] sm:$0xff] }
 0x441   : > { %v11433_v34 = vcombine.low %v3509_v25, %v3513_v63  ;;  %v3578_v28 = vld [vmem:[%s17370_s6 + $0xca8] sm:$0xff] }
 0x442   : > { %7146 = vmatpush1.bf16.msra.mxu1 %v11385_v43  ;;  %v11434_v43 = vcombine.high %v3509_v25, %v3513_v63  ;;  %v3550_v25 = vld [vmem:[%s17370_s6 + $0xbc8] sm:$0xff] }
 0x443   : > { %7351 = vmatpush1.bf16.msra.mxu0 %v11387_v1  ;;  %7147 = vmatprep.subr.bf16.mxu1 %v11394_v62  ;;  %v11436_v1 = vcombine.high %v3510_v7, %v3514_v32  ;;  %v3517_v62 = vld [vmem:[%s17370_s6 + $0xac0] sm:$0xff]  ;;  %v3554_v63 = vld [vmem:[%s17370_s6 + $0xbe8] sm:$0xff]  ;;  %v11467_v32 = vcombine.low %v3542_v18, %v3546_v40 }
 0x444   : > { %7352 = vmatprep.subr.bf16.mxu0 %v11396_v36  ;;  %v3521_v36 = vld [vmem:[%s17370_s6 + $0xae0] sm:$0xff]  ;;  %v13420_v48 = vpop.eup %13419 }
 0x445   : > { %v3127_v11 = vadd.f32 1.0, %v13420_v48  ;;  %v11441_v35 = vcombine.low %v3517_v62, %v3521_v36 }
 0x446   : > { %7148 = vmatpush1.bf16.msra.mxu1 %v11393_v20  ;;  %v11442_v20 = vcombine.high %v3517_v62, %v3521_v36  ;;  %v3561_v62 = vld [vmem:[%s17370_s6 + $0xc20] sm:$0xff]  ;;  %v3558_v36 = vld [vmem:[%s17370_s6 + $0xc08] sm:$0xff] }
 0x447   : > { %7353 = vmatpush1.bf16.msra.mxu0 %v11395_v56  ;;  %7149 = vmatprep.subr.bf16.mxu1 %v11402_v29  ;;  %v3525_v56 = vld [vmem:[%s17370_s6 + $0xb00] sm:$0xff]  ;;  %13423 = vrcp.f32 %v3127_v11 }
 0x448   : > { %7354 = vmatprep.subr.bf16.mxu0 %v11404_v27  ;;  %v3529_v29 = vld [vmem:[%s17370_s6 + $0xb20] sm:$0xff]  ;;  %v13422_v27 = vpop.eup %13421 }
 0x449   : > { %v11449_v59 = vcombine.low %v3525_v56, %v3529_v29 }
 0x44a   : > { %7150 = vmatpush1.bf16.msra.mxu1 %v11401_v8  ;;  %v11443_v8 = vcombine.low %v3518_v10, %v3522_v39  ;;  %v3562_v10 = vld [vmem:[%s17370_s6 + $0xc28] sm:$0xff] }
 0x44b   : > { %7355 = vmatpush1.bf16.msra.mxu0 %v11403_v30  ;;  %7151 = vmatprep.subr.bf16.mxu1 %v11410_v60  ;;  %v11450_v30 = vcombine.high %v3525_v56, %v3529_v29  ;;  %v3130_v60 = vadd.f32 1.0, %v13422_v27  ;;  %v3565_v29 = vld [vmem:[%s17370_s6 + $0xc40] sm:$0xff] }
 0x44c   : > { %7356 = vmatprep.subr.bf16.mxu0 %v11412_v9  ;;  %v11452_v9 = vcombine.high %v3526_v55, %v3530_v33  ;;  %v3569_v27 = vld [vmem:[%s17370_s6 + $0xc60] sm:$0xff] }
 0x44d   : > { %13425 = vrcp.f32 %v3130_v60 }
 0x44e   : > { %7152 = vmatpush1.bf16.msra.mxu1 %v11409_v58  ;;  %v11451_v58 = vcombine.low %v3526_v55, %v3530_v33  ;;  %v3570_v33 = vld [vmem:[%s17370_s6 + $0xc68] sm:$0xff] }
 0x44f   : > { %7357 = vmatpush1.bf16.msra.mxu0 %v11411_v44  ;;  %7153 = vmatprep.subr.bf16.mxu1 %v11418_v61  ;;  %v11460_v44 = vcombine.high %v3534_v2, %v3538_v22  ;;  %v3541_v61 = vld [vmem:[%s17370_s6 + $0xb80] sm:$0xff]  ;;  %v11489_v2 = vcombine.low %v3565_v29, %v3569_v27 }
 0x450   : > { %7358 = vmatprep.subr.bf16.mxu0 %v11420_v12  ;;  %v3545_v12 = vld [vmem:[%s17370_s6 + $0xba0] sm:$0xff] }
 0x451   : > { %v11465_v7 = vcombine.low %v3541_v61, %v3545_v12 }
 0x452   : > { %7154 = vmatpush1.bf16.msra.mxu1 %v11417_v38  ;;  %v11466_v38 = vcombine.high %v3541_v61, %v3545_v12  ;;  %v3582_v61 = vld [vmem:[%s17370_s6 + $0xcc8] sm:$0xff] }
 0x453   : > { %7359 = vmatpush1.bf16.msra.mxu0 %v11419_v46  ;;  %7155 = vmatprep.subr.bf16.mxu1 %v11426_v21  ;;  %v11468_v46 = vcombine.high %v3542_v18, %v3546_v40  ;;  %v3549_v21 = vld [vmem:[%s17370_s6 + $0xbc0] sm:$0xff]  ;;  %v3586_v12 = vld [vmem:[%s17370_s6 + $0xce8] sm:$0xff]  ;;  %v11499_v40 = vcombine.low %v3574_v37, %v3578_v28 }
 0x454   : > { %7360 = vmatprep.subr.bf16.mxu0 %v11428_v0  ;;  %v3553_v0 = vld [vmem:[%s17370_s6 + $0xbe0] sm:$0xff] }
 0x456   : > { %7156 = vmatpush1.bf16.msra.mxu1 %v11425_v51  ;;  %v11474_v51 = vcombine.high %v3549_v21, %v3553_v0 }
 0x457   : > { %7361 = vmatpush1.bf16.msra.mxu0 %v11427_v54  ;;  %7157 = vmatprep.subr.bf16.mxu1 %v11434_v43  ;;  %v13424_v54 = vpop.eup %13423  ;;  %v11476_v43 = vcombine.high %v3550_v25, %v3554_v63 }
 0x458   : > { %7362 = vmatprep.subr.bf16.mxu0 %v11436_v1  ;;  %v3557_v1 = vld [vmem:[%s17370_s6 + $0xc00] sm:$0xff]  ;;  %v13426_v39 = vpop.eup %13425  ;;  %v3157_v48 = vmul.f32 %v13424_v54, %v15357_v14  ;;  %v3566_v14 = vld [vmem:[%s17370_s6 + $0xc48] sm:$0xff] }
 0x459   : > { %v3160_v56 = vmul.f32 %v13426_v39, %v15366_v53  ;;  %v11481_v55 = vcombine.low %v3557_v1, %v3561_v62  ;;  %v11483_v53 = vcombine.low %v3558_v36, %v3562_v10  ;;  %v11491_v22 = vcombine.low %v3566_v14, %v3570_v33  ;;  %v3601_v54 = vld [vmem:[%s17370_s6 + $0xd60] sm:$0xff] }
 0x45a   : > { %7158 = vmatpush1.bf16.msra.mxu1 %v11433_v34  ;;  %v11473_v34 = vcombine.low %v3549_v21, %v3553_v0  ;;  %v15492_v11 = vpack.c.bf16 %v3157_v48, %v3157_v48  ;;  %v3590_v21 = vld [vmem:[%s17370_s6 + $0xd08] sm:$0xff] }
 0x45b   : > { %7363 = vmatpush1.bf16.msra.mxu0 %v11435_v23  ;;  %7159 = vmatprep.subr.bf16.mxu1 %v11442_v20  ;;  %v11475_v23 = vcombine.low %v3550_v25, %v3554_v63  ;;  %v11482_v20 = vcombine.high %v3557_v1, %v3561_v62  ;;  %v15500_v60 = vpack.c.bf16 %v3160_v56, %v3160_v56  ;;  %v3594_v0 = vld [vmem:[%s17370_s6 + $0xd28] sm:$0xff] }
 0x45c   : > { %7364 = vmatprep.subr.bf16.mxu0 %v11444_v52  ;;  %v11484_v52 = vcombine.high %v3558_v36, %v3562_v10  ;;  %v11507_v63 = vcombine.low %v3582_v61, %v3586_v12  ;;  %v3598_v1 = vld [vmem:[%s17370_s6 + $0xd48] sm:$0xff]  ;;  %v11515_v10 = vcombine.low %v3590_v21, %v3594_v0 }
 0x45d   : > { %v3602_v62 = vld [vmem:[%s17370_s6 + $0xd68] sm:$0xff] }
 0x45e   : > { %7160 = vmatpush1.bf16.msra.mxu1 %v11441_v35  ;;  %v11490_v35 = vcombine.high %v3565_v29, %v3569_v27  ;;  %v11524_v48 = vcombine.high %v3598_v1, %v3602_v62  ;;  %v3606_v29 = vld [vmem:[%s17370_s6 + $0xd88] sm:$0xff] }
 0x45f   : > { %7365 = vmatpush1.bf16.msra.mxu0 %v11443_v8  ;;  %7161 = vmatprep.subr.bf16.mxu1 %v11450_v30  ;;  %v3573_v8 = vld [vmem:[%s17370_s6 + $0xc80] sm:$0xff]  ;;  %v3610_v27 = vld [vmem:[%s17370_s6 + $0xda8] sm:$0xff] }
 0x460   : > { %7366 = vmatprep.subr.bf16.mxu0 %v11452_v9  ;;  %v3577_v30 = vld [vmem:[%s17370_s6 + $0xca0] sm:$0xff]  ;;  %v11492_v9 = vcombine.high %v3566_v14, %v3570_v33  ;;  %v11523_v33 = vcombine.low %v3598_v1, %v3602_v62  ;;  %v3638_v62 = vld [vmem:[%s17370_s6 + $0xe88] sm:$0xff] }
 0x461   : > { %v11497_v18 = vcombine.low %v3573_v8, %v3577_v30  ;;  %v3641_v1 = vld [vmem:[%s17370_s6 + $0xea0] sm:$0xff] }
 0x462   : > { %7162 = vmatpush1.bf16.msra.mxu1 %v11449_v59  ;;  %v11498_v59 = vcombine.high %v3573_v8, %v3577_v30  ;;  %v3613_v8 = vld [vmem:[%s17370_s6 + $0xdc0] sm:$0xff] }
 0x463   : > { %7367 = vmatpush1.bf16.msra.mxu0 %v11451_v58  ;;  %7163 = vmatprep.subr.bf16.mxu1 %v11458_v4  ;;  %v11500_v58 = vcombine.high %v3574_v37, %v3578_v28  ;;  %v3581_v4 = vld [vmem:[%s17370_s6 + $0xcc0] sm:$0xff]  ;;  %v3614_v37 = vld [vmem:[%s17370_s6 + $0xdc8] sm:$0xff] }
 0x464   : > { %7368 = vmatprep.subr.bf16.mxu0 %v11460_v44  ;;  %v3585_v44 = vld [vmem:[%s17370_s6 + $0xce0] sm:$0xff]  ;;  %v3618_v28 = vld [vmem:[%s17370_s6 + $0xde8] sm:$0xff] }
 0x465   : > { %v11505_v25 = vcombine.low %v3581_v4, %v3585_v44  ;;  %v3617_v30 = vld [vmem:[%s17370_s6 + $0xde0] sm:$0xff] }
 0x466   : > { %7164 = vmatpush1.bf16.msra.mxu1 %v11457_v5  ;;  %v11506_v5 = vcombine.high %v3581_v4, %v3585_v44  ;;  %v3621_v4 = vld [vmem:[%s17370_s6 + $0xe00] sm:$0xff] }
 0x467   : > { %7369 = vmatpush1.bf16.msra.mxu0 %v11459_v47  ;;  %7165 = vmatprep.subr.bf16.mxu1 %v11466_v38  ;;  %v11508_v47 = vcombine.high %v3582_v61, %v3586_v12  ;;  %v3589_v38 = vld [vmem:[%s17370_s6 + $0xd00] sm:$0xff]  ;;  %v3626_v12 = vld [vmem:[%s17370_s6 + $0xe28] sm:$0xff] }
 0x468   : > { %7370 = vmatprep.subr.bf16.mxu0 %v11468_v46  ;;  %v3593_v46 = vld [vmem:[%s17370_s6 + $0xd20] sm:$0xff] }
 0x469   : > { %v11513_v36 = vcombine.low %v3589_v38, %v3593_v46  ;;  %v3625_v44 = vld [vmem:[%s17370_s6 + $0xe20] sm:$0xff] }
 0x46a   : > { %7166 = vmatpush1.bf16.msra.mxu1 %v11465_v7  ;;  %v11514_v7 = vcombine.high %v3589_v38, %v3593_v46  ;;  %v3629_v46 = vld [vmem:[%s17370_s6 + $0xe40] sm:$0xff] }
 0x46b   : > { %7371 = vmatpush1.bf16.msra.mxu0 %v11467_v32  ;;  %7167 = vmatprep.subr.bf16.mxu1 %v11474_v51  ;;  %v11516_v32 = vcombine.high %v3590_v21, %v3594_v0  ;;  %v3597_v51 = vld [vmem:[%s17370_s6 + $0xd40] sm:$0xff]  ;;  %v3630_v0 = vld [vmem:[%s17370_s6 + $0xe48] sm:$0xff] }
 0x46c   : > { %7372 = vmatprep.subr.bf16.mxu0 %v11476_v43  ;;  %v2464_v43 = vsub.s32 6, %v14993_v45  ;;  %v11522_v39 = vcombine.high %v3597_v51, %v3601_v54  ;;  %v3633_v21 = vld [vmem:[%s17370_s6 + $0xe60] sm:$0xff] }
 0x46d   : > { %v13015_v45 = vld [vmem:[%s13897_s15] ss:$8 sps:$4 sm:$0xff]  }
 0x46e   : > { %7168 = vmatpush1.bf16.msra.mxu1 %v11473_v34  ;;  %v15552_v34 = vld [vmem:[%s17369_s5 + $0x8] sm:$0x3] }
 0x46f   : > { %7373 = vmatpush1.bf16.msra.mxu0 %v11475_v23  ;;  %7178 = vmatprep.subr.bf16.mxu1 %v11482_v20  ;;  %v3605_v23 = vld [vmem:[%s17370_s6 + $0xd80] sm:$0xff]  ;;  %v2477_v14 = vrot.slane %v15552_v34, %v15004_v15 }
 0x470   : > { %7383 = vmatprep.subr.bf16.mxu0 %v11484_v52  ;;  %v3609_v20 = vld [vmem:[%s17370_s6 + $0xda0] sm:$0xff] }
 0x471   : > { %7170 = vmatmul.mubr.bf16.vlgmr.msra.gmra.mrb[20].mxu1 %v15492_v11  ;;  %v13440_v52 = vld [vmem:[%s17369_s5] sm:$0xff] }
 0x472   : > { %7375 = vmatmul.mubr.bf16.vlgmr.msra.gmra.mrb[72].mxu0 %v15492_v11  ;;  %7179 = vmatpush1.bf16.msra.mxu1 %v11481_v55  ;;  %v2465_v56 = vrot.slane %v13440_v52, %v2464_v43  ;;  %v11521_v55 = vcombine.low %v3597_v51, %v3601_v54  ;;  %v3637_v54 = vld [vmem:[%s17370_s6 + $0xe80] sm:$0xff] }
 0x473   : > { %7210 = vmatprep.mubr.bf16.mxu1 %v15500_v60  ;;  %7384 = vmatpush1.bf16.msra.mxu0 %v11483_v53  ;;  %v11530_v53 = vcombine.high %v3605_v23, %v3609_v20  ;;  %v3649_v52 = vld [vmem:[%s17370_s6 + $0xee0] sm:$0xff] }
 0x474   : > { %7415 = vmatprep.mubr.bf16.mxu0 %v15500_v60  ;;  %7180 = vmatprep.subr.bf16.mxu1 %v11490_v35  ;;  %v11532_v35 = vcombine.high %v3606_v29, %v3610_v27 }
 0x475   : > { %7385 = vmatprep.subr.bf16.mxu0 %v11492_v9  ;;  %v15580_v9 = vadd.f32 %v15168_v13, %v2465_v56  ;;  %v11540_v13 = vcombine.high %v3614_v37, %v3618_v28  ;;  %v3646_v56 = vld [vmem:[%s17370_s6 + $0xec8] sm:$0xff] }
 0x476   : > { %7181 = vmatpush1.bf16.msra.mxu1 %v11489_v2  ;;  %v11529_v2 = vcombine.low %v3605_v23, %v3609_v20  ;;  %v3645_v20 = vld [vmem:[%s17370_s6 + $0xec0] sm:$0xff] }
 0x477   : > { %7386 = vmatpush1.bf16.msra.mxu0 %v11491_v22  ;;  %7182 = vmatprep.subr.bf16.mxu1 %v11498_v59  ;;  %v15589_v22 = vadd.f32 %v15037_v16, %v2477_v14  ;;  %v11531_v59 = vcombine.low %v3606_v29, %v3610_v27  ;;  %v11093_v61 = vmul.f32 -1.442695, %v15580_v9  ;;  %v3622_v16 = vld [vmem:[%s17370_s6 + $0xe08] sm:$0xff]  ;;  %v11561_v27 = vcombine.low %v3637_v54, %v3641_v1 }
 0x478   : > { %7387 = vmatprep.subr.bf16.mxu0 %v11500_v58  ;;  %v11538_v58 = vcombine.high %v3613_v8, %v3617_v30  ;;  %v11548_v38 = vcombine.high %v3622_v16, %v3626_v12  ;;  %v3650_v29 = vld [vmem:[%s17370_s6 + $0xee8] sm:$0xff] }
 0x479   : > { %13427 = vpow2.f32 %v11093_v61  ;;  %v3661_v61 = vld [vmem:[%s17370_s6 + $0xf40] sm:$0xff] }
 0x47a   : > { %7183 = vmatpush1.bf16.msra.mxu1 %v11497_v18  ;;  %v11537_v18 = vcombine.low %v3613_v8, %v3617_v30  ;;  %v3657_v8 = vld [vmem:[%s17370_s6 + $0xf20] sm:$0xff] }
 0x47b   : > { %7388 = vmatpush1.bf16.msra.mxu0 %v11499_v40  ;;  %7184 = vmatprep.subr.bf16.mxu1 %v11506_v5  ;;  %v11096_v40 = vmul.f32 -1.442695, %v15589_v22  ;;  %v11539_v5 = vcombine.low %v3614_v37, %v3618_v28  ;;  %v3654_v37 = vld [vmem:[%s17370_s6 + $0xf08] sm:$0xff] }
 0x47c   : > { %7389 = vmatprep.subr.bf16.mxu0 %v11508_v47  ;;  %v11546_v47 = vcombine.high %v3621_v4, %v3625_v44  ;;  %v3658_v28 = vld [vmem:[%s17370_s6 + $0xf28] sm:$0xff] }
 0x47d   : > { %13429 = vpow2.f32 %v11096_v40 }
 0x47e   : > { %7185 = vmatpush1.bf16.msra.mxu1 %v11505_v25  ;;  %v3634_v25 = vld [vmem:[%s17370_s6 + $0xe68] sm:$0xff] }
 0x47f   : > { %7390 = vmatpush1.bf16.msra.mxu0 %v11507_v63  ;;  %7186 = vmatprep.subr.bf16.mxu1 %v11514_v7  ;;  %v11545_v63 = vcombine.low %v3621_v4, %v3625_v44  ;;  %v11547_v7 = vcombine.low %v3622_v16, %v3626_v12  ;;  %v11556_v51 = vcombine.high %v3630_v0, %v3634_v25  ;;  %v3665_v16 = vld [vmem:[%s17370_s6 + $0xf60] sm:$0xff]  ;;  %v3662_v12 = vld [vmem:[%s17370_s6 + $0xf48] sm:$0xff] }
 0x480   : > { %7391 = vmatprep.subr.bf16.mxu0 %v11516_v32  ;;  %v11554_v32 = vcombine.high %v3629_v46, %v3633_v21  ;;  %v11580_v44 = vcombine.high %v3654_v37, %v3658_v28 }
 0x482   : > { %7187 = vmatpush1.bf16.msra.mxu1 %v11513_v36  ;;  %v3642_v36 = vld [vmem:[%s17370_s6 + $0xea8] sm:$0xff] }
 0x483   : > { %7392 = vmatpush1.bf16.msra.mxu0 %v11515_v10  ;;  %7188 = vmatprep.subr.bf16.mxu1 %v11522_v39  ;;  %v11553_v10 = vcombine.low %v3629_v46, %v3633_v21  ;;  %v11555_v39 = vcombine.low %v3630_v0, %v3634_v25  ;;  %v11564_v23 = vcombine.high %v3638_v62, %v3642_v36  ;;  %v3669_v46 = vld [vmem:[%s17370_s6 + $0xf80] sm:$0xff]  ;;  %v3670_v0 = vld [vmem:[%s17370_s6 + $0xf88] sm:$0xff] }
 0x484   : > { %7393 = vmatprep.subr.bf16.mxu0 %v11524_v48  ;;  %v11562_v48 = vcombine.high %v3637_v54, %v3641_v1  ;;  %v11563_v14 = vcombine.low %v3638_v62, %v3642_v36  ;;  %v3673_v21 = vld [vmem:[%s17370_s6 + $0xfa0] sm:$0xff]  ;;  %v3674_v25 = vld [vmem:[%s17370_s6 + $0xfa8] sm:$0xff] }
 0x485   : > { %v3677_v54 = vld [vmem:[%s17370_s6 + $0xfc0] sm:$0xff]  ;;  %v3678_v62 = vld [vmem:[%s17370_s6 + $0xfc8] sm:$0xff] }
 0x486   : > { %7189 = vmatpush1.bf16.msra.mxu1 %v11521_v55  ;;  %v13428_v55 = vpop.eup %13427  ;;  %v3681_v1 = vld [vmem:[%s17370_s6 + $0xfe0] sm:$0xff]  ;;  %v3682_v36 = vld [vmem:[%s17370_s6 + $0xfe8] sm:$0xff] }
 0x487   : > { %7394 = vmatpush1.bf16.msra.mxu0 %v11523_v33  ;;  %7190 = vmatprep.subr.bf16.mxu1 %v11530_v53  ;;  %v11570_v33 = vcombine.high %v3645_v20, %v3649_v52  ;;  %v11572_v53 = vcombine.high %v3646_v56, %v3650_v29  ;;  %v13430_v30 = vpop.eup %13429 }
 0x488   : > { %7395 = vmatprep.subr.bf16.mxu0 %v11532_v35  ;;  %v3653_v35 = vld [vmem:[%s17370_s6 + $0xf00] sm:$0xff]  ;;  %v3132_v4 = vadd.f32 1.0, %v13430_v30 }
 0x489   : > { %v11577_v40 = vcombine.low %v3653_v35, %v3657_v8 }
 0x48a   : > { %7191 = vmatpush1.bf16.msra.mxu1 %v11529_v2  ;;  %v3129_v2 = vadd.f32 1.0, %v13428_v55 }
 0x48b   : > { %7396 = vmatpush1.bf16.msra.mxu0 %v11531_v59  ;;  %7192 = vmatprep.subr.bf16.mxu1 %v11538_v58  ;;  %v11569_v59 = vcombine.low %v3645_v20, %v3649_v52  ;;  %v11571_v58 = vcombine.low %v3646_v56, %v3650_v29  ;;  %v11604_v20 = vcombine.high %v3678_v62, %v3682_v36  ;;  %v3685_v52 = vld [vmem:[%s17370_s6 + $0x1000] sm:$0xff]  ;;  %v3686_v29 = vld [vmem:[%s17370_s6 + $0x1008] sm:$0xff] }
 0x48c   : > { %7397 = vmatprep.subr.bf16.mxu0 %v11540_v13  ;;  %v11578_v13 = vcombine.high %v3653_v35, %v3657_v8  ;;  %13431 = vrcp.f32 %v3129_v2  ;;  %v3689_v56 = vld [vmem:[%s17370_s6 + $0x1020] sm:$0xff] }
 0x48d   : > { %13433 = vrcp.f32 %v3132_v4  ;;  %v11610_v35 = vcombine.high %v3685_v52, %v3689_v56  ;;  %v11609_v2 = vcombine.low %v3685_v52, %v3689_v56  ;;  %v3701_v4 = vld [vmem:[%s17370_s6 + $0x1080] sm:$0xff]  ;;  %v3726_v56 = vld [vmem:[%s17370_s6 + $0x1148] sm:$0xff] }
 0x48e   : > { %7193 = vmatpush1.bf16.msra.mxu1 %v11537_v18  ;;  %v3666_v18 = vld [vmem:[%s17370_s6 + $0xf68] sm:$0xff]  ;;  %v3729_v52 = vld [vmem:[%s17370_s6 + $0x1160] sm:$0xff] }
 0x48f   : > { %7398 = vmatpush1.bf16.msra.mxu0 %v11539_v5  ;;  %7194 = vmatprep.subr.bf16.mxu1 %v11546_v47  ;;  %v11579_v5 = vcombine.low %v3654_v37, %v3658_v28  ;;  %v11586_v47 = vcombine.high %v3661_v61, %v3665_v16  ;;  %v3693_v37 = vld [vmem:[%s17370_s6 + $0x1040] sm:$0xff] }
 0x490   : > { %7399 = vmatprep.subr.bf16.mxu0 %v11548_v38  ;;  %v11588_v38 = vcombine.high %v3662_v12, %v3666_v18  ;;  %v3697_v28 = vld [vmem:[%s17370_s6 + $0x1060] sm:$0xff] }
 0x492   : > { %7195 = vmatpush1.bf16.msra.mxu1 %v11545_v63  ;;  %v11585_v63 = vcombine.low %v3661_v61, %v3665_v16 }
 0x493   : > { %7400 = vmatpush1.bf16.msra.mxu0 %v11547_v7  ;;  %7196 = vmatprep.subr.bf16.mxu1 %v11554_v32  ;;  %v11587_v7 = vcombine.low %v3662_v12, %v3666_v18  ;;  %v11594_v32 = vcombine.high %v3669_v46, %v3673_v21  ;;  %v3702_v12 = vld [vmem:[%s17370_s6 + $0x1088] sm:$0xff] }
 0x494   : > { %7401 = vmatprep.subr.bf16.mxu0 %v11556_v51  ;;  %v11596_v51 = vcombine.high %v3670_v0, %v3674_v25  ;;  %v3706_v18 = vld [vmem:[%s17370_s6 + $0x10a8] sm:$0xff] }
 0x496   : > { %7197 = vmatpush1.bf16.msra.mxu1 %v11553_v10  ;;  %v11593_v10 = vcombine.low %v3669_v46, %v3673_v21  ;;  %v3709_v46 = vld [vmem:[%s17370_s6 + $0x10c0] sm:$0xff] }
 0x497   : > { %7402 = vmatpush1.bf16.msra.mxu0 %v11555_v39  ;;  %7198 = vmatprep.subr.bf16.mxu1 %v11562_v48  ;;  %v11595_v39 = vcombine.low %v3670_v0, %v3674_v25  ;;  %v11602_v48 = vcombine.high %v3677_v54, %v3681_v1  ;;  %v3713_v21 = vld [vmem:[%s17370_s6 + $0x10e0] sm:$0xff]  ;;  %v3710_v0 = vld [vmem:[%s17370_s6 + $0x10c8] sm:$0xff] }
 0x498   : > { %7403 = vmatprep.subr.bf16.mxu0 %v11564_v23  ;;  %v13432_v23 = vpop.eup %13431  ;;  %v3714_v25 = vld [vmem:[%s17370_s6 + $0x10e8] sm:$0xff] }
 0x499   : > { %v13434_v55 = vpop.eup %13433 }
 0x49a   : > { %7199 = vmatpush1.bf16.msra.mxu1 %v11561_v27  ;;  %v3690_v27 = vld [vmem:[%s17370_s6 + $0x1028] sm:$0xff]  ;;  %v3162_v30 = vmul.f32 %v13434_v55, %v15589_v22 }
 0x49b   : > { %7404 = vmatpush1.bf16.msra.mxu0 %v11563_v14  ;;  %7200 = vmatprep.subr.bf16.mxu1 %v11570_v33  ;;  %v11601_v14 = vcombine.low %v3677_v54, %v3681_v1  ;;  %v3159_v33 = vmul.f32 %v13432_v23, %v15580_v9  ;;  %v11612_v8 = vcombine.high %v3686_v29, %v3690_v27  ;;  %v3694_v9 = vld [vmem:[%s17370_s6 + $0x1048] sm:$0xff]  ;;  %v3717_v54 = vld [vmem:[%s17370_s6 + $0x1100] sm:$0xff] }
 0x49c   : > { %7405 = vmatprep.subr.bf16.mxu0 %v11572_v53  ;;  %v11603_v53 = vcombine.low %v3678_v62, %v3682_v36  ;;  %v11611_v22 = vcombine.low %v3686_v29, %v3690_v27  ;;  %v15723_v61 = vpack.c.bf16 %v3162_v30, %v3162_v30  ;;  %v3721_v1 = vld [vmem:[%s17370_s6 + $0x1120] sm:$0xff]  ;;  %v3718_v62 = vld [vmem:[%s17370_s6 + $0x1108] sm:$0xff] }
 0x49d   : > { %v3722_v36 = vld [vmem:[%s17370_s6 + $0x1128] sm:$0xff]  ;;  %v11641_v27 = vcombine.low %v3717_v54, %v3721_v1 }
 0x49e   : > { %7201 = vmatpush1.bf16.msra.mxu1 %v11569_v59  ;;  %v3698_v59 = vld [vmem:[%s17370_s6 + $0x1068] sm:$0xff]  ;;  %v11644_v23 = vcombine.high %v3718_v62, %v3722_v36  ;;  %v11643_v55 = vcombine.low %v3718_v62, %v3722_v36 }
 0x49f   : > { %7406 = vmatpush1.bf16.msra.mxu0 %v11571_v58  ;;  %7202 = vmatprep.subr.bf16.mxu1 %v11578_v13  ;;  %v15715_v58 = vpack.c.bf16 %v3159_v33, %v3159_v33  ;;  %v11618_v13 = vcombine.high %v3693_v37, %v3697_v28  ;;  %v11620_v16 = vcombine.high %v3694_v9, %v3698_v59  ;;  %v3730_v29 = vld [vmem:[%s17370_s6 + $0x1168] sm:$0xff] }
 0x4a0   : > { %7407 = vmatprep.subr.bf16.mxu0 %v11580_v44  ;;  %v3705_v44 = vld [vmem:[%s17370_s6 + $0x10a0] sm:$0xff]  ;;  %v11652_v33 = vcombine.high %v3726_v56, %v3730_v29  ;;  %v3734_v30 = vld [vmem:[%s17370_s6 + $0x1188] sm:$0xff] }
 0x4a2   : > { %7203 = vmatpush1.bf16.msra.mxu1 %v11577_v40  ;;  %v11617_v40 = vcombine.low %v3693_v37, %v3697_v28  ;;  %v3738_v37 = vld [vmem:[%s17370_s6 + $0x11a8] sm:$0xff] }
 0x4a3   : > { %7408 = vmatpush1.bf16.msra.mxu0 %v11579_v5  ;;  %7204 = vmatprep.subr.bf16.mxu1 %v11586_v47  ;;  %v11619_v5 = vcombine.low %v3694_v9, %v3698_v59  ;;  %v11626_v47 = vcombine.high %v3701_v4, %v3705_v44  ;;  %v11660_v59 = vcombine.high %v3734_v30, %v3738_v37 }
 0x4a4   : > { %7409 = vmatprep.subr.bf16.mxu0 %v11588_v38  ;;  %v11628_v38 = vcombine.high %v3702_v12, %v3706_v18 }
 0x4a6   : > { %7205 = vmatpush1.bf16.msra.mxu1 %v11585_v63  ;;  %v11625_v63 = vcombine.low %v3701_v4, %v3705_v44  ;;  %v3742_v4 = vld [vmem:[%s17370_s6 + $0x11c8] sm:$0xff] }
 0x4a7   : > { %7410 = vmatpush1.bf16.msra.mxu0 %v11587_v7  ;;  %7206 = vmatprep.subr.bf16.mxu1 %v11594_v32  ;;  %v11627_v7 = vcombine.low %v3702_v12, %v3706_v18  ;;  %v11634_v32 = vcombine.high %v3709_v46, %v3713_v21  ;;  %v3746_v44 = vld [vmem:[%s17370_s6 + $0x11e8] sm:$0xff]  ;;  %v11659_v12 = vcombine.low %v3734_v30, %v3738_v37 }
 0x4a8   : > { %7411 = vmatprep.subr.bf16.mxu0 %v11596_v51  ;;  %v11636_v51 = vcombine.high %v3710_v0, %v3714_v25 }
 0x4aa   : > { %7207 = vmatpush1.bf16.msra.mxu1 %v11593_v10  ;;  %v11633_v10 = vcombine.low %v3709_v46, %v3713_v21  ;;  %v3754_v46 = vld [vmem:[%s17370_s6 + $0x1228] sm:$0xff] }
 0x4ab   : > { %7412 = vmatpush1.bf16.msra.mxu0 %v11595_v39  ;;  %7208 = vmatprep.subr.bf16.mxu1 %v11602_v48  ;;  %v11635_v39 = vcombine.low %v3710_v0, %v3714_v25  ;;  %v11642_v48 = vcombine.high %v3717_v54, %v3721_v1  ;;  %v11667_v0 = vcombine.low %v3742_v4, %v3746_v44  ;;  %v3762_v54 = vld [vmem:[%s17370_s6 + $0x1268] sm:$0xff] }
 0x4ac   : > { %7413 = vmatprep.subr.bf16.mxu0 %v11604_v20  ;;  %v3725_v20 = vld [vmem:[%s17370_s6 + $0x1140] sm:$0xff] }
 0x4ad   : > { %v11649_v28 = vcombine.low %v3725_v20, %v3729_v52 }
 0x4ae   : > { %7209 = vmatpush1.bf16.msra.mxu1 %v11601_v14  ;;  %v11650_v14 = vcombine.high %v3725_v20, %v3729_v52  ;;  %v3770_v20 = vld [vmem:[%s17370_s6 + $0x12a8] sm:$0xff] }
 0x4af   : > { %7414 = vmatpush1.bf16.msra.mxu0 %v11603_v53  ;;  %7219 = vmatprep.subr.bf16.mxu1 %v11610_v35  ;;  %v3733_v53 = vld [vmem:[%s17370_s6 + $0x1180] sm:$0xff] }
 0x4b0   : > { %7424 = vmatprep.subr.bf16.mxu0 %v11612_v8  ;;  %v3737_v35 = vld [vmem:[%s17370_s6 + $0x11a0] sm:$0xff]  ;;  %v2473_v8 = vrot.slane %v15552_v34, %v14996_v24 }
 0x4b1   : > { %7211 = vmatmul.mubr.bf16.vlgmr.msra.gmra.mrb[20].mxu1 %v15715_v58  ;;  %v11658_v9 = vcombine.high %v3733_v53, %v3737_v35  ;;  %v3741_v34 = vld [vmem:[%s17370_s6 + $0x11c0] sm:$0xff] }
 0x4b2   : > { %7416 = vmatmul.mubr.bf16.vlgmr.msra.gmra.mrb[72].mxu0 %v15715_v58  ;;  %7220 = vmatpush1.bf16.msra.mxu1 %v11609_v2  ;;  %v11651_v2 = vcombine.low %v3726_v56, %v3730_v29 }
 0x4b3   : > { %7251 = vmatprep.mubr.bf16.mxu1 %v15723_v61  ;;  %7425 = vmatpush1.bf16.msra.mxu0 %v11611_v22  ;;  %v3745_v22 = vld [vmem:[%s17370_s6 + $0x11e0] sm:$0xff] }
 0x4b4   : > { %7456 = vmatprep.mubr.bf16.mxu0 %v15723_v61  ;;  %7221 = vmatprep.subr.bf16.mxu1 %v11618_v13  ;;  %v15792_v13 = vadd.f32 %v15033_v26, %v2473_v8  ;;  %v11666_v18 = vcombine.high %v3741_v34, %v3745_v22  ;;  %v3749_v26 = vld [vmem:[%s17370_s6 + $0x1200] sm:$0xff]  ;;  %v11665_v21 = vcombine.low %v3741_v34, %v3745_v22  ;;  %v3786_v34 = vld [vmem:[%s17370_s6 + $0x1328] sm:$0xff] }
 0x4b5   : > { %7426 = vmatprep.subr.bf16.mxu0 %v11620_v16  ;;  %v11657_v16 = vcombine.low %v3733_v53, %v3737_v35  ;;  %v3778_v53 = vld [vmem:[%s17370_s6 + $0x12e8] sm:$0xff] }
 0x4b6   : > { %7222 = vmatpush1.bf16.msra.mxu1 %v11617_v40  ;;  %v11668_v40 = vcombine.high %v3742_v4, %v3746_v44 }
 0x4b7   : > { %7427 = vmatpush1.bf16.msra.mxu0 %v11619_v5  ;;  %7223 = vmatprep.subr.bf16.mxu1 %v11626_v47  ;;  %v3753_v5 = vld [vmem:[%s17370_s6 + $0x1220] sm:$0xff]  ;;  %v11095_v47 = vmul.f32 -1.442695, %v15792_v13 }
 0x4b8   : > { %7428 = vmatprep.subr.bf16.mxu0 %v11628_v38  ;;  %v3750_v38 = vld [vmem:[%s17370_s6 + $0x1208] sm:$0xff]  ;;  %v11674_v25 = vcombine.high %v3749_v26, %v3753_v5  ;;  %v11673_v1 = vcombine.low %v3749_v26, %v3753_v5 }
 0x4b9   : > { %13435 = vpow2.f32 %v11095_v47  ;;  %v11675_v62 = vcombine.low %v3750_v38, %v3754_v46  ;;  %v3790_v26 = vld [vmem:[%s17370_s6 + $0x1348] sm:$0xff] }
 0x4ba   : > { %7224 = vmatpush1.bf16.msra.mxu1 %v11625_v63  ;;  %v11676_v63 = vcombine.high %v3750_v38, %v3754_v46  ;;  %v3794_v5 = vld [vmem:[%s17370_s6 + $0x1368] sm:$0xff] }
 0x4bb   : > { %7429 = vmatpush1.bf16.msra.mxu0 %v11627_v7  ;;  %7225 = vmatprep.subr.bf16.mxu1 %v11634_v32  ;;  %v3757_v7 = vld [vmem:[%s17370_s6 + $0x1240] sm:$0xff] }
 0x4bc   : > { %7430 = vmatprep.subr.bf16.mxu0 %v11636_v51  ;;  %v3761_v32 = vld [vmem:[%s17370_s6 + $0x1260] sm:$0xff]  ;;  %v3758_v51 = vld [vmem:[%s17370_s6 + $0x1248] sm:$0xff] }
 0x4bd   : > { %v11682_v36 = vcombine.high %v3757_v7, %v3761_v32  ;;  %v11681_v52 = vcombine.low %v3757_v7, %v3761_v32  ;;  %v11683_v56 = vcombine.low %v3758_v51, %v3762_v54  ;;  %v3802_v7 = vld [vmem:[%s17370_s6 + $0x13a8] sm:$0xff] }
 0x4be   : > { %7226 = vmatpush1.bf16.msra.mxu1 %v11633_v10  ;;  %v11684_v10 = vcombine.high %v3758_v51, %v3762_v54  ;;  %v11715_v51 = vcombine.low %v3790_v26, %v3794_v5 }
 0x4bf   : > { %7431 = vmatpush1.bf16.msra.mxu0 %v11635_v39  ;;  %7227 = vmatprep.subr.bf16.mxu1 %v11642_v48  ;;  %v3765_v39 = vld [vmem:[%s17370_s6 + $0x1280] sm:$0xff] }
 0x4c0   : > { %7432 = vmatprep.subr.bf16.mxu0 %v11644_v23  ;;  %v3769_v48 = vld [vmem:[%s17370_s6 + $0x12a0] sm:$0xff]  ;;  %v3766_v23 = vld [vmem:[%s17370_s6 + $0x1288] sm:$0xff] }
 0x4c1   : > { %v11690_v29 = vcombine.high %v3765_v39, %v3769_v48  ;;  %v11689_v35 = vcombine.low %v3765_v39, %v3769_v48  ;;  %v11691_v30 = vcombine.low %v3766_v23, %v3770_v20  ;;  %v3810_v39 = vld [vmem:[%s17370_s6 + $0x13e8] sm:$0xff] }
 0x4c2   : > { %7228 = vmatpush1.bf16.msra.mxu1 %v11641_v27  ;;  %v11692_v27 = vcombine.high %v3766_v23, %v3770_v20 }
 0x4c3   : > { %7433 = vmatpush1.bf16.msra.mxu0 %v11643_v55  ;;  %7229 = vmatprep.subr.bf16.mxu1 %v11650_v14  ;;  %v3773_v55 = vld [vmem:[%s17370_s6 + $0x12c0] sm:$0xff]  ;;  %v13436_v8 = vpop.eup %13435 }
 0x4c4   : > { %7434 = vmatprep.subr.bf16.mxu0 %v11652_v33  ;;  %v3777_v14 = vld [vmem:[%s17370_s6 + $0x12e0] sm:$0xff]  ;;  %v3774_v33 = vld [vmem:[%s17370_s6 + $0x12c8] sm:$0xff]  ;;  %v3131_v22 = vadd.f32 1.0, %v13436_v8 }
 0x4c5   : > { %v11698_v37 = vcombine.high %v3773_v55, %v3777_v14  ;;  %v11697_v4 = vcombine.low %v3773_v55, %v3777_v14  ;;  %v11699_v44 = vcombine.low %v3774_v33, %v3778_v53  ;;  %v3176_v55 = vld [vmem:[%s17370_s6 + $0x18] sm:$0xff] }
 0x4c6   : > { %7230 = vmatpush1.bf16.msra.mxu1 %v11649_v28  ;;  %v11700_v28 = vcombine.high %v3774_v33, %v3778_v53  ;;  %13437 = vrcp.f32 %v3131_v22  ;;  %v3180_v14 = vld [vmem:[%s17370_s6 + $0x38] sm:$0xff] }
 0x4c7   : > { %7435 = vmatpush1.bf16.msra.mxu0 %v11651_v2  ;;  %7231 = vmatprep.subr.bf16.mxu1 %v11658_v9  ;;  %v3781_v2 = vld [vmem:[%s17370_s6 + $0x1300] sm:$0xff] }
 0x4c8   : > { %7436 = vmatprep.subr.bf16.mxu0 %v11660_v59  ;;  %v3785_v9 = vld [vmem:[%s17370_s6 + $0x1320] sm:$0xff]  ;;  %v3782_v59 = vld [vmem:[%s17370_s6 + $0x1308] sm:$0xff] }
 0x4c9   : > { %v11705_v47 = vcombine.low %v3781_v2, %v3785_v9  ;;  %v11707_v38 = vcombine.low %v3782_v59, %v3786_v34 }
 0x4ca   : > { %7232 = vmatpush1.bf16.msra.mxu1 %v11657_v16  ;;  %v11706_v16 = vcombine.high %v3781_v2, %v3785_v9  ;;  %v3188_v9 = vld [vmem:[%s17370_s6 + $0x78] sm:$0xff] }
 0x4cb   : > { %7437 = vmatpush1.bf16.msra.mxu0 %v11659_v12  ;;  %7233 = vmatprep.subr.bf16.mxu1 %v11666_v18  ;;  %v11708_v12 = vcombine.high %v3782_v59, %v3786_v34  ;;  %v3789_v18 = vld [vmem:[%s17370_s6 + $0x1340] sm:$0xff]  ;;  %v11103_v34 = vcombine.low %v3176_v55, %v3180_v14 }
 0x4cc   : > { %7438 = vmatprep.subr.bf16.mxu0 %v11668_v40  ;;  %v3793_v40 = vld [vmem:[%s17370_s6 + $0x1360] sm:$0xff] }
 0x4cd   : > { %v11714_v46 = vcombine.high %v3789_v18, %v3793_v40  ;;  %v11713_v32 = vcombine.low %v3789_v18, %v3793_v40  ;;  %v3196_v18 = vld [vmem:[%s17370_s6 + $0xb8] sm:$0xff] }
 0x4ce   : > { %7234 = vmatpush1.bf16.msra.mxu1 %v11665_v21  ;;  %v11716_v21 = vcombine.high %v3790_v26, %v3794_v5 }
 0x4cf   : > { %7439 = vmatpush1.bf16.msra.mxu0 %v11667_v0  ;;  %7235 = vmatprep.subr.bf16.mxu1 %v11674_v25  ;;  %v3797_v0 = vld [vmem:[%s17370_s6 + $0x1380] sm:$0xff] }
 0x4d0   : > { %7440 = vmatprep.subr.bf16.mxu0 %v11676_v63  ;;  %v3801_v25 = vld [vmem:[%s17370_s6 + $0x13a0] sm:$0xff]  ;;  %v3798_v63 = vld [vmem:[%s17370_s6 + $0x1388] sm:$0xff] }
 0x4d1   : > { %v11722_v54 = vcombine.high %v3797_v0, %v3801_v25  ;;  %v11721_v48 = vcombine.low %v3797_v0, %v3801_v25  ;;  %v11723_v23 = vcombine.low %v3798_v63, %v3802_v7  ;;  %v3204_v0 = vld [vmem:[%s17370_s6 + $0xf8] sm:$0xff] }
 0x4d2   : > { %7236 = vmatpush1.bf16.msra.mxu1 %v11673_v1  ;;  %v11724_v1 = vcombine.high %v3798_v63, %v3802_v7 }
 0x4d3   : > { %7441 = vmatpush1.bf16.msra.mxu0 %v11675_v62  ;;  %7237 = vmatprep.subr.bf16.mxu1 %v11682_v36  ;;  %v3805_v62 = vld [vmem:[%s17370_s6 + $0x13c0] sm:$0xff] }
 0x4d4   : > { %7442 = vmatprep.subr.bf16.mxu0 %v11684_v10  ;;  %v3809_v36 = vld [vmem:[%s17370_s6 + $0x13e0] sm:$0xff]  ;;  %v3806_v10 = vld [vmem:[%s17370_s6 + $0x13c8] sm:$0xff] }
 0x4d5   : > { %v11730_v20 = vcombine.high %v3805_v62, %v3809_v36  ;;  %v11729_v33 = vcombine.low %v3805_v62, %v3809_v36 }
 0x4d6   : > { %7238 = vmatpush1.bf16.msra.mxu1 %v11681_v52  ;;  %v13438_v52 = vpop.eup %13437 }
 0x4d7   : > { %7443 = vmatpush1.bf16.msra.mxu0 %v11683_v56  ;;  %7239 = vmatprep.subr.bf16.mxu1 %v11690_v29  ;;  %v11732_v56 = vcombine.high %v3806_v10, %v3810_v39  ;;  %v3175_v29 = vld [vmem:[%s17370_s6 + $0x10] sm:$0xff]  ;;  %v3161_v53 = vmul.f32 %v13438_v52, %v15792_v13  ;;  %v3184_v13 = vld [vmem:[%s17370_s6 + $0x58] sm:$0xff] }
 0x4d8   : > { %7444 = vmatprep.subr.bf16.mxu0 %v11692_v27  ;;  %v3179_v27 = vld [vmem:[%s17370_s6 + $0x30] sm:$0xff]  ;;  %v11111_v26 = vcombine.low %v3184_v13, %v3188_v9  ;;  %v3220_v52 = vld [vmem:[%s17370_s6 + $0x178] sm:$0xff] }
 0x4d9   : > { %v11102_v8 = vcombine.high %v3175_v29, %v3179_v27  ;;  %v11101_v2 = vcombine.low %v3175_v29, %v3179_v27  ;;  %v15922_v59 = vpack.c.bf16 %v3161_v53, %v3161_v53  ;;  %v3224_v53 = vld [vmem:[%s17370_s6 + $0x198] sm:$0xff] }
 0x4da   : > { %7240 = vmatpush1.bf16.msra.mxu1 %v11689_v35  ;;  %v11731_v35 = vcombine.low %v3806_v10, %v3810_v39 }
 0x4db   : > { %7445 = vmatpush1.bf16.msra.mxu0 %v11691_v30  ;;  %7241 = vmatprep.subr.bf16.mxu1 %v11698_v37  ;;  %v11104_v30 = vcombine.high %v3176_v55, %v3180_v14  ;;  %v3183_v37 = vld [vmem:[%s17370_s6 + $0x50] sm:$0xff] }
 0x4dc   : > { %7446 = vmatprep.subr.bf16.mxu0 %v11700_v28  ;;  %v3187_v28 = vld [vmem:[%s17370_s6 + $0x70] sm:$0xff] }
 0x4dd   : > { %v11110_v22 = vcombine.high %v3183_v37, %v3187_v28  ;;  %v11109_v40 = vcombine.low %v3183_v37, %v3187_v28  ;;  %v3223_v14 = vld [vmem:[%s17370_s6 + $0x190] sm:$0xff] }
 0x4de   : > { %7242 = vmatpush1.bf16.msra.mxu1 %v11697_v4  ;;  %v3191_v4 = vld [vmem:[%s17370_s6 + $0x90] sm:$0xff] }
 0x4df   : > { %7447 = vmatpush1.bf16.msra.mxu0 %v11699_v44  ;;  %7243 = vmatprep.subr.bf16.mxu1 %v11706_v16  ;;  %v3195_v44 = vld [vmem:[%s17370_s6 + $0xb0] sm:$0xff]  ;;  %v11112_v16 = vcombine.high %v3184_v13, %v3188_v9  ;;  %v3232_v9 = vld [vmem:[%s17370_s6 + $0x1d8] sm:$0xff] }
 0x4e0   : > { %7448 = vmatprep.subr.bf16.mxu0 %v11708_v12  ;;  %v3192_v12 = vld [vmem:[%s17370_s6 + $0x98] sm:$0xff]  ;;  %v11118_v5 = vcombine.high %v3191_v4, %v3195_v44  ;;  %v3235_v13 = vld [vmem:[%s17370_s6 + $0x1f0] sm:$0xff] }
 0x4e1   : > { %v11119_v25 = vcombine.low %v3192_v12, %v3196_v18 }
 0x4e2   : > { %7244 = vmatpush1.bf16.msra.mxu1 %v11705_v47  ;;  %v11120_v47 = vcombine.high %v3192_v12, %v3196_v18  ;;  %v3239_v12 = vld [vmem:[%s17370_s6 + $0x210] sm:$0xff] }
 0x4e3   : > { %7449 = vmatpush1.bf16.msra.mxu0 %v11707_v38  ;;  %7245 = vmatprep.subr.bf16.mxu1 %v11714_v46  ;;  %v3199_v38 = vld [vmem:[%s17370_s6 + $0xd0] sm:$0xff] }
 0x4e4   : > { %7450 = vmatprep.subr.bf16.mxu0 %v11716_v21  ;;  %v3203_v46 = vld [vmem:[%s17370_s6 + $0xf0] sm:$0xff]  ;;  %v3200_v21 = vld [vmem:[%s17370_s6 + $0xd8] sm:$0xff] }
 0x4e5   : > { %v11126_v63 = vcombine.high %v3199_v38, %v3203_v46  ;;  %v11128_v7 = vcombine.high %v3200_v21, %v3204_v0  ;;  %v11125_v62 = vcombine.low %v3199_v38, %v3203_v46  ;;  %v11127_v36 = vcombine.low %v3200_v21, %v3204_v0  ;;  %v3243_v18 = vld [vmem:[%s17370_s6 + $0x230] sm:$0xff] }
 0x4e6   : > { %7246 = vmatpush1.bf16.msra.mxu1 %v11713_v32  ;;  %v3207_v32 = vld [vmem:[%s17370_s6 + $0x110] sm:$0xff]  ;;  %v11166_v38 = vcombine.high %v3239_v12, %v3243_v18 }
 0x4e7   : > { %7451 = vmatpush1.bf16.msra.mxu0 %v11715_v51  ;;  %7247 = vmatprep.subr.bf16.mxu1 %v11722_v54  ;;  %v3211_v51 = vld [vmem:[%s17370_s6 + $0x130] sm:$0xff]  ;;  %v3208_v54 = vld [vmem:[%s17370_s6 + $0x118] sm:$0xff] }
 0x4e8   : > { %7452 = vmatprep.subr.bf16.mxu0 %v11724_v1  ;;  %v3212_v1 = vld [vmem:[%s17370_s6 + $0x138] sm:$0xff]  ;;  %v11134_v10 = vcombine.high %v3207_v32, %v3211_v51  ;;  %v3247_v21 = vld [vmem:[%s17370_s6 + $0x250] sm:$0xff] }
 0x4e9   : > { %v11136_v39 = vcombine.high %v3208_v54, %v3212_v1  ;;  %v11135_v29 = vcombine.low %v3208_v54, %v3212_v1  ;;  %v3251_v0 = vld [vmem:[%s17370_s6 + $0x270] sm:$0xff] }
 0x4ea   : > { %7248 = vmatpush1.bf16.msra.mxu1 %v11721_v48  ;;  %v3215_v48 = vld [vmem:[%s17370_s6 + $0x150] sm:$0xff] }
 0x4eb   : > { %7453 = vmatpush1.bf16.msra.mxu0 %v11723_v23  ;;  %7249 = vmatprep.subr.bf16.mxu1 %v11730_v20  ;;  %v3219_v23 = vld [vmem:[%s17370_s6 + $0x170] sm:$0xff]  ;;  %v3216_v20 = vld [vmem:[%s17370_s6 + $0x158] sm:$0xff] }
 0x4ec   : > { %7454 = vmatprep.subr.bf16.mxu0 %v11732_v56  ;;  %v11133_v56 = vcombine.low %v3207_v32, %v3211_v51  ;;  %v11142_v27 = vcombine.high %v3215_v48, %v3219_v23  ;;  %v11144_v55 = vcombine.high %v3216_v20, %v3220_v52  ;;  %v11174_v32 = vcombine.high %v3247_v21, %v3251_v0  ;;  %v3255_v54 = vld [vmem:[%s17370_s6 + $0x290] sm:$0xff] }
 0x4ed   : > { %v3259_v1 = vld [vmem:[%s17370_s6 + $0x2b0] sm:$0xff] }
 0x4ee   : > { %7250 = vmatpush1.bf16.msra.mxu1 %v11729_v33  ;;  %v3227_v33 = vld [vmem:[%s17370_s6 + $0x1b0] sm:$0xff] }
 0x4ef   : > { %7455 = vmatpush1.bf16.msra.mxu0 %v11731_v35  ;;  %7465 = vmatprep.subr.bf16.mxu1 %v11102_v8  ;;  %v3228_v35 = vld [vmem:[%s17370_s6 + $0x1b8] sm:$0xff]  ;;  %v11141_v8 = vcombine.low %v3215_v48, %v3219_v23  ;;  %v11150_v37 = vcombine.high %v3223_v14, %v3227_v33  ;;  %v11182_v48 = vcombine.high %v3255_v54, %v3259_v1 }
 0x4f0   : > { %7670 = vmatprep.subr.bf16.mxu0 %v11104_v30  ;;  %v11143_v30 = vcombine.low %v3216_v20, %v3220_v52  ;;  %v11152_v28 = vcombine.high %v3224_v53, %v3228_v35  ;;  %v3263_v20 = vld [vmem:[%s17370_s6 + $0x2d0] sm:$0xff] }
 0x4f1   : > { %7252 = vmatmul.mubr.bf16.vlgmr.msra.gmra.mrb[20].mxu1 %v15922_v59  ;;  %v3267_v52 = vld [vmem:[%s17370_s6 + $0x2f0] sm:$0xff] }
 0x4f2   : > { %7457 = vmatmul.mubr.bf16.vlgmr.msra.gmra.mrb[72].mxu0 %v15922_v59  ;;  %7466 = vmatpush1.bf16.msra.mxu1 %v11101_v2  ;;  %v3231_v2 = vld [vmem:[%s17370_s6 + $0x1d0] sm:$0xff] }
 0x4f3   : > { %7497 = vmatprep.mubr.bf16.mxu1 %v15035_v42  ;;  %7671 = vmatpush1.bf16.msra.mxu0 %v11103_v34  ;;  %v3236_v34 = vld [vmem:[%s17370_s6 + $0x1f8] sm:$0xff] }
 0x4f4   : > { %7702 = vmatprep.mubr.bf16.mxu0 %v15035_v42  ;;  %7467 = vmatprep.subr.bf16.mxu1 %v11110_v22  ;;  %v11117_v42 = vcombine.low %v3191_v4, %v3195_v44  ;;  %v11149_v22 = vcombine.low %v3223_v14, %v3227_v33  ;;  %v11151_v4 = vcombine.low %v3224_v53, %v3228_v35  ;;  %v3271_v53 = vld [vmem:[%s17370_s6 + $0x310] sm:$0xff] }
 0x4f5   : > { %7672 = vmatprep.subr.bf16.mxu0 %v11112_v16  ;;  %v11158_v44 = vcombine.high %v3231_v2, %v3235_v13  ;;  %v11160_v16 = vcombine.high %v3232_v9, %v3236_v34  ;;  %v11190_v14 = vcombine.high %v3263_v20, %v3267_v52  ;;  %v3275_v35 = vld [vmem:[%s17370_s6 + $0x330] sm:$0xff] }
 0x4f6   : > { %7468 = vmatpush1.bf16.msra.mxu1 %v11109_v40  ;;  %v3240_v40 = vld [vmem:[%s17370_s6 + $0x218] sm:$0xff] }
 0x4f7   : > { %7673 = vmatpush1.bf16.msra.mxu0 %v11111_v26  ;;  %7469 = vmatprep.subr.bf16.mxu1 %v11118_v5  ;;  %v3244_v26 = vld [vmem:[%s17370_s6 + $0x238] sm:$0xff]  ;;  %v11157_v5 = vcombine.low %v3231_v2, %v3235_v13  ;;  %v11198_v2 = vcombine.high %v3271_v53, %v3275_v35 }
 0x4f8   : > { %7674 = vmatprep.subr.bf16.mxu0 %v11120_v47  ;;  %v11159_v47 = vcombine.low %v3232_v9, %v3236_v34  ;;  %v11168_v46 = vcombine.high %v3240_v40, %v3244_v26  ;;  %v3279_v9 = vld [vmem:[%s17370_s6 + $0x350] sm:$0xff] }
 0x4f9   : > { %v3283_v34 = vld [vmem:[%s17370_s6 + $0x370] sm:$0xff] }
 0x4fa   : > { %7470 = vmatpush1.bf16.msra.mxu1 %v11117_v42  ;;  %v3248_v42 = vld [vmem:[%s17370_s6 + $0x258] sm:$0xff] }
 0x4fb   : > { %7675 = vmatpush1.bf16.msra.mxu0 %v11119_v25  ;;  %7471 = vmatprep.subr.bf16.mxu1 %v11126_v63  ;;  %v3252_v25 = vld [vmem:[%s17370_s6 + $0x278] sm:$0xff]  ;;  %v11165_v63 = vcombine.low %v3239_v12, %v3243_v18  ;;  %v11206_v12 = vcombine.high %v3279_v9, %v3283_v34 }
 0x4fc   : > { %7676 = vmatprep.subr.bf16.mxu0 %v11128_v7  ;;  %v11167_v7 = vcombine.low %v3240_v40, %v3244_v26  ;;  %v11176_v51 = vcombine.high %v3248_v42, %v3252_v25  ;;  %v3287_v40 = vld [vmem:[%s17370_s6 + $0x390] sm:$0xff] }
 0x4fd   : > { %v3291_v26 = vld [vmem:[%s17370_s6 + $0x3b0] sm:$0xff] }
 0x4fe   : > { %7472 = vmatpush1.bf16.msra.mxu1 %v11125_v62  ;;  %v3256_v62 = vld [vmem:[%s17370_s6 + $0x298] sm:$0xff] }
 0x4ff   : > { %7677 = vmatpush1.bf16.msra.mxu0 %v11127_v36  ;;  %7473 = vmatprep.subr.bf16.mxu1 %v11134_v10  ;;  %v3260_v36 = vld [vmem:[%s17370_s6 + $0x2b8] sm:$0xff]  ;;  %v11173_v10 = vcombine.low %v3247_v21, %v3251_v0  ;;  %v11214_v21 = vcombine.high %v3287_v40, %v3291_v26 }
 0x500   : > { %7678 = vmatprep.subr.bf16.mxu0 %v11136_v39  ;;  %v11175_v39 = vcombine.low %v3248_v42, %v3252_v25  ;;  %v11184_v23 = vcombine.high %v3256_v62, %v3260_v36  ;;  %v3295_v42 = vld [vmem:[%s17370_s6 + $0x3d0] sm:$0xff] }
 0x501   : > { %v3299_v25 = vld [vmem:[%s17370_s6 + $0x3f0] sm:$0xff] }
 0x502   : > { %7474 = vmatpush1.bf16.msra.mxu1 %v11133_v56  ;;  %v3264_v56 = vld [vmem:[%s17370_s6 + $0x2d8] sm:$0xff] }
 0x503   : > { %7679 = vmatpush1.bf16.msra.mxu0 %v11135_v29  ;;  %7475 = vmatprep.subr.bf16.mxu1 %v11142_v27  ;;  %v3268_v29 = vld [vmem:[%s17370_s6 + $0x2f8] sm:$0xff]  ;;  %v11181_v27 = vcombine.low %v3255_v54, %v3259_v1  ;;  %v11222_v54 = vcombine.high %v3295_v42, %v3299_v25 }
 0x504   : > { %7680 = vmatprep.subr.bf16.mxu0 %v11144_v55  ;;  %v11183_v55 = vcombine.low %v3256_v62, %v3260_v36  ;;  %v11192_v33 = vcombine.high %v3264_v56, %v3268_v29  ;;  %v3303_v62 = vld [vmem:[%s17370_s6 + $0x410] sm:$0xff] }
 0x505   : > { %v3307_v36 = vld [vmem:[%s17370_s6 + $0x430] sm:$0xff] }
 0x506   : > { %7476 = vmatpush1.bf16.msra.mxu1 %v11141_v8  ;;  %v3272_v8 = vld [vmem:[%s17370_s6 + $0x318] sm:$0xff] }
 0x507   : > { %7681 = vmatpush1.bf16.msra.mxu0 %v11143_v30  ;;  %7477 = vmatprep.subr.bf16.mxu1 %v11150_v37  ;;  %v3276_v30 = vld [vmem:[%s17370_s6 + $0x338] sm:$0xff]  ;;  %v11189_v37 = vcombine.low %v3263_v20, %v3267_v52  ;;  %v11230_v20 = vcombine.high %v3303_v62, %v3307_v36 }
 0x508   : > { %7682 = vmatprep.subr.bf16.mxu0 %v11152_v28  ;;  %v11191_v28 = vcombine.low %v3264_v56, %v3268_v29  ;;  %v11200_v13 = vcombine.high %v3272_v8, %v3276_v30  ;;  %v3311_v56 = vld [vmem:[%s17370_s6 + $0x450] sm:$0xff] }
 0x509   : > { %v3315_v29 = vld [vmem:[%s17370_s6 + $0x470] sm:$0xff] }
 0x50a   : > { %7478 = vmatpush1.bf16.msra.mxu1 %v11149_v22  ;;  %v3280_v22 = vld [vmem:[%s17370_s6 + $0x358] sm:$0xff] }
 0x50b   : > { %7683 = vmatpush1.bf16.msra.mxu0 %v11151_v4  ;;  %7479 = vmatprep.subr.bf16.mxu1 %v11158_v44  ;;  %v3284_v4 = vld [vmem:[%s17370_s6 + $0x378] sm:$0xff]  ;;  %v11197_v44 = vcombine.low %v3271_v53, %v3275_v35  ;;  %v11238_v53 = vcombine.high %v3311_v56, %v3315_v29  ;;  %v3319_v35 = vld [vmem:[%s17370_s6 + $0x490] sm:$0xff] }
 0x50c   : > { %7684 = vmatprep.subr.bf16.mxu0 %v11160_v16  ;;  %v11199_v16 = vcombine.low %v3272_v8, %v3276_v30  ;;  %v11208_v18 = vcombine.high %v3280_v22, %v3284_v4  ;;  %v3323_v8 = vld [vmem:[%s17370_s6 + $0x4b0] sm:$0xff] }
 0x50e   : > { %7480 = vmatpush1.bf16.msra.mxu1 %v11157_v5  ;;  %v3288_v5 = vld [vmem:[%s17370_s6 + $0x398] sm:$0xff] }
 0x50f   : > { %7685 = vmatpush1.bf16.msra.mxu0 %v11159_v47  ;;  %7481 = vmatprep.subr.bf16.mxu1 %v11166_v38  ;;  %v3292_v47 = vld [vmem:[%s17370_s6 + $0x3b8] sm:$0xff]  ;;  %v11205_v38 = vcombine.low %v3279_v9, %v3283_v34  ;;  %v11246_v9 = vcombine.high %v3319_v35, %v3323_v8 }
 0x510   : > { %7686 = vmatprep.subr.bf16.mxu0 %v11168_v46  ;;  %v11207_v46 = vcombine.low %v3280_v22, %v3284_v4  ;;  %v11216_v0 = vcombine.high %v3288_v5, %v3292_v47  ;;  %v3327_v22 = vld [vmem:[%s17370_s6 + $0x4d0] sm:$0xff] }
 0x511   : > { %v3331_v4 = vld [vmem:[%s17370_s6 + $0x4f0] sm:$0xff] }
 0x512   : > { %7482 = vmatpush1.bf16.msra.mxu1 %v11165_v63  ;;  %v3296_v63 = vld [vmem:[%s17370_s6 + $0x3d8] sm:$0xff] }
 0x513   : > { %7687 = vmatpush1.bf16.msra.mxu0 %v11167_v7  ;;  %7483 = vmatprep.subr.bf16.mxu1 %v11174_v32  ;;  %v3300_v7 = vld [vmem:[%s17370_s6 + $0x3f8] sm:$0xff]  ;;  %v11213_v32 = vcombine.low %v3287_v40, %v3291_v26  ;;  %v3335_v40 = vld [vmem:[%s17370_s6 + $0x510] sm:$0xff] }
 0x514   : > { %7688 = vmatprep.subr.bf16.mxu0 %v11176_v51  ;;  %v11215_v51 = vcombine.low %v3288_v5, %v3292_v47  ;;  %v11224_v1 = vcombine.high %v3296_v63, %v3300_v7  ;;  %v3339_v26 = vld [vmem:[%s17370_s6 + $0x530] sm:$0xff]  ;;  %v3336_v5 = vld [vmem:[%s17370_s6 + $0x518] sm:$0xff] }
 0x515   : > { %v3340_v47 = vld [vmem:[%s17370_s6 + $0x538] sm:$0xff] }
 0x516   : > { %7484 = vmatpush1.bf16.msra.mxu1 %v11173_v10  ;;  %v3304_v10 = vld [vmem:[%s17370_s6 + $0x418] sm:$0xff] }
 0x517   : > { %7689 = vmatpush1.bf16.msra.mxu0 %v11175_v39  ;;  %7485 = vmatprep.subr.bf16.mxu1 %v11182_v48  ;;  %v3308_v39 = vld [vmem:[%s17370_s6 + $0x438] sm:$0xff]  ;;  %v11221_v48 = vcombine.low %v3295_v42, %v3299_v25  ;;  %v3343_v42 = vld [vmem:[%s17370_s6 + $0x550] sm:$0xff] }
 0x518   : > { %7690 = vmatprep.subr.bf16.mxu0 %v11184_v23  ;;  %v11223_v23 = vcombine.low %v3296_v63, %v3300_v7  ;;  %v11232_v52 = vcombine.high %v3304_v10, %v3308_v39  ;;  %v3347_v25 = vld [vmem:[%s17370_s6 + $0x570] sm:$0xff]  ;;  %v3344_v63 = vld [vmem:[%s17370_s6 + $0x558] sm:$0xff] }
 0x519   : > { %v3348_v7 = vld [vmem:[%s17370_s6 + $0x578] sm:$0xff] }
 0x51a   : > { %7486 = vmatpush1.bf16.msra.mxu1 %v11181_v27  ;;  %v11229_v27 = vcombine.low %v3303_v62, %v3307_v36  ;;  %v3351_v62 = vld [vmem:[%s17370_s6 + $0x590] sm:$0xff] }
 0x51b   : > { %7691 = vmatpush1.bf16.msra.mxu0 %v11183_v55  ;;  %7487 = vmatprep.subr.bf16.mxu1 %v11190_v14  ;;  %v3312_v55 = vld [vmem:[%s17370_s6 + $0x458] sm:$0xff]  ;;  %v3355_v36 = vld [vmem:[%s17370_s6 + $0x5b0] sm:$0xff] }
 0x51c   : > { %7692 = vmatprep.subr.bf16.mxu0 %v11192_v33  ;;  %v3316_v14 = vld [vmem:[%s17370_s6 + $0x478] sm:$0xff]  ;;  %v11231_v33 = vcombine.low %v3304_v10, %v3308_v39 }
 0x51d   : > { %v11240_v30 = vcombine.high %v3312_v55, %v3316_v14  ;;  %v3352_v10 = vld [vmem:[%s17370_s6 + $0x598] sm:$0xff] }
 0x51e   : > { %7488 = vmatpush1.bf16.msra.mxu1 %v11189_v37  ;;  %v3320_v37 = vld [vmem:[%s17370_s6 + $0x498] sm:$0xff] }
 0x51f   : > { %7693 = vmatpush1.bf16.msra.mxu0 %v11191_v28  ;;  %7489 = vmatprep.subr.bf16.mxu1 %v11198_v2  ;;  %v3324_v28 = vld [vmem:[%s17370_s6 + $0x4b8] sm:$0xff]  ;;  %v11237_v2 = vcombine.low %v3311_v56, %v3315_v29  ;;  %v3359_v56 = vld [vmem:[%s17370_s6 + $0x5d0] sm:$0xff] }
 0x520   : > { %7694 = vmatprep.subr.bf16.mxu0 %v11200_v13  ;;  %v11239_v13 = vcombine.low %v3312_v55, %v3316_v14  ;;  %v11248_v34 = vcombine.high %v3320_v37, %v3324_v28  ;;  %v3356_v39 = vld [vmem:[%s17370_s6 + $0x5b8] sm:$0xff]  ;;  %v3363_v29 = vld [vmem:[%s17370_s6 + $0x5f0] sm:$0xff]  ;;  %v11277_v14 = vcombine.low %v3351_v62, %v3355_v36 }
 0x521   : > { %v3364_v55 = vld [vmem:[%s17370_s6 + $0x5f8] sm:$0xff] }
 0x522   : > { %7490 = vmatpush1.bf16.msra.mxu1 %v11197_v44  ;;  %v3332_v44 = vld [vmem:[%s17370_s6 + $0x4f8] sm:$0xff] }
 0x523   : > { %7695 = vmatpush1.bf16.msra.mxu0 %v11199_v16  ;;  %7491 = vmatprep.subr.bf16.mxu1 %v11206_v12  ;;  %v11247_v16 = vcombine.low %v3320_v37, %v3324_v28  ;;  %v11254_v12 = vcombine.high %v3327_v22, %v3331_v4  ;;  %v3368_v37 = vld [vmem:[%s17370_s6 + $0x618] sm:$0xff] }
 0x524   : > { %7696 = vmatprep.subr.bf16.mxu0 %v11208_v18  ;;  %v3372_v28 = vld [vmem:[%s17370_s6 + $0x638] sm:$0xff] }
 0x526   : > { %7492 = vmatpush1.bf16.msra.mxu1 %v11205_v38  ;;  %v11253_v38 = vcombine.low %v3327_v22, %v3331_v4  ;;  %v3375_v22 = vld [vmem:[%s17370_s6 + $0x650] sm:$0xff] }
 0x527   : > { %7697 = vmatpush1.bf16.msra.mxu0 %v11207_v46  ;;  %7493 = vmatprep.subr.bf16.mxu1 %v11214_v21  ;;  %v11262_v21 = vcombine.high %v3335_v40, %v3339_v26  ;;  %v3379_v4 = vld [vmem:[%s17370_s6 + $0x670] sm:$0xff] }
 0x528   : > { %7698 = vmatprep.subr.bf16.mxu0 %v11216_v0  ;;  %v11264_v0 = vcombine.high %v3336_v5, %v3340_v47 }
 0x52a   : > { %7494 = vmatpush1.bf16.msra.mxu1 %v11213_v32  ;;  %v11261_v32 = vcombine.low %v3335_v40, %v3339_v26  ;;  %v3383_v40 = vld [vmem:[%s17370_s6 + $0x690] sm:$0xff] }
 0x52b   : > { %7699 = vmatpush1.bf16.msra.mxu0 %v11215_v51  ;;  %7495 = vmatprep.subr.bf16.mxu1 %v11222_v54  ;;  %v11263_v51 = vcombine.low %v3336_v5, %v3340_v47  ;;  %v11270_v54 = vcombine.high %v3343_v42, %v3347_v25  ;;  %v3387_v26 = vld [vmem:[%s17370_s6 + $0x6b0] sm:$0xff]  ;;  %v3384_v5 = vld [vmem:[%s17370_s6 + $0x698] sm:$0xff] }
 0x52c   : > { %7700 = vmatprep.subr.bf16.mxu0 %v11224_v1  ;;  %v11272_v1 = vcombine.high %v3344_v63, %v3348_v7  ;;  %v3388_v47 = vld [vmem:[%s17370_s6 + $0x6b8] sm:$0xff] }
 0x52e   : > { %7496 = vmatpush1.bf16.msra.mxu1 %v11221_v48  ;;  %v11269_v48 = vcombine.low %v3343_v42, %v3347_v25  ;;  %v3391_v42 = vld [vmem:[%s17370_s6 + $0x6d0] sm:$0xff] }
 0x52f   : > { %7701 = vmatpush1.bf16.msra.mxu0 %v11223_v23  ;;  %7506 = vmatprep.subr.bf16.mxu1 %v11230_v20  ;;  %v11271_v23 = vcombine.low %v3344_v63, %v3348_v7  ;;  %v11278_v20 = vcombine.high %v3351_v62, %v3355_v36  ;;  %v3395_v25 = vld [vmem:[%s17370_s6 + $0x6f0] sm:$0xff]  ;;  %v3392_v63 = vld [vmem:[%s17370_s6 + $0x6d8] sm:$0xff] }
 0x530   : > { %7711 = vmatprep.subr.bf16.mxu0 %v11232_v52  ;;  %v11280_v52 = vcombine.high %v3352_v10, %v3356_v39  ;;  %v3396_v7 = vld [vmem:[%s17370_s6 + $0x6f8] sm:$0xff]  ;;  %v3399_v62 = vld [vmem:[%s17370_s6 + $0x710] sm:$0xff] }
 0x531   : > { %7498 = vmatmul.mubr.bf16.vlgmr.msra.gmra.mrb[24].mxu1 %v15039_v6  ;;  %v3403_v36 = vld [vmem:[%s17370_s6 + $0x730] sm:$0xff] }
 0x532   : > { %7703 = vmatmul.mubr.bf16.vlgmr.msra.gmra.mrb[76].mxu0 %v15039_v6  ;;  %7507 = vmatpush1.bf16.msra.mxu1 %v11229_v27  ;;  %v3328_v6 = vld [vmem:[%s17370_s6 + $0x4d8] sm:$0xff] }
 0x533   : > { %7538 = vmatprep.mubr.bf16.mxu1 %v15170_v19  ;;  %7712 = vmatpush1.bf16.msra.mxu0 %v11231_v33  ;;  %v11256_v18 = vcombine.high %v3328_v6, %v3332_v44  ;;  %v11255_v46 = vcombine.low %v3328_v6, %v3332_v44  ;;  %v3360_v27 = vld [vmem:[%s17370_s6 + $0x5d8] sm:$0xff]  ;;  %v11279_v33 = vcombine.low %v3352_v10, %v3356_v39 }
 0x534   : > { %7743 = vmatprep.mubr.bf16.mxu0 %v15170_v19  ;;  %7508 = vmatprep.subr.bf16.mxu1 %v11238_v53  ;;  %v11245_v19 = vcombine.low %v3319_v35, %v3323_v8  ;;  %v11286_v53 = vcombine.high %v3359_v56, %v3363_v29  ;;  %v11288_v35 = vcombine.high %v3360_v27, %v3364_v55  ;;  %v3367_v8 = vld [vmem:[%s17370_s6 + $0x610] sm:$0xff]  ;;  %v3376_v6 = vld [vmem:[%s17370_s6 + $0x658] sm:$0xff] }
 0x535   : > { %7713 = vmatprep.subr.bf16.mxu0 %v11240_v30  ;;  %v3371_v30 = vld [vmem:[%s17370_s6 + $0x630] sm:$0xff]  ;;  %v3380_v44 = vld [vmem:[%s17370_s6 + $0x678] sm:$0xff] }
 0x536   : > { %7509 = vmatpush1.bf16.msra.mxu1 %v11237_v2  ;;  %v11285_v2 = vcombine.low %v3359_v56, %v3363_v29  ;;  %v3400_v10 = vld [vmem:[%s17370_s6 + $0x718] sm:$0xff]  ;;  %v3407_v56 = vld [vmem:[%s17370_s6 + $0x750] sm:$0xff] }
 0x537   : > { %7714 = vmatpush1.bf16.msra.mxu0 %v11239_v13  ;;  %7510 = vmatprep.subr.bf16.mxu1 %v11246_v9  ;;  %v11287_v13 = vcombine.low %v3360_v27, %v3364_v55  ;;  %v11294_v9 = vcombine.high %v3367_v8, %v3371_v30  ;;  %v3404_v39 = vld [vmem:[%s17370_s6 + $0x738] sm:$0xff]  ;;  %v3411_v29 = vld [vmem:[%s17370_s6 + $0x770] sm:$0xff] }
 0x538   : > { %7715 = vmatprep.subr.bf16.mxu0 %v11248_v34  ;;  %v11296_v34 = vcombine.high %v3368_v37, %v3372_v28  ;;  %v3408_v27 = vld [vmem:[%s17370_s6 + $0x758] sm:$0xff] }
 0x539   : > { %v3412_v55 = vld [vmem:[%s17370_s6 + $0x778] sm:$0xff] }
 0x53a   : > { %7511 = vmatpush1.bf16.msra.mxu1 %v11245_v19  ;;  %v11293_v19 = vcombine.low %v3367_v8, %v3371_v30  ;;  %v3415_v8 = vld [vmem:[%s17370_s6 + $0x790] sm:$0xff] }
 0x53b   : > { %7716 = vmatpush1.bf16.msra.mxu0 %v11247_v16  ;;  %7512 = vmatprep.subr.bf16.mxu1 %v11254_v12  ;;  %v11295_v16 = vcombine.low %v3368_v37, %v3372_v28  ;;  %v11302_v12 = vcombine.high %v3375_v22, %v3379_v4  ;;  %v3419_v30 = vld [vmem:[%s17370_s6 + $0x7b0] sm:$0xff]  ;;  %v3416_v37 = vld [vmem:[%s17370_s6 + $0x798] sm:$0xff] }
 0x53c   : > { %7717 = vmatprep.subr.bf16.mxu0 %v11256_v18  ;;  %v11304_v18 = vcombine.high %v3376_v6, %v3380_v44  ;;  %v3420_v28 = vld [vmem:[%s17370_s6 + $0x7b8] sm:$0xff] }
 0x53e   : > { %7513 = vmatpush1.bf16.msra.mxu1 %v11253_v38  ;;  %v11301_v38 = vcombine.low %v3375_v22, %v3379_v4  ;;  %v3423_v22 = vld [vmem:[%s17370_s6 + $0x7d0] sm:$0xff] }
 0x53f   : > { %7718 = vmatpush1.bf16.msra.mxu0 %v11255_v46  ;;  %7514 = vmatprep.subr.bf16.mxu1 %v11262_v21  ;;  %v11303_v46 = vcombine.low %v3376_v6, %v3380_v44  ;;  %v11310_v21 = vcombine.high %v3383_v40, %v3387_v26  ;;  %v3427_v4 = vld [vmem:[%s17370_s6 + $0x7f0] sm:$0xff]  ;;  %v3424_v6 = vld [vmem:[%s17370_s6 + $0x7d8] sm:$0xff] }
 0x540   : > { %7719 = vmatprep.subr.bf16.mxu0 %v11264_v0  ;;  %v11312_v0 = vcombine.high %v3384_v5, %v3388_v47  ;;  %v3428_v44 = vld [vmem:[%s17370_s6 + $0x7f8] sm:$0xff] }
 0x542   : > { %7515 = vmatpush1.bf16.msra.mxu1 %v11261_v32  ;;  %v11309_v32 = vcombine.low %v3383_v40, %v3387_v26  ;;  %v3431_v40 = vld [vmem:[%s17370_s6 + $0x810] sm:$0xff] }
 0x543   : > { %7720 = vmatpush1.bf16.msra.mxu0 %v11263_v51  ;;  %7516 = vmatprep.subr.bf16.mxu1 %v11270_v54  ;;  %v11311_v51 = vcombine.low %v3384_v5, %v3388_v47  ;;  %v11318_v54 = vcombine.high %v3391_v42, %v3395_v25  ;;  %v3435_v26 = vld [vmem:[%s17370_s6 + $0x830] sm:$0xff]  ;;  %v3432_v5 = vld [vmem:[%s17370_s6 + $0x818] sm:$0xff] }
 0x544   : > { %7721 = vmatprep.subr.bf16.mxu0 %v11272_v1  ;;  %v11320_v1 = vcombine.high %v3392_v63, %v3396_v7  ;;  %v3436_v47 = vld [vmem:[%s17370_s6 + $0x838] sm:$0xff] }
 0x546   : > { %7517 = vmatpush1.bf16.msra.mxu1 %v11269_v48  ;;  %v11317_v48 = vcombine.low %v3391_v42, %v3395_v25  ;;  %v3439_v42 = vld [vmem:[%s17370_s6 + $0x850] sm:$0xff] }
 0x547   : > { %7722 = vmatpush1.bf16.msra.mxu0 %v11271_v23  ;;  %7518 = vmatprep.subr.bf16.mxu1 %v11278_v20  ;;  %v11319_v23 = vcombine.low %v3392_v63, %v3396_v7  ;;  %v11326_v20 = vcombine.high %v3399_v62, %v3403_v36  ;;  %v3443_v25 = vld [vmem:[%s17370_s6 + $0x870] sm:$0xff]  ;;  %v11357_v63 = vcombine.low %v3431_v40, %v3435_v26  ;;  %v3440_v7 = vld [vmem:[%s17370_s6 + $0x858] sm:$0xff] }
 0x548   : > { %7723 = vmatprep.subr.bf16.mxu0 %v11280_v52  ;;  %v11328_v52 = vcombine.high %v3400_v10, %v3404_v39 }
 0x54a   : > { %7519 = vmatpush1.bf16.msra.mxu1 %v11277_v14  ;;  %v11325_v14 = vcombine.low %v3399_v62, %v3403_v36  ;;  %v3451_v62 = vld [vmem:[%s17370_s6 + $0x8b0] sm:$0xff] }
 0x54b   : > { %7724 = vmatpush1.bf16.msra.mxu0 %v11279_v33  ;;  %7520 = vmatprep.subr.bf16.mxu1 %v11286_v53  ;;  %v11327_v33 = vcombine.low %v3400_v10, %v3404_v39  ;;  %v11334_v53 = vcombine.high %v3407_v56, %v3411_v29  ;;  %v3448_v10 = vld [vmem:[%s17370_s6 + $0x898] sm:$0xff] }
 0x54c   : > { %7725 = vmatprep.subr.bf16.mxu0 %v11288_v35  ;;  %v11336_v35 = vcombine.high %v3408_v27, %v3412_v55  ;;  %v3452_v39 = vld [vmem:[%s17370_s6 + $0x8b8] sm:$0xff] }
 0x54e   : > { %7521 = vmatpush1.bf16.msra.mxu1 %v11285_v2  ;;  %v11333_v2 = vcombine.low %v3407_v56, %v3411_v29  ;;  %v3455_v56 = vld [vmem:[%s17370_s6 + $0x8d0] sm:$0xff] }
 0x54f   : > { %7726 = vmatpush1.bf16.msra.mxu0 %v11287_v13  ;;  %7522 = vmatprep.subr.bf16.mxu1 %v11294_v9  ;;  %v11335_v13 = vcombine.low %v3408_v27, %v3412_v55  ;;  %v11342_v9 = vcombine.high %v3415_v8, %v3419_v30  ;;  %v3459_v29 = vld [vmem:[%s17370_s6 + $0x8f0] sm:$0xff]  ;;  %v3460_v27 = vld [vmem:[%s17370_s6 + $0x8f8] sm:$0xff]  ;;  %v11375_v55 = vcombine.low %v3448_v10, %v3452_v39 }
 0x550   : > { %7727 = vmatprep.subr.bf16.mxu0 %v11296_v34  ;;  %v11344_v34 = vcombine.high %v3416_v37, %v3420_v28 }
 0x552   : > { %7523 = vmatpush1.bf16.msra.mxu1 %v11293_v19  ;;  %v11341_v19 = vcombine.low %v3415_v8, %v3419_v30  ;;  %v3464_v8 = vld [vmem:[%s17370_s6 + $0x918] sm:$0xff] }
 0x553   : > { %7728 = vmatpush1.bf16.msra.mxu0 %v11295_v16  ;;  %7524 = vmatprep.subr.bf16.mxu1 %v11302_v12  ;;  %v11343_v16 = vcombine.low %v3416_v37, %v3420_v28  ;;  %v11350_v12 = vcombine.high %v3423_v22, %v3427_v4  ;;  %v3468_v30 = vld [vmem:[%s17370_s6 + $0x938] sm:$0xff]  ;;  %v11381_v37 = vcombine.low %v3455_v56, %v3459_v29 }
 0x554   : > { %7729 = vmatprep.subr.bf16.mxu0 %v11304_v18  ;;  %v11352_v18 = vcombine.high %v3424_v6, %v3428_v44 }
 0x556   : > { %7525 = vmatpush1.bf16.msra.mxu1 %v11301_v38  ;;  %v11349_v38 = vcombine.low %v3423_v22, %v3427_v4  ;;  %v3472_v22 = vld [vmem:[%s17370_s6 + $0x958] sm:$0xff] }
 0x557   : > { %7730 = vmatpush1.bf16.msra.mxu0 %v11303_v46  ;;  %7526 = vmatprep.subr.bf16.mxu1 %v11310_v21  ;;  %v11351_v46 = vcombine.low %v3424_v6, %v3428_v44  ;;  %v11358_v21 = vcombine.high %v3431_v40, %v3435_v26  ;;  %v3476_v4 = vld [vmem:[%s17370_s6 + $0x978] sm:$0xff]  ;;  %v11391_v44 = vcombine.low %v3464_v8, %v3468_v30 }
 0x558   : > { %7731 = vmatprep.subr.bf16.mxu0 %v11312_v0  ;;  %v11360_v0 = vcombine.high %v3432_v5, %v3436_v47  ;;  %v3480_v40 = vld [vmem:[%s17370_s6 + $0x998] sm:$0xff] }
 0x559   : > { %v3484_v26 = vld [vmem:[%s17370_s6 + $0x9b8] sm:$0xff] }
 0x55a   : > { %7527 = vmatpush1.bf16.msra.mxu1 %v11309_v32  ;;  %v3444_v32 = vld [vmem:[%s17370_s6 + $0x878] sm:$0xff] }
 0x55b   : > { %7732 = vmatpush1.bf16.msra.mxu0 %v11311_v51  ;;  %7528 = vmatprep.subr.bf16.mxu1 %v11318_v54  ;;  %v11359_v51 = vcombine.low %v3432_v5, %v3436_v47  ;;  %v11366_v54 = vcombine.high %v3439_v42, %v3443_v25  ;;  %v11368_v36 = vcombine.high %v3440_v7, %v3444_v32 }
 0x55c   : > { %7733 = vmatprep.subr.bf16.mxu0 %v11320_v1  ;;  %v3447_v1 = vld [vmem:[%s17370_s6 + $0x890] sm:$0xff]  ;;  %v11399_v47 = vcombine.low %v3472_v22, %v3476_v4 }
 0x55e   : > { %7529 = vmatpush1.bf16.msra.mxu1 %v11317_v48  ;;  %v11365_v48 = vcombine.low %v3439_v42, %v3443_v25  ;;  %v3488_v42 = vld [vmem:[%s17370_s6 + $0x9d8] sm:$0xff] }
 0x55f   : > { %7734 = vmatpush1.bf16.msra.mxu0 %v11319_v23  ;;  %7530 = vmatprep.subr.bf16.mxu1 %v11326_v20  ;;  %v11367_v23 = vcombine.low %v3440_v7, %v3444_v32  ;;  %v11374_v20 = vcombine.high %v3447_v1, %v3451_v62  ;;  %v3492_v25 = vld [vmem:[%s17370_s6 + $0x9f8] sm:$0xff]  ;;  %v11407_v7 = vcombine.low %v3480_v40, %v3484_v26 }
 0x560   : > { %7735 = vmatprep.subr.bf16.mxu0 %v11328_v52  ;;  %v11376_v52 = vcombine.high %v3448_v10, %v3452_v39  ;;  %v11415_v39 = vcombine.low %v3488_v42, %v3492_v25 }
 0x562   : > { %7531 = vmatpush1.bf16.msra.mxu1 %v11325_v14  ;;  %v11382_v14 = vcombine.high %v3455_v56, %v3459_v29  ;;  %v3504_v56 = vld [vmem:[%s17370_s6 + $0xa58] sm:$0xff] }
 0x563   : > { %7736 = vmatpush1.bf16.msra.mxu0 %v11327_v33  ;;  %7532 = vmatprep.subr.bf16.mxu1 %v11334_v53  ;;  %v3463_v53 = vld [vmem:[%s17370_s6 + $0x910] sm:$0xff]  ;;  %v3508_v29 = vld [vmem:[%s17370_s6 + $0xa78] sm:$0xff] }
 0x564   : > { %7737 = vmatprep.subr.bf16.mxu0 %v11336_v35  ;;  %v3467_v35 = vld [vmem:[%s17370_s6 + $0x930] sm:$0xff] }
 0x565   : > { %v11389_v6 = vcombine.low %v3463_v53, %v3467_v35 }
 0x566   : > { %7533 = vmatpush1.bf16.msra.mxu1 %v11333_v2  ;;  %v11390_v2 = vcombine.high %v3463_v53, %v3467_v35  ;;  %v3512_v53 = vld [vmem:[%s17370_s6 + $0xa98] sm:$0xff] }
 0x567   : > { %7738 = vmatpush1.bf16.msra.mxu0 %v11335_v13  ;;  %7534 = vmatprep.subr.bf16.mxu1 %v11342_v9  ;;  %v11392_v13 = vcombine.high %v3464_v8, %v3468_v30  ;;  %v3471_v9 = vld [vmem:[%s17370_s6 + $0x950] sm:$0xff]  ;;  %v3516_v35 = vld [vmem:[%s17370_s6 + $0xab8] sm:$0xff]  ;;  %v11431_v30 = vcombine.low %v3504_v56, %v3508_v29 }
 0x568   : > { %7739 = vmatprep.subr.bf16.mxu0 %v11344_v34  ;;  %v3475_v34 = vld [vmem:[%s17370_s6 + $0x970] sm:$0xff] }
 0x569   : > { %v11397_v5 = vcombine.low %v3471_v9, %v3475_v34 }
 0x56a   : > { %7535 = vmatpush1.bf16.msra.mxu1 %v11341_v19  ;;  %v11398_v19 = vcombine.high %v3471_v9, %v3475_v34  ;;  %v3520_v9 = vld [vmem:[%s17370_s6 + $0xad8] sm:$0xff] }
 0x56b   : > { %7740 = vmatpush1.bf16.msra.mxu0 %v11343_v16  ;;  %7536 = vmatprep.subr.bf16.mxu1 %v11350_v12  ;;  %v11400_v16 = vcombine.high %v3472_v22, %v3476_v4  ;;  %v3479_v12 = vld [vmem:[%s17370_s6 + $0x990] sm:$0xff]  ;;  %v3524_v34 = vld [vmem:[%s17370_s6 + $0xaf8] sm:$0xff]  ;;  %v11439_v4 = vcombine.low %v3512_v53, %v3516_v35 }
 0x56c   : > { %7741 = vmatprep.subr.bf16.mxu0 %v11352_v18  ;;  %v3483_v18 = vld [vmem:[%s17370_s6 + $0x9b0] sm:$0xff] }
 0x56e   : > { %7537 = vmatpush1.bf16.msra.mxu1 %v11349_v38  ;;  %v11406_v38 = vcombine.high %v3479_v12, %v3483_v18 }
 0x56f   : > { %7742 = vmatpush1.bf16.msra.mxu0 %v11351_v46  ;;  %7547 = vmatprep.subr.bf16.mxu1 %v11358_v21  ;;  %v11408_v46 = vcombine.high %v3480_v40, %v3484_v26  ;;  %v3487_v21 = vld [vmem:[%s17370_s6 + $0x9d0] sm:$0xff]  ;;  %v11447_v26 = vcombine.low %v3520_v9, %v3524_v34 }
 0x570   : > { %7752 = vmatprep.subr.bf16.mxu0 %v11360_v0  ;;  %v3491_v0 = vld [vmem:[%s17370_s6 + $0x9f0] sm:$0xff] }
 0x571   : > { %7539 = vmatmul.mubr.bf16.vlgmr.msra.gmra.mrb[24].mxu1 %v15274_v49  ;;  %v11414_v32 = vcombine.high %v3487_v21, %v3491_v0  ;;  %v11413_v10 = vcombine.low %v3487_v21, %v3491_v0  ;;  %v3536_v21 = vld [vmem:[%s17370_s6 + $0xb58] sm:$0xff] }
 0x572   : > { %7744 = vmatmul.mubr.bf16.vlgmr.msra.gmra.mrb[76].mxu0 %v15274_v49  ;;  %7548 = vmatpush1.bf16.msra.mxu1 %v11357_v63  ;;  %v3456_v49 = vld [vmem:[%s17370_s6 + $0x8d8] sm:$0xff]  ;;  %v11405_v63 = vcombine.low %v3479_v12, %v3483_v18 }
 0x573   : > { %7579 = vmatprep.mubr.bf16.mxu1 %v15276_v41  ;;  %7753 = vmatpush1.bf16.msra.mxu0 %v11359_v51  ;;  %v11384_v33 = vcombine.high %v3456_v49, %v3460_v27  ;;  %v11383_v28 = vcombine.low %v3456_v49, %v3460_v27  ;;  %v11416_v51 = vcombine.high %v3488_v42, %v3492_v25  ;;  %v3528_v12 = vld [vmem:[%s17370_s6 + $0xb18] sm:$0xff] }
 0x574   : > { %7784 = vmatprep.mubr.bf16.mxu0 %v15276_v41  ;;  %7549 = vmatprep.subr.bf16.mxu1 %v11366_v54  ;;  %v11373_v41 = vcombine.low %v3447_v1, %v3451_v62  ;;  %v3495_v54 = vld [vmem:[%s17370_s6 + $0xa10] sm:$0xff]  ;;  %v3496_v62 = vld [vmem:[%s17370_s6 + $0xa18] sm:$0xff] }
 0x575   : > { %7754 = vmatprep.subr.bf16.mxu0 %v11368_v36  ;;  %v3499_v1 = vld [vmem:[%s17370_s6 + $0xa30] sm:$0xff]  ;;  %v3500_v36 = vld [vmem:[%s17370_s6 + $0xa38] sm:$0xff] }
 0x576   : > { %7550 = vmatpush1.bf16.msra.mxu1 %v11365_v48  ;;  %v11422_v48 = vcombine.high %v3495_v54, %v3499_v1  ;;  %v11421_v49 = vcombine.low %v3495_v54, %v3499_v1  ;;  %v11423_v27 = vcombine.low %v3496_v62, %v3500_v36  ;;  %v3532_v18 = vld [vmem:[%s17370_s6 + $0xb38] sm:$0xff] }
 0x577   : > { %7755 = vmatpush1.bf16.msra.mxu0 %v11367_v23  ;;  %7551 = vmatprep.subr.bf16.mxu1 %v11374_v20  ;;  %v11424_v23 = vcombine.high %v3496_v62, %v3500_v36  ;;  %v3503_v20 = vld [vmem:[%s17370_s6 + $0xa50] sm:$0xff]  ;;  %v3540_v0 = vld [vmem:[%s17370_s6 + $0xb78] sm:$0xff]  ;;  %v11455_v25 = vcombine.low %v3528_v12, %v3532_v18 }
 0x578   : > { %7756 = vmatprep.subr.bf16.mxu0 %v11376_v52  ;;  %v3507_v52 = vld [vmem:[%s17370_s6 + $0xa70] sm:$0xff]  ;;  %v3544_v54 = vld [vmem:[%s17370_s6 + $0xb98] sm:$0xff]  ;;  %v11463_v36 = vcombine.low %v3536_v21, %v3540_v0 }
 0x579   : > { %v11429_v8 = vcombine.low %v3503_v20, %v3507_v52  ;;  %v3548_v1 = vld [vmem:[%s17370_s6 + $0xbb8] sm:$0xff] }
 0x57a   : > { %7552 = vmatpush1.bf16.msra.mxu1 %v11373_v41  ;;  %v11430_v41 = vcombine.high %v3503_v20, %v3507_v52  ;;  %v3552_v20 = vld [vmem:[%s17370_s6 + $0xbd8] sm:$0xff] }
 0x57b   : > { %7757 = vmatpush1.bf16.msra.mxu0 %v11375_v55  ;;  %7553 = vmatprep.subr.bf16.mxu1 %v11382_v14  ;;  %v11432_v55 = vcombine.high %v3504_v56, %v3508_v29  ;;  %v3511_v14 = vld [vmem:[%s17370_s6 + $0xa90] sm:$0xff]  ;;  %v3556_v52 = vld [vmem:[%s17370_s6 + $0xbf8] sm:$0xff]  ;;  %v11471_v29 = vcombine.low %v3544_v54, %v3548_v1 }
 0x57c   : > { %7758 = vmatprep.subr.bf16.mxu0 %v11384_v33  ;;  %v3515_v33 = vld [vmem:[%s17370_s6 + $0xab0] sm:$0xff] }
 0x57d   : > { %v11437_v22 = vcombine.low %v3511_v14, %v3515_v33 }
 0x57e   : > { %7554 = vmatpush1.bf16.msra.mxu1 %v11381_v37  ;;  %v11438_v37 = vcombine.high %v3511_v14, %v3515_v33  ;;  %v3560_v14 = vld [vmem:[%s17370_s6 + $0xc18] sm:$0xff] }
 0x57f   : > { %7759 = vmatpush1.bf16.msra.mxu0 %v11383_v28  ;;  %7555 = vmatprep.subr.bf16.mxu1 %v11390_v2  ;;  %v11440_v28 = vcombine.high %v3512_v53, %v3516_v35  ;;  %v3519_v2 = vld [vmem:[%s17370_s6 + $0xad0] sm:$0xff]  ;;  %v3564_v33 = vld [vmem:[%s17370_s6 + $0xc38] sm:$0xff]  ;;  %v11479_v35 = vcombine.low %v3552_v20, %v3556_v52 }
 0x580   : > { %7760 = vmatprep.subr.bf16.mxu0 %v11392_v13  ;;  %v3523_v13 = vld [vmem:[%s17370_s6 + $0xaf0] sm:$0xff] }
 0x581   : > { %v11445_v40 = vcombine.low %v3519_v2, %v3523_v13 }
 0x582   : > { %7556 = vmatpush1.bf16.msra.mxu1 %v11389_v6  ;;  %v11446_v6 = vcombine.high %v3519_v2, %v3523_v13  ;;  %v3568_v13 = vld [vmem:[%s17370_s6 + $0xc58] sm:$0xff] }
 0x583   : > { %7761 = vmatpush1.bf16.msra.mxu0 %v11391_v44  ;;  %7557 = vmatprep.subr.bf16.mxu1 %v11398_v19  ;;  %v11448_v44 = vcombine.high %v3520_v9, %v3524_v34  ;;  %v3527_v19 = vld [vmem:[%s17370_s6 + $0xb10] sm:$0xff]  ;;  %v3572_v9 = vld [vmem:[%s17370_s6 + $0xc78] sm:$0xff]  ;;  %v11487_v34 = vcombine.low %v3560_v14, %v3564_v33 }
 0x584   : > { %7762 = vmatprep.subr.bf16.mxu0 %v11400_v16  ;;  %v3531_v16 = vld [vmem:[%s17370_s6 + $0xb30] sm:$0xff] }
 0x585   : > { %v11453_v42 = vcombine.low %v3527_v19, %v3531_v16 }
 0x586   : > { %7558 = vmatpush1.bf16.msra.mxu1 %v11397_v5  ;;  %v11454_v5 = vcombine.high %v3527_v19, %v3531_v16  ;;  %v3576_v19 = vld [vmem:[%s17370_s6 + $0xc98] sm:$0xff] }
 0x587   : > { %7763 = vmatpush1.bf16.msra.mxu0 %v11399_v47  ;;  %7559 = vmatprep.subr.bf16.mxu1 %v11406_v38  ;;  %v11456_v47 = vcombine.high %v3528_v12, %v3532_v18  ;;  %v3535_v38 = vld [vmem:[%s17370_s6 + $0xb50] sm:$0xff]  ;;  %v3580_v16 = vld [vmem:[%s17370_s6 + $0xcb8] sm:$0xff]  ;;  %v11495_v18 = vcombine.low %v3568_v13, %v3572_v9 }
 0x588   : > { %7764 = vmatprep.subr.bf16.mxu0 %v11408_v46  ;;  %v3539_v46 = vld [vmem:[%s17370_s6 + $0xb70] sm:$0xff] }
 0x589   : > { %v11461_v62 = vcombine.low %v3535_v38, %v3539_v46 }
 0x58a   : > { %7560 = vmatpush1.bf16.msra.mxu1 %v11405_v63  ;;  %v11462_v63 = vcombine.high %v3535_v38, %v3539_v46  ;;  %v3588_v38 = vld [vmem:[%s17370_s6 + $0xcf8] sm:$0xff]  ;;  %v11503_v46 = vcombine.low %v3576_v19, %v3580_v16 }
 0x58b   : > { %7765 = vmatpush1.bf16.msra.mxu0 %v11407_v7  ;;  %7561 = vmatprep.subr.bf16.mxu1 %v11414_v32  ;;  %v11464_v7 = vcombine.high %v3536_v21, %v3540_v0  ;;  %v3543_v32 = vld [vmem:[%s17370_s6 + $0xb90] sm:$0xff] }
 0x58c   : > { %7766 = vmatprep.subr.bf16.mxu0 %v11416_v51  ;;  %v3547_v51 = vld [vmem:[%s17370_s6 + $0xbb0] sm:$0xff] }
 0x58d   : > { %v11469_v56 = vcombine.low %v3543_v32, %v3547_v51 }
 0x58e   : > { %7562 = vmatpush1.bf16.msra.mxu1 %v11413_v10  ;;  %v11470_v10 = vcombine.high %v3543_v32, %v3547_v51 }
 0x58f   : > { %7767 = vmatpush1.bf16.msra.mxu0 %v11415_v39  ;;  %7563 = vmatprep.subr.bf16.mxu1 %v11422_v48  ;;  %v11472_v39 = vcombine.high %v3544_v54, %v3548_v1  ;;  %v3551_v48 = vld [vmem:[%s17370_s6 + $0xbd0] sm:$0xff] }
 0x590   : > { %7768 = vmatprep.subr.bf16.mxu0 %v11424_v23  ;;  %v3555_v23 = vld [vmem:[%s17370_s6 + $0xbf0] sm:$0xff] }
 0x591   : > { %v11477_v53 = vcombine.low %v3551_v48, %v3555_v23 }
 0x592   : > { %7564 = vmatpush1.bf16.msra.mxu1 %v11421_v49  ;;  %v11478_v49 = vcombine.high %v3551_v48, %v3555_v23 }
 0x593   : > { %7769 = vmatpush1.bf16.msra.mxu0 %v11423_v27  ;;  %7565 = vmatprep.subr.bf16.mxu1 %v11430_v41  ;;  %v11480_v27 = vcombine.high %v3552_v20, %v3556_v52  ;;  %v3559_v41 = vld [vmem:[%s17370_s6 + $0xc10] sm:$0xff] }
 0x594   : > { %7770 = vmatprep.subr.bf16.mxu0 %v11432_v55  ;;  %v3563_v55 = vld [vmem:[%s17370_s6 + $0xc30] sm:$0xff] }
 0x595   : > { %v11485_v2 = vcombine.low %v3559_v41, %v3563_v55 }
 0x596   : > { %7566 = vmatpush1.bf16.msra.mxu1 %v11429_v8  ;;  %v11486_v8 = vcombine.high %v3559_v41, %v3563_v55 }
 0x597   : > { %7771 = vmatpush1.bf16.msra.mxu0 %v11431_v30  ;;  %7567 = vmatprep.subr.bf16.mxu1 %v11438_v37  ;;  %v11488_v30 = vcombine.high %v3560_v14, %v3564_v33  ;;  %v3567_v37 = vld [vmem:[%s17370_s6 + $0xc50] sm:$0xff] }
 0x598   : > { %7772 = vmatprep.subr.bf16.mxu0 %v11440_v28  ;;  %v3571_v28 = vld [vmem:[%s17370_s6 + $0xc70] sm:$0xff] }
 0x599   : > { %v11493_v12 = vcombine.low %v3567_v37, %v3571_v28 }
 0x59a   : > { %7568 = vmatpush1.bf16.msra.mxu1 %v11437_v22  ;;  %v11494_v22 = vcombine.high %v3567_v37, %v3571_v28  ;;  %v3616_v28 = vld [vmem:[%s17370_s6 + $0xdd8] sm:$0xff] }
 0x59b   : > { %7773 = vmatpush1.bf16.msra.mxu0 %v11439_v4  ;;  %7569 = vmatprep.subr.bf16.mxu1 %v11446_v6  ;;  %v3575_v4 = vld [vmem:[%s17370_s6 + $0xc90] sm:$0xff] }
 0x59c   : > { %7774 = vmatprep.subr.bf16.mxu0 %v11448_v44  ;;  %v3579_v6 = vld [vmem:[%s17370_s6 + $0xcb0] sm:$0xff]  ;;  %v11496_v44 = vcombine.high %v3568_v13, %v3572_v9 }
 0x59e   : > { %7570 = vmatpush1.bf16.msra.mxu1 %v11445_v40  ;;  %v11502_v40 = vcombine.high %v3575_v4, %v3579_v6 }
 0x59f   : > { %7775 = vmatpush1.bf16.msra.mxu0 %v11447_v26  ;;  %7571 = vmatprep.subr.bf16.mxu1 %v11454_v5  ;;  %v11504_v26 = vcombine.high %v3576_v19, %v3580_v16  ;;  %v3583_v5 = vld [vmem:[%s17370_s6 + $0xcd0] sm:$0xff] }
 0x5a0   : > { %7776 = vmatprep.subr.bf16.mxu0 %v11456_v47  ;;  %v3587_v47 = vld [vmem:[%s17370_s6 + $0xcf0] sm:$0xff] }
 0x5a1   : > { %v11510_v21 = vcombine.high %v3583_v5, %v3587_v47  ;;  %v11509_v32 = vcombine.low %v3583_v5, %v3587_v47 }
 0x5a2   : > { %7572 = vmatpush1.bf16.msra.mxu1 %v11453_v42  ;;  %v3591_v42 = vld [vmem:[%s17370_s6 + $0xd10] sm:$0xff] }
 0x5a3   : > { %7777 = vmatpush1.bf16.msra.mxu0 %v11455_v25  ;;  %7573 = vmatprep.subr.bf16.mxu1 %v11462_v63  ;;  %v3595_v25 = vld [vmem:[%s17370_s6 + $0xd30] sm:$0xff]  ;;  %v3592_v63 = vld [vmem:[%s17370_s6 + $0xd18] sm:$0xff] }
 0x5a4   : > { %7778 = vmatprep.subr.bf16.mxu0 %v11464_v7  ;;  %v3596_v7 = vld [vmem:[%s17370_s6 + $0xd38] sm:$0xff]  ;;  %v11518_v54 = vcombine.high %v3591_v42, %v3595_v25  ;;  %v11517_v48 = vcombine.low %v3591_v42, %v3595_v25 }
 0x5a5   : > { %v11520_v1 = vcombine.high %v3592_v63, %v3596_v7  ;;  %v11519_v23 = vcombine.low %v3592_v63, %v3596_v7 }
 0x5a6   : > { %7574 = vmatpush1.bf16.msra.mxu1 %v11461_v62  ;;  %v3599_v62 = vld [vmem:[%s17370_s6 + $0xd50] sm:$0xff] }
 0x5a7   : > { %7779 = vmatpush1.bf16.msra.mxu0 %v11463_v36  ;;  %7575 = vmatprep.subr.bf16.mxu1 %v11470_v10  ;;  %v3603_v36 = vld [vmem:[%s17370_s6 + $0xd70] sm:$0xff]  ;;  %v3600_v10 = vld [vmem:[%s17370_s6 + $0xd58] sm:$0xff] }
 0x5a8   : > { %7780 = vmatprep.subr.bf16.mxu0 %v11472_v39  ;;  %v3604_v39 = vld [vmem:[%s17370_s6 + $0xd78] sm:$0xff]  ;;  %v11526_v20 = vcombine.high %v3599_v62, %v3603_v36  ;;  %v11525_v41 = vcombine.low %v3599_v62, %v3603_v36 }
 0x5a9   : > { %v11528_v52 = vcombine.high %v3600_v10, %v3604_v39  ;;  %v11527_v55 = vcombine.low %v3600_v10, %v3604_v39 }
 0x5aa   : > { %7576 = vmatpush1.bf16.msra.mxu1 %v11469_v56  ;;  %v3607_v56 = vld [vmem:[%s17370_s6 + $0xd90] sm:$0xff] }
 0x5ab   : > { %7781 = vmatpush1.bf16.msra.mxu0 %v11471_v29  ;;  %7577 = vmatprep.subr.bf16.mxu1 %v11478_v49  ;;  %v3611_v29 = vld [vmem:[%s17370_s6 + $0xdb0] sm:$0xff]  ;;  %v3608_v49 = vld [vmem:[%s17370_s6 + $0xd98] sm:$0xff] }
 0x5ac   : > { %7782 = vmatprep.subr.bf16.mxu0 %v11480_v27  ;;  %v3612_v27 = vld [vmem:[%s17370_s6 + $0xdb8] sm:$0xff]  ;;  %v11534_v14 = vcombine.high %v3607_v56, %v3611_v29 }
 0x5ae   : > { %7578 = vmatpush1.bf16.msra.mxu1 %v11477_v53  ;;  %v11536_v53 = vcombine.high %v3608_v49, %v3612_v27 }
 0x5af   : > { %7783 = vmatpush1.bf16.msra.mxu0 %v11479_v35  ;;  %7588 = vmatprep.subr.bf16.mxu1 %v11486_v8  ;;  %v3615_v35 = vld [vmem:[%s17370_s6 + $0xdd0] sm:$0xff] }
 0x5b0   : > { %7793 = vmatprep.subr.bf16.mxu0 %v11488_v30  ;;  %v3619_v8 = vld [vmem:[%s17370_s6 + $0xdf0] sm:$0xff] }
 0x5b1   : > { %7580 = vmatmul.mubr.bf16.vlgmr.msra.gmra.mrb[24].mxu1 %v15492_v11  ;;  %v11541_v5 = vcombine.low %v3615_v35, %v3619_v8 }
 0x5b2   : > { %7785 = vmatmul.mubr.bf16.vlgmr.msra.gmra.mrb[76].mxu0 %v15492_v11  ;;  %7589 = vmatpush1.bf16.msra.mxu1 %v11485_v2  ;;  %v3584_v11 = vld [vmem:[%s17370_s6 + $0xcd8] sm:$0xff] }
 0x5b3   : > { %7620 = vmatprep.mubr.bf16.mxu1 %v15500_v60  ;;  %7794 = vmatpush1.bf16.msra.mxu0 %v11487_v34  ;;  %v11512_v0 = vcombine.high %v3584_v11, %v3588_v38  ;;  %v11511_v51 = vcombine.low %v3584_v11, %v3588_v38  ;;  %v3620_v2 = vld [vmem:[%s17370_s6 + $0xdf8] sm:$0xff]  ;;  %v11533_v34 = vcombine.low %v3607_v56, %v3611_v29 }
 0x5b4   : > { %7825 = vmatprep.mubr.bf16.mxu0 %v15500_v60  ;;  %7590 = vmatprep.subr.bf16.mxu1 %v11494_v22  ;;  %v11501_v60 = vcombine.low %v3575_v4, %v3579_v6  ;;  %v11535_v6 = vcombine.low %v3608_v49, %v3612_v27  ;;  %v11544_v16 = vcombine.high %v3616_v28, %v3620_v2 }
 0x5b5   : > { %7795 = vmatprep.subr.bf16.mxu0 %v11496_v44  ;;  %v11542_v44 = vcombine.high %v3615_v35, %v3619_v8  ;;  %v11543_v47 = vcombine.low %v3616_v28, %v3620_v2 }
 0x5b6   : > { %7591 = vmatpush1.bf16.msra.mxu1 %v11493_v12  ;;  %v3623_v12 = vld [vmem:[%s17370_s6 + $0xe10] sm:$0xff] }
 0x5b7   : > { %7796 = vmatpush1.bf16.msra.mxu0 %v11495_v18  ;;  %7592 = vmatprep.subr.bf16.mxu1 %v11502_v40  ;;  %v3627_v18 = vld [vmem:[%s17370_s6 + $0xe30] sm:$0xff]  ;;  %v3624_v40 = vld [vmem:[%s17370_s6 + $0xe18] sm:$0xff] }
 0x5b8   : > { %7797 = vmatprep.subr.bf16.mxu0 %v11504_v26  ;;  %v3628_v26 = vld [vmem:[%s17370_s6 + $0xe38] sm:$0xff]  ;;  %v11550_v11 = vcombine.high %v3623_v12, %v3627_v18  ;;  %v11549_v42 = vcombine.low %v3623_v12, %v3627_v18  ;;  %v3671_v12 = vld [vmem:[%s17370_s6 + $0xf90] sm:$0xff] }
 0x5b9   : > { %v11552_v38 = vcombine.high %v3624_v40, %v3628_v26  ;;  %v11551_v25 = vcombine.low %v3624_v40, %v3628_v26  ;;  %v3675_v18 = vld [vmem:[%s17370_s6 + $0xfb0] sm:$0xff]  ;;  %v3672_v40 = vld [vmem:[%s17370_s6 + $0xf98] sm:$0xff] }
 0x5ba   : > { %7593 = vmatpush1.bf16.msra.mxu1 %v11501_v60  ;;  %v3631_v60 = vld [vmem:[%s17370_s6 + $0xe50] sm:$0xff]  ;;  %v3676_v26 = vld [vmem:[%s17370_s6 + $0xfb8] sm:$0xff] }
 0x5bb   : > { %7798 = vmatpush1.bf16.msra.mxu0 %v11503_v46  ;;  %7594 = vmatprep.subr.bf16.mxu1 %v11510_v21  ;;  %v3635_v46 = vld [vmem:[%s17370_s6 + $0xe70] sm:$0xff]  ;;  %v3632_v21 = vld [vmem:[%s17370_s6 + $0xe58] sm:$0xff] }
 0x5bc   : > { %7799 = vmatprep.subr.bf16.mxu0 %v11512_v0  ;;  %v3636_v0 = vld [vmem:[%s17370_s6 + $0xe78] sm:$0xff]  ;;  %v11558_v63 = vcombine.high %v3631_v60, %v3635_v46  ;;  %v11557_v62 = vcombine.low %v3631_v60, %v3635_v46  ;;  %v3679_v60 = vld [vmem:[%s17370_s6 + $0xfd0] sm:$0xff] }
 0x5bd   : > { %v11560_v7 = vcombine.high %v3632_v21, %v3636_v0  ;;  %v11559_v36 = vcombine.low %v3632_v21, %v3636_v0  ;;  %v3683_v46 = vld [vmem:[%s17370_s6 + $0xff0] sm:$0xff]  ;;  %v3680_v21 = vld [vmem:[%s17370_s6 + $0xfd8] sm:$0xff] }
 0x5be   : > { %7595 = vmatpush1.bf16.msra.mxu1 %v11509_v32  ;;  %v3639_v32 = vld [vmem:[%s17370_s6 + $0xe90] sm:$0xff]  ;;  %v3684_v0 = vld [vmem:[%s17370_s6 + $0xff8] sm:$0xff] }
 0x5bf   : > { %7800 = vmatpush1.bf16.msra.mxu0 %v11511_v51  ;;  %7596 = vmatprep.subr.bf16.mxu1 %v11518_v54  ;;  %v3643_v51 = vld [vmem:[%s17370_s6 + $0xeb0] sm:$0xff]  ;;  %v3640_v54 = vld [vmem:[%s17370_s6 + $0xe98] sm:$0xff] }
 0x5c0   : > { %7801 = vmatprep.subr.bf16.mxu0 %v11520_v1  ;;  %v3644_v1 = vld [vmem:[%s17370_s6 + $0xeb8] sm:$0xff]  ;;  %v11566_v10 = vcombine.high %v3639_v32, %v3643_v51  ;;  %v11565_v56 = vcombine.low %v3639_v32, %v3643_v51  ;;  %v3687_v32 = vld [vmem:[%s17370_s6 + $0x1010] sm:$0xff] }
 0x5c1   : > { %v11568_v39 = vcombine.high %v3640_v54, %v3644_v1  ;;  %v11567_v29 = vcombine.low %v3640_v54, %v3644_v1  ;;  %v3691_v51 = vld [vmem:[%s17370_s6 + $0x1030] sm:$0xff]  ;;  %v3688_v54 = vld [vmem:[%s17370_s6 + $0x1018] sm:$0xff] }
 0x5c2   : > { %7597 = vmatpush1.bf16.msra.mxu1 %v11517_v48  ;;  %v3647_v48 = vld [vmem:[%s17370_s6 + $0xed0] sm:$0xff]  ;;  %v3692_v1 = vld [vmem:[%s17370_s6 + $0x1038] sm:$0xff] }
 0x5c3   : > { %7802 = vmatpush1.bf16.msra.mxu0 %v11519_v23  ;;  %7598 = vmatprep.subr.bf16.mxu1 %v11526_v20  ;;  %v3651_v23 = vld [vmem:[%s17370_s6 + $0xef0] sm:$0xff]  ;;  %v3648_v20 = vld [vmem:[%s17370_s6 + $0xed8] sm:$0xff] }
 0x5c4   : > { %v16576_v33 = vpop.f32.mrb[20].mxu1  ;;  %7803 = vmatprep.subr.bf16.mxu0 %v11528_v52  ;;  %v3652_v52 = vld [vmem:[%s17370_s6 + $0xef8] sm:$0xff]  ;;  %v11574_v49 = vcombine.high %v3647_v48, %v3651_v23  ;;  %v11573_v35 = vcombine.low %v3647_v48, %v3651_v23  ;;  %v3695_v48 = vld [vmem:[%s17370_s6 + $0x1050] sm:$0xff] }
 0x5c5   : > { %v16584_v30 = vpop.f32.mrb[72].mxu0  ;;  %v16586_v37 = vpop.f32.mrb[21].mxu1  ;;  %v11576_v27 = vcombine.high %v3648_v20, %v3652_v52  ;;  %v11575_v8 = vcombine.low %v3648_v20, %v3652_v52  ;;  %v3699_v23 = vld [vmem:[%s17370_s6 + $0x1070] sm:$0xff]  ;;  %v11613_v20 = vcombine.low %v3687_v32, %v3691_v51  ;;  %v3696_v52 = vld [vmem:[%s17370_s6 + $0x1058] sm:$0xff] }
 0x5c6   : > { %v16594_v13 = vpop.f32.mrb[73].mxu0  ;;  %v7257_v9 = vpop.f32.mrb[22].mxu1  ;;  %7599 = vmatpush1.bf16.msra.mxu1 %v11525_v41  ;;  %v3655_v41 = vld [vmem:[%s17370_s6 + $0xf10] sm:$0xff] }
 0x5c7   : > { %v7462_v22 = vpop.f32.mrb[74].mxu0  ;;  %7804 = vmatpush1.bf16.msra.mxu0 %v11527_v55  ;;  %v7258_v4 = vpop.f32.mrb[23].mxu1  ;;  %7600 = vmatprep.subr.bf16.mxu1 %v11534_v14  ;;  %v3659_v55 = vld [vmem:[%s17370_s6 + $0xf30] sm:$0xff]  ;;  %v3656_v14 = vld [vmem:[%s17370_s6 + $0xf18] sm:$0xff] }
 0x5c8   : > { %v7463_v19 = vpop.f32.mrb[75].mxu0  ;;  %7805 = vmatprep.subr.bf16.mxu0 %v11536_v53  ;;  %v3660_v53 = vld [vmem:[%s17370_s6 + $0xf38] sm:$0xff]  ;;  %v11582_v28 = vcombine.high %v3655_v41, %v3659_v55  ;;  %v3663_v9 = vld [vmem:[%s17370_s6 + $0xf50] sm:$0xff] }
 0x5c9   : > { %v11584_v2 = vcombine.high %v3656_v14, %v3660_v53  ;;  %v3664_v22 = vld [vmem:[%s17370_s6 + $0xf58] sm:$0xff] }
 0x5ca   : > { %7601 = vmatpush1.bf16.msra.mxu1 %v11533_v34  ;;  %v3667_v34 = vld [vmem:[%s17370_s6 + $0xf70] sm:$0xff]  ;;  %v3668_v4 = vld [vmem:[%s17370_s6 + $0xf78] sm:$0xff] }
 0x5cb   : > { %7806 = vmatpush1.bf16.msra.mxu0 %v11535_v6  ;;  %7602 = vmatprep.subr.bf16.mxu1 %v11542_v44  ;;  %v11581_v6 = vcombine.low %v3655_v41, %v3659_v55  ;;  %v11583_v44 = vcombine.low %v3656_v14, %v3660_v53  ;;  %v11590_v19 = vcombine.high %v3663_v9, %v3667_v34  ;;  %v3707_v41 = vld [vmem:[%s17370_s6 + $0x10b0] sm:$0xff]  ;;  %v3704_v14 = vld [vmem:[%s17370_s6 + $0x1098] sm:$0xff] }
 0x5cc   : > { %7807 = vmatprep.subr.bf16.mxu0 %v11544_v16  ;;  %v11592_v16 = vcombine.high %v3664_v22, %v3668_v4  ;;  %v3708_v53 = vld [vmem:[%s17370_s6 + $0x10b8] sm:$0xff] }
 0x5ce   : > { %7603 = vmatpush1.bf16.msra.mxu1 %v11541_v5  ;;  %v11589_v5 = vcombine.low %v3663_v9, %v3667_v34  ;;  %v3711_v9 = vld [vmem:[%s17370_s6 + $0x10d0] sm:$0xff] }
 0x5cf   : > { %7808 = vmatpush1.bf16.msra.mxu0 %v11543_v47  ;;  %7604 = vmatprep.subr.bf16.mxu1 %v11550_v11  ;;  %v11591_v47 = vcombine.low %v3664_v22, %v3668_v4  ;;  %v11598_v11 = vcombine.high %v3671_v12, %v3675_v18  ;;  %v3715_v34 = vld [vmem:[%s17370_s6 + $0x10f0] sm:$0xff]  ;;  %v3716_v22 = vld [vmem:[%s17370_s6 + $0x10f8] sm:$0xff]  ;;  %v11631_v4 = vcombine.low %v3704_v14, %v3708_v53 }
 0x5d0   : > { %7809 = vmatprep.subr.bf16.mxu0 %v11552_v38  ;;  %v11600_v38 = vcombine.high %v3672_v40, %v3676_v26 }
 0x5d2   : > { %7605 = vmatpush1.bf16.msra.mxu1 %v11549_v42  ;;  %v11597_v42 = vcombine.low %v3671_v12, %v3675_v18  ;;  %v3720_v12 = vld [vmem:[%s17370_s6 + $0x1118] sm:$0xff] }
 0x5d3   : > { %7810 = vmatpush1.bf16.msra.mxu0 %v11551_v25  ;;  %7606 = vmatprep.subr.bf16.mxu1 %v11558_v63  ;;  %v11599_v25 = vcombine.low %v3672_v40, %v3676_v26  ;;  %v11606_v63 = vcombine.high %v3679_v60, %v3683_v46  ;;  %v3724_v18 = vld [vmem:[%s17370_s6 + $0x1138] sm:$0xff]  ;;  %v11637_v40 = vcombine.low %v3711_v9, %v3715_v34 }
 0x5d4   : > { %7811 = vmatprep.subr.bf16.mxu0 %v11560_v7  ;;  %v11608_v7 = vcombine.high %v3680_v21, %v3684_v0 }
 0x5d6   : > { %7607 = vmatpush1.bf16.msra.mxu1 %v11557_v62  ;;  %v11605_v62 = vcombine.low %v3679_v60, %v3683_v46  ;;  %v3728_v60 = vld [vmem:[%s17370_s6 + $0x1158] sm:$0xff] }
 0x5d7   : > { %7812 = vmatpush1.bf16.msra.mxu0 %v11559_v36  ;;  %7608 = vmatprep.subr.bf16.mxu1 %v11566_v10  ;;  %v11607_v36 = vcombine.low %v3680_v21, %v3684_v0  ;;  %v11614_v10 = vcombine.high %v3687_v32, %v3691_v51  ;;  %v3732_v46 = vld [vmem:[%s17370_s6 + $0x1178] sm:$0xff]  ;;  %v11647_v0 = vcombine.low %v3720_v12, %v3724_v18 }
 0x5d8   : > { %7813 = vmatprep.subr.bf16.mxu0 %v11568_v39  ;;  %v11616_v39 = vcombine.high %v3688_v54, %v3692_v1  ;;  %v3736_v32 = vld [vmem:[%s17370_s6 + $0x1198] sm:$0xff] }
 0x5d9   : > { %v3740_v51 = vld [vmem:[%s17370_s6 + $0x11b8] sm:$0xff] }
 0x5da   : > { %7609 = vmatpush1.bf16.msra.mxu1 %v11565_v56  ;;  %v3700_v56 = vld [vmem:[%s17370_s6 + $0x1078] sm:$0xff] }
 0x5db   : > { %7814 = vmatpush1.bf16.msra.mxu0 %v11567_v29  ;;  %7610 = vmatprep.subr.bf16.mxu1 %v11574_v49  ;;  %v11615_v29 = vcombine.low %v3688_v54, %v3692_v1  ;;  %v11622_v49 = vcombine.high %v3695_v48, %v3699_v23  ;;  %v11624_v55 = vcombine.high %v3696_v52, %v3700_v56 }
 0x5dc   : > { %7815 = vmatprep.subr.bf16.mxu0 %v11576_v27  ;;  %v3703_v27 = vld [vmem:[%s17370_s6 + $0x1090] sm:$0xff]  ;;  %v11655_v1 = vcombine.low %v3728_v60, %v3732_v46 }
 0x5de   : > { %7611 = vmatpush1.bf16.msra.mxu1 %v11573_v35  ;;  %v11621_v35 = vcombine.low %v3695_v48, %v3699_v23  ;;  %v3744_v48 = vld [vmem:[%s17370_s6 + $0x11d8] sm:$0xff] }
 0x5df   : > { %7816 = vmatpush1.bf16.msra.mxu0 %v11575_v8  ;;  %7612 = vmatprep.subr.bf16.mxu1 %v11582_v28  ;;  %v11623_v8 = vcombine.low %v3696_v52, %v3700_v56  ;;  %v11630_v28 = vcombine.high %v3703_v27, %v3707_v41  ;;  %v3748_v23 = vld [vmem:[%s17370_s6 + $0x11f8] sm:$0xff]  ;;  %v11663_v52 = vcombine.low %v3736_v32, %v3740_v51 }
 0x5e0   : > { %7817 = vmatprep.subr.bf16.mxu0 %v11584_v2  ;;  %v11632_v2 = vcombine.high %v3704_v14, %v3708_v53  ;;  %v11671_v53 = vcombine.low %v3744_v48, %v3748_v23 }
 0x5e2   : > { %7613 = vmatpush1.bf16.msra.mxu1 %v11581_v6  ;;  %v11638_v6 = vcombine.high %v3711_v9, %v3715_v34  ;;  %v3760_v9 = vld [vmem:[%s17370_s6 + $0x1258] sm:$0xff] }
 0x5e3   : > { %7818 = vmatpush1.bf16.msra.mxu0 %v11583_v44  ;;  %7614 = vmatprep.subr.bf16.mxu1 %v11590_v19  ;;  %v3719_v19 = vld [vmem:[%s17370_s6 + $0x1110] sm:$0xff]  ;;  %v3764_v34 = vld [vmem:[%s17370_s6 + $0x1278] sm:$0xff] }
 0x5e4   : > { %7819 = vmatprep.subr.bf16.mxu0 %v11592_v16  ;;  %v3723_v16 = vld [vmem:[%s17370_s6 + $0x1130] sm:$0xff] }
 0x5e5   : > { %v11645_v21 = vcombine.low %v3719_v19, %v3723_v16 }
 0x5e6   : > { %7615 = vmatpush1.bf16.msra.mxu1 %v11589_v5  ;;  %v11646_v5 = vcombine.high %v3719_v19, %v3723_v16  ;;  %v3768_v19 = vld [vmem:[%s17370_s6 + $0x1298] sm:$0xff] }
 0x5e7   : > { %7820 = vmatpush1.bf16.msra.mxu0 %v11591_v47  ;;  %7616 = vmatprep.subr.bf16.mxu1 %v11598_v11  ;;  %v11648_v47 = vcombine.high %v3720_v12, %v3724_v18  ;;  %v3727_v11 = vld [vmem:[%s17370_s6 + $0x1150] sm:$0xff]  ;;  %v3772_v16 = vld [vmem:[%s17370_s6 + $0x12b8] sm:$0xff]  ;;  %v11687_v18 = vcombine.low %v3760_v9, %v3764_v34 }
 0x5e8   : > { %7821 = vmatprep.subr.bf16.mxu0 %v11600_v38  ;;  %v3731_v38 = vld [vmem:[%s17370_s6 + $0x1170] sm:$0xff] }
 0x5e9   : > { %v11653_v54 = vcombine.low %v3727_v11, %v3731_v38 }
 0x5ea   : > { %7617 = vmatpush1.bf16.msra.mxu1 %v11597_v42  ;;  %v11654_v42 = vcombine.high %v3727_v11, %v3731_v38  ;;  %v3776_v11 = vld [vmem:[%s17370_s6 + $0x12d8] sm:$0xff] }
 0x5eb   : > { %7822 = vmatpush1.bf16.msra.mxu0 %v11599_v25  ;;  %7618 = vmatprep.subr.bf16.mxu1 %v11606_v63  ;;  %v11656_v25 = vcombine.high %v3728_v60, %v3732_v46  ;;  %v3735_v63 = vld [vmem:[%s17370_s6 + $0x1190] sm:$0xff]  ;;  %v3780_v38 = vld [vmem:[%s17370_s6 + $0x12f8] sm:$0xff]  ;;  %v11695_v46 = vcombine.low %v3768_v19, %v3772_v16 }
 0x5ec   : > { %7823 = vmatprep.subr.bf16.mxu0 %v11608_v7  ;;  %v3739_v7 = vld [vmem:[%s17370_s6 + $0x11b0] sm:$0xff] }
 0x5ee   : > { %7619 = vmatpush1.bf16.msra.mxu1 %v11605_v62  ;;  %v11662_v62 = vcombine.high %v3735_v63, %v3739_v7 }
 0x5ef   : > { %7824 = vmatpush1.bf16.msra.mxu0 %v11607_v36  ;;  %7629 = vmatprep.subr.bf16.mxu1 %v11614_v10  ;;  %v11664_v36 = vcombine.high %v3736_v32, %v3740_v51  ;;  %v3743_v10 = vld [vmem:[%s17370_s6 + $0x11d0] sm:$0xff]  ;;  %v11703_v51 = vcombine.low %v3776_v11, %v3780_v38 }
 0x5f0   : > { %7834 = vmatprep.subr.bf16.mxu0 %v11616_v39  ;;  %v3747_v39 = vld [vmem:[%s17370_s6 + $0x11f0] sm:$0xff] }
 0x5f1   : > { %7621 = vmatmul.mubr.bf16.vlgmr.msra.gmra.mrb[24].mxu1 %v15715_v58  ;;  %v11670_v56 = vcombine.high %v3743_v10, %v3747_v39  ;;  %v11669_v14 = vcombine.low %v3743_v10, %v3747_v39  ;;  %v3792_v10 = vld [vmem:[%s17370_s6 + $0x1358] sm:$0xff] }
 0x5f2   : > { %7826 = vmatmul.mubr.bf16.vlgmr.msra.gmra.mrb[76].mxu0 %v15715_v58  ;;  %7630 = vmatpush1.bf16.msra.mxu1 %v11613_v20  ;;  %v3712_v58 = vld [vmem:[%s17370_s6 + $0x10d8] sm:$0xff]  ;;  %v11661_v20 = vcombine.low %v3735_v63, %v3739_v7 }
 0x5f3   : > { %7661 = vmatprep.mubr.bf16.mxu1 %v15723_v61  ;;  %7835 = vmatpush1.bf16.msra.mxu0 %v11615_v29  ;;  %v11640_v44 = vcombine.high %v3712_v58, %v3716_v22  ;;  %v11639_v26 = vcombine.low %v3712_v58, %v3716_v22  ;;  %v11672_v29 = vcombine.high %v3744_v48, %v3748_v23  ;;  %v3784_v63 = vld [vmem:[%s17370_s6 + $0x1318] sm:$0xff] }
 0x5f4   : > { %7866 = vmatprep.mubr.bf16.mxu0 %v15723_v61  ;;  %7631 = vmatprep.subr.bf16.mxu1 %v11622_v49  ;;  %v11629_v61 = vcombine.low %v3703_v27, %v3707_v41  ;;  %v3751_v49 = vld [vmem:[%s17370_s6 + $0x1210] sm:$0xff]  ;;  %v3752_v41 = vld [vmem:[%s17370_s6 + $0x1218] sm:$0xff] }
 0x5f5   : > { %7836 = vmatprep.subr.bf16.mxu0 %v11624_v55  ;;  %v3755_v27 = vld [vmem:[%s17370_s6 + $0x1230] sm:$0xff]  ;;  %v3756_v55 = vld [vmem:[%s17370_s6 + $0x1238] sm:$0xff] }
 0x5f6   : > { %7632 = vmatpush1.bf16.msra.mxu1 %v11621_v35  ;;  %v11678_v35 = vcombine.high %v3751_v49, %v3755_v27  ;;  %v11677_v58 = vcombine.low %v3751_v49, %v3755_v27  ;;  %v11679_v22 = vcombine.low %v3752_v41, %v3756_v55  ;;  %v3788_v7 = vld [vmem:[%s17370_s6 + $0x1338] sm:$0xff] }
 0x5f7   : > { %7837 = vmatpush1.bf16.msra.mxu0 %v11623_v8  ;;  %7633 = vmatprep.subr.bf16.mxu1 %v11630_v28  ;;  %v11680_v8 = vcombine.high %v3752_v41, %v3756_v55  ;;  %v3759_v28 = vld [vmem:[%s17370_s6 + $0x1250] sm:$0xff]  ;;  %v3796_v39 = vld [vmem:[%s17370_s6 + $0x1378] sm:$0xff]  ;;  %v11711_v23 = vcombine.low %v3784_v63, %v3788_v7 }
 0x5f8   : > { %7838 = vmatprep.subr.bf16.mxu0 %v11632_v2  ;;  %v3763_v2 = vld [vmem:[%s17370_s6 + $0x1270] sm:$0xff]  ;;  %v3800_v49 = vld [vmem:[%s17370_s6 + $0x1398] sm:$0xff]  ;;  %v11719_v55 = vcombine.low %v3792_v10, %v3796_v39 }
 0x5f9   : > { %v11685_v12 = vcombine.low %v3759_v28, %v3763_v2  ;;  %v3804_v27 = vld [vmem:[%s17370_s6 + $0x13b8] sm:$0xff] }
 0x5fa   : > { %7634 = vmatpush1.bf16.msra.mxu1 %v11629_v61  ;;  %v11686_v61 = vcombine.high %v3759_v28, %v3763_v2  ;;  %v3808_v28 = vld [vmem:[%s17370_s6 + $0x13d8] sm:$0xff] }
 0x5fb   : > { %7839 = vmatpush1.bf16.msra.mxu0 %v11631_v4  ;;  %7635 = vmatprep.subr.bf16.mxu1 %v11638_v6  ;;  %v11688_v4 = vcombine.high %v3760_v9, %v3764_v34  ;;  %v3767_v6 = vld [vmem:[%s17370_s6 + $0x1290] sm:$0xff]  ;;  %v3812_v2 = vld [vmem:[%s17370_s6 + $0x13f8] sm:$0xff]  ;;  %v16891_v9 = vld [vmem:[%s17371_s7] sm:$0xff] }
 0x5fc   : > { %7840 = vmatprep.subr.bf16.mxu0 %v11640_v44  ;;  %v3771_v44 = vld [vmem:[%s17370_s6 + $0x12b0] sm:$0xff] }
 0x5fd   : > { %v11693_v60 = vcombine.low %v3767_v6, %v3771_v44 }
 0x5fe   : > { %7636 = vmatpush1.bf16.msra.mxu1 %v11637_v40  ;;  %v11694_v40 = vcombine.high %v3767_v6, %v3771_v44  ;;  %v11735_v44 = vcombine.low %v3808_v28, %v3812_v2 }
 0x5ff   : > { %7841 = vmatpush1.bf16.msra.mxu0 %v11639_v26  ;;  %7637 = vmatprep.subr.bf16.mxu1 %v11646_v5  ;;  %v11696_v26 = vcombine.high %v3768_v19, %v3772_v16  ;;  %v3775_v5 = vld [vmem:[%s17370_s6 + $0x12d0] sm:$0xff]  ;;  %v12636_v16 = vld [vmem:[%s13889_s26 + $0xc] ss:$16 sps:$4 sm:$0xff]  }
 0x600   : > { %7842 = vmatprep.subr.bf16.mxu0 %v11648_v47  ;;  %v3779_v47 = vld [vmem:[%s17370_s6 + $0x12f0] sm:$0xff] }
 0x601   : > { %v11701_v32 = vcombine.low %v3775_v5, %v3779_v47  ;;  %v12633_v19 = vld [vmem:[%s13889_s26 + $0x4] ss:$16 sps:$4 sm:$0xff]  }
 0x602   : > { %7638 = vmatpush1.bf16.msra.mxu1 %v11645_v21  ;;  %v11702_v21 = vcombine.high %v3775_v5, %v3779_v47  ;;  %v12642_v47 = vld [vmem:[%s13889_s26 + $0x2c] ss:$16 sps:$4 sm:$0xff]  }
 0x603   : > { %7843 = vmatpush1.bf16.msra.mxu0 %v11647_v0  ;;  %7639 = vmatprep.subr.bf16.mxu1 %v11654_v42  ;;  %v11704_v0 = vcombine.high %v3776_v11, %v3780_v38  ;;  %v3783_v42 = vld [vmem:[%s17370_s6 + $0x1310] sm:$0xff]  ;;  %v12640_v11 = vld [vmem:[%s13889_s26 + $0x28] ss:$16 sps:$4 sm:$0xff]  }
 0x604   : > { %7844 = vmatprep.subr.bf16.mxu0 %v11656_v25  ;;  %v3787_v25 = vld [vmem:[%s17370_s6 + $0x1330] sm:$0xff] }
 0x605   : > { %v11709_v48 = vcombine.low %v3783_v42, %v3787_v25  ;;  %v12645_v38 = vld [vmem:[%s13889_s26 + $0x44] ss:$16 sps:$4 sm:$0xff]  }
 0x606   : > { %7640 = vmatpush1.bf16.msra.mxu1 %v11653_v54  ;;  %v11710_v54 = vcombine.high %v3783_v42, %v3787_v25  ;;  %v12649_v42 = vld [vmem:[%s13889_s26 + $0x60] ss:$16 sps:$4 sm:$0xff]   ;;  %v12652_v25 = vld [vmem:[%s13889_s26 + $0x68] ss:$16 sps:$4 sm:$0xff]  }
 0x607   : > { %7845 = vmatpush1.bf16.msra.mxu0 %v11655_v1  ;;  %7641 = vmatprep.subr.bf16.mxu1 %v11662_v62  ;;  %v11712_v1 = vcombine.high %v3784_v63, %v3788_v7  ;;  %v3791_v62 = vld [vmem:[%s17370_s6 + $0x1350] sm:$0xff]  ;;  %v12660_v7 = vld [vmem:[%s13889_s26 + $0x8c] ss:$16 sps:$4 sm:$0xff]  }
 0x608   : > { %7846 = vmatprep.subr.bf16.mxu0 %v11664_v36  ;;  %v3795_v36 = vld [vmem:[%s17370_s6 + $0x1370] sm:$0xff] }
 0x609   : > { %v11717_v41 = vcombine.low %v3791_v62, %v3795_v36  ;;  %v12657_v63 = vld [vmem:[%s13889_s26 + $0x84] ss:$16 sps:$4 sm:$0xff]  }
 0x60a   : > { %7642 = vmatpush1.bf16.msra.mxu1 %v11661_v20  ;;  %v11718_v20 = vcombine.high %v3791_v62, %v3795_v36  ;;  %v12661_v62 = vld [vmem:[%s13889_s26 + $0xa0] ss:$16 sps:$4 sm:$0xff]   ;;  %v12664_v36 = vld [vmem:[%s13889_s26 + $0xa8] ss:$16 sps:$4 sm:$0xff]  }
 0x60b   : > { %7847 = vmatpush1.bf16.msra.mxu0 %v11663_v52  ;;  %7643 = vmatprep.subr.bf16.mxu1 %v11670_v56  ;;  %v11720_v52 = vcombine.high %v3792_v10, %v3796_v39  ;;  %v3799_v56 = vld [vmem:[%s17370_s6 + $0x1390] sm:$0xff]  ;;  %v12672_v39 = vld [vmem:[%s13889_s26 + $0xcc] ss:$16 sps:$4 sm:$0xff]  }
 0x60c   : > { %7848 = vmatprep.subr.bf16.mxu0 %v11672_v29  ;;  %v3803_v29 = vld [vmem:[%s17370_s6 + $0x13b0] sm:$0xff] }
 0x60d   : > { %v11725_v34 = vcombine.low %v3799_v56, %v3803_v29  ;;  %v12669_v10 = vld [vmem:[%s13889_s26 + $0xc4] ss:$16 sps:$4 sm:$0xff]  }
 0x60e   : > { %7644 = vmatpush1.bf16.msra.mxu1 %v11669_v14  ;;  %v11726_v14 = vcombine.high %v3799_v56, %v3803_v29  ;;  %v12673_v56 = vld [vmem:[%s13889_s26 + $0xe0] ss:$16 sps:$4 sm:$0xff]   ;;  %v12676_v29 = vld [vmem:[%s13889_s26 + $0xe8] ss:$16 sps:$4 sm:$0xff]  }
 0x60f   : > { %7849 = vmatpush1.bf16.msra.mxu0 %v11671_v53  ;;  %7645 = vmatprep.subr.bf16.mxu1 %v11678_v35  ;;  %v11728_v53 = vcombine.high %v3800_v49, %v3804_v27  ;;  %v3807_v35 = vld [vmem:[%s17370_s6 + $0x13d0] sm:$0xff] }
 0x610   : > { %7850 = vmatprep.subr.bf16.mxu0 %v11680_v8  ;;  %v3811_v8 = vld [vmem:[%s17370_s6 + $0x13f0] sm:$0xff] }
 0x611   : > { %v11733_v6 = vcombine.low %v3807_v35, %v3811_v8 }
 0x612   : > { %7646 = vmatpush1.bf16.msra.mxu1 %v11677_v58  ;;  %v11727_v58 = vcombine.low %v3800_v49, %v3804_v27  ;;  %v12681_v49 = vld [vmem:[%s13889_s26 + $0x104] ss:$16 sps:$4 sm:$0xff]   ;;  %v12684_v27 = vld [vmem:[%s13889_s26 + $0x10c] ss:$16 sps:$4 sm:$0xff]  }
 0x613   : > { %7851 = vmatpush1.bf16.msra.mxu0 %v11679_v22  ;;  %7647 = vmatprep.subr.bf16.mxu1 %v11686_v61  ;;  %v11734_v22 = vcombine.high %v3807_v35, %v3811_v8  ;;  %v11736_v61 = vcombine.high %v3808_v28, %v3812_v2  ;;  %v12685_v35 = vld [vmem:[%s13889_s26 + $0x120] ss:$16 sps:$4 sm:$0xff]   ;;  %v12688_v8 = vld [vmem:[%s13889_s26 + $0x128] ss:$16 sps:$4 sm:$0xff]   ;;  %v12693_v28 = vld [vmem:[%s13889_s26 + $0x144] ss:$16 sps:$4 sm:$0xff]  }
 0x614   : > { %7852 = vmatprep.subr.bf16.mxu0 %v11688_v4  ;;  %v3822_v4 = vrot.slane %v16891_v9, %v15004_v15  ;;  %v12696_v2 = vld [vmem:[%s13889_s26 + $0x14c] ss:$16 sps:$4 sm:$0xff]  }
 0x616   : > { %7648 = vmatpush1.bf16.msra.mxu1 %v11685_v12  ;;  %v12323_v12 = vadd.f32 %v16586_v37, %v3822_v4  ;;  %v12637_v37 = vld [vmem:[%s13889_s26 + $0x20] ss:$16 sps:$4 sm:$0xff]  }
 0x617   : > { %7853 = vmatpush1.bf16.msra.mxu0 %v11687_v18  ;;  %7649 = vmatprep.subr.bf16.mxu1 %v11694_v40  ;;  %v12631_v18 = vld [vmem:[%s13889_s26] ss:$16 sps:$4 sm:$0xff]   ;;  %v12634_v40 = vld [vmem:[%s13889_s26 + $0x8] ss:$16 sps:$4 sm:$0xff]  }
 0x618   : > { %7854 = vmatprep.subr.bf16.mxu0 %v11696_v26  ;;  %v12639_v26 = vld [vmem:[%s13889_s26 + $0x24] ss:$16 sps:$4 sm:$0xff]   ;;  %v7876_v5 = vpack.c.bf16 %v12323_v12, %v12323_v12  ;;  %v12697_v4 = vld [vmem:[%s13889_s26 + $0x160] ss:$16 sps:$4 sm:$0xff]   ;;  %v12706_v12 = vld [vmem:[%s13889_s26 + $0x188] ss:$16 sps:$4 sm:$0xff]  }
 0x61a   : > { %7650 = vmatpush1.bf16.msra.mxu1 %v11693_v60  ;;  %v12648_v60 = vld [vmem:[%s13889_s26 + $0x4c] ss:$16 sps:$4 sm:$0xff]  }
 0x61b   : > { %7855 = vmatpush1.bf16.msra.mxu0 %v11695_v46  ;;  %7651 = vmatprep.subr.bf16.mxu1 %v11702_v21  ;;  %v12643_v46 = vld [vmem:[%s13889_s26 + $0x40] ss:$16 sps:$4 sm:$0xff]   ;;  %v12651_v21 = vld [vmem:[%s13889_s26 + $0x64] ss:$16 sps:$4 sm:$0xff]  }
 0x61c   : > { %7856 = vmatprep.subr.bf16.mxu0 %v11704_v0  ;;  %v12654_v0 = vld [vmem:[%s13889_s26 + $0x6c] ss:$16 sps:$4 sm:$0xff]  }
 0x61e   : > { %7652 = vmatpush1.bf16.msra.mxu1 %v11701_v32  ;;  %v12655_v32 = vld [vmem:[%s13889_s26 + $0x80] ss:$16 sps:$4 sm:$0xff]  }
 0x61f   : > { %7857 = vmatpush1.bf16.msra.mxu0 %v11703_v51  ;;  %7653 = vmatprep.subr.bf16.mxu1 %v11710_v54  ;;  %v12658_v51 = vld [vmem:[%s13889_s26 + $0x88] ss:$16 sps:$4 sm:$0xff]   ;;  %v12663_v54 = vld [vmem:[%s13889_s26 + $0xa4] ss:$16 sps:$4 sm:$0xff]  }
 0x620   : > { %7858 = vmatprep.subr.bf16.mxu0 %v11712_v1  ;;  %v12666_v1 = vld [vmem:[%s13889_s26 + $0xac] ss:$16 sps:$4 sm:$0xff]  }
 0x622   : > { %7654 = vmatpush1.bf16.msra.mxu1 %v11709_v48  ;;  %v12667_v48 = vld [vmem:[%s13889_s26 + $0xc0] ss:$16 sps:$4 sm:$0xff]  }
 0x623   : > { %7859 = vmatpush1.bf16.msra.mxu0 %v11711_v23  ;;  %7655 = vmatprep.subr.bf16.mxu1 %v11718_v20  ;;  %v12670_v23 = vld [vmem:[%s13889_s26 + $0xc8] ss:$16 sps:$4 sm:$0xff]   ;;  %v12675_v20 = vld [vmem:[%s13889_s26 + $0xe4] ss:$16 sps:$4 sm:$0xff]  }
 0x624   : > { %7860 = vmatprep.subr.bf16.mxu0 %v11720_v52  ;;  %v12678_v52 = vld [vmem:[%s13889_s26 + $0xec] ss:$16 sps:$4 sm:$0xff]  }
 0x626   : > { %7656 = vmatpush1.bf16.msra.mxu1 %v11717_v41  ;;  %v12679_v41 = vld [vmem:[%s13889_s26 + $0x100] ss:$16 sps:$4 sm:$0xff]  }
 0x627   : > { %7861 = vmatpush1.bf16.msra.mxu0 %v11719_v55  ;;  %7657 = vmatprep.subr.bf16.mxu1 %v11726_v14  ;;  %v12682_v55 = vld [vmem:[%s13889_s26 + $0x108] ss:$16 sps:$4 sm:$0xff]   ;;  %v12687_v14 = vld [vmem:[%s13889_s26 + $0x124] ss:$16 sps:$4 sm:$0xff]  }
 0x628   : > { %7862 = vmatprep.subr.bf16.mxu0 %v11728_v53  ;;  %v12690_v53 = vld [vmem:[%s13889_s26 + $0x12c] ss:$16 sps:$4 sm:$0xff]  }
 0x62a   : > { %7658 = vmatpush1.bf16.msra.mxu1 %v11725_v34  ;;  %v12691_v34 = vld [vmem:[%s13889_s26 + $0x140] ss:$16 sps:$4 sm:$0xff]  }
 0x62b   : > { %7863 = vmatpush1.bf16.msra.mxu0 %v11727_v58  ;;  %7659 = vmatprep.subr.bf16.mxu1 %v11734_v22  ;;  %v12694_v58 = vld [vmem:[%s13889_s26 + $0x148] ss:$16 sps:$4 sm:$0xff]   ;;  %v12699_v22 = vld [vmem:[%s13889_s26 + $0x164] ss:$16 sps:$4 sm:$0xff]  }
 0x62c   : > { %7864 = vmatprep.subr.bf16.mxu0 %v11736_v61  ;;  %v12702_v61 = vld [vmem:[%s13889_s26 + $0x16c] ss:$16 sps:$4 sm:$0xff]  }
 0x62e   : > { %7660 = vmatpush1.bf16.msra.mxu1 %v11733_v6  ;;  %v12700_v6 = vld [vmem:[%s13889_s26 + $0x168] ss:$16 sps:$4 sm:$0xff]  }
 0x62f   : > { %7865 = vmatpush1.bf16.msra.mxu0 %v11735_v44  ;;  %9441 = vmatprep.subr.bf16.mxu1 %v12633_v19  ;;  %v12705_v44 = vld [vmem:[%s13889_s26 + $0x184] ss:$16 sps:$4 sm:$0xff]   ;;  %v12708_v19 = vld [vmem:[%s13889_s26 + $0x18c] ss:$16 sps:$4 sm:$0xff]  }
 0x630   : > { %9605 = vmatprep.subr.bf16.mxu0 %v12636_v16  ;;  %v12703_v16 = vld [vmem:[%s13889_s26 + $0x180] ss:$16 sps:$4 sm:$0xff]  }
 0x631   : > { %7662 = vmatmul.mubr.bf16.vlgmr.msra.gmra.mrb[24].mxu1 %v15922_v59 }
 0x632   : > { %7867 = vmatmul.mubr.bf16.vlgmr.msra.gmra.mrb[76].mxu0 %v15922_v59  ;;  %9442 = vmatpush1.bf16.msra.mxu1 %v12631_v18  ;;  %v12646_v59 = vld [vmem:[%s13889_s26 + $0x48] ss:$16 sps:$4 sm:$0xff]   ;;  %v12711_v18 = vld [vmem:[%s13889_s26 + $0x1a4] ss:$16 sps:$4 sm:$0xff]  }
 0x633   : > { %9473 = vmatprep.mubr.bf16.mxu1 %v7876_v5  ;;  %9606 = vmatpush1.bf16.msra.mxu0 %v12634_v40  ;;  %v12714_v40 = vld [vmem:[%s13889_s26 + $0x1ac] ss:$16 sps:$4 sm:$0xff]  }
 0x634   : > { %9637 = vmatprep.mubr.bf16.mxu0 %v7876_v5  ;;  %9443 = vmatprep.subr.bf16.mxu1 %v12639_v26  ;;  %v12709_v26 = vld [vmem:[%s13889_s26 + $0x1a0] ss:$16 sps:$4 sm:$0xff]   ;;  %v12712_v5 = vld [vmem:[%s13889_s26 + $0x1a8] ss:$16 sps:$4 sm:$0xff]  }
 0x635   : > { %9607 = vmatprep.subr.bf16.mxu0 %v12642_v47  ;;  %v12717_v47 = vld [vmem:[%s13889_s26 + $0x1c4] ss:$16 sps:$4 sm:$0xff]  }
 0x636   : > { %9444 = vmatpush1.bf16.msra.mxu1 %v12637_v37  ;;  %v12720_v37 = vld [vmem:[%s13889_s26 + $0x1cc] ss:$16 sps:$4 sm:$0xff]  }
 0x637   : > { %9608 = vmatpush1.bf16.msra.mxu0 %v12640_v11  ;;  %9445 = vmatprep.subr.bf16.mxu1 %v12645_v38  ;;  %v12715_v11 = vld [vmem:[%s13889_s26 + $0x1c0] ss:$16 sps:$4 sm:$0xff]   ;;  %v3818_v38 = vrot.slane %v16891_v9, %v14996_v24 }
 0x638   : > { %9609 = vmatprep.subr.bf16.mxu0 %v12648_v60  ;;  %v12718_v60 = vld [vmem:[%s13889_s26 + $0x1c8] ss:$16 sps:$4 sm:$0xff]  }
 0x63a   : > { %9446 = vmatpush1.bf16.msra.mxu1 %v12643_v46  ;;  %v12723_v46 = vld [vmem:[%s13889_s26 + $0x1e4] ss:$16 sps:$4 sm:$0xff]  }
 0x63b   : > { %9610 = vmatpush1.bf16.msra.mxu0 %v12646_v59  ;;  %9447 = vmatprep.subr.bf16.mxu1 %v12651_v21  ;;  %v12726_v59 = vld [vmem:[%s13889_s26 + $0x1ec] ss:$16 sps:$4 sm:$0xff]   ;;  %v3830_v21 = vrot.slane %v16891_v9, %v15015_v57 }
 0x63c   : > { %9611 = vmatprep.subr.bf16.mxu0 %v12654_v0  ;;  %v12721_v0 = vld [vmem:[%s13889_s26 + $0x1e0] ss:$16 sps:$4 sm:$0xff]  }
 0x63e   : > { %9448 = vmatpush1.bf16.msra.mxu1 %v12649_v42  ;;  %v12322_v42 = vadd.f32 %v16576_v33, %v3818_v38  ;;  %v12735_v33 = vld [vmem:[%s13889_s26 + $0x224] ss:$16 sps:$4 sm:$0xff]   ;;  %v12787_v38 = vld [vmem:[%s13889_s26 + $0x340] ss:$16 sps:$4 sm:$0xff]  }
 0x63f   : > { %9612 = vmatpush1.bf16.msra.mxu0 %v12652_v25  ;;  %9449 = vmatprep.subr.bf16.mxu1 %v12657_v63  ;;  %v12724_v25 = vld [vmem:[%s13889_s26 + $0x1e8] ss:$16 sps:$4 sm:$0xff]   ;;  %v12729_v63 = vld [vmem:[%s13889_s26 + $0x204] ss:$16 sps:$4 sm:$0xff]  }
 0x640   : > { %9613 = vmatprep.subr.bf16.mxu0 %v12660_v7  ;;  %v12732_v7 = vld [vmem:[%s13889_s26 + $0x20c] ss:$16 sps:$4 sm:$0xff]  }
 0x642   : > { %9450 = vmatpush1.bf16.msra.mxu1 %v12655_v32  ;;  %v12325_v32 = vadd.f32 %v16594_v13, %v3830_v21  ;;  %v12733_v13 = vld [vmem:[%s13889_s26 + $0x220] ss:$16 sps:$4 sm:$0xff]  }
 0x643   : > { %9614 = vmatpush1.bf16.msra.mxu0 %v12658_v51  ;;  %9451 = vmatprep.subr.bf16.mxu1 %v12663_v54  ;;  %v12727_v51 = vld [vmem:[%s13889_s26 + $0x200] ss:$16 sps:$4 sm:$0xff]   ;;  %v7875_v54 = vpack.c.bf16 %v12322_v42, %v12322_v42  ;;  %v12801_v42 = vld [vmem:[%s13889_s26 + $0x384] ss:$16 sps:$4 sm:$0xff]  }
 0x644   : > { %9615 = vmatprep.subr.bf16.mxu0 %v12666_v1  ;;  %v12730_v1 = vld [vmem:[%s13889_s26 + $0x208] ss:$16 sps:$4 sm:$0xff]   ;;  %v12793_v21 = vld [vmem:[%s13889_s26 + $0x360] ss:$16 sps:$4 sm:$0xff]  }
 0x646   : > { %9452 = vmatpush1.bf16.msra.mxu1 %v12661_v62  ;;  %v7878_v62 = vpack.c.bf16 %v12325_v32, %v12325_v32  ;;  %v12807_v32 = vld [vmem:[%s13889_s26 + $0x3a4] ss:$16 sps:$4 sm:$0xff]  }
 0x647   : > { %9616 = vmatpush1.bf16.msra.mxu0 %v12664_v36  ;;  %9453 = vmatprep.subr.bf16.mxu1 %v12669_v10  ;;  %v12738_v36 = vld [vmem:[%s13889_s26 + $0x22c] ss:$16 sps:$4 sm:$0xff]   ;;  %v12736_v10 = vld [vmem:[%s13889_s26 + $0x228] ss:$16 sps:$4 sm:$0xff]  }
 0x648   : > { %9617 = vmatprep.subr.bf16.mxu0 %v12672_v39  ;;  %v12741_v39 = vld [vmem:[%s13889_s26 + $0x244] ss:$16 sps:$4 sm:$0xff]  }
 0x64a   : > { %9454 = vmatpush1.bf16.msra.mxu1 %v12667_v48  ;;  %v12744_v48 = vld [vmem:[%s13889_s26 + $0x24c] ss:$16 sps:$4 sm:$0xff]  }
 0x64b   : > { %9618 = vmatpush1.bf16.msra.mxu0 %v12670_v23  ;;  %9455 = vmatprep.subr.bf16.mxu1 %v12675_v20  ;;  %v12739_v23 = vld [vmem:[%s13889_s26 + $0x240] ss:$16 sps:$4 sm:$0xff]   ;;  %v12742_v20 = vld [vmem:[%s13889_s26 + $0x248] ss:$16 sps:$4 sm:$0xff]  }
 0x64c   : > { %9619 = vmatprep.subr.bf16.mxu0 %v12678_v52  ;;  %v12747_v52 = vld [vmem:[%s13889_s26 + $0x264] ss:$16 sps:$4 sm:$0xff]  }
 0x64e   : > { %9456 = vmatpush1.bf16.msra.mxu1 %v12673_v56  ;;  %v12750_v56 = vld [vmem:[%s13889_s26 + $0x26c] ss:$16 sps:$4 sm:$0xff]  }
 0x64f   : > { %9620 = vmatpush1.bf16.msra.mxu0 %v12676_v29  ;;  %9457 = vmatprep.subr.bf16.mxu1 %v12681_v49  ;;  %v12745_v29 = vld [vmem:[%s13889_s26 + $0x260] ss:$16 sps:$4 sm:$0xff]   ;;  %v12748_v49 = vld [vmem:[%s13889_s26 + $0x268] ss:$16 sps:$4 sm:$0xff]  }
 0x650   : > { %9621 = vmatprep.subr.bf16.mxu0 %v12684_v27  ;;  %v12753_v27 = vld [vmem:[%s13889_s26 + $0x284] ss:$16 sps:$4 sm:$0xff]  }
 0x652   : > { %9458 = vmatpush1.bf16.msra.mxu1 %v12679_v41  ;;  %v12756_v41 = vld [vmem:[%s13889_s26 + $0x28c] ss:$16 sps:$4 sm:$0xff]  }
 0x653   : > { %9622 = vmatpush1.bf16.msra.mxu0 %v12682_v55  ;;  %9459 = vmatprep.subr.bf16.mxu1 %v12687_v14  ;;  %v12751_v55 = vld [vmem:[%s13889_s26 + $0x280] ss:$16 sps:$4 sm:$0xff]   ;;  %v12754_v14 = vld [vmem:[%s13889_s26 + $0x288] ss:$16 sps:$4 sm:$0xff]  }
 0x654   : > { %9623 = vmatprep.subr.bf16.mxu0 %v12690_v53  ;;  %v12759_v53 = vld [vmem:[%s13889_s26 + $0x2a4] ss:$16 sps:$4 sm:$0xff]  }
 0x656   : > { %9460 = vmatpush1.bf16.msra.mxu1 %v12685_v35  ;;  %v12762_v35 = vld [vmem:[%s13889_s26 + $0x2ac] ss:$16 sps:$4 sm:$0xff]  }
 0x657   : > { %9624 = vmatpush1.bf16.msra.mxu0 %v12688_v8  ;;  %9461 = vmatprep.subr.bf16.mxu1 %v12693_v28  ;;  %v12757_v8 = vld [vmem:[%s13889_s26 + $0x2a0] ss:$16 sps:$4 sm:$0xff]   ;;  %v12760_v28 = vld [vmem:[%s13889_s26 + $0x2a8] ss:$16 sps:$4 sm:$0xff]  }
 0x658   : > { %9625 = vmatprep.subr.bf16.mxu0 %v12696_v2  ;;  %v12765_v2 = vld [vmem:[%s13889_s26 + $0x2c4] ss:$16 sps:$4 sm:$0xff]  }
 0x65a   : > { %9462 = vmatpush1.bf16.msra.mxu1 %v12691_v34  ;;  %v12768_v34 = vld [vmem:[%s13889_s26 + $0x2cc] ss:$16 sps:$4 sm:$0xff]  }
 0x65b   : > { %9626 = vmatpush1.bf16.msra.mxu0 %v12694_v58  ;;  %9463 = vmatprep.subr.bf16.mxu1 %v12699_v22  ;;  %v12763_v58 = vld [vmem:[%s13889_s26 + $0x2c0] ss:$16 sps:$4 sm:$0xff]   ;;  %v12766_v22 = vld [vmem:[%s13889_s26 + $0x2c8] ss:$16 sps:$4 sm:$0xff]  }
 0x65c   : > { %9627 = vmatprep.subr.bf16.mxu0 %v12702_v61  ;;  %v12771_v61 = vld [vmem:[%s13889_s26 + $0x2e4] ss:$16 sps:$4 sm:$0xff]  }
 0x65e   : > { %9464 = vmatpush1.bf16.msra.mxu1 %v12697_v4  ;;  %v12774_v4 = vld [vmem:[%s13889_s26 + $0x2ec] ss:$16 sps:$4 sm:$0xff]  }
 0x65f   : > { %9628 = vmatpush1.bf16.msra.mxu0 %v12700_v6  ;;  %9465 = vmatprep.subr.bf16.mxu1 %v12705_v44  ;;  %v12769_v6 = vld [vmem:[%s13889_s26 + $0x2e0] ss:$16 sps:$4 sm:$0xff]   ;;  %v12772_v44 = vld [vmem:[%s13889_s26 + $0x2e8] ss:$16 sps:$4 sm:$0xff]  }
 0x660   : > { %9629 = vmatprep.subr.bf16.mxu0 %v12708_v19  ;;  %v12777_v19 = vld [vmem:[%s13889_s26 + $0x304] ss:$16 sps:$4 sm:$0xff]  }
 0x662   : > { %9466 = vmatpush1.bf16.msra.mxu1 %v12703_v16  ;;  %v12780_v16 = vld [vmem:[%s13889_s26 + $0x30c] ss:$16 sps:$4 sm:$0xff]  }
 0x663   : > { %9630 = vmatpush1.bf16.msra.mxu0 %v12706_v12  ;;  %9467 = vmatprep.subr.bf16.mxu1 %v12711_v18  ;;  %v12775_v12 = vld [vmem:[%s13889_s26 + $0x300] ss:$16 sps:$4 sm:$0xff]   ;;  %v12778_v18 = vld [vmem:[%s13889_s26 + $0x308] ss:$16 sps:$4 sm:$0xff]  }
 0x664   : > { %9631 = vmatprep.subr.bf16.mxu0 %v12714_v40  ;;  %v12783_v40 = vld [vmem:[%s13889_s26 + $0x324] ss:$16 sps:$4 sm:$0xff]  }
 0x666   : > { %9468 = vmatpush1.bf16.msra.mxu1 %v12709_v26  ;;  %v12786_v26 = vld [vmem:[%s13889_s26 + $0x32c] ss:$16 sps:$4 sm:$0xff]  }
 0x667   : > { %9632 = vmatpush1.bf16.msra.mxu0 %v12712_v5  ;;  %9469 = vmatprep.subr.bf16.mxu1 %v12717_v47  ;;  %v12781_v5 = vld [vmem:[%s13889_s26 + $0x320] ss:$16 sps:$4 sm:$0xff]   ;;  %v12784_v47 = vld [vmem:[%s13889_s26 + $0x328] ss:$16 sps:$4 sm:$0xff]  }
 0x668   : > { %9633 = vmatprep.subr.bf16.mxu0 %v12720_v37  ;;  %v12789_v37 = vld [vmem:[%s13889_s26 + $0x344] ss:$16 sps:$4 sm:$0xff]  }
 0x66a   : > { %9470 = vmatpush1.bf16.msra.mxu1 %v12715_v11  ;;  %v12792_v11 = vld [vmem:[%s13889_s26 + $0x34c] ss:$16 sps:$4 sm:$0xff]  }
 0x66b   : > { %9634 = vmatpush1.bf16.msra.mxu0 %v12718_v60  ;;  %9471 = vmatprep.subr.bf16.mxu1 %v12723_v46  ;;  %v12790_v60 = vld [vmem:[%s13889_s26 + $0x348] ss:$16 sps:$4 sm:$0xff]   ;;  %v12795_v46 = vld [vmem:[%s13889_s26 + $0x364] ss:$16 sps:$4 sm:$0xff]  }
 0x66c   : > { %9635 = vmatprep.subr.bf16.mxu0 %v12726_v59  ;;  %v12798_v59 = vld [vmem:[%s13889_s26 + $0x36c] ss:$16 sps:$4 sm:$0xff]  }
 0x66e   : > { %9472 = vmatpush1.bf16.msra.mxu1 %v12721_v0  ;;  %v12796_v0 = vld [vmem:[%s13889_s26 + $0x368] ss:$16 sps:$4 sm:$0xff]  }
 0x66f   : > { %9636 = vmatpush1.bf16.msra.mxu0 %v12724_v25  ;;  %9482 = vmatprep.subr.bf16.mxu1 %v12729_v63  ;;  %v12804_v25 = vld [vmem:[%s13889_s26 + $0x38c] ss:$16 sps:$4 sm:$0xff]   ;;  %v12799_v63 = vld [vmem:[%s13889_s26 + $0x380] ss:$16 sps:$4 sm:$0xff]  }
 0x670   : > { %9646 = vmatprep.subr.bf16.mxu0 %v12732_v7  ;;  %v12802_v7 = vld [vmem:[%s13889_s26 + $0x388] ss:$16 sps:$4 sm:$0xff]  }
 0x671   : > { %9474 = vmatmul.mubr.bf16.vlgmr.msra.gmra.mrb[28].mxu1 %v7875_v54 }
 0x672   : > { %9638 = vmatmul.mubr.bf16.vlgmr.msra.gmra.mrb[80].mxu0 %v7875_v54  ;;  %9483 = vmatpush1.bf16.msra.mxu1 %v12727_v51  ;;  %v12810_v51 = vld [vmem:[%s13889_s26 + $0x3ac] ss:$16 sps:$4 sm:$0xff]   ;;  %v12805_v54 = vld [vmem:[%s13889_s26 + $0x3a0] ss:$16 sps:$4 sm:$0xff]  }
 0x673   : > { %9514 = vmatprep.mubr.bf16.mxu1 %v7878_v62  ;;  %9647 = vmatpush1.bf16.msra.mxu0 %v12730_v1  ;;  %v12808_v1 = vld [vmem:[%s13889_s26 + $0x3a8] ss:$16 sps:$4 sm:$0xff]  }
 0x674   : > { %9678 = vmatprep.mubr.bf16.mxu0 %v7878_v62  ;;  %9484 = vmatprep.subr.bf16.mxu1 %v12735_v33  ;;  %v12813_v33 = vld [vmem:[%s13889_s26 + $0x3c4] ss:$16 sps:$4 sm:$0xff]   ;;  %v12816_v62 = vld [vmem:[%s13889_s26 + $0x3cc] ss:$16 sps:$4 sm:$0xff]  }
 0x675   : > { %9648 = vmatprep.subr.bf16.mxu0 %v12738_v36  ;;  %v12811_v36 = vld [vmem:[%s13889_s26 + $0x3c0] ss:$16 sps:$4 sm:$0xff]  }
 0x676   : > { %9485 = vmatpush1.bf16.msra.mxu1 %v12733_v13  ;;  %v3826_v13 = vrot.slane %v16891_v9, %v15103_v17 }
 0x677   : > { %9649 = vmatpush1.bf16.msra.mxu0 %v12736_v10  ;;  %9486 = vmatprep.subr.bf16.mxu1 %v12741_v39  ;;  %v12814_v10 = vld [vmem:[%s13889_s26 + $0x3c8] ss:$16 sps:$4 sm:$0xff]   ;;  %v12819_v39 = vld [vmem:[%s13889_s26 + $0x3e4] ss:$16 sps:$4 sm:$0xff]  }
 0x678   : > { %9650 = vmatprep.subr.bf16.mxu0 %v12744_v48  ;;  %v12822_v48 = vld [vmem:[%s13889_s26 + $0x3ec] ss:$16 sps:$4 sm:$0xff]  }
 0x67a   : > { %9487 = vmatpush1.bf16.msra.mxu1 %v12739_v23  ;;  %v12817_v23 = vld [vmem:[%s13889_s26 + $0x3e0] ss:$16 sps:$4 sm:$0xff]  }
 0x67b   : > { %9651 = vmatpush1.bf16.msra.mxu0 %v12742_v20  ;;  %9488 = vmatprep.subr.bf16.mxu1 %v12747_v52  ;;  %v12324_v20 = vadd.f32 %v16584_v30, %v3826_v13  ;;  %v12820_v52 = vld [vmem:[%s13889_s26 + $0x3e8] ss:$16 sps:$4 sm:$0xff]   ;;  %v12834_v30 = vld [vmem:[%s13889_s26 + $0x42c] ss:$16 sps:$4 sm:$0xff]   ;;  %v12889_v13 = vld [vmem:[%s13889_s26 + $0x560] ss:$16 sps:$4 sm:$0xff]  }
 0x67c   : > { %9652 = vmatprep.subr.bf16.mxu0 %v12750_v56  ;;  %v12825_v56 = vld [vmem:[%s13889_s26 + $0x404] ss:$16 sps:$4 sm:$0xff]  }
 0x67e   : > { %9489 = vmatpush1.bf16.msra.mxu1 %v12745_v29  ;;  %v12828_v29 = vld [vmem:[%s13889_s26 + $0x40c] ss:$16 sps:$4 sm:$0xff]  }
 0x67f   : > { %9653 = vmatpush1.bf16.msra.mxu0 %v12748_v49  ;;  %9490 = vmatprep.subr.bf16.mxu1 %v12753_v27  ;;  %v12823_v49 = vld [vmem:[%s13889_s26 + $0x400] ss:$16 sps:$4 sm:$0xff]   ;;  %v7877_v27 = vpack.c.bf16 %v12324_v20, %v12324_v20  ;;  %v12898_v20 = vld [vmem:[%s13889_s26 + $0x588] ss:$16 sps:$4 sm:$0xff]  }
 0x680   : > { %9654 = vmatprep.subr.bf16.mxu0 %v12756_v41  ;;  %v12826_v41 = vld [vmem:[%s13889_s26 + $0x408] ss:$16 sps:$4 sm:$0xff]  }
 0x682   : > { %9491 = vmatpush1.bf16.msra.mxu1 %v12751_v55  ;;  %v12831_v55 = vld [vmem:[%s13889_s26 + $0x424] ss:$16 sps:$4 sm:$0xff]  }
 0x683   : > { %9655 = vmatpush1.bf16.msra.mxu0 %v12754_v14  ;;  %9492 = vmatprep.subr.bf16.mxu1 %v12759_v53  ;;  %v12829_v14 = vld [vmem:[%s13889_s26 + $0x420] ss:$16 sps:$4 sm:$0xff]   ;;  %v12832_v53 = vld [vmem:[%s13889_s26 + $0x428] ss:$16 sps:$4 sm:$0xff]  }
 0x684   : > { %9656 = vmatprep.subr.bf16.mxu0 %v12762_v35  ;;  %v12837_v35 = vld [vmem:[%s13889_s26 + $0x444] ss:$16 sps:$4 sm:$0xff]  }
 0x686   : > { %9493 = vmatpush1.bf16.msra.mxu1 %v12757_v8  ;;  %v12840_v8 = vld [vmem:[%s13889_s26 + $0x44c] ss:$16 sps:$4 sm:$0xff]  }
 0x687   : > { %9657 = vmatpush1.bf16.msra.mxu0 %v12760_v28  ;;  %9494 = vmatprep.subr.bf16.mxu1 %v12765_v2  ;;  %v12835_v28 = vld [vmem:[%s13889_s26 + $0x440] ss:$16 sps:$4 sm:$0xff]   ;;  %v12838_v2 = vld [vmem:[%s13889_s26 + $0x448] ss:$16 sps:$4 sm:$0xff]  }
 0x688   : > { %9658 = vmatprep.subr.bf16.mxu0 %v12768_v34  ;;  %v12843_v34 = vld [vmem:[%s13889_s26 + $0x464] ss:$16 sps:$4 sm:$0xff]  }
 0x68a   : > { %9495 = vmatpush1.bf16.msra.mxu1 %v12763_v58  ;;  %v12846_v58 = vld [vmem:[%s13889_s26 + $0x46c] ss:$16 sps:$4 sm:$0xff]  }
 0x68b   : > { %9659 = vmatpush1.bf16.msra.mxu0 %v12766_v22  ;;  %9496 = vmatprep.subr.bf16.mxu1 %v12771_v61  ;;  %v12841_v22 = vld [vmem:[%s13889_s26 + $0x460] ss:$16 sps:$4 sm:$0xff]   ;;  %v12844_v61 = vld [vmem:[%s13889_s26 + $0x468] ss:$16 sps:$4 sm:$0xff]  }
 0x68c   : > { %9660 = vmatprep.subr.bf16.mxu0 %v12774_v4  ;;  %v12849_v4 = vld [vmem:[%s13889_s26 + $0x484] ss:$16 sps:$4 sm:$0xff]  }
 0x68e   : > { %9497 = vmatpush1.bf16.msra.mxu1 %v12769_v6  ;;  %v12852_v6 = vld [vmem:[%s13889_s26 + $0x48c] ss:$16 sps:$4 sm:$0xff]  }
 0x68f   : > { %9661 = vmatpush1.bf16.msra.mxu0 %v12772_v44  ;;  %9498 = vmatprep.subr.bf16.mxu1 %v12777_v19  ;;  %v12847_v44 = vld [vmem:[%s13889_s26 + $0x480] ss:$16 sps:$4 sm:$0xff]   ;;  %v12850_v19 = vld [vmem:[%s13889_s26 + $0x488] ss:$16 sps:$4 sm:$0xff]  }
 0x690   : > { %9662 = vmatprep.subr.bf16.mxu0 %v12780_v16  ;;  %v12855_v16 = vld [vmem:[%s13889_s26 + $0x4a4] ss:$16 sps:$4 sm:$0xff]  }
 0x692   : > { %9499 = vmatpush1.bf16.msra.mxu1 %v12775_v12  ;;  %v12858_v12 = vld [vmem:[%s13889_s26 + $0x4ac] ss:$16 sps:$4 sm:$0xff]  }
 0x693   : > { %9663 = vmatpush1.bf16.msra.mxu0 %v12778_v18  ;;  %9500 = vmatprep.subr.bf16.mxu1 %v12783_v40  ;;  %v12853_v18 = vld [vmem:[%s13889_s26 + $0x4a0] ss:$16 sps:$4 sm:$0xff]   ;;  %v12856_v40 = vld [vmem:[%s13889_s26 + $0x4a8] ss:$16 sps:$4 sm:$0xff]  }
 0x694   : > { %9664 = vmatprep.subr.bf16.mxu0 %v12786_v26  ;;  %v12861_v26 = vld [vmem:[%s13889_s26 + $0x4c4] ss:$16 sps:$4 sm:$0xff]  }
 0x696   : > { %9501 = vmatpush1.bf16.msra.mxu1 %v12781_v5  ;;  %v12864_v5 = vld [vmem:[%s13889_s26 + $0x4cc] ss:$16 sps:$4 sm:$0xff]  }
 0x697   : > { %9665 = vmatpush1.bf16.msra.mxu0 %v12784_v47  ;;  %9502 = vmatprep.subr.bf16.mxu1 %v12789_v37  ;;  %v12859_v47 = vld [vmem:[%s13889_s26 + $0x4c0] ss:$16 sps:$4 sm:$0xff]   ;;  %v12862_v37 = vld [vmem:[%s13889_s26 + $0x4c8] ss:$16 sps:$4 sm:$0xff]  }
 0x698   : > { %9666 = vmatprep.subr.bf16.mxu0 %v12792_v11  ;;  %v12867_v11 = vld [vmem:[%s13889_s26 + $0x4e4] ss:$16 sps:$4 sm:$0xff]  }
 0x69a   : > { %9503 = vmatpush1.bf16.msra.mxu1 %v12787_v38  ;;  %v12870_v38 = vld [vmem:[%s13889_s26 + $0x4ec] ss:$16 sps:$4 sm:$0xff]  }
 0x69b   : > { %9667 = vmatpush1.bf16.msra.mxu0 %v12790_v60  ;;  %9504 = vmatprep.subr.bf16.mxu1 %v12795_v46  ;;  %v12865_v60 = vld [vmem:[%s13889_s26 + $0x4e0] ss:$16 sps:$4 sm:$0xff]   ;;  %v12868_v46 = vld [vmem:[%s13889_s26 + $0x4e8] ss:$16 sps:$4 sm:$0xff]  }
 0x69c   : > { %9668 = vmatprep.subr.bf16.mxu0 %v12798_v59  ;;  %v12873_v59 = vld [vmem:[%s13889_s26 + $0x504] ss:$16 sps:$4 sm:$0xff]  }
 0x69e   : > { %9505 = vmatpush1.bf16.msra.mxu1 %v12793_v21  ;;  %v12876_v21 = vld [vmem:[%s13889_s26 + $0x50c] ss:$16 sps:$4 sm:$0xff]  }
 0x69f   : > { %9669 = vmatpush1.bf16.msra.mxu0 %v12796_v0  ;;  %9506 = vmatprep.subr.bf16.mxu1 %v12801_v42  ;;  %v12871_v0 = vld [vmem:[%s13889_s26 + $0x500] ss:$16 sps:$4 sm:$0xff]   ;;  %v12874_v42 = vld [vmem:[%s13889_s26 + $0x508] ss:$16 sps:$4 sm:$0xff]  }
 0x6a0   : > { %9670 = vmatprep.subr.bf16.mxu0 %v12804_v25  ;;  %v12879_v25 = vld [vmem:[%s13889_s26 + $0x524] ss:$16 sps:$4 sm:$0xff]  }
 0x6a2   : > { %9507 = vmatpush1.bf16.msra.mxu1 %v12799_v63  ;;  %v12882_v63 = vld [vmem:[%s13889_s26 + $0x52c] ss:$16 sps:$4 sm:$0xff]  }
 0x6a3   : > { %9671 = vmatpush1.bf16.msra.mxu0 %v12802_v7  ;;  %9508 = vmatprep.subr.bf16.mxu1 %v12807_v32  ;;  %v12877_v7 = vld [vmem:[%s13889_s26 + $0x520] ss:$16 sps:$4 sm:$0xff]   ;;  %v12880_v32 = vld [vmem:[%s13889_s26 + $0x528] ss:$16 sps:$4 sm:$0xff]  }
 0x6a4   : > { %9672 = vmatprep.subr.bf16.mxu0 %v12810_v51  ;;  %v12885_v51 = vld [vmem:[%s13889_s26 + $0x544] ss:$16 sps:$4 sm:$0xff]  }
 0x6a6   : > { %9509 = vmatpush1.bf16.msra.mxu1 %v12805_v54  ;;  %v12888_v54 = vld [vmem:[%s13889_s26 + $0x54c] ss:$16 sps:$4 sm:$0xff]  }
 0x6a7   : > { %9673 = vmatpush1.bf16.msra.mxu0 %v12808_v1  ;;  %9510 = vmatprep.subr.bf16.mxu1 %v12813_v33  ;;  %v12883_v1 = vld [vmem:[%s13889_s26 + $0x540] ss:$16 sps:$4 sm:$0xff]   ;;  %v12886_v33 = vld [vmem:[%s13889_s26 + $0x548] ss:$16 sps:$4 sm:$0xff]  }
 0x6a8   : > { %9674 = vmatprep.subr.bf16.mxu0 %v12816_v62  ;;  %v12891_v62 = vld [vmem:[%s13889_s26 + $0x564] ss:$16 sps:$4 sm:$0xff]  }
 0x6aa   : > { %9511 = vmatpush1.bf16.msra.mxu1 %v12811_v36  ;;  %v12894_v36 = vld [vmem:[%s13889_s26 + $0x56c] ss:$16 sps:$4 sm:$0xff]  }
 0x6ab   : > { %9675 = vmatpush1.bf16.msra.mxu0 %v12814_v10  ;;  %9512 = vmatprep.subr.bf16.mxu1 %v12819_v39  ;;  %v12892_v10 = vld [vmem:[%s13889_s26 + $0x568] ss:$16 sps:$4 sm:$0xff]   ;;  %v12897_v39 = vld [vmem:[%s13889_s26 + $0x584] ss:$16 sps:$4 sm:$0xff]  }
 0x6ac   : > { %9676 = vmatprep.subr.bf16.mxu0 %v12822_v48  ;;  %v12900_v48 = vld [vmem:[%s13889_s26 + $0x58c] ss:$16 sps:$4 sm:$0xff]  }
 0x6ae   : > { %9513 = vmatpush1.bf16.msra.mxu1 %v12817_v23  ;;  %v12895_v23 = vld [vmem:[%s13889_s26 + $0x580] ss:$16 sps:$4 sm:$0xff]  }
 0x6af   : > { %9677 = vmatpush1.bf16.msra.mxu0 %v12820_v52  ;;  %9523 = vmatprep.subr.bf16.mxu1 %v12825_v56  ;;  %v12903_v52 = vld [vmem:[%s13889_s26 + $0x5a4] ss:$16 sps:$4 sm:$0xff]   ;;  %v12906_v56 = vld [vmem:[%s13889_s26 + $0x5ac] ss:$16 sps:$4 sm:$0xff]  }
 0x6b0   : > { %9687 = vmatprep.subr.bf16.mxu0 %v12828_v29  ;;  %v12901_v29 = vld [vmem:[%s13889_s26 + $0x5a0] ss:$16 sps:$4 sm:$0xff]  }
 0x6b1   : > { %9515 = vmatmul.mubr.bf16.vlgmr.msra.gmra.mrb[28].mxu1 %v7877_v27 }
 0x6b2   : > { %9679 = vmatmul.mubr.bf16.vlgmr.msra.gmra.mrb[80].mxu0 %v7877_v27  ;;  %9524 = vmatpush1.bf16.msra.mxu1 %v12823_v49  ;;  %v12904_v49 = vld [vmem:[%s13889_s26 + $0x5a8] ss:$16 sps:$4 sm:$0xff]   ;;  %v12909_v27 = vld [vmem:[%s13889_s26 + $0x5c4] ss:$16 sps:$4 sm:$0xff]  }
 0x6b3   : > { %9688 = vmatpush1.bf16.msra.mxu0 %v12826_v41  ;;  %9525 = vmatprep.subr.bf16.mxu1 %v12831_v55  ;;  %v12912_v41 = vld [vmem:[%s13889_s26 + $0x5cc] ss:$16 sps:$4 sm:$0xff]   ;;  %v12907_v55 = vld [vmem:[%s13889_s26 + $0x5c0] ss:$16 sps:$4 sm:$0xff]  }
 0x6b4   : > { %9689 = vmatprep.subr.bf16.mxu0 %v12834_v30  ;;  %v12910_v30 = vld [vmem:[%s13889_s26 + $0x5c8] ss:$16 sps:$4 sm:$0xff]  }
 0x6b6   : > { %9526 = vmatpush1.bf16.msra.mxu1 %v12829_v14  ;;  %v12915_v14 = vld [vmem:[%s13889_s26 + $0x5e4] ss:$16 sps:$4 sm:$0xff]  }
 0x6b7   : > { %9690 = vmatpush1.bf16.msra.mxu0 %v12832_v53  ;;  %9527 = vmatprep.subr.bf16.mxu1 %v12837_v35  ;;  %v12918_v53 = vld [vmem:[%s13889_s26 + $0x5ec] ss:$16 sps:$4 sm:$0xff]   ;;  %v12913_v35 = vld [vmem:[%s13889_s26 + $0x5e0] ss:$16 sps:$4 sm:$0xff]  }
 0x6b8   : > { %9691 = vmatprep.subr.bf16.mxu0 %v12840_v8  ;;  %v12916_v8 = vld [vmem:[%s13889_s26 + $0x5e8] ss:$16 sps:$4 sm:$0xff]  }
 0x6ba   : > { %9528 = vmatpush1.bf16.msra.mxu1 %v12835_v28  ;;  %v12921_v28 = vld [vmem:[%s13889_s26 + $0x604] ss:$16 sps:$4 sm:$0xff]  }
 0x6bb   : > { %9692 = vmatpush1.bf16.msra.mxu0 %v12838_v2  ;;  %9529 = vmatprep.subr.bf16.mxu1 %v12843_v34  ;;  %v12924_v2 = vld [vmem:[%s13889_s26 + $0x60c] ss:$16 sps:$4 sm:$0xff]   ;;  %v3834_v34 = vrot.slane %v16891_v9, %v2456_v3 }
 0x6bc   : > { %9693 = vmatprep.subr.bf16.mxu0 %v12846_v58  ;;  %v3838_v58 = vrot.slane %v16891_v9, %v2460_v50 }
 0x6be   : > { %9530 = vmatpush1.bf16.msra.mxu1 %v12841_v22  ;;  %v3846_v22 = vrot.slane %v16891_v9, %v2468_v31  ;;  %v12922_v31 = vld [vmem:[%s13889_s26 + $0x608] ss:$16 sps:$4 sm:$0xff]  }
 0x6bf   : > { %9694 = vmatpush1.bf16.msra.mxu0 %v12844_v61  ;;  %9531 = vmatprep.subr.bf16.mxu1 %v12849_v4 }
 0x6c0   : > { %9695 = vmatprep.subr.bf16.mxu0 %v12852_v6 }
 0x6c2   : > { %9532 = vmatpush1.bf16.msra.mxu1 %v12847_v44 }
 0x6c3   : > { %9696 = vmatpush1.bf16.msra.mxu0 %v12850_v19  ;;  %9533 = vmatprep.subr.bf16.mxu1 %v12855_v16 }
 0x6c4   : > { %9697 = vmatprep.subr.bf16.mxu0 %v12858_v12 }
 0x6c6   : > { %9534 = vmatpush1.bf16.msra.mxu1 %v12853_v18 }
 0x6c7   : > { %9698 = vmatpush1.bf16.msra.mxu0 %v12856_v40  ;;  %9535 = vmatprep.subr.bf16.mxu1 %v12861_v26 }
 0x6c8   : > { %9699 = vmatprep.subr.bf16.mxu0 %v12864_v5  ;;  %v12919_v5 = vld [vmem:[%s13889_s26 + $0x600] ss:$16 sps:$4 sm:$0xff]  }
 0x6ca   : > { %9536 = vmatpush1.bf16.msra.mxu1 %v12859_v47  ;;  %v12927_v47 = vld [vmem:[%s13889_s26 + $0x624] ss:$16 sps:$4 sm:$0xff]  }
 0x6cb   : > { %9700 = vmatpush1.bf16.msra.mxu0 %v12862_v37  ;;  %9537 = vmatprep.subr.bf16.mxu1 %v12867_v11  ;;  %v12930_v37 = vld [vmem:[%s13889_s26 + $0x62c] ss:$16 sps:$4 sm:$0xff]  }
 0x6cc   : > { %9701 = vmatprep.subr.bf16.mxu0 %v12870_v38  ;;  %v12925_v38 = vld [vmem:[%s13889_s26 + $0x620] ss:$16 sps:$4 sm:$0xff]  }
 0x6ce   : > { %9538 = vmatpush1.bf16.msra.mxu1 %v12865_v60  ;;  %v12928_v60 = vld [vmem:[%s13889_s26 + $0x628] ss:$16 sps:$4 sm:$0xff]  }
 0x6cf   : > { %9702 = vmatpush1.bf16.msra.mxu0 %v12868_v46  ;;  %9539 = vmatprep.subr.bf16.mxu1 %v12873_v59  ;;  %v12933_v46 = vld [vmem:[%s13889_s26 + $0x644] ss:$16 sps:$4 sm:$0xff]   ;;  %v12936_v59 = vld [vmem:[%s13889_s26 + $0x64c] ss:$16 sps:$4 sm:$0xff]  }
 0x6d0   : > { %9703 = vmatprep.subr.bf16.mxu0 %v12876_v21  ;;  %v12931_v21 = vld [vmem:[%s13889_s26 + $0x640] ss:$16 sps:$4 sm:$0xff]  }
 0x6d2   : > { %9540 = vmatpush1.bf16.msra.mxu1 %v12871_v0  ;;  %v12934_v0 = vld [vmem:[%s13889_s26 + $0x648] ss:$16 sps:$4 sm:$0xff]  }
 0x6d3   : > { %9704 = vmatpush1.bf16.msra.mxu0 %v12874_v42  ;;  %9541 = vmatprep.subr.bf16.mxu1 %v12879_v25  ;;  %v12939_v42 = vld [vmem:[%s13889_s26 + $0x664] ss:$16 sps:$4 sm:$0xff]   ;;  %v12942_v25 = vld [vmem:[%s13889_s26 + $0x66c] ss:$16 sps:$4 sm:$0xff]  }
 0x6d4   : > { %9705 = vmatprep.subr.bf16.mxu0 %v12882_v63  ;;  %v12937_v63 = vld [vmem:[%s13889_s26 + $0x660] ss:$16 sps:$4 sm:$0xff]  }
 0x6d6   : > { %9542 = vmatpush1.bf16.msra.mxu1 %v12877_v7  ;;  %v12940_v7 = vld [vmem:[%s13889_s26 + $0x668] ss:$16 sps:$4 sm:$0xff]  }
 0x6d7   : > { %9706 = vmatpush1.bf16.msra.mxu0 %v12880_v32  ;;  %9543 = vmatprep.subr.bf16.mxu1 %v12885_v51  ;;  %v12945_v32 = vld [vmem:[%s13889_s26 + $0x684] ss:$16 sps:$4 sm:$0xff]   ;;  %v12948_v51 = vld [vmem:[%s13889_s26 + $0x68c] ss:$16 sps:$4 sm:$0xff]  }
 0x6d8   : > { %9707 = vmatprep.subr.bf16.mxu0 %v12888_v54  ;;  %v12943_v54 = vld [vmem:[%s13889_s26 + $0x680] ss:$16 sps:$4 sm:$0xff]  }
 0x6da   : > { %9544 = vmatpush1.bf16.msra.mxu1 %v12883_v1  ;;  %v12946_v1 = vld [vmem:[%s13889_s26 + $0x688] ss:$16 sps:$4 sm:$0xff]  }
 0x6db   : > { %9708 = vmatpush1.bf16.msra.mxu0 %v12886_v33  ;;  %9545 = vmatprep.subr.bf16.mxu1 %v12891_v62  ;;  %v12951_v33 = vld [vmem:[%s13889_s26 + $0x6a4] ss:$16 sps:$4 sm:$0xff]   ;;  %v12954_v62 = vld [vmem:[%s13889_s26 + $0x6ac] ss:$16 sps:$4 sm:$0xff]  }
 0x6dc   : > { %9709 = vmatprep.subr.bf16.mxu0 %v12894_v36  ;;  %v12949_v36 = vld [vmem:[%s13889_s26 + $0x6a0] ss:$16 sps:$4 sm:$0xff]  }
 0x6de   : > { %9546 = vmatpush1.bf16.msra.mxu1 %v12889_v13  ;;  %v12952_v13 = vld [vmem:[%s13889_s26 + $0x6a8] ss:$16 sps:$4 sm:$0xff]  }
 0x6df   : > { %9710 = vmatpush1.bf16.msra.mxu0 %v12892_v10  ;;  %9547 = vmatprep.subr.bf16.mxu1 %v12897_v39  ;;  %v12957_v10 = vld [vmem:[%s13889_s26 + $0x6c4] ss:$16 sps:$4 sm:$0xff]   ;;  %v12960_v39 = vld [vmem:[%s13889_s26 + $0x6cc] ss:$16 sps:$4 sm:$0xff]  }
 0x6e0   : > { %9711 = vmatprep.subr.bf16.mxu0 %v12900_v48  ;;  %v12955_v48 = vld [vmem:[%s13889_s26 + $0x6c0] ss:$16 sps:$4 sm:$0xff]  }
 0x6e2   : > { %9548 = vmatpush1.bf16.msra.mxu1 %v12895_v23  ;;  %v12958_v23 = vld [vmem:[%s13889_s26 + $0x6c8] ss:$16 sps:$4 sm:$0xff]  }
 0x6e3   : > { %9712 = vmatpush1.bf16.msra.mxu0 %v12898_v20  ;;  %9549 = vmatprep.subr.bf16.mxu1 %v12903_v52  ;;  %v12963_v20 = vld [vmem:[%s13889_s26 + $0x6e4] ss:$16 sps:$4 sm:$0xff]   ;;  %v12966_v52 = vld [vmem:[%s13889_s26 + $0x6ec] ss:$16 sps:$4 sm:$0xff]  }
 0x6e4   : > { %9713 = vmatprep.subr.bf16.mxu0 %v12906_v56  ;;  %v12961_v56 = vld [vmem:[%s13889_s26 + $0x6e0] ss:$16 sps:$4 sm:$0xff]  }
 0x6e6   : > { %9550 = vmatpush1.bf16.msra.mxu1 %v12901_v29  ;;  %v12964_v29 = vld [vmem:[%s13889_s26 + $0x6e8] ss:$16 sps:$4 sm:$0xff]  }
 0x6e7   : > { %9714 = vmatpush1.bf16.msra.mxu0 %v12904_v49  ;;  %9551 = vmatprep.subr.bf16.mxu1 %v12909_v27  ;;  %v12969_v49 = vld [vmem:[%s13889_s26 + $0x704] ss:$16 sps:$4 sm:$0xff]   ;;  %v12972_v27 = vld [vmem:[%s13889_s26 + $0x70c] ss:$16 sps:$4 sm:$0xff]  }
 0x6e8   : > { %9715 = vmatprep.subr.bf16.mxu0 %v12912_v41  ;;  %v12967_v41 = vld [vmem:[%s13889_s26 + $0x700] ss:$16 sps:$4 sm:$0xff]  }
 0x6ea   : > { %9552 = vmatpush1.bf16.msra.mxu1 %v12907_v55  ;;  %v12970_v55 = vld [vmem:[%s13889_s26 + $0x708] ss:$16 sps:$4 sm:$0xff]  }
 0x6eb   : > { %9716 = vmatpush1.bf16.msra.mxu0 %v12910_v30  ;;  %9553 = vmatprep.subr.bf16.mxu1 %v12915_v14  ;;  %v12975_v30 = vld [vmem:[%s13889_s26 + $0x724] ss:$16 sps:$4 sm:$0xff]   ;;  %v12978_v14 = vld [vmem:[%s13889_s26 + $0x72c] ss:$16 sps:$4 sm:$0xff]  }
 0x6ec   : > { %9717 = vmatprep.subr.bf16.mxu0 %v12918_v53  ;;  %v12973_v53 = vld [vmem:[%s13889_s26 + $0x720] ss:$16 sps:$4 sm:$0xff]  }
 0x6ee   : > { %9554 = vmatpush1.bf16.msra.mxu1 %v12913_v35  ;;  %v12976_v35 = vld [vmem:[%s13889_s26 + $0x728] ss:$16 sps:$4 sm:$0xff]  }
 0x6ef   : > { %9718 = vmatpush1.bf16.msra.mxu0 %v12916_v8  ;;  %9564 = vmatprep.subr.bf16.mxu1 %v12921_v28  ;;  %v12981_v8 = vld [vmem:[%s13889_s26 + $0x744] ss:$16 sps:$4 sm:$0xff]   ;;  %v12984_v28 = vld [vmem:[%s13889_s26 + $0x74c] ss:$16 sps:$4 sm:$0xff]  }
 0x6f0   : > { %9728 = vmatprep.subr.bf16.mxu0 %v12924_v2  ;;  %v12979_v2 = vld [vmem:[%s13889_s26 + $0x740] ss:$16 sps:$4 sm:$0xff]  }
 0x704   : > { %v7663_v61 = vpop.f32.mrb[24].mxu1 }
 0x705   : > { %v12326_v4 = vadd.f32 %v7663_v61, %v3834_v34  ;;  %v17110_v6 = vpop.f32.mrb[76].mxu0  ;;  %v7665_v44 = vpop.f32.mrb[25].mxu1  ;;  %v12982_v34 = vld [vmem:[%s13889_s26 + $0x748] ss:$16 sps:$4 sm:$0xff]   ;;  %v12985_v61 = vld [vmem:[%s13889_s26 + $0x760] ss:$16 sps:$4 sm:$0xff]  }
 0x706   : > { %v12327_v19 = vadd.f32 %v7665_v44, %v3838_v58  ;;  %v7870_v16 = vpop.f32.mrb[77].mxu0  ;;  %v7667_v12 = vpop.f32.mrb[26].mxu1  ;;  %v12987_v58 = vld [vmem:[%s13889_s26 + $0x764] ss:$16 sps:$4 sm:$0xff]  }
 0x707   : > { %v12329_v3 = vadd.f32 %v7870_v16, %v3846_v22  ;;  %v7872_v18 = vpop.f32.mrb[78].mxu0  ;;  %v7668_v40 = vpop.f32.mrb[27].mxu1  ;;  %v7879_v9 = vpack.c.bf16 %v12326_v4, %v12326_v4  ;;  %v12990_v22 = vld [vmem:[%s13889_s26 + $0x76c] ss:$16 sps:$4 sm:$0xff]   ;;  %v12988_v4 = vld [vmem:[%s13889_s26 + $0x768] ss:$16 sps:$4 sm:$0xff]  }
 0x708   : > { %v7880_v50 = vpack.c.bf16 %v12327_v19, %v12327_v19  ;;  %v7873_v26 = vpop.f32.mrb[79].mxu0  ;;  %v12993_v44 = vld [vmem:[%s13889_s26 + $0x784] ss:$16 sps:$4 sm:$0xff]   ;;  %v12996_v19 = vld [vmem:[%s13889_s26 + $0x78c] ss:$16 sps:$4 sm:$0xff]  }
 0x709   : > { %v7882_v11 = vpack.c.bf16 %v12329_v3, %v12329_v3  ;;  %v12991_v16 = vld [vmem:[%s13889_s26 + $0x780] ss:$16 sps:$4 sm:$0xff]   ;;  %v12994_v12 = vld [vmem:[%s13889_s26 + $0x788] ss:$16 sps:$4 sm:$0xff]   ;;  %v12999_v3 = vld [vmem:[%s13889_s26 + $0x7a4] ss:$16 sps:$4 sm:$0xff]  }
 0x70a   : > { %9555 = vmatprep.mubr.bf16.mxu1 %v7880_v50  ;;  %9719 = vmatprep.mubr.bf16.mxu0 %v7880_v50  ;;  %v13002_v18 = vld [vmem:[%s13889_s26 + $0x7ac] ss:$16 sps:$4 sm:$0xff]   ;;  %v12997_v40 = vld [vmem:[%s13889_s26 + $0x7a0] ss:$16 sps:$4 sm:$0xff]   ;;  %v13000_v50 = vld [vmem:[%s13889_s26 + $0x7a8] ss:$16 sps:$4 sm:$0xff]  }
 0x70b   : > { %9556 = vmatmul.mubr.bf16.vlgmr.msra.gmra.mrb[28].mxu1 %v7879_v9  ;;  %9720 = vmatmul.mubr.bf16.vlgmr.msra.gmra.mrb[80].mxu0 %v7879_v9  ;;  %v13005_v26 = vld [vmem:[%s13889_s26 + $0x7c4] ss:$16 sps:$4 sm:$0xff]   ;;  %v13006_v9 = vld [vmem:[%s13889_s26 + $0x7c8] ss:$16 sps:$4 sm:$0xff]  }
 0x70c   : > { %9565 = vmatpush1.bf16.msra.mxu1 %v12919_v5  ;;  %9729 = vmatpush1.bf16.msra.mxu0 %v12922_v31  ;;  %v13008_v5 = vld [vmem:[%s13889_s26 + $0x7cc] ss:$16 sps:$4 sm:$0xff]   ;;  %v13003_v31 = vld [vmem:[%s13889_s26 + $0x7c0] ss:$16 sps:$4 sm:$0xff]  }
 0x70d   : > { %9596 = vmatprep.mubr.bf16.mxu1 %v7882_v11  ;;  %9760 = vmatprep.mubr.bf16.mxu0 %v7882_v11  ;;  %v13011_v11 = vld [vmem:[%s13889_s26 + $0x7e4] ss:$16 sps:$4 sm:$0xff]  }
 0x70e   : > { %9566 = vmatprep.subr.bf16.mxu1 %v12927_v47  ;;  %9730 = vmatprep.subr.bf16.mxu0 %v12930_v37  ;;  %v13441_v47 = vld [vmem:[%s17371_s7] sm:$0xff] }
 0x70f   : > { %v3842_v37 = vrot.slane %v13441_v47, %v2464_v43 }
 0x710   : > { %9567 = vmatpush1.bf16.msra.mxu1 %v12925_v38  ;;  %9731 = vmatpush1.bf16.msra.mxu0 %v12928_v60  ;;  %v13014_v38 = vld [vmem:[%s13889_s26 + $0x7ec] ss:$16 sps:$4 sm:$0xff]   ;;  %v13009_v60 = vld [vmem:[%s13889_s26 + $0x7e0] ss:$16 sps:$4 sm:$0xff]  }
 0x711   : > { %9568 = vmatprep.subr.bf16.mxu1 %v12933_v46  ;;  %9732 = vmatprep.subr.bf16.mxu0 %v12936_v59  ;;  %v13012_v46 = vld [vmem:[%s13889_s26 + $0x7e8] ss:$16 sps:$4 sm:$0xff]   ;;  %v12328_v59 = vadd.f32 %v17110_v6, %v3842_v37  ;;  %v13023_v6 = vld [vmem:[%s13897_s15 + $0x24] ss:$8 sps:$4 sm:$0xff]   ;;  %s10866_s26 = sshll.u32 %s13885_s23, 7 }
 0x712   : > { %s17214_s8 = scalar_lea.vmem [#allocation6], %s10866_s26 }
 0x713   : > { %v7881_v43 = vpack.c.bf16 %v12328_v59, %v12328_v59 }
 0x714   : > { %9569 = vmatpush1.bf16.msra.mxu1 %v12931_v21  ;;  %9733 = vmatpush1.bf16.msra.mxu0 %v12934_v0  ;;  %v13017_v21 = vld [vmem:[%s13897_s15 + $0x4] ss:$8 sps:$4 sm:$0xff]   ;;  %v13020_v0 = vld [vmem:[%s13897_s15 + $0x14] ss:$8 sps:$4 sm:$0xff]  }
 0x715   : > { %9570 = vmatprep.subr.bf16.mxu1 %v12939_v42  ;;  %9734 = vmatprep.subr.bf16.mxu0 %v12942_v25  ;;  %v13018_v42 = vld [vmem:[%s13897_s15 + $0x10] ss:$8 sps:$4 sm:$0xff]   ;;  %v13021_v25 = vld [vmem:[%s13897_s15 + $0x20] ss:$8 sps:$4 sm:$0xff]  }
 0x718   : > { %9571 = vmatpush1.bf16.msra.mxu1 %v12937_v63  ;;  %9735 = vmatpush1.bf16.msra.mxu0 %v12940_v7  ;;  %v13026_v63 = vld [vmem:[%s13897_s15 + $0x34] ss:$8 sps:$4 sm:$0xff]   ;;  %v13024_v7 = vld [vmem:[%s13897_s15 + $0x30] ss:$8 sps:$4 sm:$0xff]  }
 0x719   : > { %9572 = vmatprep.subr.bf16.mxu1 %v12945_v32  ;;  %9736 = vmatprep.subr.bf16.mxu0 %v12948_v51  ;;  %v13029_v32 = vld [vmem:[%s13897_s15 + $0x44] ss:$8 sps:$4 sm:$0xff]   ;;  %v13027_v51 = vld [vmem:[%s13897_s15 + $0x40] ss:$8 sps:$4 sm:$0xff]  }
 0x71c   : > { %9573 = vmatpush1.bf16.msra.mxu1 %v12943_v54  ;;  %9737 = vmatpush1.bf16.msra.mxu0 %v12946_v1  ;;  %v13032_v54 = vld [vmem:[%s13897_s15 + $0x54] ss:$8 sps:$4 sm:$0xff]   ;;  %v13030_v1 = vld [vmem:[%s13897_s15 + $0x50] ss:$8 sps:$4 sm:$0xff]  }
 0x71d   : > { %9574 = vmatprep.subr.bf16.mxu1 %v12951_v33  ;;  %9738 = vmatprep.subr.bf16.mxu0 %v12954_v62  ;;  %v13035_v33 = vld [vmem:[%s13897_s15 + $0x64] ss:$8 sps:$4 sm:$0xff]   ;;  %v13033_v62 = vld [vmem:[%s13897_s15 + $0x60] ss:$8 sps:$4 sm:$0xff]  }
 0x720   : > { %9575 = vmatpush1.bf16.msra.mxu1 %v12949_v36  ;;  %9739 = vmatpush1.bf16.msra.mxu0 %v12952_v13  ;;  %v13038_v36 = vld [vmem:[%s13897_s15 + $0x74] ss:$8 sps:$4 sm:$0xff]   ;;  %v13036_v13 = vld [vmem:[%s13897_s15 + $0x70] ss:$8 sps:$4 sm:$0xff]  }
 0x721   : > { %9576 = vmatprep.subr.bf16.mxu1 %v12957_v10  ;;  %9740 = vmatprep.subr.bf16.mxu0 %v12960_v39  ;;  %v13041_v10 = vld [vmem:[%s13897_s15 + $0x84] ss:$8 sps:$4 sm:$0xff]   ;;  %v13039_v39 = vld [vmem:[%s13897_s15 + $0x80] ss:$8 sps:$4 sm:$0xff]  }
 0x724   : > { %9577 = vmatpush1.bf16.msra.mxu1 %v12955_v48  ;;  %9741 = vmatpush1.bf16.msra.mxu0 %v12958_v23  ;;  %v13044_v48 = vld [vmem:[%s13897_s15 + $0x94] ss:$8 sps:$4 sm:$0xff]   ;;  %v13042_v23 = vld [vmem:[%s13897_s15 + $0x90] ss:$8 sps:$4 sm:$0xff]  }
 0x725   : > { %9578 = vmatprep.subr.bf16.mxu1 %v12963_v20  ;;  %9742 = vmatprep.subr.bf16.mxu0 %v12966_v52  ;;  %v13047_v20 = vld [vmem:[%s13897_s15 + $0xa4] ss:$8 sps:$4 sm:$0xff]   ;;  %v13045_v52 = vld [vmem:[%s13897_s15 + $0xa0] ss:$8 sps:$4 sm:$0xff]  }
 0x728   : > { %9579 = vmatpush1.bf16.msra.mxu1 %v12961_v56  ;;  %9743 = vmatpush1.bf16.msra.mxu0 %v12964_v29  ;;  %v13050_v56 = vld [vmem:[%s13897_s15 + $0xb4] ss:$8 sps:$4 sm:$0xff]   ;;  %v13048_v29 = vld [vmem:[%s13897_s15 + $0xb0] ss:$8 sps:$4 sm:$0xff]  }
 0x729   : > { %9580 = vmatprep.subr.bf16.mxu1 %v12969_v49  ;;  %9744 = vmatprep.subr.bf16.mxu0 %v12972_v27  ;;  %v13053_v49 = vld [vmem:[%s13897_s15 + $0xc4] ss:$8 sps:$4 sm:$0xff]   ;;  %v13051_v27 = vld [vmem:[%s13897_s15 + $0xc0] ss:$8 sps:$4 sm:$0xff]  }
 0x72c   : > { %9581 = vmatpush1.bf16.msra.mxu1 %v12967_v41  ;;  %9745 = vmatpush1.bf16.msra.mxu0 %v12970_v55  ;;  %v13056_v41 = vld [vmem:[%s13897_s15 + $0xd4] ss:$8 sps:$4 sm:$0xff]   ;;  %v13054_v55 = vld [vmem:[%s13897_s15 + $0xd0] ss:$8 sps:$4 sm:$0xff]  }
 0x72d   : > { %9582 = vmatprep.subr.bf16.mxu1 %v12975_v30  ;;  %9746 = vmatprep.subr.bf16.mxu0 %v12978_v14  ;;  %v13059_v30 = vld [vmem:[%s13897_s15 + $0xe4] ss:$8 sps:$4 sm:$0xff]   ;;  %v13057_v14 = vld [vmem:[%s13897_s15 + $0xe0] ss:$8 sps:$4 sm:$0xff]  }
 0x730   : > { %9583 = vmatpush1.bf16.msra.mxu1 %v12973_v53  ;;  %9747 = vmatpush1.bf16.msra.mxu0 %v12976_v35  ;;  %v13062_v53 = vld [vmem:[%s13897_s15 + $0xf4] ss:$8 sps:$4 sm:$0xff]   ;;  %v13060_v35 = vld [vmem:[%s13897_s15 + $0xf0] ss:$8 sps:$4 sm:$0xff]  }
 0x731   : > { %9584 = vmatprep.subr.bf16.mxu1 %v12981_v8  ;;  %9748 = vmatprep.subr.bf16.mxu0 %v12984_v28  ;;  %v13065_v8 = vld [vmem:[%s13897_s15 + $0x104] ss:$8 sps:$4 sm:$0xff]  }
 0x732   : > { %v13111_v28 = vld [vmem:[%s17214_s8 + $0x40] sm:$0xff]  }
 0x734   : > { %9585 = vmatpush1.bf16.msra.mxu1 %v12979_v2  ;;  %9749 = vmatpush1.bf16.msra.mxu0 %v12982_v34  ;;  %v13112_v2 = vld [vmem:[%s17214_s8] sm:$0xff]   ;;  %v13113_v34 = vld [vmem:[%s17214_s8 + $0x48] sm:$0xff]  }
 0x735   : > { %9586 = vmatprep.subr.bf16.mxu1 %v12987_v58  ;;  %9750 = vmatprep.subr.bf16.mxu0 %v12990_v22  ;;  %v13114_v58 = vld [vmem:[%s17214_s8 + $0x8] sm:$0xff]   ;;  %v13115_v22 = vld [vmem:[%s17214_s8 + $0x50] sm:$0xff]  }
 0x738   : > { %9587 = vmatpush1.bf16.msra.mxu1 %v12985_v61  ;;  %9751 = vmatpush1.bf16.msra.mxu0 %v12988_v4  ;;  %v13116_v61 = vld [vmem:[%s17214_s8 + $0x10] sm:$0xff]   ;;  %v13117_v4 = vld [vmem:[%s17214_s8 + $0x58] sm:$0xff]  }
 0x739   : > { %9588 = vmatprep.subr.bf16.mxu1 %v12993_v44  ;;  %9752 = vmatprep.subr.bf16.mxu0 %v12996_v19  ;;  %v13118_v44 = vld [vmem:[%s17214_s8 + $0x18] sm:$0xff]   ;;  %v13119_v19 = vld [vmem:[%s17214_s8 + $0x60] sm:$0xff]  }
 0x73c   : > { %9589 = vmatpush1.bf16.msra.mxu1 %v12991_v16  ;;  %9753 = vmatpush1.bf16.msra.mxu0 %v12994_v12  ;;  %v13120_v16 = vld [vmem:[%s17214_s8 + $0x20] sm:$0xff]   ;;  %v13121_v12 = vld [vmem:[%s17214_s8 + $0x68] sm:$0xff]  }
 0x73d   : > { %9590 = vmatprep.subr.bf16.mxu1 %v12999_v3  ;;  %9754 = vmatprep.subr.bf16.mxu0 %v13002_v18  ;;  %v13122_v3 = vld [vmem:[%s17214_s8 + $0x28] sm:$0xff]   ;;  %v17232_v18 = vld [vmem:[%s1122_s2] sm:$0xf]  ;;  %s1135_s2 = scalar_lea.vmem %s17410_s25, %s17423_s0 }
 0x740   : > { %9591 = vmatpush1.bf16.msra.mxu1 %v12997_v40  ;;  %9755 = vmatpush1.bf16.msra.mxu0 %v13000_v50  ;;  %v8144_v40 = vrot.slane %v17232_v18, %v14996_v24  ;;  %v8148_v50 = vrot.slane %v17232_v18, %v15004_v15 }
 0x741   : > { %9592 = vmatprep.subr.bf16.mxu1 %v13005_v26  ;;  %9756 = vmatprep.subr.bf16.mxu0 %v13008_v5  ;;  %v8156_v26 = vrot.slane %v17232_v18, %v15015_v57 }
 0x744   : > { %9593 = vmatpush1.bf16.msra.mxu1 %v13003_v31  ;;  %9757 = vmatpush1.bf16.msra.mxu0 %v13006_v9 }
 0x745   : > { %9594 = vmatprep.subr.bf16.mxu1 %v13011_v11  ;;  %9758 = vmatprep.subr.bf16.mxu0 %v13014_v38 }
 0x748   : > { %9595 = vmatpush1.bf16.msra.mxu1 %v13009_v60  ;;  %9759 = vmatpush1.bf16.msra.mxu0 %v13012_v46 }
 0x749   : > { %10173 = vmatprep.subr.bf16.mxu1 %v13017_v21  ;;  %12174 = vmatprep.subr.bf16.mxu0 %v13111_v28  ;;  %v13107_v28 = vld [vmem:[%s13897_s15 + $0x1e4] ss:$8 sps:$4 sm:$0xff]  }
 0x74b   : > { %9597 = vmatmul.mubr.bf16.vlgmr.msra.gmra.mrb[28].mxu1 %v7881_v43  ;;  %9761 = vmatmul.mubr.bf16.vlgmr.msra.gmra.mrb[80].mxu0 %v7881_v43 }
 0x74c   : > { %10174 = vmatpush1.bf16.msra.mxu1 %v13015_v45  ;;  %12175 = vmatpush3.bf16.msra.mxu0 %v13112_v2  ;;  %v13105_v2 = vld [vmem:[%s13897_s15 + $0x1e0] ss:$8 sps:$4 sm:$0xff]  }
 0x74d   : > { %10175 = vmatprep.subr.bf16.mxu1 %v13020_v0  ;;  %12176 = vmatprep.subr.bf16.mxu0 %v13113_v34 }
 0x750   : > { %10176 = vmatpush1.bf16.msra.mxu1 %v13018_v42  ;;  %12177 = vmatpush3.bf16.msra.mxu0 %v13114_v58  ;;  %v13063_v42 = vld [vmem:[%s13897_s15 + $0x100] ss:$8 sps:$4 sm:$0xff]   ;;  %v13110_v58 = vld [vmem:[%s13897_s15 + $0x1f4] ss:$8 sps:$4 sm:$0xff]  }
 0x751   : > { %10177 = vmatprep.subr.bf16.mxu1 %v13023_v6  ;;  %12178 = vmatprep.subr.bf16.mxu0 %v13115_v22  ;;  %v13108_v22 = vld [vmem:[%s13897_s15 + $0x1f0] ss:$8 sps:$4 sm:$0xff]  }
 0x754   : > { %10178 = vmatpush1.bf16.msra.mxu1 %v13021_v25  ;;  %12179 = vmatpush3.bf16.msra.mxu0 %v13116_v61  ;;  %v13068_v25 = vld [vmem:[%s13897_s15 + $0x114] ss:$8 sps:$4 sm:$0xff]  }
 0x755   : > { %10179 = vmatprep.subr.bf16.mxu1 %v13026_v63  ;;  %12180 = vmatprep.subr.bf16.mxu0 %v13117_v4  ;;  %v13123_v4 = vld [vmem:[%s17214_s8 + $0x70] sm:$0xff]  }
 0x758   : > { %10180 = vmatpush1.bf16.msra.mxu1 %v13024_v7  ;;  %12181 = vmatpush3.bf16.msra.mxu0 %v13118_v44  ;;  %v13066_v7 = vld [vmem:[%s13897_s15 + $0x110] ss:$8 sps:$4 sm:$0xff]  }
 0x759   : > { %10181 = vmatprep.subr.bf16.mxu1 %v13029_v32  ;;  %12182 = vmatprep.subr.bf16.mxu0 %v13119_v19  ;;  %v13071_v32 = vld [vmem:[%s13897_s15 + $0x124] ss:$8 sps:$4 sm:$0xff]   ;;  %v13124_v44 = vld [vmem:[%s17214_s8 + $0x30] sm:$0xff]   ;;  %v13125_v19 = vld [vmem:[%s17214_s8 + $0x78] sm:$0xff]  }
 0x75c   : > { %10182 = vmatpush1.bf16.msra.mxu1 %v13027_v51  ;;  %12183 = vmatpush3.bf16.msra.mxu0 %v13120_v16  ;;  %v13069_v51 = vld [vmem:[%s13897_s15 + $0x120] ss:$8 sps:$4 sm:$0xff]   ;;  %v13126_v16 = vld [vmem:[%s17214_s8 + $0x38] sm:$0xff]   ;;  %s17409_s8 = sld [smem:[#allocation19_spill]] }
 0x75d   : > { %10183 = vmatprep.subr.bf16.mxu1 %v13032_v54  ;;  %12184 = vmatprep.subr.bf16.mxu0 %v13121_v12  ;;  %v13074_v54 = vld [vmem:[%s13897_s15 + $0x134] ss:$8 sps:$4 sm:$0xff]   ;;  %v13547_v12 = vmov 0.0  }
 0x760   : > { %10184 = vmatpush1.bf16.msra.mxu1 %v13030_v1  ;;  %12185 = vmatpush3.bf16.msra.mxu0 %v13122_v3  ;;  %v13072_v1 = vld [vmem:[%s13897_s15 + $0x130] ss:$8 sps:$4 sm:$0xff]   ;;  %v9841_v3 = vld [vmem:[%s1128_s30] sm:$0x3] }
 0x761   : > { %10185 = vmatprep.subr.bf16.mxu1 %v13035_v33  ;;  %v13077_v33 = vld [vmem:[%s13897_s15 + $0x144] ss:$8 sps:$4 sm:$0xff]   ;;  %12186 = vmatprep.subr.bf16.mxu0 %v13123_v4 }
 0x762   : > { %s1132_s27 = scalar_lea.vmem %s17409_s8, %s17423_s0 }
 0x764   : > { %10186 = vmatpush1.bf16.msra.mxu1 %v13033_v62  ;;  %v13075_v62 = vld [vmem:[%s13897_s15 + $0x140] ss:$8 sps:$4 sm:$0xff]   ;;  %12187 = vmatpush3.bf16.msra.mxu0 %v13124_v44 }
 0x765   : > { %10187 = vmatprep.subr.bf16.mxu1 %v13038_v36  ;;  %v13080_v36 = vld [vmem:[%s13897_s15 + $0x154] ss:$8 sps:$4 sm:$0xff]   ;;  %12188 = vmatprep.subr.bf16.mxu0 %v13125_v19 }
 0x768   : > { %10188 = vmatpush1.bf16.msra.mxu1 %v13036_v13  ;;  %v13078_v13 = vld [vmem:[%s13897_s15 + $0x150] ss:$8 sps:$4 sm:$0xff]   ;;  %12189 = vmatpush3.bf16.msra.mxu0 %v13126_v16 }
 0x769   : > { %10189 = vmatprep.subr.bf16.mxu1 %v13041_v10  ;;  %v13083_v10 = vld [vmem:[%s13897_s15 + $0x164] ss:$8 sps:$4 sm:$0xff]   ;;  %12282 = vmatprep.subr.bf16.mxu0 %v13547_v12 }
 0x76c   : > { %10190 = vmatpush1.bf16.msra.mxu1 %v13039_v39  ;;  %v13081_v39 = vld [vmem:[%s13897_s15 + $0x160] ss:$8 sps:$4 sm:$0xff]  }
 0x76d   : > { %10191 = vmatprep.subr.bf16.mxu1 %v13044_v48  ;;  %v13086_v48 = vld [vmem:[%s13897_s15 + $0x174] ss:$8 sps:$4 sm:$0xff]  }
 0x770   : > { %10192 = vmatpush1.bf16.msra.mxu1 %v13042_v23  ;;  %v13084_v23 = vld [vmem:[%s13897_s15 + $0x170] ss:$8 sps:$4 sm:$0xff]  }
 0x771   : > { %10193 = vmatprep.subr.bf16.mxu1 %v13047_v20  ;;  %v13089_v20 = vld [vmem:[%s13897_s15 + $0x184] ss:$8 sps:$4 sm:$0xff]  }
 0x774   : > { %10194 = vmatpush1.bf16.msra.mxu1 %v13045_v52  ;;  %v13087_v52 = vld [vmem:[%s13897_s15 + $0x180] ss:$8 sps:$4 sm:$0xff]  }
 0x775   : > { %10195 = vmatprep.subr.bf16.mxu1 %v13050_v56  ;;  %v13092_v56 = vld [vmem:[%s13897_s15 + $0x194] ss:$8 sps:$4 sm:$0xff]  }
 0x778   : > { %10196 = vmatpush1.bf16.msra.mxu1 %v13048_v29  ;;  %v13090_v29 = vld [vmem:[%s13897_s15 + $0x190] ss:$8 sps:$4 sm:$0xff]  }
 0x779   : > { %10197 = vmatprep.subr.bf16.mxu1 %v13053_v49  ;;  %v13095_v49 = vld [vmem:[%s13897_s15 + $0x1a4] ss:$8 sps:$4 sm:$0xff]  }
 0x77c   : > { %10198 = vmatpush1.bf16.msra.mxu1 %v13051_v27  ;;  %v13093_v27 = vld [vmem:[%s13897_s15 + $0x1a0] ss:$8 sps:$4 sm:$0xff]  }
 0x77d   : > { %10199 = vmatprep.subr.bf16.mxu1 %v13056_v41  ;;  %v13098_v41 = vld [vmem:[%s13897_s15 + $0x1b4] ss:$8 sps:$4 sm:$0xff]  }
 0x780   : > { %10200 = vmatpush1.bf16.msra.mxu1 %v13054_v55  ;;  %v13096_v55 = vld [vmem:[%s13897_s15 + $0x1b0] ss:$8 sps:$4 sm:$0xff]  }
 0x781   : > { %10201 = vmatprep.subr.bf16.mxu1 %v13059_v30  ;;  %v13101_v30 = vld [vmem:[%s13897_s15 + $0x1c4] ss:$8 sps:$4 sm:$0xff]  }
 0x784   : > { %10202 = vmatpush1.bf16.msra.mxu1 %v13057_v14  ;;  %v13099_v14 = vld [vmem:[%s13897_s15 + $0x1c0] ss:$8 sps:$4 sm:$0xff]  }
 0x785   : > { %10203 = vmatprep.subr.bf16.mxu1 %v13062_v53  ;;  %v13104_v53 = vld [vmem:[%s13897_s15 + $0x1d4] ss:$8 sps:$4 sm:$0xff]  }
 0x788   : > { %10204 = vmatpush1.bf16.msra.mxu1 %v13060_v35  ;;  %v13102_v35 = vld [vmem:[%s13897_s15 + $0x1d0] ss:$8 sps:$4 sm:$0xff]   ;;  %s17284_s15 = scalar_lea.vmem [#allocation7], %s10867_s19 }
 0x789   : > { %10214 = vmatprep.subr.bf16.mxu1 %v13065_v8  ;;  %v8152_v8 = vrot.slane %v17232_v18, %v15103_v17  ;;  %v9846_v18 = vrot.slane %v9841_v3, %v14996_v24  ;;  %v13128_v24 = vld [vmem:[%s17284_s15 + $0x8] sm:$0xff]  }
 0x81e   : > { %v9598_v5 = vpop.f32.mrb[28].mxu1  ;;  %v17240_v31 = vpop.f32.mrb[80].mxu0 }
 0x81f   : > { %v12330_v9 = vadd.f32 %v9598_v5, %v8144_v40  ;;  %v9600_v47 = vpop.f32.mrb[29].mxu1  ;;  %v9764_v37 = vpop.f32.mrb[81].mxu0  ;;  %v12332_v34 = vadd.f32 %v17240_v31, %v8152_v8  ;;  %v9850_v40 = vrot.slane %v9841_v3, %v15004_v15  ;;  %v13129_v15 = vld [vmem:[%s17284_s15 + $0x10] sm:$0xff]  }
 0x820   : > { %v12331_v11 = vadd.f32 %v9600_v47, %v8148_v50  ;;  %v12333_v38 = vadd.f32 %v9764_v37, %v8156_v26  ;;  %v9602_v60 = vpop.f32.mrb[30].mxu1  ;;  %v9766_v46 = vpop.f32.mrb[82].mxu0 }
 0x821   : > { %v9769_v59 = vmax.f32 %v12330_v9, 0.0  ;;  %v9603_v21 = vpop.f32.mrb[31].mxu1  ;;  %v9767_v45 = vpop.f32.mrb[83].mxu0  ;;  %v9771_v61 = vmax.f32 %v12332_v34, 0.0  ;;  %v13127_v60 = vld [vmem:[%s17284_s15] sm:$0xff]  }
 0x822   : > { %v9770_v43 = vmax.f32 %v12331_v11, 0.0  ;;  %v9772_v57 = vmax.f32 %v12333_v38, 0.0  ;;  %v13131_v21 = vld [vmem:[%s17284_s15 + $0x20] sm:$0xff]   ;;  %v13132_v45 = vld [vmem:[%s17284_s15 + $0x28] sm:$0xff]  }
 0x823   : > { %v9773_v6 = vpack.c.bf16 %v9769_v59, %v9769_v59  ;;  %v9775_v17 = vpack.c.bf16 %v9771_v61, %v9771_v61  ;;  %v13130_v59 = vld [vmem:[%s17284_s15 + $0x18] sm:$0xff]  }
 0x824   : > { %v9774_v0 = vpack.c.bf16 %v9770_v43, %v9770_v43  ;;  %v9776_v63 = vpack.c.bf16 %v9772_v57, %v9772_v57  ;;  %v13133_v43 = vld [vmem:[%s17284_s15 + $0x30] sm:$0xff]   ;;  %v13134_v57 = vld [vmem:[%s17284_s15 + $0x38] sm:$0xff]  }
 0x826   : > { %10205 = vmatprep.mubr.bf16.mxu1 %v9774_v0 }
 0x827   : > { %10206 = vmatmul.mubr.bf16.vlgmr.msra.gmra.mrb[32].mxu1 %v9773_v6 }
 0x828   : > { %10215 = vmatpush1.bf16.msra.mxu1 %v13063_v42  ;;  %10246 = vmatprep.mubr.bf16.mxu1 %v9776_v63  ;;  %v12057_v42 = vld [vmem:[%s1132_s27] ss:$0 sm:$0xff] }
 0x829   : > { %10216 = vmatprep.subr.bf16.mxu1 %v13068_v25 }
 0x82c   : > { %10217 = vmatpush1.bf16.msra.mxu1 %v13066_v7 }
 0x82d   : > { %10218 = vmatprep.subr.bf16.mxu1 %v13071_v32 }
 0x830   : > { %10219 = vmatpush1.bf16.msra.mxu1 %v13069_v51 }
 0x831   : > { %10220 = vmatprep.subr.bf16.mxu1 %v13074_v54  ;;  %v13135_v54 = vld [vmem:[%s17312_s13] sm:$0xff]  }
 0x834   : > { %10221 = vmatpush1.bf16.msra.mxu1 %v13072_v1 }
 0x835   : > { %10222 = vmatprep.subr.bf16.mxu1 %v13077_v33  ;;  %v13136_v33 = vld [vmem:[%s17312_s13 + $0x8] sm:$0xff]  }
 0x838   : > { %10223 = vmatpush1.bf16.msra.mxu1 %v13075_v62  ;;  %v13137_v62 = vld [vmem:[%s17312_s13 + $0x10] sm:$0xff]  }
 0x839   : > { %10224 = vmatprep.subr.bf16.mxu1 %v13080_v36  ;;  %v13138_v36 = vld [vmem:[%s17312_s13 + $0x18] sm:$0xff]  }
 0x83c   : > { %10225 = vmatpush1.bf16.msra.mxu1 %v13078_v13  ;;  %v13139_v13 = vld [vmem:[%s17312_s13 + $0x20] sm:$0xff]  }
 0x83d   : > { %10226 = vmatprep.subr.bf16.mxu1 %v13083_v10  ;;  %v13140_v10 = vld [vmem:[%s17312_s13 + $0x28] sm:$0xff]  }
 0x840   : > { %10227 = vmatpush1.bf16.msra.mxu1 %v13081_v39  ;;  %v13141_v39 = vld [vmem:[%s17312_s13 + $0x30] sm:$0xff]  }
 0x841   : > { %10228 = vmatprep.subr.bf16.mxu1 %v13086_v48  ;;  %v13142_v48 = vld [vmem:[%s17312_s13 + $0x38] sm:$0xff]   ;;  %s17412_s13 = sld [smem:[#allocation22_spill]] }
 0x844   : > { %10229 = vmatpush1.bf16.msra.mxu1 %v13084_v23  ;;  %v12074_v23 = vld [vmem:[%s1135_s2] ss:$0 sm:$0xff] }
 0x845   : > { %10230 = vmatprep.subr.bf16.mxu1 %v13089_v20 }
 0x847   : > { %s1142_s20 = scalar_lea.vmem %s17412_s13, %s10871_s1 }
 0x848   : > { %10231 = vmatpush1.bf16.msra.mxu1 %v13087_v52 }
 0x849   : > { %10232 = vmatprep.subr.bf16.mxu1 %v13092_v56 }
 0x84c   : > { %10233 = vmatpush1.bf16.msra.mxu1 %v13090_v29 }
 0x84d   : > { %10234 = vmatprep.subr.bf16.mxu1 %v13095_v49 }
 0x850   : > { %10235 = vmatpush1.bf16.msra.mxu1 %v13093_v27 }
 0x851   : > { %10236 = vmatprep.subr.bf16.mxu1 %v13098_v41 }
 0x854   : > { %10237 = vmatpush1.bf16.msra.mxu1 %v13096_v55  ;;  %v12083_v55 = vld [vmem:[%s1138_s22] ss:$0 sm:$0xff] }
 0x855   : > { %10238 = vmatprep.subr.bf16.mxu1 %v13101_v30 }
 0x858   : > { %10239 = vmatpush1.bf16.msra.mxu1 %v13099_v14 }
 0x859   : > { %10240 = vmatprep.subr.bf16.mxu1 %v13104_v53 }
 0x85c   : > { %10241 = vmatpush1.bf16.msra.mxu1 %v13102_v35 }
 0x85d   : > { %10242 = vmatprep.subr.bf16.mxu1 %v13107_v28 }
 0x860   : > { %10243 = vmatpush1.bf16.msra.mxu1 %v13105_v2 }
 0x861   : > { %10244 = vmatprep.subr.bf16.mxu1 %v13110_v58 }
 0x864   : > { %10245 = vmatpush1.bf16.msra.mxu1 %v13108_v22 }
 0x867   : > { %10247 = vmatmul.mubr.bf16.vlgmr.msra.gmra.mrb[32].mxu1 %v9775_v17 }
 0x93a   : > { %v10248_v50 = vpop.f32.mrb[32].mxu1 }
 0x93b   : > { %v12334_v26 = vadd.f32 %v10248_v50, %v9846_v18  ;;  %v10250_v5 = vpop.f32.mrb[33].mxu1 }
 0x93c   : > { %v12335_v31 = vadd.f32 %v10250_v5, %v9850_v40  ;;  %v10252_v9 = vpop.f32.mrb[34].mxu1 }
 0x93d   : > { %v10255_v47 = vmax.f32 %v12334_v26, 0.0  ;;  %v10253_v37 = vpop.f32.mrb[35].mxu1 }
 0x93e   : > { %v10256_v11 = vmax.f32 %v12335_v31, 0.0 }
 0x93f   : > { %v10257_v46 = vpack.c.bf16 %v10255_v47, %v10255_v47 }
 0x940   : > { %v10258_v38 = vpack.c.bf16 %v10256_v11, %v10256_v11 }
 0x942   : > { %10426 = vmatprep.mubr.bf16.mxu0 %v10258_v38 }
 0x943   : > { %10427 = vmatmul.mubr.bf16.vlgmr.msra.gmra.mrb[84].mxu0 %v10257_v46 }
 0x944   : > { %12283 = vmatpush3.bf16.msra.mxu0 %v13127_v60  ;;  %12298 = vmatprep.mubr.msk.bf16.mxu0 %vm13548_vm1, %v13547_v12 }
 0x945   : > { %12284 = vmatprep.subr.bf16.mxu0 %v13547_v12 }
 0x948   : > { %12285 = vmatpush3.bf16.msra.mxu0 %v13128_v24 }
 0x949   : > { %12286 = vmatprep.subr.bf16.mxu0 %v13547_v12 }
 0x94c   : > { %12287 = vmatpush3.bf16.msra.mxu0 %v13129_v15 }
 0x94d   : > { %12288 = vmatprep.subr.bf16.mxu0 %v13547_v12 }
 0x950   : > { %12289 = vmatpush3.bf16.msra.mxu0 %v13130_v59 }
 0x951   : > { %12290 = vmatprep.subr.bf16.mxu0 %v13547_v12 }
 0x954   : > { %12291 = vmatpush3.bf16.msra.mxu0 %v13131_v21 }
 0x955   : > { %12292 = vmatprep.subr.bf16.mxu0 %v13547_v12 }
 0x958   : > { %12293 = vmatpush3.bf16.msra.mxu0 %v13132_v45 }
 0x959   : > { %12294 = vmatprep.subr.bf16.mxu0 %v13547_v12 }
 0x95c   : > { %12295 = vmatpush3.bf16.msra.mxu0 %v13133_v43 }
 0x95d   : > { %12296 = vmatprep.subr.bf16.mxu0 %v13547_v12 }
 0x960   : > { %12297 = vmatpush3.bf16.msra.mxu0 %v13134_v57 }
 0x961   : > { %12302 = vmatprep.subr.bf16.mxu0 %v13547_v12 }
 0xa16   : > { %v12190_v0 = vpop.f32.mrb[84].mxu0 }
 0xa17   : > { %v12191_v6 = vpop.f32.mrb[85].mxu0 }
 0xa18   : > { %v12192_v25 = vadd.f32 %v12191_v6, %v12190_v0  ;;  %v12193_v63 = vpop.f32.mrb[86].mxu0 }
 0xa19   : > { %v12194_v7 = vpop.f32.mrb[87].mxu0 }
 0xa1a   : > { %v10429_v32 = vadd.f32 %v12192_v25, %v12057_v42 }
 0xa1c   : > { %v10434_v51 = vmax.f32 %v10429_v32, 0.0 }
 0xa1e   : > { %v10435_v1 = vpack.c.bf16 %v10434_v51, %v10434_v51 }
 0xa20   : > { %12299 = vmatmul.mubr.bf16.vlgmr.msra.gmra.mrb[88].mxu0 %v10435_v1 }
 0xa21   : > { %12303 = vmatpush3.bf16.msra.mxu0 %v13135_v54  ;;  %12318 = vmatprep.mubr.msk.bf16.mxu0 %vm13548_vm1, %v13547_v12 }
 0xa22   : > { %12304 = vmatprep.subr.bf16.mxu0 %v13547_v12 }
 0xa25   : > { %12305 = vmatpush3.bf16.msra.mxu0 %v13136_v33 }
 0xa26   : > { %12306 = vmatprep.subr.bf16.mxu0 %v13547_v12 }
 0xa29   : > { %12307 = vmatpush3.bf16.msra.mxu0 %v13137_v62 }
 0xa2a   : > { %12308 = vmatprep.subr.bf16.mxu0 %v13547_v12 }
 0xa2d   : > { %12309 = vmatpush3.bf16.msra.mxu0 %v13138_v36 }
 0xa2e   : > { %12310 = vmatprep.subr.bf16.mxu0 %v13547_v12 }
 0xa31   : > { %12311 = vmatpush3.bf16.msra.mxu0 %v13139_v13 }
 0xa32   : > { %12312 = vmatprep.subr.bf16.mxu0 %v13547_v12 }
 0xa35   : > { %12313 = vmatpush3.bf16.msra.mxu0 %v13140_v10 }
 0xa36   : > { %12314 = vmatprep.subr.bf16.mxu0 %v13547_v12 }
 0xa39   : > { %12315 = vmatpush3.bf16.msra.mxu0 %v13141_v39 }
 0xa3a   : > { %12316 = vmatprep.subr.bf16.mxu0 %v13547_v12 }
 0xa3d   : > { %12317 = vmatpush3.bf16.msra.mxu0 %v13142_v48 }
 0xaf3   : > { %v10541_v20 = vpop.f32.mrb[88].mxu0 }
 0xaf4   : > { %v10542_v52 = vadd.f32 %v12074_v23, %v10541_v20  ;;  %v12300_v56 = vpop.f32.mrb[89].mxu0 }
 0xaf5   : > { %v10544_v29 = vpop.f32.mrb[90].mxu0 }
 0xaf6   : > { %v10547_v49 = vmax.f32 %v10542_v52, 0.0  ;;  %v12301_v27 = vpop.f32.mrb[91].mxu0 }
 0xaf8   : > { %v10548_v41 = vpack.c.bf16 %v10547_v49, %v10547_v49 }
 0xafa   : > { %12319 = vmatmul.mubr.bf16.vlgmr.msra.gmra.mrb[92].mxu0 %v10548_v41 }
 0xbcd   : > { %v10654_v30 = vpop.f32.mrb[92].mxu0 }
 0xbce   : > { %v10655_v14 = vadd.f32 %v12083_v55, %v10654_v30  ;;  %v12320_v53 = vpop.f32.mrb[93].mxu0 }
 0xbcf   : > { %v10657_v35 = vpop.f32.mrb[94].mxu0 }
 0xbd0   : > { %10660 = vst [vmem:[%s1142_s20] sm:$0xff] %v10655_v14  ;;  %v12321_v8 = vpop.f32.mrb[95].mxu0 }
 0xbd1 PF: > { %s17413_s30 = sld [smem:[#allocation12_spill]]  ;;  %s17414_s26 = sld [smem:[#allocation11_spill]] }
 0xbd2   : > { %s17415_s29 = sld [smem:[#allocation13_spill]]  ;;  %s17416_s27 = smov %s13528_s28 }
 0xbd7   : > { %p31_p8 = scmp.ge.s32.totalorder %s17413_s30, 8   ;;  %s17417_s28 = smov %s17414_s26 }
 0xbd9   :  { %33 = sbr.rel (!%p31_p8) target bundleno = 15 (0xf), region = 307 }
 0xbe0   :  { %10680 = vsyncpa [#allocation3], 1 }
 0xbe1   :  { %10682 = vsyncpa [#allocation3 + $0x1], 1 }
 0xbe2   :  { %10683 = vsyncpa [#allocation5], 1 }
 0xbe3   :  { %10685 = vsyncpa [#allocation5 + $0x1], 1 }

</bundles_post_ra>
